<compile_context>
chip_gen: v6e
topology: v6e:2x2x1
jax: 0.10.0
libtpu: 0.0.40
codegen_flags: <defaults>
</compile_context>

<pallas_src>
import jax
import jax.numpy as jnp
import numpy as np
from jax.experimental import pallas as pl
from jax.experimental.pallas import tpu as pltpu


def _round_up(v, m):
    return (v + m - 1) // m * m


# ------------------------------- Pallas kernel ------------------------------

def _make_encoder_kernel(BB, H, W, C, E, LEXT):
    """Builds the fused encoder kernel for a batch block of BB elements.

    Activation layout: channels-first, flat padded spatial index on the lane
    axis:  act[c, E + hp*Wp + wp]  with a zero halo (hp/wp < 2 or >= Hp-2) and
    zero extension strips [0, E) and [E+P, LEXT) so every 5x5 tap is a
    contiguous lane slice.
    """
    Hp, Wp = H + 4, W + 4
    P = Hp * Wp
    # Tap offsets in the flat (hp*Wp + wp) index space, ky-major / kx-minor —
    # matches the HWIO weight reshape done in the wrapper.
    TAPS = tuple((ky - 2) * Wp + (kx - 2) for ky in range(5) for kx in range(5))

    def kernel(p1_ref, w1_ref, w2_ref, w3_ref, w4_ref, b_ref, mask_ref,
               pos_ref, o_ref, act_a, act_b):
        mask = mask_ref[...]                      # [1, P] f32 : 1 interior, 0 halo
        pos = pos_ref[...]                        # [C, P] f32 (zero on halo)

        # Zero ONLY the extension strips.  They are read only by halo output
        # positions (which the mask zeroes anyway) but must be finite so stale
        # NaN bit patterns cannot leak through relu()*0.  Unconditional every
        # grid step: stays correct when the batch axis is split across
        # TensorCores and scratch persists across grid iterations.
        zl = jnp.zeros((C, E), jnp.bfloat16)
        zt = jnp.zeros((C, LEXT - E - P), jnp.bfloat16)
        act_a[:, 0:E] = zl
        act_a[:, E + P:LEXT] = zt
        act_b[:, 0:E] = zl
        act_b[:, E + P:LEXT] = zt

        def epilogue(acc, layer):
            # bias + ReLU in f32 (v5e has no bf16 VPU path); mask re-zeroes the
            # 'same'-padding halo for the next layer.
            return jnp.maximum(acc + b_ref[layer], 0.0) * mask

        def conv_from_scratch(src, w_ref, layer):
            # sum over 25 taps of  W[ky,kx]^T [C,Cin]  @  shifted activation
            # slice [Cin, P].  Each RHS is a contiguous static lane slice — no
            # concatenation, no windowed reshape, accumulator is 16 dense vregs.
            acc = jnp.zeros((C, P), jnp.float32)
            for t, off in enumerate(TAPS):
                s = E + off                                       # static offset
                acc = acc + jnp.dot(w_ref[t], src[:, s:s + P],
                                    preferred_element_type=jnp.float32)
            return epilogue(acc, layer)

        for bb in range(BB):                      # static unroll over batch block
            # conv1: im2col done by XLA in the wrapper -> one [C,75]x[75,P] matmul.
            acc = jnp.dot(w1_ref[...], p1_ref[bb],
                          preferred_element_type=jnp.float32)
            act_a[:, E:E + P] = epilogue(acc, 0).astype(jnp.bfloat16)
            # conv2 / conv3: ping-pong between the two VMEM-resident buffers.
            act_b[:, E:E + P] = conv_from_scratch(act_a, w2_ref, 1).astype(jnp.bfloat16)
            act_a[:, E:E + P] = conv_from_scratch(act_b, w3_ref, 2).astype(jnp.bfloat16)
            # conv4 + soft position embedding; halo positions (zeroed) are
            # dropped by the wrapper-side interior slice.
            o_ref[bb] = conv_from_scratch(act_a, w4_ref, 3) + pos

    return kernel


# ------------------------------- JAX wrapper --------------------------------

def encoder_forward_pallas(x, params, grid4, *, batch_block=1):
    """x: [B, H, W, 3] float32 (NHWC, as the PyTorch module's input).

    batch_block: elements processed per grid step.  1 (default) -> grid=(B,)
    with 'parallel' semantics so v7x megacore takes one element per core;
    on single-TC parts (v5e/v6e) pass batch_block=B to amortize the per-step
    overhead in a single grid step.
    """
    B, H, W, Cin = x.shape
    C = params["w1"].shape[-1]
    Hp, Wp = H + 4, W + 4
    P = Hp * Wp
    BB = batch_block
    assert B % BB == 0, (B, BB)

    # Flat-shift halo: |tap offset| <= 2*Wp + 2.  Lead extension rounded up to a
    # lane tile (128) so every interior writeback starts lane-aligned.
    halo = 2 * Wp + 2
    E = _round_up(max(halo, 128), 128)
    LEXT = _round_up(E + P + halo, 128)

    # ---- wrapper-side prep (tiny; XLA work overlaps with the kernel's DMA) ----
    # Layer-1 im2col in padded-flat indexing (Cin=3 lane packing left to XLA).
    xb = jnp.pad(x.astype(jnp.bfloat16), ((0, 0), (4, 4), (4, 4), (0, 0)))
    cols = [xb[:, ky:ky + Hp, kx:kx + Wp, :] for ky in range(5) for kx in range(5)]
    patches1 = jnp.concatenate(cols, axis=-1).reshape(B, P, 25 * Cin)
    patches1 = jnp.transpose(patches1, (0, 2, 1))               # [B, 25*Cin, P] bf16

    # Weights: channels-first per-tap blocks (kernel indexes the leading tap dim).
    w1 = jnp.transpose(params["w1"].reshape(25 * Cin, C)).astype(jnp.bfloat16)  # [C, 75]

    def tap_w(w):  # [5,5,C,C] HWIO -> [25, Cout, Cin] bf16
        return jnp.transpose(w.reshape(25, C, C), (0, 2, 1)).astype(jnp.bfloat16)

    w2, w3, w4 = tap_w(params["w2"]), tap_w(params["w3"]), tap_w(params["w4"])

    biases = jnp.concatenate(
        [params["b1"], params["b2"], params["b3"], params["b4"]],
        axis=0).astype(jnp.float32)[:, :, None]                  # [4, C, 1]

    # Interior mask: 1 inside the 'same' padding, 0 on the 2-wide halo.
    mask = jnp.zeros((Hp, Wp), jnp.float32).at[2:Hp - 2, 2:Wp - 2].set(1.0)
    mask = mask.reshape(1, P)

    # SoftPositionEmbed is batch independent: precompute grid @ We + be once,
    # channels-first and padded-flat, and fold the add into conv4's epilogue.
    pos = grid4.reshape(H * W, 4) @ params["we"] + params["be"]  # [H*W, C]
    pos = jnp.pad(jnp.transpose(pos.reshape(H, W, C), (2, 0, 1)),
                  ((0, 0), (2, 2), (2, 2))).reshape(C, P).astype(jnp.float32)

    kernel = _make_encoder_kernel(BB, H, W, C, E, LEXT)
    out = pl.pallas_call(
        kernel,
        out_shape=jax.ShapeDtypeStruct((B, C, P), jnp.float32),
        grid=(B // BB,),
        in_specs=[
            pl.BlockSpec((BB, 25 * Cin, P), lambda g: (g, 0, 0)),
            pl.BlockSpec((C, 25 * Cin), lambda g: (0, 0)),
            pl.BlockSpec((25, C, C), lambda g: (0, 0, 0)),
            pl.BlockSpec((25, C, C), lambda g: (0, 0, 0)),
            pl.BlockSpec((25, C, C), lambda g: (0, 0, 0)),
            pl.BlockSpec((4, C, 1), lambda g: (0, 0, 0)),
            pl.BlockSpec((1, P), lambda g: (0, 0)),
            pl.BlockSpec((C, P), lambda g: (0, 0)),
        ],
        out_specs=pl.BlockSpec((BB, C, P), lambda g: (g, 0, 0)),
        scratch_shapes=[pltpu.VMEM((C, LEXT), jnp.bfloat16),
                        pltpu.VMEM((C, LEXT), jnp.bfloat16)],
        compiler_params=pltpu.CompilerParams(
            dimension_semantics=("parallel",)),
    )(patches1, w1, w2, w3, w4, biases, mask, pos)

    # Drop the padding halo and restore the module's [B, H*W, C] layout
    # (one small XLA transpose per call, ~50 KiB/element).
    out = out.reshape(B, C, Hp, Wp)[:, :, 2:Hp - 2, 2:Wp - 2]
    return jnp.transpose(out, (0, 2, 3, 1)).reshape(B, H * W, C)


encoder_forward = jax.jit(encoder_forward_pallas, static_argnames=("batch_block",))


# --------------------------- reference & utilities ---------------------------

def build_grid(resolution):
    """Same as the PyTorch build_grid: [1, H, W, 4] float32."""
    ranges = [np.linspace(0.0, 1.0, num=res) for res in resolution]
    grid = np.meshgrid(*ranges, sparse=False, indexing="ij")
    grid = np.stack(grid, axis=-1)
    grid = np.reshape(grid, [resolution[0], resolution[1], -1])
    grid = np.expand_dims(grid, axis=0).astype(np.float32)
    grid = np.concatenate([grid, 1.0 - grid], axis=-1)
    return jnp.asarray(grid)


def init_encoder_params(key, hid_dim):
    """Deterministic synthetic params. Conv weights in HWIO layout."""
    keys = jax.random.split(key, 10)

    def conv_w(k, cin, cout):
        return 0.1 * jax.random.normal(k, (5, 5, cin, cout), jnp.float32)

    return {
        "w1": conv_w(keys[0], 3, hid_dim),
        "b1": 0.1 * jax.random.normal(keys[1], (1, hid_dim), jnp.float32),
        "w2": conv_w(keys[2], hid_dim, hid_dim),
        "b2": 0.1 * jax.random.normal(keys[3], (1, hid_dim), jnp.float32),
        "w3": conv_w(keys[4], hid_dim, hid_dim),
        "b3": 0.1 * jax.random.normal(keys[5], (1, hid_dim), jnp.float32),
        "w4": conv_w(keys[6], hid_dim, hid_dim),
        "b4": 0.1 * jax.random.normal(keys[7], (1, hid_dim), jnp.float32),
        "we": 0.1 * jax.random.normal(keys[8], (4, hid_dim), jnp.float32),
        "be": 0.1 * jax.random.normal(keys[9], (1, hid_dim), jnp.float32),
    }


def encoder_reference(x, params, grid4):
    """Pure-JAX f32 reference mirroring the PyTorch module."""
    def conv(h, w, b):
        y = jax.lax.conv_general_dilated(
            h, w, window_strides=(1, 1), padding="SAME",
            dimension_numbers=("NHWC", "HWIO", "NHWC"),
            precision=jax.lax.Precision.HIGHEST)
        return jax.nn.relu(y + b.reshape(1, 1, 1, -1))

    h = conv(x, params["w1"], params["b1"])
    h = conv(h, params["w2"], params["b2"])
    h = conv(h, params["w3"], params["b3"])
    h = conv(h, params["w4"], params["b4"])
    B, H, W, C = h.shape
    pos = grid4 @ params["we"] + params["be"]      # [1, H, W, C]
    h = h + pos
    return h.reshape(B, H * W, C)


# ----------------------------------- main ------------------------------------

if __name__ == "__main__":
    B, H, W, hid_dim = 2, 16, 16, 32
    resolution = (H, W)

    key = jax.random.PRNGKey(0)
    k_x, k_p = jax.random.split(key)
    x = jax.random.normal(k_x, (B, H, W, 3), jnp.float32)
    params = init_encoder_params(k_p, hid_dim)
    grid4 = build_grid(resolution)

    out = encoder_forward(x, params, grid4)
    jax.block_until_ready(out)
    assert out.shape == (B, H * W, hid_dim), out.shape

    # Numerical check vs the f32 reference (bf16 MXU operands -> loose tol).
    ref = encoder_reference(x, params, grid4)
    rel_rms = float(jnp.linalg.norm(out - ref) / (jnp.linalg.norm(ref) + 1e-6))
    assert rel_rms < 0.05, f"kernel mismatch: relative RMS error {rel_rms:.4f}"

    print("KERNEL_OK")
</pallas_src>

<mosaic_0001>
module attributes {stable_mosaic.version = 11 : i64} {
  func.func @kernel(%arg0: i32, %arg1: memref<1x75x400xbf16, #tpu.memory_space<vmem>>, %arg2: memref<32x75xbf16, #tpu.memory_space<vmem>>, %arg3: memref<25x32x32xbf16, #tpu.memory_space<vmem>>, %arg4: memref<25x32x32xbf16, #tpu.memory_space<vmem>>, %arg5: memref<25x32x32xbf16, #tpu.memory_space<vmem>>, %arg6: memref<4x32x1xf32, #tpu.memory_space<vmem>>, %arg7: memref<1x400xf32, #tpu.memory_space<vmem>>, %arg8: memref<32x400xf32, #tpu.memory_space<vmem>>, %arg9: memref<1x32x400xf32, #tpu.memory_space<vmem>>, %arg10: memref<32x640xbf16, #tpu.memory_space<vmem>>, %arg11: memref<32x640xbf16, #tpu.memory_space<vmem>>) attributes {dimension_semantics = [#tpu.dimension_semantics<parallel>], iteration_bounds = array<i64: 2>, scalar_prefetch = 0 : i64, scratch_operands = 2 : i64, tpu.core_type = #tpu.core_type<tc>, window_params = [{transform_indices = @transform_0, window_bounds = array<i64: 1, 75, 400>}, {pipeline_mode = #tpu.pipeline_mode<synchronous>, transform_indices = @transform_1, window_bounds = array<i64: 32, 75>}, {pipeline_mode = #tpu.pipeline_mode<synchronous>, transform_indices = @transform_2, window_bounds = array<i64: 25, 32, 32>}, {pipeline_mode = #tpu.pipeline_mode<synchronous>, transform_indices = @transform_3, window_bounds = array<i64: 25, 32, 32>}, {pipeline_mode = #tpu.pipeline_mode<synchronous>, transform_indices = @transform_4, window_bounds = array<i64: 25, 32, 32>}, {pipeline_mode = #tpu.pipeline_mode<synchronous>, transform_indices = @transform_5, window_bounds = array<i64: 4, 32, 1>}, {pipeline_mode = #tpu.pipeline_mode<synchronous>, transform_indices = @transform_6, window_bounds = array<i64: 1, 400>}, {pipeline_mode = #tpu.pipeline_mode<synchronous>, transform_indices = @transform_7, window_bounds = array<i64: 32, 400>}, {transform_indices = @transform_8, window_bounds = array<i64: 1, 32, 400>}]} {
    %c0 = arith.constant 0 : index
    %c0_0 = arith.constant 0 : index
    %0 = vector.load %arg7[%c0, %c0_0] : memref<1x400xf32, #tpu.memory_space<vmem>>, vector<1x400xf32>
    %c0_1 = arith.constant 0 : index
    %c0_2 = arith.constant 0 : index
    %1 = vector.load %arg8[%c0_1, %c0_2] : memref<32x400xf32, #tpu.memory_space<vmem>>, vector<32x400xf32>
    %cst = arith.constant 0.000000e+00 : bf16
    %2 = vector.broadcast %cst : bf16 to vector<32x128xbf16>
    %cst_3 = arith.constant 0.000000e+00 : bf16
    %3 = vector.broadcast %cst_3 : bf16 to vector<32x112xbf16>
    %c0_4 = arith.constant 0 : index
    %c0_5 = arith.constant 0 : index
    %4 = vector.load %arg10[%c0_4, %c0_5] : memref<32x640xbf16, #tpu.memory_space<vmem>>, vector<32x128xbf16>
    tpu.vector_store %arg10[%c0_4, %c0_5], %2 {strides = array<i32>} : memref<32x640xbf16, #tpu.memory_space<vmem>>, vector<32x128xbf16>,
    %c0_6 = arith.constant 0 : index
    %c528 = arith.constant 528 : index
    %5 = vector.load %arg10[%c0_6, %c528] : memref<32x640xbf16, #tpu.memory_space<vmem>>, vector<32x112xbf16>
    tpu.vector_store %arg10[%c0_6, %c528], %3 {strides = array<i32>} : memref<32x640xbf16, #tpu.memory_space<vmem>>, vector<32x112xbf16>,
    %c0_7 = arith.constant 0 : index
    %c0_8 = arith.constant 0 : index
    %6 = vector.load %arg11[%c0_7, %c0_8] : memref<32x640xbf16, #tpu.memory_space<vmem>>, vector<32x128xbf16>
    tpu.vector_store %arg11[%c0_7, %c0_8], %2 {strides = array<i32>} : memref<32x640xbf16, #tpu.memory_space<vmem>>, vector<32x128xbf16>,
    %c0_9 = arith.constant 0 : index
    %c528_10 = arith.constant 528 : index
    %7 = vector.load %arg11[%c0_9, %c528_10] : memref<32x640xbf16, #tpu.memory_space<vmem>>, vector<32x112xbf16>
    tpu.vector_store %arg11[%c0_9, %c528_10], %3 {strides = array<i32>} : memref<32x640xbf16, #tpu.memory_space<vmem>>, vector<32x112xbf16>,
    %c0_11 = arith.constant 0 : index
    %c0_12 = arith.constant 0 : index
    %8 = vector.load %arg2[%c0_11, %c0_12] : memref<32x75xbf16, #tpu.memory_space<vmem>>, vector<32x75xbf16>
    %c0_13 = arith.constant 0 : index
    %c0_14 = arith.constant 0 : index
    %c0_15 = arith.constant 0 : index
    %9 = vector.load %arg1[%c0_13, %c0_14, %c0_15] : memref<1x75x400xbf16, #tpu.memory_space<vmem>>, vector<1x75x400xbf16>
    %10 = vector.shape_cast %9 : vector<1x75x400xbf16> to vector<75x400xbf16>
    %cst_16 = arith.constant dense<0.000000e+00> : vector<32x400xf32>
    %11 = tpu.matmul %8, %10, %cst_16 {dimension_numbers = #tpu.dot_dimension_numbers<[1], [0], [0], [1], [0, 0, 1, 1], [], []>} : vector<32x75xbf16>, vector<75x400xbf16>, vector<32x400xf32> -> vector<32x400xf32>
    %c0_17 = arith.constant 0 : index
    %c0_18 = arith.constant 0 : index
    %c0_19 = arith.constant 0 : index
    %12 = vector.load %arg6[%c0_17, %c0_18, %c0_19] : memref<4x32x1xf32, #tpu.memory_space<vmem>>, vector<1x32x1xf32>
    %13 = vector.shape_cast %12 : vector<1x32x1xf32> to vector<32x1xf32>
    %14 = vector.broadcast %13 : vector<32x1xf32> to vector<32x400xf32>
    %15 = arith.addf %11, %14 : vector<32x400xf32>
    %cst_20 = arith.constant 0.000000e+00 : f32
    %16 = vector.broadcast %cst_20 : f32 to vector<32x400xf32>
    %17 = arith.maximumf %15, %16 : vector<32x400xf32>
    %18 = vector.broadcast %0 : vector<1x400xf32> to vector<32x400xf32>
    %19 = arith.mulf %17, %18 : vector<32x400xf32>
    %20 = arith.truncf %19 : vector<32x400xf32> to vector<32x400xbf16>
    %c0_21 = arith.constant 0 : index
    %c128 = arith.constant 128 : index
    %21 = vector.load %arg10[%c0_21, %c128] : memref<32x640xbf16, #tpu.memory_space<vmem>>, vector<32x400xbf16>
    tpu.vector_store %arg10[%c0_21, %c128], %20 {strides = array<i32>} : memref<32x640xbf16, #tpu.memory_space<vmem>>, vector<32x400xbf16>,
    %cst_22 = arith.constant 0.000000e+00 : f32
    %22 = vector.broadcast %cst_22 : f32 to vector<32x400xf32>
    %c0_23 = arith.constant 0 : index
    %c0_24 = arith.constant 0 : index
    %c0_25 = arith.constant 0 : index
    %23 = vector.load %arg3[%c0_23, %c0_24, %c0_25] : memref<25x32x32xbf16, #tpu.memory_space<vmem>>, vector<1x32x32xbf16>
    %24 = vector.shape_cast %23 : vector<1x32x32xbf16> to vector<32x32xbf16>
    %c0_26 = arith.constant 0 : index
    %c86 = arith.constant 86 : index
    %25 = vector.load %arg10[%c0_26, %c86] : memref<32x640xbf16, #tpu.memory_space<vmem>>, vector<32x400xbf16>
    %cst_27 = arith.constant dense<0.000000e+00> : vector<32x400xf32>
    %26 = tpu.matmul %24, %25, %cst_27 {dimension_numbers = #tpu.dot_dimension_numbers<[1], [0], [0], [1], [0, 0, 1, 1], [], []>} : vector<32x32xbf16>, vector<32x400xbf16>, vector<32x400xf32> -> vector<32x400xf32>
    %27 = arith.addf %22, %26 : vector<32x400xf32>
    %c1 = arith.constant 1 : index
    %c0_28 = arith.constant 0 : index
    %c0_29 = arith.constant 0 : index
    %28 = vector.load %arg3[%c1, %c0_28, %c0_29] : memref<25x32x32xbf16, #tpu.memory_space<vmem>>, vector<1x32x32xbf16>
    %29 = vector.shape_cast %28 : vector<1x32x32xbf16> to vector<32x32xbf16>
    %c0_30 = arith.constant 0 : index
    %c87 = arith.constant 87 : index
    %30 = vector.load %arg10[%c0_30, %c87] : memref<32x640xbf16, #tpu.memory_space<vmem>>, vector<32x400xbf16>
    %cst_31 = arith.constant dense<0.000000e+00> : vector<32x400xf32>
    %31 = tpu.matmul %29, %30, %cst_31 {dimension_numbers = #tpu.dot_dimension_numbers<[1], [0], [0], [1], [0, 0, 1, 1], [], []>} : vector<32x32xbf16>, vector<32x400xbf16>, vector<32x400xf32> -> vector<32x400xf32>
    %32 = arith.addf %27, %31 : vector<32x400xf32>
    %c2 = arith.constant 2 : index
    %c0_32 = arith.constant 0 : index
    %c0_33 = arith.constant 0 : index
    %33 = vector.load %arg3[%c2, %c0_32, %c0_33] : memref<25x32x32xbf16, #tpu.memory_space<vmem>>, vector<1x32x32xbf16>
    %34 = vector.shape_cast %33 : vector<1x32x32xbf16> to vector<32x32xbf16>
    %c0_34 = arith.constant 0 : index
    %c88 = arith.constant 88 : index
    %35 = vector.load %arg10[%c0_34, %c88] : memref<32x640xbf16, #tpu.memory_space<vmem>>, vector<32x400xbf16>
    %cst_35 = arith.constant dense<0.000000e+00> : vector<32x400xf32>
    %36 = tpu.matmul %34, %35, %cst_35 {dimension_numbers = #tpu.dot_dimension_numbers<[1], [0], [0], [1], [0, 0, 1, 1], [], []>} : vector<32x32xbf16>, vector<32x400xbf16>, vector<32x400xf32> -> vector<32x400xf32>
    %37 = arith.addf %32, %36 : vector<32x400xf32>
    %c3 = arith.constant 3 : index
    %c0_36 = arith.constant 0 : index
    %c0_37 = arith.constant 0 : index
    %38 = vector.load %arg3[%c3, %c0_36, %c0_37] : memref<25x32x32xbf16, #tpu.memory_space<vmem>>, vector<1x32x32xbf16>
    %39 = vector.shape_cast %38 : vector<1x32x32xbf16> to vector<32x32xbf16>
    %c0_38 = arith.constant 0 : index
    %c89 = arith.constant 89 : index
    %40 = vector.load %arg10[%c0_38, %c89] : memref<32x640xbf16, #tpu.memory_space<vmem>>, vector<32x400xbf16>
    %cst_39 = arith.constant dense<0.000000e+00> : vector<32x400xf32>
    %41 = tpu.matmul %39, %40, %cst_39 {dimension_numbers = #tpu.dot_dimension_numbers<[1], [0], [0], [1], [0, 0, 1, 1], [], []>} : vector<32x32xbf16>, vector<32x400xbf16>, vector<32x400xf32> -> vector<32x400xf32>
    %42 = arith.addf %37, %41 : vector<32x400xf32>
    %c4 = arith.constant 4 : index
    %c0_40 = arith.constant 0 : index
    %c0_41 = arith.constant 0 : index
    %43 = vector.load %arg3[%c4, %c0_40, %c0_41] : memref<25x32x32xbf16, #tpu.memory_space<vmem>>, vector<1x32x32xbf16>
    %44 = vector.shape_cast %43 : vector<1x32x32xbf16> to vector<32x32xbf16>
    %c0_42 = arith.constant 0 : index
    %c90 = arith.constant 90 : index
    %45 = vector.load %arg10[%c0_42, %c90] : memref<32x640xbf16, #tpu.memory_space<vmem>>, vector<32x400xbf16>
    %cst_43 = arith.constant dense<0.000000e+00> : vector<32x400xf32>
    %46 = tpu.matmul %44, %45, %cst_43 {dimension_numbers = #tpu.dot_dimension_numbers<[1], [0], [0], [1], [0, 0, 1, 1], [], []>} : vector<32x32xbf16>, vector<32x400xbf16>, vector<32x400xf32> -> vector<32x400xf32>
    %47 = arith.addf %42, %46 : vector<32x400xf32>
    %c5 = arith.constant 5 : index
    %c0_44 = arith.constant 0 : index
    %c0_45 = arith.constant 0 : index
    %48 = vector.load %arg3[%c5, %c0_44, %c0_45] : memref<25x32x32xbf16, #tpu.memory_space<vmem>>, vector<1x32x32xbf16>
    %49 = vector.shape_cast %48 : vector<1x32x32xbf16> to vector<32x32xbf16>
    %c0_46 = arith.constant 0 : index
    %c106 = arith.constant 106 : index
    %50 = vector.load %arg10[%c0_46, %c106] : memref<32x640xbf16, #tpu.memory_space<vmem>>, vector<32x400xbf16>
    %cst_47 = arith.constant dense<0.000000e+00> : vector<32x400xf32>
    %51 = tpu.matmul %49, %50, %cst_47 {dimension_numbers = #tpu.dot_dimension_numbers<[1], [0], [0], [1], [0, 0, 1, 1], [], []>} : vector<32x32xbf16>, vector<32x400xbf16>, vector<32x400xf32> -> vector<32x400xf32>
    %52 = arith.addf %47, %51 : vector<32x400xf32>
    %c6 = arith.constant 6 : index
    %c0_48 = arith.constant 0 : index
    %c0_49 = arith.constant 0 : index
    %53 = vector.load %arg3[%c6, %c0_48, %c0_49] : memref<25x32x32xbf16, #tpu.memory_space<vmem>>, vector<1x32x32xbf16>
    %54 = vector.shape_cast %53 : vector<1x32x32xbf16> to vector<32x32xbf16>
    %c0_50 = arith.constant 0 : index
    %c107 = arith.constant 107 : index
    %55 = vector.load %arg10[%c0_50, %c107] : memref<32x640xbf16, #tpu.memory_space<vmem>>, vector<32x400xbf16>
    %cst_51 = arith.constant dense<0.000000e+00> : vector<32x400xf32>
    %56 = tpu.matmul %54, %55, %cst_51 {dimension_numbers = #tpu.dot_dimension_numbers<[1], [0], [0], [1], [0, 0, 1, 1], [], []>} : vector<32x32xbf16>, vector<32x400xbf16>, vector<32x400xf32> -> vector<32x400xf32>
    %57 = arith.addf %52, %56 : vector<32x400xf32>
    %c7 = arith.constant 7 : index
    %c0_52 = arith.constant 0 : index
    %c0_53 = arith.constant 0 : index
    %58 = vector.load %arg3[%c7, %c0_52, %c0_53] : memref<25x32x32xbf16, #tpu.memory_space<vmem>>, vector<1x32x32xbf16>
    %59 = vector.shape_cast %58 : vector<1x32x32xbf16> to vector<32x32xbf16>
    %c0_54 = arith.constant 0 : index
    %c108 = arith.constant 108 : index
    %60 = vector.load %arg10[%c0_54, %c108] : memref<32x640xbf16, #tpu.memory_space<vmem>>, vector<32x400xbf16>
    %cst_55 = arith.constant dense<0.000000e+00> : vector<32x400xf32>
    %61 = tpu.matmul %59, %60, %cst_55 {dimension_numbers = #tpu.dot_dimension_numbers<[1], [0], [0], [1], [0, 0, 1, 1], [], []>} : vector<32x32xbf16>, vector<32x400xbf16>, vector<32x400xf32> -> vector<32x400xf32>
    %62 = arith.addf %57, %61 : vector<32x400xf32>
    %c8 = arith.constant 8 : index
    %c0_56 = arith.constant 0 : index
    %c0_57 = arith.constant 0 : index
    %63 = vector.load %arg3[%c8, %c0_56, %c0_57] : memref<25x32x32xbf16, #tpu.memory_space<vmem>>, vector<1x32x32xbf16>
    %64 = vector.shape_cast %63 : vector<1x32x32xbf16> to vector<32x32xbf16>
    %c0_58 = arith.constant 0 : index
    %c109 = arith.constant 109 : index
    %65 = vector.load %arg10[%c0_58, %c109] : memref<32x640xbf16, #tpu.memory_space<vmem>>, vector<32x400xbf16>
    %cst_59 = arith.constant dense<0.000000e+00> : vector<32x400xf32>
    %66 = tpu.matmul %64, %65, %cst_59 {dimension_numbers = #tpu.dot_dimension_numbers<[1], [0], [0], [1], [0, 0, 1, 1], [], []>} : vector<32x32xbf16>, vector<32x400xbf16>, vector<32x400xf32> -> vector<32x400xf32>
    %67 = arith.addf %62, %66 : vector<32x400xf32>
    %c9 = arith.constant 9 : index
    %c0_60 = arith.constant 0 : index
    %c0_61 = arith.constant 0 : index
    %68 = vector.load %arg3[%c9, %c0_60, %c0_61] : memref<25x32x32xbf16, #tpu.memory_space<vmem>>, vector<1x32x32xbf16>
    %69 = vector.shape_cast %68 : vector<1x32x32xbf16> to vector<32x32xbf16>
    %c0_62 = arith.constant 0 : index
    %c110 = arith.constant 110 : index
    %70 = vector.load %arg10[%c0_62, %c110] : memref<32x640xbf16, #tpu.memory_space<vmem>>, vector<32x400xbf16>
    %cst_63 = arith.constant dense<0.000000e+00> : vector<32x400xf32>
    %71 = tpu.matmul %69, %70, %cst_63 {dimension_numbers = #tpu.dot_dimension_numbers<[1], [0], [0], [1], [0, 0, 1, 1], [], []>} : vector<32x32xbf16>, vector<32x400xbf16>, vector<32x400xf32> -> vector<32x400xf32>
    %72 = arith.addf %67, %71 : vector<32x400xf32>
    %c10 = arith.constant 10 : index
    %c0_64 = arith.constant 0 : index
    %c0_65 = arith.constant 0 : index
    %73 = vector.load %arg3[%c10, %c0_64, %c0_65] : memref<25x32x32xbf16, #tpu.memory_space<vmem>>, vector<1x32x32xbf16>
    %74 = vector.shape_cast %73 : vector<1x32x32xbf16> to vector<32x32xbf16>
    %c0_66 = arith.constant 0 : index
    %c126 = arith.constant 126 : index
    %75 = vector.load %arg10[%c0_66, %c126] : memref<32x640xbf16, #tpu.memory_space<vmem>>, vector<32x400xbf16>
    %cst_67 = arith.constant dense<0.000000e+00> : vector<32x400xf32>
    %76 = tpu.matmul %74, %75, %cst_67 {dimension_numbers = #tpu.dot_dimension_numbers<[1], [0], [0], [1], [0, 0, 1, 1], [], []>} : vector<32x32xbf16>, vector<32x400xbf16>, vector<32x400xf32> -> vector<32x400xf32>
    %77 = arith.addf %72, %76 : vector<32x400xf32>
    %c11 = arith.constant 11 : index
    %c0_68 = arith.constant 0 : index
    %c0_69 = arith.constant 0 : index
    %78 = vector.load %arg3[%c11, %c0_68, %c0_69] : memref<25x32x32xbf16, #tpu.memory_space<vmem>>, vector<1x32x32xbf16>
    %79 = vector.shape_cast %78 : vector<1x32x32xbf16> to vector<32x32xbf16>
    %c0_70 = arith.constant 0 : index
    %c127 = arith.constant 127 : index
    %80 = vector.load %arg10[%c0_70, %c127] : memref<32x640xbf16, #tpu.memory_space<vmem>>, vector<32x400xbf16>
    %cst_71 = arith.constant dense<0.000000e+00> : vector<32x400xf32>
    %81 = tpu.matmul %79, %80, %cst_71 {dimension_numbers = #tpu.dot_dimension_numbers<[1], [0], [0], [1], [0, 0, 1, 1], [], []>} : vector<32x32xbf16>, vector<32x400xbf16>, vector<32x400xf32> -> vector<32x400xf32>
    %82 = arith.addf %77, %81 : vector<32x400xf32>
    %c12 = arith.constant 12 : index
    %c0_72 = arith.constant 0 : index
    %c0_73 = arith.constant 0 : index
    %83 = vector.load %arg3[%c12, %c0_72, %c0_73] : memref<25x32x32xbf16, #tpu.memory_space<vmem>>, vector<1x32x32xbf16>
    %84 = vector.shape_cast %83 : vector<1x32x32xbf16> to vector<32x32xbf16>
    %c0_74 = arith.constant 0 : index
    %c128_75 = arith.constant 128 : index
    %85 = vector.load %arg10[%c0_74, %c128_75] : memref<32x640xbf16, #tpu.memory_space<vmem>>, vector<32x400xbf16>
    %cst_76 = arith.constant dense<0.000000e+00> : vector<32x400xf32>
    %86 = tpu.matmul %84, %85, %cst_76 {dimension_numbers = #tpu.dot_dimension_numbers<[1], [0], [0], [1], [0, 0, 1, 1], [], []>} : vector<32x32xbf16>, vector<32x400xbf16>, vector<32x400xf32> -> vector<32x400xf32>
    %87 = arith.addf %82, %86 : vector<32x400xf32>
    %c13 = arith.constant 13 : index
    %c0_77 = arith.constant 0 : index
    %c0_78 = arith.constant 0 : index
    %88 = vector.load %arg3[%c13, %c0_77, %c0_78] : memref<25x32x32xbf16, #tpu.memory_space<vmem>>, vector<1x32x32xbf16>
    %89 = vector.shape_cast %88 : vector<1x32x32xbf16> to vector<32x32xbf16>
    %c0_79 = arith.constant 0 : index
    %c129 = arith.constant 129 : index
    %90 = vector.load %arg10[%c0_79, %c129] : memref<32x640xbf16, #tpu.memory_space<vmem>>, vector<32x400xbf16>
    %cst_80 = arith.constant dense<0.000000e+00> : vector<32x400xf32>
    %91 = tpu.matmul %89, %90, %cst_80 {dimension_numbers = #tpu.dot_dimension_numbers<[1], [0], [0], [1], [0, 0, 1, 1], [], []>} : vector<32x32xbf16>, vector<32x400xbf16>, vector<32x400xf32> -> vector<32x400xf32>
    %92 = arith.addf %87, %91 : vector<32x400xf32>
    %c14 = arith.constant 14 : index
    %c0_81 = arith.constant 0 : index
    %c0_82 = arith.constant 0 : index
    %93 = vector.load %arg3[%c14, %c0_81, %c0_82] : memref<25x32x32xbf16, #tpu.memory_space<vmem>>, vector<1x32x32xbf16>
    %94 = vector.shape_cast %93 : vector<1x32x32xbf16> to vector<32x32xbf16>
    %c0_83 = arith.constant 0 : index
    %c130 = arith.constant 130 : index
    %95 = vector.load %arg10[%c0_83, %c130] : memref<32x640xbf16, #tpu.memory_space<vmem>>, vector<32x400xbf16>
    %cst_84 = arith.constant dense<0.000000e+00> : vector<32x400xf32>
    %96 = tpu.matmul %94, %95, %cst_84 {dimension_numbers = #tpu.dot_dimension_numbers<[1], [0], [0], [1], [0, 0, 1, 1], [], []>} : vector<32x32xbf16>, vector<32x400xbf16>, vector<32x400xf32> -> vector<32x400xf32>
    %97 = arith.addf %92, %96 : vector<32x400xf32>
    %c15 = arith.constant 15 : index
    %c0_85 = arith.constant 0 : index
    %c0_86 = arith.constant 0 : index
    %98 = vector.load %arg3[%c15, %c0_85, %c0_86] : memref<25x32x32xbf16, #tpu.memory_space<vmem>>, vector<1x32x32xbf16>
    %99 = vector.shape_cast %98 : vector<1x32x32xbf16> to vector<32x32xbf16>
    %c0_87 = arith.constant 0 : index
    %c146 = arith.constant 146 : index
    %100 = vector.load %arg10[%c0_87, %c146] : memref<32x640xbf16, #tpu.memory_space<vmem>>, vector<32x400xbf16>
    %cst_88 = arith.constant dense<0.000000e+00> : vector<32x400xf32>
    %101 = tpu.matmul %99, %100, %cst_88 {dimension_numbers = #tpu.dot_dimension_numbers<[1], [0], [0], [1], [0, 0, 1, 1], [], []>} : vector<32x32xbf16>, vector<32x400xbf16>, vector<32x400xf32> -> vector<32x400xf32>
    %102 = arith.addf %97, %101 : vector<32x400xf32>
    %c16 = arith.constant 16 : index
    %c0_89 = arith.constant 0 : index
    %c0_90 = arith.constant 0 : index
    %103 = vector.load %arg3[%c16, %c0_89, %c0_90] : memref<25x32x32xbf16, #tpu.memory_space<vmem>>, vector<1x32x32xbf16>
    %104 = vector.shape_cast %103 : vector<1x32x32xbf16> to vector<32x32xbf16>
    %c0_91 = arith.constant 0 : index
    %c147 = arith.constant 147 : index
    %105 = vector.load %arg10[%c0_91, %c147] : memref<32x640xbf16, #tpu.memory_space<vmem>>, vector<32x400xbf16>
    %cst_92 = arith.constant dense<0.000000e+00> : vector<32x400xf32>
    %106 = tpu.matmul %104, %105, %cst_92 {dimension_numbers = #tpu.dot_dimension_numbers<[1], [0], [0], [1], [0, 0, 1, 1], [], []>} : vector<32x32xbf16>, vector<32x400xbf16>, vector<32x400xf32> -> vector<32x400xf32>
    %107 = arith.addf %102, %106 : vector<32x400xf32>
    %c17 = arith.constant 17 : index
    %c0_93 = arith.constant 0 : index
    %c0_94 = arith.constant 0 : index
    %108 = vector.load %arg3[%c17, %c0_93, %c0_94] : memref<25x32x32xbf16, #tpu.memory_space<vmem>>, vector<1x32x32xbf16>
    %109 = vector.shape_cast %108 : vector<1x32x32xbf16> to vector<32x32xbf16>
    %c0_95 = arith.constant 0 : index
    %c148 = arith.constant 148 : index
    %110 = vector.load %arg10[%c0_95, %c148] : memref<32x640xbf16, #tpu.memory_space<vmem>>, vector<32x400xbf16>
    %cst_96 = arith.constant dense<0.000000e+00> : vector<32x400xf32>
    %111 = tpu.matmul %109, %110, %cst_96 {dimension_numbers = #tpu.dot_dimension_numbers<[1], [0], [0], [1], [0, 0, 1, 1], [], []>} : vector<32x32xbf16>, vector<32x400xbf16>, vector<32x400xf32> -> vector<32x400xf32>
    %112 = arith.addf %107, %111 : vector<32x400xf32>
    %c18 = arith.constant 18 : index
    %c0_97 = arith.constant 0 : index
    %c0_98 = arith.constant 0 : index
    %113 = vector.load %arg3[%c18, %c0_97, %c0_98] : memref<25x32x32xbf16, #tpu.memory_space<vmem>>, vector<1x32x32xbf16>
    %114 = vector.shape_cast %113 : vector<1x32x32xbf16> to vector<32x32xbf16>
    %c0_99 = arith.constant 0 : index
    %c149 = arith.constant 149 : index
    %115 = vector.load %arg10[%c0_99, %c149] : memref<32x640xbf16, #tpu.memory_space<vmem>>, vector<32x400xbf16>
    %cst_100 = arith.constant dense<0.000000e+00> : vector<32x400xf32>
    %116 = tpu.matmul %114, %115, %cst_100 {dimension_numbers = #tpu.dot_dimension_numbers<[1], [0], [0], [1], [0, 0, 1, 1], [], []>} : vector<32x32xbf16>, vector<32x400xbf16>, vector<32x400xf32> -> vector<32x400xf32>
    %117 = arith.addf %112, %116 : vector<32x400xf32>
    %c19 = arith.constant 19 : index
    %c0_101 = arith.constant 0 : index
    %c0_102 = arith.constant 0 : index
    %118 = vector.load %arg3[%c19, %c0_101, %c0_102] : memref<25x32x32xbf16, #tpu.memory_space<vmem>>, vector<1x32x32xbf16>
    %119 = vector.shape_cast %118 : vector<1x32x32xbf16> to vector<32x32xbf16>
    %c0_103 = arith.constant 0 : index
    %c150 = arith.constant 150 : index
    %120 = vector.load %arg10[%c0_103, %c150] : memref<32x640xbf16, #tpu.memory_space<vmem>>, vector<32x400xbf16>
    %cst_104 = arith.constant dense<0.000000e+00> : vector<32x400xf32>
    %121 = tpu.matmul %119, %120, %cst_104 {dimension_numbers = #tpu.dot_dimension_numbers<[1], [0], [0], [1], [0, 0, 1, 1], [], []>} : vector<32x32xbf16>, vector<32x400xbf16>, vector<32x400xf32> -> vector<32x400xf32>
    %122 = arith.addf %117, %121 : vector<32x400xf32>
    %c20 = arith.constant 20 : index
    %c0_105 = arith.constant 0 : index
    %c0_106 = arith.constant 0 : index
    %123 = vector.load %arg3[%c20, %c0_105, %c0_106] : memref<25x32x32xbf16, #tpu.memory_space<vmem>>, vector<1x32x32xbf16>
    %124 = vector.shape_cast %123 : vector<1x32x32xbf16> to vector<32x32xbf16>
    %c0_107 = arith.constant 0 : index
    %c166 = arith.constant 166 : index
    %125 = vector.load %arg10[%c0_107, %c166] : memref<32x640xbf16, #tpu.memory_space<vmem>>, vector<32x400xbf16>
    %cst_108 = arith.constant dense<0.000000e+00> : vector<32x400xf32>
    %126 = tpu.matmul %124, %125, %cst_108 {dimension_numbers = #tpu.dot_dimension_numbers<[1], [0], [0], [1], [0, 0, 1, 1], [], []>} : vector<32x32xbf16>, vector<32x400xbf16>, vector<32x400xf32> -> vector<32x400xf32>
    %127 = arith.addf %122, %126 : vector<32x400xf32>
    %c21 = arith.constant 21 : index
    %c0_109 = arith.constant 0 : index
    %c0_110 = arith.constant 0 : index
    %128 = vector.load %arg3[%c21, %c0_109, %c0_110] : memref<25x32x32xbf16, #tpu.memory_space<vmem>>, vector<1x32x32xbf16>
    %129 = vector.shape_cast %128 : vector<1x32x32xbf16> to vector<32x32xbf16>
    %c0_111 = arith.constant 0 : index
    %c167 = arith.constant 167 : index
    %130 = vector.load %arg10[%c0_111, %c167] : memref<32x640xbf16, #tpu.memory_space<vmem>>, vector<32x400xbf16>
    %cst_112 = arith.constant dense<0.000000e+00> : vector<32x400xf32>
    %131 = tpu.matmul %129, %130, %cst_112 {dimension_numbers = #tpu.dot_dimension_numbers<[1], [0], [0], [1], [0, 0, 1, 1], [], []>} : vector<32x32xbf16>, vector<32x400xbf16>, vector<32x400xf32> -> vector<32x400xf32>
    %132 = arith.addf %127, %131 : vector<32x400xf32>
    %c22 = arith.constant 22 : index
    %c0_113 = arith.constant 0 : index
    %c0_114 = arith.constant 0 : index
    %133 = vector.load %arg3[%c22, %c0_113, %c0_114] : memref<25x32x32xbf16, #tpu.memory_space<vmem>>, vector<1x32x32xbf16>
    %134 = vector.shape_cast %133 : vector<1x32x32xbf16> to vector<32x32xbf16>
    %c0_115 = arith.constant 0 : index
    %c168 = arith.constant 168 : index
    %135 = vector.load %arg10[%c0_115, %c168] : memref<32x640xbf16, #tpu.memory_space<vmem>>, vector<32x400xbf16>
    %cst_116 = arith.constant dense<0.000000e+00> : vector<32x400xf32>
    %136 = tpu.matmul %134, %135, %cst_116 {dimension_numbers = #tpu.dot_dimension_numbers<[1], [0], [0], [1], [0, 0, 1, 1], [], []>} : vector<32x32xbf16>, vector<32x400xbf16>, vector<32x400xf32> -> vector<32x400xf32>
    %137 = arith.addf %132, %136 : vector<32x400xf32>
    %c23 = arith.constant 23 : index
    %c0_117 = arith.constant 0 : index
    %c0_118 = arith.constant 0 : index
    %138 = vector.load %arg3[%c23, %c0_117, %c0_118] : memref<25x32x32xbf16, #tpu.memory_space<vmem>>, vector<1x32x32xbf16>
    %139 = vector.shape_cast %138 : vector<1x32x32xbf16> to vector<32x32xbf16>
    %c0_119 = arith.constant 0 : index
    %c169 = arith.constant 169 : index
    %140 = vector.load %arg10[%c0_119, %c169] : memref<32x640xbf16, #tpu.memory_space<vmem>>, vector<32x400xbf16>
    %cst_120 = arith.constant dense<0.000000e+00> : vector<32x400xf32>
    %141 = tpu.matmul %139, %140, %cst_120 {dimension_numbers = #tpu.dot_dimension_numbers<[1], [0], [0], [1], [0, 0, 1, 1], [], []>} : vector<32x32xbf16>, vector<32x400xbf16>, vector<32x400xf32> -> vector<32x400xf32>
    %142 = arith.addf %137, %141 : vector<32x400xf32>
    %c24 = arith.constant 24 : index
    %c0_121 = arith.constant 0 : index
    %c0_122 = arith.constant 0 : index
    %143 = vector.load %arg3[%c24, %c0_121, %c0_122] : memref<25x32x32xbf16, #tpu.memory_space<vmem>>, vector<1x32x32xbf16>
    %144 = vector.shape_cast %143 : vector<1x32x32xbf16> to vector<32x32xbf16>
    %c0_123 = arith.constant 0 : index
    %c170 = arith.constant 170 : index
    %145 = vector.load %arg10[%c0_123, %c170] : memref<32x640xbf16, #tpu.memory_space<vmem>>, vector<32x400xbf16>
    %cst_124 = arith.constant dense<0.000000e+00> : vector<32x400xf32>
    %146 = tpu.matmul %144, %145, %cst_124 {dimension_numbers = #tpu.dot_dimension_numbers<[1], [0], [0], [1], [0, 0, 1, 1], [], []>} : vector<32x32xbf16>, vector<32x400xbf16>, vector<32x400xf32> -> vector<32x400xf32>
    %147 = arith.addf %142, %146 : vector<32x400xf32>
    %c1_125 = arith.constant 1 : index
    %c0_126 = arith.constant 0 : index
    %c0_127 = arith.constant 0 : index
    %148 = vector.load %arg6[%c1_125, %c0_126, %c0_127] : memref<4x32x1xf32, #tpu.memory_space<vmem>>, vector<1x32x1xf32>
    %149 = vector.shape_cast %148 : vector<1x32x1xf32> to vector<32x1xf32>
    %150 = vector.broadcast %149 : vector<32x1xf32> to vector<32x400xf32>
    %151 = arith.addf %147, %150 : vector<32x400xf32>
    %cst_128 = arith.constant 0.000000e+00 : f32
    %152 = vector.broadcast %cst_128 : f32 to vector<32x400xf32>
    %153 = arith.maximumf %151, %152 : vector<32x400xf32>
    %154 = vector.broadcast %0 : vector<1x400xf32> to vector<32x400xf32>
    %155 = arith.mulf %153, %154 : vector<32x400xf32>
    %156 = arith.truncf %155 : vector<32x400xf32> to vector<32x400xbf16>
    %c0_129 = arith.constant 0 : index
    %c128_130 = arith.constant 128 : index
    %157 = vector.load %arg11[%c0_129, %c128_130] : memref<32x640xbf16, #tpu.memory_space<vmem>>, vector<32x400xbf16>
    tpu.vector_store %arg11[%c0_129, %c128_130], %156 {strides = array<i32>} : memref<32x640xbf16, #tpu.memory_space<vmem>>, vector<32x400xbf16>,
    %cst_131 = arith.constant 0.000000e+00 : f32
    %158 = vector.broadcast %cst_131 : f32 to vector<32x400xf32>
    %c0_132 = arith.constant 0 : index
    %c0_133 = arith.constant 0 : index
    %c0_134 = arith.constant 0 : index
    %159 = vector.load %arg4[%c0_132, %c0_133, %c0_134] : memref<25x32x32xbf16, #tpu.memory_space<vmem>>, vector<1x32x32xbf16>
    %160 = vector.shape_cast %159 : vector<1x32x32xbf16> to vector<32x32xbf16>
    %c0_135 = arith.constant 0 : index
    %c86_136 = arith.constant 86 : index
    %161 = vector.load %arg11[%c0_135, %c86_136] : memref<32x640xbf16, #tpu.memory_space<vmem>>, vector<32x400xbf16>
    %cst_137 = arith.constant dense<0.000000e+00> : vector<32x400xf32>
    %162 = tpu.matmul %160, %161, %cst_137 {dimension_numbers = #tpu.dot_dimension_numbers<[1], [0], [0], [1], [0, 0, 1, 1], [], []>} : vector<32x32xbf16>, vector<32x400xbf16>, vector<32x400xf32> -> vector<32x400xf32>
    %163 = arith.addf %158, %162 : vector<32x400xf32>
    %c1_138 = arith.constant 1 : index
    %c0_139 = arith.constant 0 : index
    %c0_140 = arith.constant 0 : index
    %164 = vector.load %arg4[%c1_138, %c0_139, %c0_140] : memref<25x32x32xbf16, #tpu.memory_space<vmem>>, vector<1x32x32xbf16>
    %165 = vector.shape_cast %164 : vector<1x32x32xbf16> to vector<32x32xbf16>
    %c0_141 = arith.constant 0 : index
    %c87_142 = arith.constant 87 : index
    %166 = vector.load %arg11[%c0_141, %c87_142] : memref<32x640xbf16, #tpu.memory_space<vmem>>, vector<32x400xbf16>
    %cst_143 = arith.constant dense<0.000000e+00> : vector<32x400xf32>
    %167 = tpu.matmul %165, %166, %cst_143 {dimension_numbers = #tpu.dot_dimension_numbers<[1], [0], [0], [1], [0, 0, 1, 1], [], []>} : vector<32x32xbf16>, vector<32x400xbf16>, vector<32x400xf32> -> vector<32x400xf32>
    %168 = arith.addf %163, %167 : vector<32x400xf32>
    %c2_144 = arith.constant 2 : index
    %c0_145 = arith.constant 0 : index
    %c0_146 = arith.constant 0 : index
    %169 = vector.load %arg4[%c2_144, %c0_145, %c0_146] : memref<25x32x32xbf16, #tpu.memory_space<vmem>>, vector<1x32x32xbf16>
    %170 = vector.shape_cast %169 : vector<1x32x32xbf16> to vector<32x32xbf16>
    %c0_147 = arith.constant 0 : index
    %c88_148 = arith.constant 88 : index
    %171 = vector.load %arg11[%c0_147, %c88_148] : memref<32x640xbf16, #tpu.memory_space<vmem>>, vector<32x400xbf16>
    %cst_149 = arith.constant dense<0.000000e+00> : vector<32x400xf32>
    %172 = tpu.matmul %170, %171, %cst_149 {dimension_numbers = #tpu.dot_dimension_numbers<[1], [0], [0], [1], [0, 0, 1, 1], [], []>} : vector<32x32xbf16>, vector<32x400xbf16>, vector<32x400xf32> -> vector<32x400xf32>
    %173 = arith.addf %168, %172 : vector<32x400xf32>
    %c3_150 = arith.constant 3 : index
    %c0_151 = arith.constant 0 : index
    %c0_152 = arith.constant 0 : index
    %174 = vector.load %arg4[%c3_150, %c0_151, %c0_152] : memref<25x32x32xbf16, #tpu.memory_space<vmem>>, vector<1x32x32xbf16>
    %175 = vector.shape_cast %174 : vector<1x32x32xbf16> to vector<32x32xbf16>
    %c0_153 = arith.constant 0 : index
    %c89_154 = arith.constant 89 : index
    %176 = vector.load %arg11[%c0_153, %c89_154] : memref<32x640xbf16, #tpu.memory_space<vmem>>, vector<32x400xbf16>
    %cst_155 = arith.constant dense<0.000000e+00> : vector<32x400xf32>
    %177 = tpu.matmul %175, %176, %cst_155 {dimension_numbers = #tpu.dot_dimension_numbers<[1], [0], [0], [1], [0, 0, 1, 1], [], []>} : vector<32x32xbf16>, vector<32x400xbf16>, vector<32x400xf32> -> vector<32x400xf32>
    %178 = arith.addf %173, %177 : vector<32x400xf32>
    %c4_156 = arith.constant 4 : index
    %c0_157 = arith.constant 0 : index
    %c0_158 = arith.constant 0 : index
    %179 = vector.load %arg4[%c4_156, %c0_157, %c0_158] : memref<25x32x32xbf16, #tpu.memory_space<vmem>>, vector<1x32x32xbf16>
    %180 = vector.shape_cast %179 : vector<1x32x32xbf16> to vector<32x32xbf16>
    %c0_159 = arith.constant 0 : index
    %c90_160 = arith.constant 90 : index
    %181 = vector.load %arg11[%c0_159, %c90_160] : memref<32x640xbf16, #tpu.memory_space<vmem>>, vector<32x400xbf16>
    %cst_161 = arith.constant dense<0.000000e+00> : vector<32x400xf32>
    %182 = tpu.matmul %180, %181, %cst_161 {dimension_numbers = #tpu.dot_dimension_numbers<[1], [0], [0], [1], [0, 0, 1, 1], [], []>} : vector<32x32xbf16>, vector<32x400xbf16>, vector<32x400xf32> -> vector<32x400xf32>
    %183 = arith.addf %178, %182 : vector<32x400xf32>
    %c5_162 = arith.constant 5 : index
    %c0_163 = arith.constant 0 : index
    %c0_164 = arith.constant 0 : index
    %184 = vector.load %arg4[%c5_162, %c0_163, %c0_164] : memref<25x32x32xbf16, #tpu.memory_space<vmem>>, vector<1x32x32xbf16>
    %185 = vector.shape_cast %184 : vector<1x32x32xbf16> to vector<32x32xbf16>
    %c0_165 = arith.constant 0 : index
    %c106_166 = arith.constant 106 : index
    %186 = vector.load %arg11[%c0_165, %c106_166] : memref<32x640xbf16, #tpu.memory_space<vmem>>, vector<32x400xbf16>
    %cst_167 = arith.constant dense<0.000000e+00> : vector<32x400xf32>
    %187 = tpu.matmul %185, %186, %cst_167 {dimension_numbers = #tpu.dot_dimension_numbers<[1], [0], [0], [1], [0, 0, 1, 1], [], []>} : vector<32x32xbf16>, vector<32x400xbf16>, vector<32x400xf32> -> vector<32x400xf32>
    %188 = arith.addf %183, %187 : vector<32x400xf32>
    %c6_168 = arith.constant 6 : index
    %c0_169 = arith.constant 0 : index
    %c0_170 = arith.constant 0 : index
    %189 = vector.load %arg4[%c6_168, %c0_169, %c0_170] : memref<25x32x32xbf16, #tpu.memory_space<vmem>>, vector<1x32x32xbf16>
    %190 = vector.shape_cast %189 : vector<1x32x32xbf16> to vector<32x32xbf16>
    %c0_171 = arith.constant 0 : index
    %c107_172 = arith.constant 107 : index
    %191 = vector.load %arg11[%c0_171, %c107_172] : memref<32x640xbf16, #tpu.memory_space<vmem>>, vector<32x400xbf16>
    %cst_173 = arith.constant dense<0.000000e+00> : vector<32x400xf32>
    %192 = tpu.matmul %190, %191, %cst_173 {dimension_numbers = #tpu.dot_dimension_numbers<[1], [0], [0], [1], [0, 0, 1, 1], [], []>} : vector<32x32xbf16>, vector<32x400xbf16>, vector<32x400xf32> -> vector<32x400xf32>
    %193 = arith.addf %188, %192 : vector<32x400xf32>
    %c7_174 = arith.constant 7 : index
    %c0_175 = arith.constant 0 : index
    %c0_176 = arith.constant 0 : index
    %194 = vector.load %arg4[%c7_174, %c0_175, %c0_176] : memref<25x32x32xbf16, #tpu.memory_space<vmem>>, vector<1x32x32xbf16>
    %195 = vector.shape_cast %194 : vector<1x32x32xbf16> to vector<32x32xbf16>
    %c0_177 = arith.constant 0 : index
    %c108_178 = arith.constant 108 : index
    %196 = vector.load %arg11[%c0_177, %c108_178] : memref<32x640xbf16, #tpu.memory_space<vmem>>, vector<32x400xbf16>
    %cst_179 = arith.constant dense<0.000000e+00> : vector<32x400xf32>
    %197 = tpu.matmul %195, %196, %cst_179 {dimension_numbers = #tpu.dot_dimension_numbers<[1], [0], [0], [1], [0, 0, 1, 1], [], []>} : vector<32x32xbf16>, vector<32x400xbf16>, vector<32x400xf32> -> vector<32x400xf32>
    %198 = arith.addf %193, %197 : vector<32x400xf32>
    %c8_180 = arith.constant 8 : index
    %c0_181 = arith.constant 0 : index
    %c0_182 = arith.constant 0 : index
    %199 = vector.load %arg4[%c8_180, %c0_181, %c0_182] : memref<25x32x32xbf16, #tpu.memory_space<vmem>>, vector<1x32x32xbf16>
    %200 = vector.shape_cast %199 : vector<1x32x32xbf16> to vector<32x32xbf16>
    %c0_183 = arith.constant 0 : index
    %c109_184 = arith.constant 109 : index
    %201 = vector.load %arg11[%c0_183, %c109_184] : memref<32x640xbf16, #tpu.memory_space<vmem>>, vector<32x400xbf16>
    %cst_185 = arith.constant dense<0.000000e+00> : vector<32x400xf32>
    %202 = tpu.matmul %200, %201, %cst_185 {dimension_numbers = #tpu.dot_dimension_numbers<[1], [0], [0], [1], [0, 0, 1, 1], [], []>} : vector<32x32xbf16>, vector<32x400xbf16>, vector<32x400xf32> -> vector<32x400xf32>
    %203 = arith.addf %198, %202 : vector<32x400xf32>
    %c9_186 = arith.constant 9 : index
    %c0_187 = arith.constant 0 : index
    %c0_188 = arith.constant 0 : index
    %204 = vector.load %arg4[%c9_186, %c0_187, %c0_188] : memref<25x32x32xbf16, #tpu.memory_space<vmem>>, vector<1x32x32xbf16>
    %205 = vector.shape_cast %204 : vector<1x32x32xbf16> to vector<32x32xbf16>
    %c0_189 = arith.constant 0 : index
    %c110_190 = arith.constant 110 : index
    %206 = vector.load %arg11[%c0_189, %c110_190] : memref<32x640xbf16, #tpu.memory_space<vmem>>, vector<32x400xbf16>
    %cst_191 = arith.constant dense<0.000000e+00> : vector<32x400xf32>
    %207 = tpu.matmul %205, %206, %cst_191 {dimension_numbers = #tpu.dot_dimension_numbers<[1], [0], [0], [1], [0, 0, 1, 1], [], []>} : vector<32x32xbf16>, vector<32x400xbf16>, vector<32x400xf32> -> vector<32x400xf32>
    %208 = arith.addf %203, %207 : vector<32x400xf32>
    %c10_192 = arith.constant 10 : index
    %c0_193 = arith.constant 0 : index
    %c0_194 = arith.constant 0 : index
    %209 = vector.load %arg4[%c10_192, %c0_193, %c0_194] : memref<25x32x32xbf16, #tpu.memory_space<vmem>>, vector<1x32x32xbf16>
    %210 = vector.shape_cast %209 : vector<1x32x32xbf16> to vector<32x32xbf16>
    %c0_195 = arith.constant 0 : index
    %c126_196 = arith.constant 126 : index
    %211 = vector.load %arg11[%c0_195, %c126_196] : memref<32x640xbf16, #tpu.memory_space<vmem>>, vector<32x400xbf16>
    %cst_197 = arith.constant dense<0.000000e+00> : vector<32x400xf32>
    %212 = tpu.matmul %210, %211, %cst_197 {dimension_numbers = #tpu.dot_dimension_numbers<[1], [0], [0], [1], [0, 0, 1, 1], [], []>} : vector<32x32xbf16>, vector<32x400xbf16>, vector<32x400xf32> -> vector<32x400xf32>
    %213 = arith.addf %208, %212 : vector<32x400xf32>
    %c11_198 = arith.constant 11 : index
    %c0_199 = arith.constant 0 : index
    %c0_200 = arith.constant 0 : index
    %214 = vector.load %arg4[%c11_198, %c0_199, %c0_200] : memref<25x32x32xbf16, #tpu.memory_space<vmem>>, vector<1x32x32xbf16>
    %215 = vector.shape_cast %214 : vector<1x32x32xbf16> to vector<32x32xbf16>
    %c0_201 = arith.constant 0 : index
    %c127_202 = arith.constant 127 : index
    %216 = vector.load %arg11[%c0_201, %c127_202] : memref<32x640xbf16, #tpu.memory_space<vmem>>, vector<32x400xbf16>
    %cst_203 = arith.constant dense<0.000000e+00> : vector<32x400xf32>
    %217 = tpu.matmul %215, %216, %cst_203 {dimension_numbers = #tpu.dot_dimension_numbers<[1], [0], [0], [1], [0, 0, 1, 1], [], []>} : vector<32x32xbf16>, vector<32x400xbf16>, vector<32x400xf32> -> vector<32x400xf32>
    %218 = arith.addf %213, %217 : vector<32x400xf32>
    %c12_204 = arith.constant 12 : index
    %c0_205 = arith.constant 0 : index
    %c0_206 = arith.constant 0 : index
    %219 = vector.load %arg4[%c12_204, %c0_205, %c0_206] : memref<25x32x32xbf16, #tpu.memory_space<vmem>>, vector<1x32x32xbf16>
    %220 = vector.shape_cast %219 : vector<1x32x32xbf16> to vector<32x32xbf16>
    %c0_207 = arith.constant 0 : index
    %c128_208 = arith.constant 128 : index
    %221 = vector.load %arg11[%c0_207, %c128_208] : memref<32x640xbf16, #tpu.memory_space<vmem>>, vector<32x400xbf16>
    %cst_209 = arith.constant dense<0.000000e+00> : vector<32x400xf32>
    %222 = tpu.matmul %220, %221, %cst_209 {dimension_numbers = #tpu.dot_dimension_numbers<[1], [0], [0], [1], [0, 0, 1, 1], [], []>} : vector<32x32xbf16>, vector<32x400xbf16>, vector<32x400xf32> -> vector<32x400xf32>
    %223 = arith.addf %218, %222 : vector<32x400xf32>
    %c13_210 = arith.constant 13 : index
    %c0_211 = arith.constant 0 : index
    %c0_212 = arith.constant 0 : index
    %224 = vector.load %arg4[%c13_210, %c0_211, %c0_212] : memref<25x32x32xbf16, #tpu.memory_space<vmem>>, vector<1x32x32xbf16>
    %225 = vector.shape_cast %224 : vector<1x32x32xbf16> to vector<32x32xbf16>
    %c0_213 = arith.constant 0 : index
    %c129_214 = arith.constant 129 : index
    %226 = vector.load %arg11[%c0_213, %c129_214] : memref<32x640xbf16, #tpu.memory_space<vmem>>, vector<32x400xbf16>
    %cst_215 = arith.constant dense<0.000000e+00> : vector<32x400xf32>
    %227 = tpu.matmul %225, %226, %cst_215 {dimension_numbers = #tpu.dot_dimension_numbers<[1], [0], [0], [1], [0, 0, 1, 1], [], []>} : vector<32x32xbf16>, vector<32x400xbf16>, vector<32x400xf32> -> vector<32x400xf32>
    %228 = arith.addf %223, %227 : vector<32x400xf32>
    %c14_216 = arith.constant 14 : index
    %c0_217 = arith.constant 0 : index
    %c0_218 = arith.constant 0 : index
    %229 = vector.load %arg4[%c14_216, %c0_217, %c0_218] : memref<25x32x32xbf16, #tpu.memory_space<vmem>>, vector<1x32x32xbf16>
    %230 = vector.shape_cast %229 : vector<1x32x32xbf16> to vector<32x32xbf16>
    %c0_219 = arith.constant 0 : index
    %c130_220 = arith.constant 130 : index
    %231 = vector.load %arg11[%c0_219, %c130_220] : memref<32x640xbf16, #tpu.memory_space<vmem>>, vector<32x400xbf16>
    %cst_221 = arith.constant dense<0.000000e+00> : vector<32x400xf32>
    %232 = tpu.matmul %230, %231, %cst_221 {dimension_numbers = #tpu.dot_dimension_numbers<[1], [0], [0], [1], [0, 0, 1, 1], [], []>} : vector<32x32xbf16>, vector<32x400xbf16>, vector<32x400xf32> -> vector<32x400xf32>
    %233 = arith.addf %228, %232 : vector<32x400xf32>
    %c15_222 = arith.constant 15 : index
    %c0_223 = arith.constant 0 : index
    %c0_224 = arith.constant 0 : index
    %234 = vector.load %arg4[%c15_222, %c0_223, %c0_224] : memref<25x32x32xbf16, #tpu.memory_space<vmem>>, vector<1x32x32xbf16>
    %235 = vector.shape_cast %234 : vector<1x32x32xbf16> to vector<32x32xbf16>
    %c0_225 = arith.constant 0 : index
    %c146_226 = arith.constant 146 : index
    %236 = vector.load %arg11[%c0_225, %c146_226] : memref<32x640xbf16, #tpu.memory_space<vmem>>, vector<32x400xbf16>
    %cst_227 = arith.constant dense<0.000000e+00> : vector<32x400xf32>
    %237 = tpu.matmul %235, %236, %cst_227 {dimension_numbers = #tpu.dot_dimension_numbers<[1], [0], [0], [1], [0, 0, 1, 1], [], []>} : vector<32x32xbf16>, vector<32x400xbf16>, vector<32x400xf32> -> vector<32x400xf32>
    %238 = arith.addf %233, %237 : vector<32x400xf32>
    %c16_228 = arith.constant 16 : index
    %c0_229 = arith.constant 0 : index
    %c0_230 = arith.constant 0 : index
    %239 = vector.load %arg4[%c16_228, %c0_229, %c0_230] : memref<25x32x32xbf16, #tpu.memory_space<vmem>>, vector<1x32x32xbf16>
    %240 = vector.shape_cast %239 : vector<1x32x32xbf16> to vector<32x32xbf16>
    %c0_231 = arith.constant 0 : index
    %c147_232 = arith.constant 147 : index
    %241 = vector.load %arg11[%c0_231, %c147_232] : memref<32x640xbf16, #tpu.memory_space<vmem>>, vector<32x400xbf16>
    %cst_233 = arith.constant dense<0.000000e+00> : vector<32x400xf32>
    %242 = tpu.matmul %240, %241, %cst_233 {dimension_numbers = #tpu.dot_dimension_numbers<[1], [0], [0], [1], [0, 0, 1, 1], [], []>} : vector<32x32xbf16>, vector<32x400xbf16>, vector<32x400xf32> -> vector<32x400xf32>
    %243 = arith.addf %238, %242 : vector<32x400xf32>
    %c17_234 = arith.constant 17 : index
    %c0_235 = arith.constant 0 : index
    %c0_236 = arith.constant 0 : index
    %244 = vector.load %arg4[%c17_234, %c0_235, %c0_236] : memref<25x32x32xbf16, #tpu.memory_space<vmem>>, vector<1x32x32xbf16>
    %245 = vector.shape_cast %244 : vector<1x32x32xbf16> to vector<32x32xbf16>
    %c0_237 = arith.constant 0 : index
    %c148_238 = arith.constant 148 : index
    %246 = vector.load %arg11[%c0_237, %c148_238] : memref<32x640xbf16, #tpu.memory_space<vmem>>, vector<32x400xbf16>
    %cst_239 = arith.constant dense<0.000000e+00> : vector<32x400xf32>
    %247 = tpu.matmul %245, %246, %cst_239 {dimension_numbers = #tpu.dot_dimension_numbers<[1], [0], [0], [1], [0, 0, 1, 1], [], []>} : vector<32x32xbf16>, vector<32x400xbf16>, vector<32x400xf32> -> vector<32x400xf32>
    %248 = arith.addf %243, %247 : vector<32x400xf32>
    %c18_240 = arith.constant 18 : index
    %c0_241 = arith.constant 0 : index
    %c0_242 = arith.constant 0 : index
    %249 = vector.load %arg4[%c18_240, %c0_241, %c0_242] : memref<25x32x32xbf16, #tpu.memory_space<vmem>>, vector<1x32x32xbf16>
    %250 = vector.shape_cast %249 : vector<1x32x32xbf16> to vector<32x32xbf16>
    %c0_243 = arith.constant 0 : index
    %c149_244 = arith.constant 149 : index
    %251 = vector.load %arg11[%c0_243, %c149_244] : memref<32x640xbf16, #tpu.memory_space<vmem>>, vector<32x400xbf16>
    %cst_245 = arith.constant dense<0.000000e+00> : vector<32x400xf32>
    %252 = tpu.matmul %250, %251, %cst_245 {dimension_numbers = #tpu.dot_dimension_numbers<[1], [0], [0], [1], [0, 0, 1, 1], [], []>} : vector<32x32xbf16>, vector<32x400xbf16>, vector<32x400xf32> -> vector<32x400xf32>
    %253 = arith.addf %248, %252 : vector<32x400xf32>
    %c19_246 = arith.constant 19 : index
    %c0_247 = arith.constant 0 : index
    %c0_248 = arith.constant 0 : index
    %254 = vector.load %arg4[%c19_246, %c0_247, %c0_248] : memref<25x32x32xbf16, #tpu.memory_space<vmem>>, vector<1x32x32xbf16>
    %255 = vector.shape_cast %254 : vector<1x32x32xbf16> to vector<32x32xbf16>
    %c0_249 = arith.constant 0 : index
    %c150_250 = arith.constant 150 : index
    %256 = vector.load %arg11[%c0_249, %c150_250] : memref<32x640xbf16, #tpu.memory_space<vmem>>, vector<32x400xbf16>
    %cst_251 = arith.constant dense<0.000000e+00> : vector<32x400xf32>
    %257 = tpu.matmul %255, %256, %cst_251 {dimension_numbers = #tpu.dot_dimension_numbers<[1], [0], [0], [1], [0, 0, 1, 1], [], []>} : vector<32x32xbf16>, vector<32x400xbf16>, vector<32x400xf32> -> vector<32x400xf32>
    %258 = arith.addf %253, %257 : vector<32x400xf32>
    %c20_252 = arith.constant 20 : index
    %c0_253 = arith.constant 0 : index
    %c0_254 = arith.constant 0 : index
    %259 = vector.load %arg4[%c20_252, %c0_253, %c0_254] : memref<25x32x32xbf16, #tpu.memory_space<vmem>>, vector<1x32x32xbf16>
    %260 = vector.shape_cast %259 : vector<1x32x32xbf16> to vector<32x32xbf16>
    %c0_255 = arith.constant 0 : index
    %c166_256 = arith.constant 166 : index
    %261 = vector.load %arg11[%c0_255, %c166_256] : memref<32x640xbf16, #tpu.memory_space<vmem>>, vector<32x400xbf16>
    %cst_257 = arith.constant dense<0.000000e+00> : vector<32x400xf32>
    %262 = tpu.matmul %260, %261, %cst_257 {dimension_numbers = #tpu.dot_dimension_numbers<[1], [0], [0], [1], [0, 0, 1, 1], [], []>} : vector<32x32xbf16>, vector<32x400xbf16>, vector<32x400xf32> -> vector<32x400xf32>
    %263 = arith.addf %258, %262 : vector<32x400xf32>
    %c21_258 = arith.constant 21 : index
    %c0_259 = arith.constant 0 : index
    %c0_260 = arith.constant 0 : index
    %264 = vector.load %arg4[%c21_258, %c0_259, %c0_260] : memref<25x32x32xbf16, #tpu.memory_space<vmem>>, vector<1x32x32xbf16>
    %265 = vector.shape_cast %264 : vector<1x32x32xbf16> to vector<32x32xbf16>
    %c0_261 = arith.constant 0 : index
    %c167_262 = arith.constant 167 : index
    %266 = vector.load %arg11[%c0_261, %c167_262] : memref<32x640xbf16, #tpu.memory_space<vmem>>, vector<32x400xbf16>
    %cst_263 = arith.constant dense<0.000000e+00> : vector<32x400xf32>
    %267 = tpu.matmul %265, %266, %cst_263 {dimension_numbers = #tpu.dot_dimension_numbers<[1], [0], [0], [1], [0, 0, 1, 1], [], []>} : vector<32x32xbf16>, vector<32x400xbf16>, vector<32x400xf32> -> vector<32x400xf32>
    %268 = arith.addf %263, %267 : vector<32x400xf32>
    %c22_264 = arith.constant 22 : index
    %c0_265 = arith.constant 0 : index
    %c0_266 = arith.constant 0 : index
    %269 = vector.load %arg4[%c22_264, %c0_265, %c0_266] : memref<25x32x32xbf16, #tpu.memory_space<vmem>>, vector<1x32x32xbf16>
    %270 = vector.shape_cast %269 : vector<1x32x32xbf16> to vector<32x32xbf16>
    %c0_267 = arith.constant 0 : index
    %c168_268 = arith.constant 168 : index
    %271 = vector.load %arg11[%c0_267, %c168_268] : memref<32x640xbf16, #tpu.memory_space<vmem>>, vector<32x400xbf16>
    %cst_269 = arith.constant dense<0.000000e+00> : vector<32x400xf32>
    %272 = tpu.matmul %270, %271, %cst_269 {dimension_numbers = #tpu.dot_dimension_numbers<[1], [0], [0], [1], [0, 0, 1, 1], [], []>} : vector<32x32xbf16>, vector<32x400xbf16>, vector<32x400xf32> -> vector<32x400xf32>
    %273 = arith.addf %268, %272 : vector<32x400xf32>
    %c23_270 = arith.constant 23 : index
    %c0_271 = arith.constant 0 : index
    %c0_272 = arith.constant 0 : index
    %274 = vector.load %arg4[%c23_270, %c0_271, %c0_272] : memref<25x32x32xbf16, #tpu.memory_space<vmem>>, vector<1x32x32xbf16>
    %275 = vector.shape_cast %274 : vector<1x32x32xbf16> to vector<32x32xbf16>
    %c0_273 = arith.constant 0 : index
    %c169_274 = arith.constant 169 : index
    %276 = vector.load %arg11[%c0_273, %c169_274] : memref<32x640xbf16, #tpu.memory_space<vmem>>, vector<32x400xbf16>
    %cst_275 = arith.constant dense<0.000000e+00> : vector<32x400xf32>
    %277 = tpu.matmul %275, %276, %cst_275 {dimension_numbers = #tpu.dot_dimension_numbers<[1], [0], [0], [1], [0, 0, 1, 1], [], []>} : vector<32x32xbf16>, vector<32x400xbf16>, vector<32x400xf32> -> vector<32x400xf32>
    %278 = arith.addf %273, %277 : vector<32x400xf32>
    %c24_276 = arith.constant 24 : index
    %c0_277 = arith.constant 0 : index
    %c0_278 = arith.constant 0 : index
    %279 = vector.load %arg4[%c24_276, %c0_277, %c0_278] : memref<25x32x32xbf16, #tpu.memory_space<vmem>>, vector<1x32x32xbf16>
    %280 = vector.shape_cast %279 : vector<1x32x32xbf16> to vector<32x32xbf16>
    %c0_279 = arith.constant 0 : index
    %c170_280 = arith.constant 170 : index
    %281 = vector.load %arg11[%c0_279, %c170_280] : memref<32x640xbf16, #tpu.memory_space<vmem>>, vector<32x400xbf16>
    %cst_281 = arith.constant dense<0.000000e+00> : vector<32x400xf32>
    %282 = tpu.matmul %280, %281, %cst_281 {dimension_numbers = #tpu.dot_dimension_numbers<[1], [0], [0], [1], [0, 0, 1, 1], [], []>} : vector<32x32xbf16>, vector<32x400xbf16>, vector<32x400xf32> -> vector<32x400xf32>
    %283 = arith.addf %278, %282 : vector<32x400xf32>
    %c2_282 = arith.constant 2 : index
    %c0_283 = arith.constant 0 : index
    %c0_284 = arith.constant 0 : index
    %284 = vector.load %arg6[%c2_282, %c0_283, %c0_284] : memref<4x32x1xf32, #tpu.memory_space<vmem>>, vector<1x32x1xf32>
    %285 = vector.shape_cast %284 : vector<1x32x1xf32> to vector<32x1xf32>
    %286 = vector.broadcast %285 : vector<32x1xf32> to vector<32x400xf32>
    %287 = arith.addf %283, %286 : vector<32x400xf32>
    %cst_285 = arith.constant 0.000000e+00 : f32
    %288 = vector.broadcast %cst_285 : f32 to vector<32x400xf32>
    %289 = arith.maximumf %287, %288 : vector<32x400xf32>
    %290 = vector.broadcast %0 : vector<1x400xf32> to vector<32x400xf32>
    %291 = arith.mulf %289, %290 : vector<32x400xf32>
    %292 = arith.truncf %291 : vector<32x400xf32> to vector<32x400xbf16>
    %c0_286 = arith.constant 0 : index
    %c128_287 = arith.constant 128 : index
    %293 = vector.load %arg10[%c0_286, %c128_287] : memref<32x640xbf16, #tpu.memory_space<vmem>>, vector<32x400xbf16>
    tpu.vector_store %arg10[%c0_286, %c128_287], %292 {strides = array<i32>} : memref<32x640xbf16, #tpu.memory_space<vmem>>, vector<32x400xbf16>,
    %cst_288 = arith.constant 0.000000e+00 : f32
    %294 = vector.broadcast %cst_288 : f32 to vector<32x400xf32>
    %c0_289 = arith.constant 0 : index
    %c0_290 = arith.constant 0 : index
    %c0_291 = arith.constant 0 : index
    %295 = vector.load %arg5[%c0_289, %c0_290, %c0_291] : memref<25x32x32xbf16, #tpu.memory_space<vmem>>, vector<1x32x32xbf16>
    %296 = vector.shape_cast %295 : vector<1x32x32xbf16> to vector<32x32xbf16>
    %c0_292 = arith.constant 0 : index
    %c86_293 = arith.constant 86 : index
    %297 = vector.load %arg10[%c0_292, %c86_293] : memref<32x640xbf16, #tpu.memory_space<vmem>>, vector<32x400xbf16>
    %cst_294 = arith.constant dense<0.000000e+00> : vector<32x400xf32>
    %298 = tpu.matmul %296, %297, %cst_294 {dimension_numbers = #tpu.dot_dimension_numbers<[1], [0], [0], [1], [0, 0, 1, 1], [], []>} : vector<32x32xbf16>, vector<32x400xbf16>, vector<32x400xf32> -> vector<32x400xf32>
    %299 = arith.addf %294, %298 : vector<32x400xf32>
    %c1_295 = arith.constant 1 : index
    %c0_296 = arith.constant 0 : index
    %c0_297 = arith.constant 0 : index
    %300 = vector.load %arg5[%c1_295, %c0_296, %c0_297] : memref<25x32x32xbf16, #tpu.memory_space<vmem>>, vector<1x32x32xbf16>
    %301 = vector.shape_cast %300 : vector<1x32x32xbf16> to vector<32x32xbf16>
    %c0_298 = arith.constant 0 : index
    %c87_299 = arith.constant 87 : index
    %302 = vector.load %arg10[%c0_298, %c87_299] : memref<32x640xbf16, #tpu.memory_space<vmem>>, vector<32x400xbf16>
    %cst_300 = arith.constant dense<0.000000e+00> : vector<32x400xf32>
    %303 = tpu.matmul %301, %302, %cst_300 {dimension_numbers = #tpu.dot_dimension_numbers<[1], [0], [0], [1], [0, 0, 1, 1], [], []>} : vector<32x32xbf16>, vector<32x400xbf16>, vector<32x400xf32> -> vector<32x400xf32>
    %304 = arith.addf %299, %303 : vector<32x400xf32>
    %c2_301 = arith.constant 2 : index
    %c0_302 = arith.constant 0 : index
    %c0_303 = arith.constant 0 : index
    %305 = vector.load %arg5[%c2_301, %c0_302, %c0_303] : memref<25x32x32xbf16, #tpu.memory_space<vmem>>, vector<1x32x32xbf16>
    %306 = vector.shape_cast %305 : vector<1x32x32xbf16> to vector<32x32xbf16>
    %c0_304 = arith.constant 0 : index
    %c88_305 = arith.constant 88 : index
    %307 = vector.load %arg10[%c0_304, %c88_305] : memref<32x640xbf16, #tpu.memory_space<vmem>>, vector<32x400xbf16>
    %cst_306 = arith.constant dense<0.000000e+00> : vector<32x400xf32>
    %308 = tpu.matmul %306, %307, %cst_306 {dimension_numbers = #tpu.dot_dimension_numbers<[1], [0], [0], [1], [0, 0, 1, 1], [], []>} : vector<32x32xbf16>, vector<32x400xbf16>, vector<32x400xf32> -> vector<32x400xf32>
    %309 = arith.addf %304, %308 : vector<32x400xf32>
    %c3_307 = arith.constant 3 : index
    %c0_308 = arith.constant 0 : index
    %c0_309 = arith.constant 0 : index
    %310 = vector.load %arg5[%c3_307, %c0_308, %c0_309] : memref<25x32x32xbf16, #tpu.memory_space<vmem>>, vector<1x32x32xbf16>
    %311 = vector.shape_cast %310 : vector<1x32x32xbf16> to vector<32x32xbf16>
    %c0_310 = arith.constant 0 : index
    %c89_311 = arith.constant 89 : index
    %312 = vector.load %arg10[%c0_310, %c89_311] : memref<32x640xbf16, #tpu.memory_space<vmem>>, vector<32x400xbf16>
    %cst_312 = arith.constant dense<0.000000e+00> : vector<32x400xf32>
    %313 = tpu.matmul %311, %312, %cst_312 {dimension_numbers = #tpu.dot_dimension_numbers<[1], [0], [0], [1], [0, 0, 1, 1], [], []>} : vector<32x32xbf16>, vector<32x400xbf16>, vector<32x400xf32> -> vector<32x400xf32>
    %314 = arith.addf %309, %313 : vector<32x400xf32>
    %c4_313 = arith.constant 4 : index
    %c0_314 = arith.constant 0 : index
    %c0_315 = arith.constant 0 : index
    %315 = vector.load %arg5[%c4_313, %c0_314, %c0_315] : memref<25x32x32xbf16, #tpu.memory_space<vmem>>, vector<1x32x32xbf16>
    %316 = vector.shape_cast %315 : vector<1x32x32xbf16> to vector<32x32xbf16>
    %c0_316 = arith.constant 0 : index
    %c90_317 = arith.constant 90 : index
    %317 = vector.load %arg10[%c0_316, %c90_317] : memref<32x640xbf16, #tpu.memory_space<vmem>>, vector<32x400xbf16>
    %cst_318 = arith.constant dense<0.000000e+00> : vector<32x400xf32>
    %318 = tpu.matmul %316, %317, %cst_318 {dimension_numbers = #tpu.dot_dimension_numbers<[1], [0], [0], [1], [0, 0, 1, 1], [], []>} : vector<32x32xbf16>, vector<32x400xbf16>, vector<32x400xf32> -> vector<32x400xf32>
    %319 = arith.addf %314, %318 : vector<32x400xf32>
    %c5_319 = arith.constant 5 : index
    %c0_320 = arith.constant 0 : index
    %c0_321 = arith.constant 0 : index
    %320 = vector.load %arg5[%c5_319, %c0_320, %c0_321] : memref<25x32x32xbf16, #tpu.memory_space<vmem>>, vector<1x32x32xbf16>
    %321 = vector.shape_cast %320 : vector<1x32x32xbf16> to vector<32x32xbf16>
    %c0_322 = arith.constant 0 : index
    %c106_323 = arith.constant 106 : index
    %322 = vector.load %arg10[%c0_322, %c106_323] : memref<32x640xbf16, #tpu.memory_space<vmem>>, vector<32x400xbf16>
    %cst_324 = arith.constant dense<0.000000e+00> : vector<32x400xf32>
    %323 = tpu.matmul %321, %322, %cst_324 {dimension_numbers = #tpu.dot_dimension_numbers<[1], [0], [0], [1], [0, 0, 1, 1], [], []>} : vector<32x32xbf16>, vector<32x400xbf16>, vector<32x400xf32> -> vector<32x400xf32>
    %324 = arith.addf %319, %323 : vector<32x400xf32>
    %c6_325 = arith.constant 6 : index
    %c0_326 = arith.constant 0 : index
    %c0_327 = arith.constant 0 : index
    %325 = vector.load %arg5[%c6_325, %c0_326, %c0_327] : memref<25x32x32xbf16, #tpu.memory_space<vmem>>, vector<1x32x32xbf16>
    %326 = vector.shape_cast %325 : vector<1x32x32xbf16> to vector<32x32xbf16>
    %c0_328 = arith.constant 0 : index
    %c107_329 = arith.constant 107 : index
    %327 = vector.load %arg10[%c0_328, %c107_329] : memref<32x640xbf16, #tpu.memory_space<vmem>>, vector<32x400xbf16>
    %cst_330 = arith.constant dense<0.000000e+00> : vector<32x400xf32>
    %328 = tpu.matmul %326, %327, %cst_330 {dimension_numbers = #tpu.dot_dimension_numbers<[1], [0], [0], [1], [0, 0, 1, 1], [], []>} : vector<32x32xbf16>, vector<32x400xbf16>, vector<32x400xf32> -> vector<32x400xf32>
    %329 = arith.addf %324, %328 : vector<32x400xf32>
    %c7_331 = arith.constant 7 : index
    %c0_332 = arith.constant 0 : index
    %c0_333 = arith.constant 0 : index
    %330 = vector.load %arg5[%c7_331, %c0_332, %c0_333] : memref<25x32x32xbf16, #tpu.memory_space<vmem>>, vector<1x32x32xbf16>
    %331 = vector.shape_cast %330 : vector<1x32x32xbf16> to vector<32x32xbf16>
    %c0_334 = arith.constant 0 : index
    %c108_335 = arith.constant 108 : index
    %332 = vector.load %arg10[%c0_334, %c108_335] : memref<32x640xbf16, #tpu.memory_space<vmem>>, vector<32x400xbf16>
    %cst_336 = arith.constant dense<0.000000e+00> : vector<32x400xf32>
    %333 = tpu.matmul %331, %332, %cst_336 {dimension_numbers = #tpu.dot_dimension_numbers<[1], [0], [0], [1], [0, 0, 1, 1], [], []>} : vector<32x32xbf16>, vector<32x400xbf16>, vector<32x400xf32> -> vector<32x400xf32>
    %334 = arith.addf %329, %333 : vector<32x400xf32>
    %c8_337 = arith.constant 8 : index
    %c0_338 = arith.constant 0 : index
    %c0_339 = arith.constant 0 : index
    %335 = vector.load %arg5[%c8_337, %c0_338, %c0_339] : memref<25x32x32xbf16, #tpu.memory_space<vmem>>, vector<1x32x32xbf16>
    %336 = vector.shape_cast %335 : vector<1x32x32xbf16> to vector<32x32xbf16>
    %c0_340 = arith.constant 0 : index
    %c109_341 = arith.constant 109 : index
    %337 = vector.load %arg10[%c0_340, %c109_341] : memref<32x640xbf16, #tpu.memory_space<vmem>>, vector<32x400xbf16>
    %cst_342 = arith.constant dense<0.000000e+00> : vector<32x400xf32>
    %338 = tpu.matmul %336, %337, %cst_342 {dimension_numbers = #tpu.dot_dimension_numbers<[1], [0], [0], [1], [0, 0, 1, 1], [], []>} : vector<32x32xbf16>, vector<32x400xbf16>, vector<32x400xf32> -> vector<32x400xf32>
    %339 = arith.addf %334, %338 : vector<32x400xf32>
    %c9_343 = arith.constant 9 : index
    %c0_344 = arith.constant 0 : index
    %c0_345 = arith.constant 0 : index
    %340 = vector.load %arg5[%c9_343, %c0_344, %c0_345] : memref<25x32x32xbf16, #tpu.memory_space<vmem>>, vector<1x32x32xbf16>
    %341 = vector.shape_cast %340 : vector<1x32x32xbf16> to vector<32x32xbf16>
    %c0_346 = arith.constant 0 : index
    %c110_347 = arith.constant 110 : index
    %342 = vector.load %arg10[%c0_346, %c110_347] : memref<32x640xbf16, #tpu.memory_space<vmem>>, vector<32x400xbf16>
    %cst_348 = arith.constant dense<0.000000e+00> : vector<32x400xf32>
    %343 = tpu.matmul %341, %342, %cst_348 {dimension_numbers = #tpu.dot_dimension_numbers<[1], [0], [0], [1], [0, 0, 1, 1], [], []>} : vector<32x32xbf16>, vector<32x400xbf16>, vector<32x400xf32> -> vector<32x400xf32>
    %344 = arith.addf %339, %343 : vector<32x400xf32>
    %c10_349 = arith.constant 10 : index
    %c0_350 = arith.constant 0 : index
    %c0_351 = arith.constant 0 : index
    %345 = vector.load %arg5[%c10_349, %c0_350, %c0_351] : memref<25x32x32xbf16, #tpu.memory_space<vmem>>, vector<1x32x32xbf16>
    %346 = vector.shape_cast %345 : vector<1x32x32xbf16> to vector<32x32xbf16>
    %c0_352 = arith.constant 0 : index
    %c126_353 = arith.constant 126 : index
    %347 = vector.load %arg10[%c0_352, %c126_353] : memref<32x640xbf16, #tpu.memory_space<vmem>>, vector<32x400xbf16>
    %cst_354 = arith.constant dense<0.000000e+00> : vector<32x400xf32>
    %348 = tpu.matmul %346, %347, %cst_354 {dimension_numbers = #tpu.dot_dimension_numbers<[1], [0], [0], [1], [0, 0, 1, 1], [], []>} : vector<32x32xbf16>, vector<32x400xbf16>, vector<32x400xf32> -> vector<32x400xf32>
    %349 = arith.addf %344, %348 : vector<32x400xf32>
    %c11_355 = arith.constant 11 : index
    %c0_356 = arith.constant 0 : index
    %c0_357 = arith.constant 0 : index
    %350 = vector.load %arg5[%c11_355, %c0_356, %c0_357] : memref<25x32x32xbf16, #tpu.memory_space<vmem>>, vector<1x32x32xbf16>
    %351 = vector.shape_cast %350 : vector<1x32x32xbf16> to vector<32x32xbf16>
    %c0_358 = arith.constant 0 : index
    %c127_359 = arith.constant 127 : index
    %352 = vector.load %arg10[%c0_358, %c127_359] : memref<32x640xbf16, #tpu.memory_space<vmem>>, vector<32x400xbf16>
    %cst_360 = arith.constant dense<0.000000e+00> : vector<32x400xf32>
    %353 = tpu.matmul %351, %352, %cst_360 {dimension_numbers = #tpu.dot_dimension_numbers<[1], [0], [0], [1], [0, 0, 1, 1], [], []>} : vector<32x32xbf16>, vector<32x400xbf16>, vector<32x400xf32> -> vector<32x400xf32>
    %354 = arith.addf %349, %353 : vector<32x400xf32>
    %c12_361 = arith.constant 12 : index
    %c0_362 = arith.constant 0 : index
    %c0_363 = arith.constant 0 : index
    %355 = vector.load %arg5[%c12_361, %c0_362, %c0_363] : memref<25x32x32xbf16, #tpu.memory_space<vmem>>, vector<1x32x32xbf16>
    %356 = vector.shape_cast %355 : vector<1x32x32xbf16> to vector<32x32xbf16>
    %c0_364 = arith.constant 0 : index
    %c128_365 = arith.constant 128 : index
    %357 = vector.load %arg10[%c0_364, %c128_365] : memref<32x640xbf16, #tpu.memory_space<vmem>>, vector<32x400xbf16>
    %cst_366 = arith.constant dense<0.000000e+00> : vector<32x400xf32>
    %358 = tpu.matmul %356, %357, %cst_366 {dimension_numbers = #tpu.dot_dimension_numbers<[1], [0], [0], [1], [0, 0, 1, 1], [], []>} : vector<32x32xbf16>, vector<32x400xbf16>, vector<32x400xf32> -> vector<32x400xf32>
    %359 = arith.addf %354, %358 : vector<32x400xf32>
    %c13_367 = arith.constant 13 : index
    %c0_368 = arith.constant 0 : index
    %c0_369 = arith.constant 0 : index
    %360 = vector.load %arg5[%c13_367, %c0_368, %c0_369] : memref<25x32x32xbf16, #tpu.memory_space<vmem>>, vector<1x32x32xbf16>
    %361 = vector.shape_cast %360 : vector<1x32x32xbf16> to vector<32x32xbf16>
    %c0_370 = arith.constant 0 : index
    %c129_371 = arith.constant 129 : index
    %362 = vector.load %arg10[%c0_370, %c129_371] : memref<32x640xbf16, #tpu.memory_space<vmem>>, vector<32x400xbf16>
    %cst_372 = arith.constant dense<0.000000e+00> : vector<32x400xf32>
    %363 = tpu.matmul %361, %362, %cst_372 {dimension_numbers = #tpu.dot_dimension_numbers<[1], [0], [0], [1], [0, 0, 1, 1], [], []>} : vector<32x32xbf16>, vector<32x400xbf16>, vector<32x400xf32> -> vector<32x400xf32>
    %364 = arith.addf %359, %363 : vector<32x400xf32>
    %c14_373 = arith.constant 14 : index
    %c0_374 = arith.constant 0 : index
    %c0_375 = arith.constant 0 : index
    %365 = vector.load %arg5[%c14_373, %c0_374, %c0_375] : memref<25x32x32xbf16, #tpu.memory_space<vmem>>, vector<1x32x32xbf16>
    %366 = vector.shape_cast %365 : vector<1x32x32xbf16> to vector<32x32xbf16>
    %c0_376 = arith.constant 0 : index
    %c130_377 = arith.constant 130 : index
    %367 = vector.load %arg10[%c0_376, %c130_377] : memref<32x640xbf16, #tpu.memory_space<vmem>>, vector<32x400xbf16>
    %cst_378 = arith.constant dense<0.000000e+00> : vector<32x400xf32>
    %368 = tpu.matmul %366, %367, %cst_378 {dimension_numbers = #tpu.dot_dimension_numbers<[1], [0], [0], [1], [0, 0, 1, 1], [], []>} : vector<32x32xbf16>, vector<32x400xbf16>, vector<32x400xf32> -> vector<32x400xf32>
    %369 = arith.addf %364, %368 : vector<32x400xf32>
    %c15_379 = arith.constant 15 : index
    %c0_380 = arith.constant 0 : index
    %c0_381 = arith.constant 0 : index
    %370 = vector.load %arg5[%c15_379, %c0_380, %c0_381] : memref<25x32x32xbf16, #tpu.memory_space<vmem>>, vector<1x32x32xbf16>
    %371 = vector.shape_cast %370 : vector<1x32x32xbf16> to vector<32x32xbf16>
    %c0_382 = arith.constant 0 : index
    %c146_383 = arith.constant 146 : index
    %372 = vector.load %arg10[%c0_382, %c146_383] : memref<32x640xbf16, #tpu.memory_space<vmem>>, vector<32x400xbf16>
    %cst_384 = arith.constant dense<0.000000e+00> : vector<32x400xf32>
    %373 = tpu.matmul %371, %372, %cst_384 {dimension_numbers = #tpu.dot_dimension_numbers<[1], [0], [0], [1], [0, 0, 1, 1], [], []>} : vector<32x32xbf16>, vector<32x400xbf16>, vector<32x400xf32> -> vector<32x400xf32>
    %374 = arith.addf %369, %373 : vector<32x400xf32>
    %c16_385 = arith.constant 16 : index
    %c0_386 = arith.constant 0 : index
    %c0_387 = arith.constant 0 : index
    %375 = vector.load %arg5[%c16_385, %c0_386, %c0_387] : memref<25x32x32xbf16, #tpu.memory_space<vmem>>, vector<1x32x32xbf16>
    %376 = vector.shape_cast %375 : vector<1x32x32xbf16> to vector<32x32xbf16>
    %c0_388 = arith.constant 0 : index
    %c147_389 = arith.constant 147 : index
    %377 = vector.load %arg10[%c0_388, %c147_389] : memref<32x640xbf16, #tpu.memory_space<vmem>>, vector<32x400xbf16>
    %cst_390 = arith.constant dense<0.000000e+00> : vector<32x400xf32>
    %378 = tpu.matmul %376, %377, %cst_390 {dimension_numbers = #tpu.dot_dimension_numbers<[1], [0], [0], [1], [0, 0, 1, 1], [], []>} : vector<32x32xbf16>, vector<32x400xbf16>, vector<32x400xf32> -> vector<32x400xf32>
    %379 = arith.addf %374, %378 : vector<32x400xf32>
    %c17_391 = arith.constant 17 : index
    %c0_392 = arith.constant 0 : index
    %c0_393 = arith.constant 0 : index
    %380 = vector.load %arg5[%c17_391, %c0_392, %c0_393] : memref<25x32x32xbf16, #tpu.memory_space<vmem>>, vector<1x32x32xbf16>
    %381 = vector.shape_cast %380 : vector<1x32x32xbf16> to vector<32x32xbf16>
    %c0_394 = arith.constant 0 : index
    %c148_395 = arith.constant 148 : index
    %382 = vector.load %arg10[%c0_394, %c148_395] : memref<32x640xbf16, #tpu.memory_space<vmem>>, vector<32x400xbf16>
    %cst_396 = arith.constant dense<0.000000e+00> : vector<32x400xf32>
    %383 = tpu.matmul %381, %382, %cst_396 {dimension_numbers = #tpu.dot_dimension_numbers<[1], [0], [0], [1], [0, 0, 1, 1], [], []>} : vector<32x32xbf16>, vector<32x400xbf16>, vector<32x400xf32> -> vector<32x400xf32>
    %384 = arith.addf %379, %383 : vector<32x400xf32>
    %c18_397 = arith.constant 18 : index
    %c0_398 = arith.constant 0 : index
    %c0_399 = arith.constant 0 : index
    %385 = vector.load %arg5[%c18_397, %c0_398, %c0_399] : memref<25x32x32xbf16, #tpu.memory_space<vmem>>, vector<1x32x32xbf16>
    %386 = vector.shape_cast %385 : vector<1x32x32xbf16> to vector<32x32xbf16>
    %c0_400 = arith.constant 0 : index
    %c149_401 = arith.constant 149 : index
    %387 = vector.load %arg10[%c0_400, %c149_401] : memref<32x640xbf16, #tpu.memory_space<vmem>>, vector<32x400xbf16>
    %cst_402 = arith.constant dense<0.000000e+00> : vector<32x400xf32>
    %388 = tpu.matmul %386, %387, %cst_402 {dimension_numbers = #tpu.dot_dimension_numbers<[1], [0], [0], [1], [0, 0, 1, 1], [], []>} : vector<32x32xbf16>, vector<32x400xbf16>, vector<32x400xf32> -> vector<32x400xf32>
    %389 = arith.addf %384, %388 : vector<32x400xf32>
    %c19_403 = arith.constant 19 : index
    %c0_404 = arith.constant 0 : index
    %c0_405 = arith.constant 0 : index
    %390 = vector.load %arg5[%c19_403, %c0_404, %c0_405] : memref<25x32x32xbf16, #tpu.memory_space<vmem>>, vector<1x32x32xbf16>
    %391 = vector.shape_cast %390 : vector<1x32x32xbf16> to vector<32x32xbf16>
    %c0_406 = arith.constant 0 : index
    %c150_407 = arith.constant 150 : index
    %392 = vector.load %arg10[%c0_406, %c150_407] : memref<32x640xbf16, #tpu.memory_space<vmem>>, vector<32x400xbf16>
    %cst_408 = arith.constant dense<0.000000e+00> : vector<32x400xf32>
    %393 = tpu.matmul %391, %392, %cst_408 {dimension_numbers = #tpu.dot_dimension_numbers<[1], [0], [0], [1], [0, 0, 1, 1], [], []>} : vector<32x32xbf16>, vector<32x400xbf16>, vector<32x400xf32> -> vector<32x400xf32>
    %394 = arith.addf %389, %393 : vector<32x400xf32>
    %c20_409 = arith.constant 20 : index
    %c0_410 = arith.constant 0 : index
    %c0_411 = arith.constant 0 : index
    %395 = vector.load %arg5[%c20_409, %c0_410, %c0_411] : memref<25x32x32xbf16, #tpu.memory_space<vmem>>, vector<1x32x32xbf16>
    %396 = vector.shape_cast %395 : vector<1x32x32xbf16> to vector<32x32xbf16>
    %c0_412 = arith.constant 0 : index
    %c166_413 = arith.constant 166 : index
    %397 = vector.load %arg10[%c0_412, %c166_413] : memref<32x640xbf16, #tpu.memory_space<vmem>>, vector<32x400xbf16>
    %cst_414 = arith.constant dense<0.000000e+00> : vector<32x400xf32>
    %398 = tpu.matmul %396, %397, %cst_414 {dimension_numbers = #tpu.dot_dimension_numbers<[1], [0], [0], [1], [0, 0, 1, 1], [], []>} : vector<32x32xbf16>, vector<32x400xbf16>, vector<32x400xf32> -> vector<32x400xf32>
    %399 = arith.addf %394, %398 : vector<32x400xf32>
    %c21_415 = arith.constant 21 : index
    %c0_416 = arith.constant 0 : index
    %c0_417 = arith.constant 0 : index
    %400 = vector.load %arg5[%c21_415, %c0_416, %c0_417] : memref<25x32x32xbf16, #tpu.memory_space<vmem>>, vector<1x32x32xbf16>
    %401 = vector.shape_cast %400 : vector<1x32x32xbf16> to vector<32x32xbf16>
    %c0_418 = arith.constant 0 : index
    %c167_419 = arith.constant 167 : index
    %402 = vector.load %arg10[%c0_418, %c167_419] : memref<32x640xbf16, #tpu.memory_space<vmem>>, vector<32x400xbf16>
    %cst_420 = arith.constant dense<0.000000e+00> : vector<32x400xf32>
    %403 = tpu.matmul %401, %402, %cst_420 {dimension_numbers = #tpu.dot_dimension_numbers<[1], [0], [0], [1], [0, 0, 1, 1], [], []>} : vector<32x32xbf16>, vector<32x400xbf16>, vector<32x400xf32> -> vector<32x400xf32>
    %404 = arith.addf %399, %403 : vector<32x400xf32>
    %c22_421 = arith.constant 22 : index
    %c0_422 = arith.constant 0 : index
    %c0_423 = arith.constant 0 : index
    %405 = vector.load %arg5[%c22_421, %c0_422, %c0_423] : memref<25x32x32xbf16, #tpu.memory_space<vmem>>, vector<1x32x32xbf16>
    %406 = vector.shape_cast %405 : vector<1x32x32xbf16> to vector<32x32xbf16>
    %c0_424 = arith.constant 0 : index
    %c168_425 = arith.constant 168 : index
    %407 = vector.load %arg10[%c0_424, %c168_425] : memref<32x640xbf16, #tpu.memory_space<vmem>>, vector<32x400xbf16>
    %cst_426 = arith.constant dense<0.000000e+00> : vector<32x400xf32>
    %408 = tpu.matmul %406, %407, %cst_426 {dimension_numbers = #tpu.dot_dimension_numbers<[1], [0], [0], [1], [0, 0, 1, 1], [], []>} : vector<32x32xbf16>, vector<32x400xbf16>, vector<32x400xf32> -> vector<32x400xf32>
    %409 = arith.addf %404, %408 : vector<32x400xf32>
    %c23_427 = arith.constant 23 : index
    %c0_428 = arith.constant 0 : index
    %c0_429 = arith.constant 0 : index
    %410 = vector.load %arg5[%c23_427, %c0_428, %c0_429] : memref<25x32x32xbf16, #tpu.memory_space<vmem>>, vector<1x32x32xbf16>
    %411 = vector.shape_cast %410 : vector<1x32x32xbf16> to vector<32x32xbf16>
    %c0_430 = arith.constant 0 : index
    %c169_431 = arith.constant 169 : index
    %412 = vector.load %arg10[%c0_430, %c169_431] : memref<32x640xbf16, #tpu.memory_space<vmem>>, vector<32x400xbf16>
    %cst_432 = arith.constant dense<0.000000e+00> : vector<32x400xf32>
    %413 = tpu.matmul %411, %412, %cst_432 {dimension_numbers = #tpu.dot_dimension_numbers<[1], [0], [0], [1], [0, 0, 1, 1], [], []>} : vector<32x32xbf16>, vector<32x400xbf16>, vector<32x400xf32> -> vector<32x400xf32>
    %414 = arith.addf %409, %413 : vector<32x400xf32>
    %c24_433 = arith.constant 24 : index
    %c0_434 = arith.constant 0 : index
    %c0_435 = arith.constant 0 : index
    %415 = vector.load %arg5[%c24_433, %c0_434, %c0_435] : memref<25x32x32xbf16, #tpu.memory_space<vmem>>, vector<1x32x32xbf16>
    %416 = vector.shape_cast %415 : vector<1x32x32xbf16> to vector<32x32xbf16>
    %c0_436 = arith.constant 0 : index
    %c170_437 = arith.constant 170 : index
    %417 = vector.load %arg10[%c0_436, %c170_437] : memref<32x640xbf16, #tpu.memory_space<vmem>>, vector<32x400xbf16>
    %cst_438 = arith.constant dense<0.000000e+00> : vector<32x400xf32>
    %418 = tpu.matmul %416, %417, %cst_438 {dimension_numbers = #tpu.dot_dimension_numbers<[1], [0], [0], [1], [0, 0, 1, 1], [], []>} : vector<32x32xbf16>, vector<32x400xbf16>, vector<32x400xf32> -> vector<32x400xf32>
    %419 = arith.addf %414, %418 : vector<32x400xf32>
    %c3_439 = arith.constant 3 : index
    %c0_440 = arith.constant 0 : index
    %c0_441 = arith.constant 0 : index
    %420 = vector.load %arg6[%c3_439, %c0_440, %c0_441] : memref<4x32x1xf32, #tpu.memory_space<vmem>>, vector<1x32x1xf32>
    %421 = vector.shape_cast %420 : vector<1x32x1xf32> to vector<32x1xf32>
    %422 = vector.broadcast %421 : vector<32x1xf32> to vector<32x400xf32>
    %423 = arith.addf %419, %422 : vector<32x400xf32>
    %cst_442 = arith.constant 0.000000e+00 : f32
    %424 = vector.broadcast %cst_442 : f32 to vector<32x400xf32>
    %425 = arith.maximumf %423, %424 : vector<32x400xf32>
    %426 = vector.broadcast %0 : vector<1x400xf32> to vector<32x400xf32>
    %427 = arith.mulf %425, %426 : vector<32x400xf32>
    %428 = arith.addf %427, %1 : vector<32x400xf32>
    %c0_443 = arith.constant 0 : index
    %c0_444 = arith.constant 0 : index
    %c0_445 = arith.constant 0 : index
    %429 = vector.load %arg9[%c0_443, %c0_444, %c0_445] : memref<1x32x400xf32, #tpu.memory_space<vmem>>, vector<1x32x400xf32>
    %430 = vector.shape_cast %429 : vector<1x32x400xf32> to vector<32x400xf32>
    %431 = vector.shape_cast %428 : vector<32x400xf32> to vector<1x32x400xf32>
    tpu.vector_store %arg9[%c0_443, %c0_444, %c0_445], %431 {strides = array<i32>} : memref<1x32x400xf32, #tpu.memory_space<vmem>>, vector<1x32x400xf32>,
    return
  }
  func.func @transform_0(%arg0: i32) -> (i32, i32, i32) {
    %c0_i32 = arith.constant 0 : i32
    %c0_i32_0 = arith.constant 0 : i32
    %c0_i32_1 = arith.constant 0 : i32
    return %arg0, %c0_i32, %c0_i32_0 : i32, i32, i32
  }
  func.func @transform_1(%arg0: i32) -> (i32, i32) {
    %c0_i32 = arith.constant 0 : i32
    %c0_i32_0 = arith.constant 0 : i32
    %c0_i32_1 = arith.constant 0 : i32
    return %c0_i32, %c0_i32_0 : i32, i32
  }
  func.func @transform_2(%arg0: i32) -> (i32, i32, i32) {
    %c0_i32 = arith.constant 0 : i32
    %c0_i32_0 = arith.constant 0 : i32
    %c0_i32_1 = arith.constant 0 : i32
    %c0_i32_2 = arith.constant 0 : i32
    return %c0_i32, %c0_i32_0, %c0_i32_1 : i32, i32, i32
  }
  func.func @transform_3(%arg0: i32) -> (i32, i32, i32) {
    %c0_i32 = arith.constant 0 : i32
    %c0_i32_0 = arith.constant 0 : i32
    %c0_i32_1 = arith.constant 0 : i32
    %c0_i32_2 = arith.constant 0 : i32
    return %c0_i32, %c0_i32_0, %c0_i32_1 : i32, i32, i32
  }
  func.func @transform_4(%arg0: i32) -> (i32, i32, i32) {
    %c0_i32 = arith.constant 0 : i32
    %c0_i32_0 = arith.constant 0 : i32
    %c0_i32_1 = arith.constant 0 : i32
    %c0_i32_2 = arith.constant 0 : i32
    return %c0_i32, %c0_i32_0, %c0_i32_1 : i32, i32, i32
  }
  func.func @transform_5(%arg0: i32) -> (i32, i32, i32) {
    %c0_i32 = arith.constant 0 : i32
    %c0_i32_0 = arith.constant 0 : i32
    %c0_i32_1 = arith.constant 0 : i32
    %c0_i32_2 = arith.constant 0 : i32
    return %c0_i32, %c0_i32_0, %c0_i32_1 : i32, i32, i32
  }
  func.func @transform_6(%arg0: i32) -> (i32, i32) {
    %c0_i32 = arith.constant 0 : i32
    %c0_i32_0 = arith.constant 0 : i32
    %c0_i32_1 = arith.constant 0 : i32
    return %c0_i32, %c0_i32_0 : i32, i32
  }
  func.func @transform_7(%arg0: i32) -> (i32, i32) {
    %c0_i32 = arith.constant 0 : i32
    %c0_i32_0 = arith.constant 0 : i32
    %c0_i32_1 = arith.constant 0 : i32
    return %c0_i32, %c0_i32_0 : i32, i32
  }
  func.func @transform_8(%arg0: i32) -> (i32, i32, i32) {
    %c0_i32 = arith.constant 0 : i32
    %c0_i32_0 = arith.constant 0 : i32
    %c0_i32_1 = arith.constant 0 : i32
    return %arg0, %c0_i32, %c0_i32_0 : i32, i32, i32
  }
}

</mosaic_0001>

<bundles_post_ra>
// kernel: encoder_forward_pallas.1
= control target key start
LH: loop header
LB: loop body
LE: loop exit
PB: predicated region body
PF: predicated region fallthrough
CT: control target
= control target key end

     0   :  { %s15669_s27 = smov 0   ;;  %s21533_s0 = inlined_call_operand.vmem [shape: bf16[2,75,400], index: 0, kind: input, shape index: {}]   ;;  %s21534_s1 = inlined_call_operand.vmem [shape: bf16[32,75], index: 1, kind: input, shape index: {}]   ;;  %s21535_s2 = inlined_call_operand.vmem [shape: bf16[25,32,32], index: 2, kind: input, shape index: {}]   ;;  %s21536_s3 = inlined_call_operand.vmem [shape: bf16[25,32,32], index: 3, kind: input, shape index: {}]   ;;  %s21537_s4 = inlined_call_operand.vmem [shape: bf16[25,32,32], index: 4, kind: input, shape index: {}]   ;;  %s21538_s5 = inlined_call_operand.vmem [shape: f32[4,32,1], index: 5, kind: input, shape index: {}]   ;;  %s21539_s6 = inlined_call_operand.vmem [shape: f32[1,400], index: 6, kind: input, shape index: {}]   ;;  %s21540_s7 = inlined_call_operand.vmem [shape: f32[32,400], index: 7, kind: input, shape index: {}]   ;;  %s21541_s8 = inlined_call_operand.vmem [shape: f32[2,32,400], index: 8, kind: output, shape index: {}]  }
   0x1 LB: > { %s14428_s28 = sadd.s32 4294967295, %s15596_s27   ;;  %p14432_p0 = scmp.ge.s32.totalorder %s15596_s27, 1  ;;  %s15596_s27 = sphi %s15669_s27, %s18_s27  }
   0x2   : > { %p262_p1 = scmp.lt.s32.totalorder %s15596_s27, 3 }
   0x4   : > { %p263_p2 = pnand %p14432_p0, %p262_p1 }
   0x6   : > { %266 = sbr.rel (%p263_p2) target bundleno = 2493 (0x9bd), region = 52 }
   0xb   : > { %p15677_p3 = scmp.lt.s32.totalorder %s14428_s28, 1  ;;  %vm502_vm0 = vcmask 1044480   ;;  %vm503_vm1 = vcmask 1045504   ;;  %v15598_v0 = vmov 65535   ;;  %v21572_v2 = vmov 0   ;;  %v365_v3 = vld [vmem:[%s21538_s5] sm:$0xff] }
   0xc   : > { %v504_v1 = vsel %vm502_vm0, 4294967295, %v15598_v0  ;;  %550 = vmatprep.mubr.bf16.mxu0 %v21572_v2  ;;  %324 = vst [vmem:[#allocation2] sm:$0xf] %v21572_v2  ;;  %325 = vst [vmem:[#allocation2 + $0x14] sm:$0xf] %v21572_v2  ;;  %603 = vmatprep.mubr.bf16.mxu1 %v21572_v2  ;;  %v366_v5 = vld [vmem:[%s21538_s5 + $0x8] sm:$0xff]  ;;  %v641_v34 = vlaneseq }
   0xd   : > { %326 = vst [vmem:[#allocation2 + $0x28] sm:$0xf] %v21572_v2  ;;  %327 = vst [vmem:[#allocation2 + $0x3c] sm:$0xf] %v21572_v2  ;;  %s21947_s28 = smov (!%p15677_p3, %s14428_s28), 1  ;;  %15377 = vset.pattern.permute.xlu1 %v21572_v2  ;;  %15376 = vset.pattern.permute.xlu0 %v21572_v2  ;;  %v505_v4 = vsel %vm503_vm1, %v504_v1, 0 }
   0xe   : > { %333 = vst [vmem:[#allocation3] sm:$0xf] %v21572_v2  ;;  %334 = vst [vmem:[#allocation3 + $0x14] sm:$0xf] %v21572_v2  ;;  %s15341_s10 = smul.u32 160, %s21947_s28  ;;  %371 = vperm.xlu1 %15377, %v365_v3   ;;  %v367_v6 = vld [vmem:[%s21538_s5 + $0x10] sm:$0xff] }
   0xf   : > { %335 = vst [vmem:[#allocation3 + $0x28] sm:$0xf] %v21572_v2  ;;  %336 = vst [vmem:[#allocation3 + $0x3c] sm:$0xf] %v21572_v2  ;;  %v368_v7 = vld [vmem:[%s21538_s5 + $0x18] sm:$0xff]  ;;  %381 = vperm.xlu0 %15376, %v367_v6   ;;  %vm495_vm2 = vcmask 613376  }
  0x10   : > { %s15714_s19 = scalar_lea.vmem %s21533_s0, %s15341_s10  ;;  %v15408_v32 = vld [vmem:[%s21534_s1] sm:$0xff]   ;;  %v15409_v33 = vld [vmem:[%s21534_s1 + $0x8] sm:$0xff]   ;;  %vm328_vm3 = vcmask 1043584   ;;  %v642_v35 = vshrl.u32 %v641_v34, 7  ;;  %vm726_vm4 = vcmask 1043456   ;;  %vm727_vm5 = vcmask 130052  }
  0x11   : > { %v15378_v8 = vld [vmem:[%s15714_s19 + $0x84] ss:$16 sps:$4 sm:$0x3f]   ;;  %v15380_v9 = vld [vmem:[%s15714_s19 + $0x8c] ss:$16 sps:$4 sm:$0x3f]   ;;  %vm15774_vm6 = vmor %vm727_vm5, %vm726_vm4 }
  0x12   : > { %376 = vperm.xlu1 %15377, %v366_v5   ;;  %v510_v10 = vand.u32 %v15378_v8, %v505_v4  ;;  %v15382_v11 = vld [vmem:[%s15714_s19 + $0x80] ss:$16 sps:$4 sm:$0x3f]   ;;  %v15383_v12 = vld [vmem:[%s15714_s19 + $0x88] ss:$16 sps:$4 sm:$0x3f]   ;;  %v516_v13 = vand.u32 %v15380_v9, %v505_v4 }
  0x13   : > { %386 = vperm.xlu0 %15376, %v368_v7   ;;  %v15384_v14 = vld [vmem:[%s15714_s19 + $0x64] ss:$16 sps:$4 sm:$0xff]   ;;  %v507_v15 = vand.u32 %v15382_v11, %v505_v4  ;;  %v513_v16 = vand.u32 %v15383_v12, %v505_v4  ;;  %v15386_v17 = vld [vmem:[%s15714_s19 + $0x6c] ss:$16 sps:$4 sm:$0xff]   ;;  %v15388_v18 = vld [vmem:[%s15714_s19 + $0x60] ss:$16 sps:$4 sm:$0xff]  }
  0x14   : > { %524 = vmatprep.subr.bf16.mxu0 %v510_v10  ;;  %577 = vmatprep.subr.bf16.mxu1 %v516_v13  ;;  %v15389_v19 = vld [vmem:[%s15714_s19 + $0x68] ss:$16 sps:$4 sm:$0xff]   ;;  %v15390_v20 = vld [vmem:[%s15714_s19 + $0x44] ss:$16 sps:$4 sm:$0xff]   ;;  %v15392_v21 = vld [vmem:[%s15714_s19 + $0x4c] ss:$16 sps:$4 sm:$0xff]  }
  0x15   : > { %525 = vmatpush1.bf16.msra.mxu0 %v507_v15  ;;  %578 = vmatpush1.bf16.msra.mxu1 %v513_v16  ;;  %v15394_v22 = vld [vmem:[%s15714_s19 + $0x40] ss:$16 sps:$4 sm:$0xff]   ;;  %v15395_v23 = vld [vmem:[%s15714_s19 + $0x48] ss:$16 sps:$4 sm:$0xff]   ;;  %v15396_v24 = vld [vmem:[%s15714_s19 + $0x24] ss:$16 sps:$4 sm:$0xff]  }
  0x16   : > { %526 = vmatprep.subr.bf16.mxu0 %v15384_v14  ;;  %579 = vmatprep.subr.bf16.mxu1 %v15386_v17  ;;  %v15398_v25 = vld [vmem:[%s15714_s19 + $0x2c] ss:$16 sps:$4 sm:$0xff]   ;;  %v15400_v26 = vld [vmem:[%s15714_s19 + $0x20] ss:$16 sps:$4 sm:$0xff]   ;;  %v15401_v27 = vld [vmem:[%s15714_s19 + $0x28] ss:$16 sps:$4 sm:$0xff]  }
  0x17   : > { %v15402_v28 = vld [vmem:[%s15714_s19 + $0x4] ss:$16 sps:$4 sm:$0xff]   ;;  %v15404_v29 = vld [vmem:[%s15714_s19 + $0xc] ss:$16 sps:$4 sm:$0xff]   ;;  %v15406_v30 = vld [vmem:[%s15714_s19] ss:$16 sps:$4 sm:$0xff]  }
  0x18   : > { %v15407_v31 = vld [vmem:[%s15714_s19 + $0x8] ss:$16 sps:$4 sm:$0xff]   ;;  %329 = vst.msk [vmem:[#allocation2 + $0x10] sm:$0xf] %vm328_vm3, %v21572_v2  ;;  %330 = vst.msk [vmem:[#allocation2 + $0x24] sm:$0xf] %vm328_vm3, %v21572_v2 }
  0x19   : > { %527 = vmatpush1.bf16.msra.mxu0 %v15388_v18  ;;  %580 = vmatpush1.bf16.msra.mxu1 %v15389_v19  ;;  %331 = vst.msk [vmem:[#allocation2 + $0x38] sm:$0xf] %vm328_vm3, %v21572_v2  ;;  %332 = vst.msk [vmem:[#allocation2 + $0x4c] sm:$0xf] %vm328_vm3, %v21572_v2  ;;  %v651_v36 = vsub.s32 2, %v642_v35  ;;  %v643_v38 = vsub.s32 0, %v642_v35 }
  0x1a   : > { %528 = vmatprep.subr.bf16.mxu0 %v15390_v20  ;;  %581 = vmatprep.subr.bf16.mxu1 %v15392_v21  ;;  %337 = vst.msk [vmem:[#allocation3 + $0x10] sm:$0xf] %vm328_vm3, %v21572_v2  ;;  %338 = vst.msk [vmem:[#allocation3 + $0x24] sm:$0xf] %vm328_vm3, %v21572_v2  ;;  %v307_v37 = vld [vmem:[%s21539_s6] sm:$0xf] }
  0x1b   : > { %339 = vst.msk [vmem:[#allocation3 + $0x38] sm:$0xf] %vm328_vm3, %v21572_v2  ;;  %340 = vst.msk [vmem:[#allocation3 + $0x4c] sm:$0xf] %vm328_vm3, %v21572_v2  ;;  %v647_v39 = vsub.s32 1, %v642_v35  ;;  %v655_v40 = vsub.s32 3, %v642_v35  ;;  %v15761_v46 = vrot.slane %v307_v37, %v651_v36  ;;  %v15763_v47 = vrot.slane %v307_v37, %v643_v38 }
  0x1c   : > { %v21622_v9 = vmov 0  ;;  %s15600_s26 = smov 41   ;;  %s15601_s29 = smov 42   ;;  %vm811_vm7 = vcmask 334848   ;;  %vm826_vm8 = vcmask 261120   ;;  %vm965_vm9 = vcmask 343040  }
  0x1d   : > { %529 = vmatpush1.bf16.msra.mxu0 %v15394_v22  ;;  %582 = vmatpush1.bf16.msra.mxu1 %v15395_v23  ;;  %21618 = vst [vmem:[#allocation4_spill] sm:$0xff] %v15761_v46  ;;  %21619 = vst [vmem:[#allocation5_spill] sm:$0xff] %v15763_v47  ;;  %v15765_v49 = vrot.slane %v307_v37, %v647_v39  ;;  %v15767_v51 = vrot.slane %v307_v37, %v655_v40  ;;  %v21623_v9 = vsel %vm15774_vm6, 4294967295, %v21622_v9  ;;  %s15602_s30 = smov 40   ;;  %s15603_s9 = smov 39   ;;  %vm1123_vm10 = vcmask 326656  }
  0x1e   : > { %530 = vmatprep.subr.bf16.mxu0 %v15396_v24  ;;  %583 = vmatprep.subr.bf16.mxu1 %v15398_v25  ;;  %21624 = vst [vmem:[#allocation8_spill] sm:$0xff] %v21623_v9  ;;  %s21605_s10 = smov 38   ;;  %s21603_s11 = smov 22   ;;  %vm1297_vm11 = vcmask 318464   ;;  %vm1471_vm12 = vcmask 310272   ;;  %vm1645_vm13 = vcmask 179200  }
  0x1f   : > { %21620 = vst [vmem:[#allocation6_spill] sm:$0xff] %v15765_v49  ;;  %21621 = vst [vmem:[#allocation7_spill] sm:$0xff] %v15767_v51  ;;  %s21601_s12 = smov 21   ;;  %s21599_s13 = smov 20   ;;  %vm1819_vm14 = vcmask 171008   ;;  %vm1993_vm15 = vcmask 162816  }
  0x20   : > { %s21597_s14 = smov 19   ;;  %s21595_s17 = smov 18   ;;  %vm2167_vm0 = vcmask 154624   ;;  %vm21592_vm1 = vcmask 146432   ;;  %vm21588_vm3 = vcmask 7168   ;;  %vm21550_vm4 = vcmask 1039360  }
  0x21   : > { %531 = vmatpush1.bf16.msra.mxu0 %v15400_v26  ;;  %584 = vmatpush1.bf16.msra.mxu1 %v15401_v27  ;;  %s21593_s20 = smov 2   ;;  %s21589_s19 = smov 1   ;;  %vm21553_vm5 = vcmask 1031168  }
  0x22   : > { %532 = vmatprep.subr.bf16.mxu0 %v15402_v28  ;;  %585 = vmatprep.subr.bf16.mxu1 %v15404_v29  ;;  %s21586_s25 = smov 127   ;;  %s21584_s22 = smov 126  }
  0x23   : > { %s21563_s18 = smov 110   ;;  %s21559_s16 = smov 109  }
  0x24   : > { %s21546_s21 = smov 108   ;;  %s21542_s24 = smov 107  }
  0x25   : > { %533 = vmatpush1.bf16.msra.mxu0 %v15406_v30  ;;  %586 = vmatpush1.bf16.msra.mxu1 %v15407_v31  ;;  %s21548_s15 = smov 90   ;;  %s21699_s23 = smov 106  }
  0x28   : > { %14458 = vmatmul.mubr.msk.bf16.vlgmr.msra.gmra.mxu0 %vm495_vm2, %v15408_v32  ;;  %14460 = vmatmul.mubr.msk.bf16.vlgmr.msra.gmra.mxu1 %vm495_vm2, %v15408_v32 }
  0x29   : > { %560 = vmatprep.mubr.bf16.mxu0 %v21572_v2  ;;  %613 = vmatprep.mubr.bf16.mxu1 %v21572_v2 }
  0x30   : > { %14459 = vmatmul.mubr.msk.bf16.gmra.mxu0 %vm495_vm2, %v15409_v33  ;;  %14461 = vmatmul.mubr.msk.bf16.gmra.mxu1 %vm495_vm2, %v15409_v33  ;;  %vm21591_vm2 = vcmask 15360  }
  0x31   : > { %865 = vmatprep.mubr.bf16.mxu0 %v21572_v2  ;;  %918 = vmatprep.mubr.bf16.mxu1 %v21572_v2 }
  0x89   : > { %v372_v41 = vpop.permute.xlu1 %371 }
  0x8a   : > { %v382_v62 = vpop.permute.xlu0 %381 }
  0x8d   : > { %v377_v59 = vpop.permute.xlu1 %376 }
  0x8e   : > { %v387_v28 = vpop.permute.xlu0 %386 }
  0xe8   : > { %v552_v42 = vpop.f32.mrf.mxu0  ;;  %v605_v43 = vpop.f32.mrf.mxu1 }
  0xe9   : > { %v553_v44 = vadd.f32 %v552_v42, %v372_v41  ;;  %v606_v45 = vadd.f32 %v605_v43, %v372_v41 }
  0xea   : > { %v554_v48 = vpop.f32.mrf.mxu0  ;;  %v607_v50 = vpop.f32.mrf.mxu1 }
  0xeb   : > { %v624_v52 = vmax.f32 %v553_v44, 0.0  ;;  %v626_v53 = vmax.f32 %v606_v45, 0.0  ;;  %v555_v54 = vadd.f32 %v554_v48, %v372_v41  ;;  %v608_v55 = vadd.f32 %v607_v50, %v372_v41 }
  0xec   : > { %v556_v56 = vpop.f32.mrf.mxu0  ;;  %v609_v57 = vpop.f32.mrf.mxu1 }
  0xed   : > { %v663_v58 = vmul.f32 %v15761_v46, %v626_v53  ;;  %v625_v60 = vmax.f32 %v555_v54, 0.0  ;;  %v627_v61 = vmax.f32 %v608_v55, 0.0  ;;  %v661_v63 = vmul.f32 %v15763_v47, %v624_v52 }
  0xee   : > { %v557_v0 = vadd.f32 %v556_v56, %v377_v59  ;;  %v610_v1 = vadd.f32 %v609_v57, %v377_v59  ;;  %v558_v3 = vpop.f32.mrf.mxu0  ;;  %v611_v4 = vpop.f32.mrf.mxu1 }
  0xef   : > { %v662_v5 = vmul.f32 %v15765_v49, %v625_v60  ;;  %v664_v6 = vmul.f32 %v15767_v51, %v627_v61  ;;  %v559_v7 = vadd.f32 %v558_v3, %v377_v59  ;;  %v612_v8 = vadd.f32 %v611_v4, %v377_v59 }
  0xf0   : > { %v628_v10 = vmax.f32 %v557_v0, 0.0  ;;  %v630_v11 = vmax.f32 %v610_v1, 0.0  ;;  %v562_v12 = vpop.f32.mrf.mxu0  ;;  %v615_v13 = vpop.f32.mrf.mxu1 }
  0xf1   : > { %v15317_v14 = vpack.c.bf16 %v662_v5, %v661_v63  ;;  %v15318_v15 = vpack.c.bf16 %v664_v6, %v663_v58  ;;  %v629_v16 = vmax.f32 %v559_v7, 0.0  ;;  %v631_v17 = vmax.f32 %v612_v8, 0.0 }
  0xf2   : > { %v665_v18 = vmul.f32 %v15763_v47, %v628_v10  ;;  %v667_v19 = vmul.f32 %v15761_v46, %v630_v11  ;;  %v563_v20 = vadd.f32 %v562_v12, %v382_v62  ;;  %v616_v21 = vadd.f32 %v615_v13, %v382_v62  ;;  %v564_v22 = vpop.f32.mrf.mxu0  ;;  %v617_v23 = vpop.f32.mrf.mxu1 }
  0xf3   : > { %725 = vst [vmem:[#allocation2 + $0x4] sm:$0xff] %v15317_v14  ;;  %729 = vst.msk [vmem:[#allocation2 + $0xc] sm:$0xff] %vm15774_vm6, %v15318_v15  ;;  %v666_v24 = vmul.f32 %v15765_v49, %v629_v16  ;;  %v668_v25 = vmul.f32 %v15767_v51, %v631_v17  ;;  %v565_v26 = vadd.f32 %v564_v22, %v382_v62 }
  0xf4   : > { %v618_v27 = vadd.f32 %v617_v23, %v382_v62  ;;  %v632_v29 = vmax.f32 %v563_v20, 0.0  ;;  %v634_v30 = vmax.f32 %v616_v21, 0.0  ;;  %v566_v31 = vpop.f32.mrf.mxu0  ;;  %v619_v32 = vpop.f32.mrf.mxu1  ;;  %v15786_v43 = vpack.c.bf16 %v665_v18, %v661_v63 }
  0xf5   : > { %v15319_v33 = vpack.c.bf16 %v666_v24, %v665_v18  ;;  %v15320_v34 = vpack.c.bf16 %v668_v25, %v667_v19  ;;  %v633_v35 = vmax.f32 %v565_v26, 0.0  ;;  %v567_v39 = vadd.f32 %v566_v31, %v387_v28 }
  0xf6   : > { %v635_v36 = vmax.f32 %v618_v27, 0.0  ;;  %v669_v37 = vmul.f32 %v15763_v47, %v632_v29  ;;  %v671_v38 = vmul.f32 %v15761_v46, %v634_v30  ;;  %v620_v40 = vadd.f32 %v619_v32, %v387_v28  ;;  %v568_v41 = vpop.f32.mrf.mxu0  ;;  %v621_v42 = vpop.f32.mrf.mxu1 }
  0xf7   : > { %730 = vst [vmem:[#allocation2 + $0x18] sm:$0xff] %v15319_v33  ;;  %v15788_v44 = vpack.c.bf16 %v666_v24, %v662_v5  ;;  %731 = vst.msk [vmem:[#allocation2 + $0x20] sm:$0xff] %vm15774_vm6, %v15320_v34  ;;  %v670_v45 = vmul.f32 %v15765_v49, %v633_v35  ;;  %v636_v50 = vmax.f32 %v567_v39, 0.0  ;;  %v569_v53 = vadd.f32 %v568_v41, %v387_v28 }
  0xf8   : > { %v672_v48 = vmul.f32 %v15767_v51, %v635_v36  ;;  %v638_v52 = vmax.f32 %v620_v40, 0.0  ;;  %v622_v54 = vadd.f32 %v621_v42, %v387_v28 }
  0xf9   : > { %v15321_v55 = vpack.c.bf16 %v670_v45, %v669_v37  ;;  %v637_v58 = vmax.f32 %v569_v53, 0.0  ;;  %v673_v60 = vmul.f32 %v15763_v47, %v636_v50  ;;  %v15411_v50 = vld [vmem:[%s21535_s2 + $0x18] sm:$0xff]  }
  0xfa   : > { %v15322_v56 = vpack.c.bf16 %v672_v48, %v671_v38  ;;  %v675_v57 = vmul.f32 %v15761_v46, %v638_v52  ;;  %v639_v59 = vmax.f32 %v622_v54, 0.0  ;;  %v740_v63 = vld [vmem:[#allocation2] sm:$0xff]  ;;  %v741_v0 = vld [vmem:[#allocation2 + $0x8] sm:$0xff]  ;;  %v15410_v38 = vld [vmem:[%s21535_s2 + $0x10] sm:$0xff]  }
  0xfb   : > { %732 = vst [vmem:[#allocation2 + $0x2c] sm:$0xff] %v15321_v55  ;;  %v674_v61 = vmul.f32 %v15765_v49, %v637_v58  ;;  %v15804_v8 = vpack.c.bf16 %v673_v60, %v669_v37 }
  0xfc   : > { %733 = vst.msk [vmem:[#allocation2 + $0x34] sm:$0xff] %vm15774_vm6, %v15322_v56  ;;  %v676_v62 = vmul.f32 %v15767_v51, %v639_v59 }
  0xfd   : > { %v15323_v4 = vpack.c.bf16 %v674_v61, %v673_v60  ;;  %v15806_v10 = vpack.c.bf16 %v674_v61, %v670_v45  ;;  %v15412_v60 = vld [vmem:[%s21535_s2] sm:$0xff]  }
  0xfe   : > { %v742_v1 = vld [vmem:[#allocation2 + $0x14] sm:$0xff]  ;;  %v743_v3 = vld [vmem:[#allocation2 + $0x1c] sm:$0xff]  ;;  %v15324_v5 = vpack.c.bf16 %v676_v62, %v675_v57 }
  0xff   : > { %v15800_v6 = vcombine.high %v740_v63, %v742_v1  ;;  %v15802_v7 = vcombine.low %v741_v0, %v743_v3  ;;  %734 = vst [vmem:[#allocation2 + $0x40] sm:$0xff] %v15323_v4  ;;  %v15814_v11 = vcombine.low %v740_v63, %v742_v1  ;;  %v15816_v12 = vcombine.high %v741_v0, %v743_v3  ;;  %v15413_v4 = vld [vmem:[%s21535_s2 + $0x8] sm:$0xff]  }
 0x100   : > { %735 = vst.msk [vmem:[#allocation2 + $0x48] sm:$0xff] %vm15774_vm6, %v15324_v5 }
 0x101   : > { %799 = vrot.lane.b32.xlu1 %v15802_v7, %s15600_s26  ;;  %797 = vrot.lane.b32.xlu0 %v15800_v6, %s15600_s26 }
 0x102   : > { %v744_v15 = vld [vmem:[#allocation2 + $0x28] sm:$0xff] }
 0x103   : > { %v745_v16 = vld [vmem:[#allocation2 + $0x30] sm:$0xff] }
 0x105   : > { %801 = vrot.lane.b32.xlu1 %v15816_v12, %s15600_s26  ;;  %795 = vrot.lane.b32.xlu0 %v15814_v11, %s15600_s26 }
 0x106   : > { %v746_v13 = vld [vmem:[#allocation2 + $0x3c] sm:$0xff] }
 0x107   : > { %v747_v14 = vld [vmem:[#allocation2 + $0x44] sm:$0xff]  ;;  %v15826_v17 = vcombine.high %v744_v15, %v746_v13  ;;  %v15834_v19 = vcombine.low %v744_v15, %v746_v13 }
 0x108   : > { %v15828_v18 = vcombine.low %v745_v16, %v747_v14  ;;  %v15836_v20 = vcombine.high %v745_v16, %v747_v14  ;;  %v16044_v16 = vld [vmem:[#allocation2 + $0x10] ss:$20 sps:$4 sm:$0xff]  }
 0x109   : > { %953 = vrot.lane.b32.xlu1 %v15802_v7, %s15601_s29  ;;  %951 = vrot.lane.b32.xlu0 %v15800_v6, %s15601_s29 }
 0x10d   : > { %807 = vrot.lane.b32.xlu1 %v15828_v18, %s15600_s26  ;;  %805 = vrot.lane.b32.xlu0 %v15826_v17, %s15600_s26 }
 0x111   : > { %809 = vrot.lane.b32.xlu1 %v15836_v20, %s15600_s26  ;;  %803 = vrot.lane.b32.xlu0 %v15834_v19, %s15600_s26 }
 0x115   : > { %955 = vrot.lane.b32.xlu1 %v15816_v12, %s15601_s29  ;;  %949 = vrot.lane.b32.xlu0 %v15814_v11, %s15601_s29 }
 0x119   : > { %1111 = vrot.lane.b32.xlu1 %v15802_v7, %s15602_s30  ;;  %1109 = vrot.lane.b32.xlu0 %v15800_v6, %s15602_s30 }
 0x11d   : > { %961 = vrot.lane.b32.xlu1 %v15828_v18, %s15601_s29  ;;  %959 = vrot.lane.b32.xlu0 %v15826_v17, %s15601_s29 }
 0x121   : > { %963 = vrot.lane.b32.xlu1 %v15836_v20, %s15601_s29  ;;  %957 = vrot.lane.b32.xlu0 %v15834_v19, %s15601_s29 }
 0x125   : > { %1113 = vrot.lane.b32.xlu1 %v15816_v12, %s15602_s30  ;;  %1107 = vrot.lane.b32.xlu0 %v15814_v11, %s15602_s30 }
 0x129   : > { %1285 = vrot.lane.b32.xlu1 %v15802_v7, %s15603_s9  ;;  %1283 = vrot.lane.b32.xlu0 %v15800_v6, %s15603_s9 }
 0x12d   : > { %1119 = vrot.lane.b32.xlu1 %v15828_v18, %s15602_s30  ;;  %1117 = vrot.lane.b32.xlu0 %v15826_v17, %s15602_s30 }
 0x131   : > { %1121 = vrot.lane.b32.xlu1 %v15836_v20, %s15602_s30  ;;  %1115 = vrot.lane.b32.xlu0 %v15834_v19, %s15602_s30 }
 0x135   : > { %1287 = vrot.lane.b32.xlu1 %v15816_v12, %s15603_s9  ;;  %1281 = vrot.lane.b32.xlu0 %v15814_v11, %s15603_s9 }
 0x139   : > { %1459 = vrot.lane.b32.xlu1 %v15802_v7, %s21605_s10  ;;  %1457 = vrot.lane.b32.xlu0 %v15800_v6, %s21605_s10 }
 0x13d   : > { %1293 = vrot.lane.b32.xlu1 %v15828_v18, %s15603_s9  ;;  %1291 = vrot.lane.b32.xlu0 %v15826_v17, %s15603_s9 }
 0x141   : > { %1295 = vrot.lane.b32.xlu1 %v15836_v20, %s15603_s9  ;;  %1289 = vrot.lane.b32.xlu0 %v15834_v19, %s15603_s9 }
 0x145   : > { %1461 = vrot.lane.b32.xlu1 %v15816_v12, %s21605_s10  ;;  %1455 = vrot.lane.b32.xlu0 %v15814_v11, %s21605_s10 }
 0x149   : > { %1633 = vrot.lane.b32.xlu1 %v15802_v7, %s21603_s11  ;;  %1631 = vrot.lane.b32.xlu0 %v15800_v6, %s21603_s11 }
 0x14d   : > { %1467 = vrot.lane.b32.xlu1 %v15828_v18, %s21605_s10  ;;  %1465 = vrot.lane.b32.xlu0 %v15826_v17, %s21605_s10 }
 0x151   : > { %1469 = vrot.lane.b32.xlu1 %v15836_v20, %s21605_s10  ;;  %1463 = vrot.lane.b32.xlu0 %v15834_v19, %s21605_s10 }
 0x155   : > { %1635 = vrot.lane.b32.xlu1 %v15816_v12, %s21603_s11  ;;  %1629 = vrot.lane.b32.xlu0 %v15814_v11, %s21603_s11 }
 0x159   : > { %1807 = vrot.lane.b32.xlu1 %v15802_v7, %s21601_s12  ;;  %1805 = vrot.lane.b32.xlu0 %v15800_v6, %s21601_s12 }
 0x15d   : > { %1641 = vrot.lane.b32.xlu1 %v15828_v18, %s21603_s11  ;;  %1639 = vrot.lane.b32.xlu0 %v15826_v17, %s21603_s11 }
 0x161   : > { %1643 = vrot.lane.b32.xlu1 %v15836_v20, %s21603_s11  ;;  %1637 = vrot.lane.b32.xlu0 %v15834_v19, %s21603_s11 }
 0x165   : > { %1809 = vrot.lane.b32.xlu1 %v15816_v12, %s21601_s12  ;;  %1803 = vrot.lane.b32.xlu0 %v15814_v11, %s21601_s12 }
 0x169   : > { %1981 = vrot.lane.b32.xlu1 %v15802_v7, %s21599_s13  ;;  %1979 = vrot.lane.b32.xlu0 %v15800_v6, %s21599_s13 }
 0x16d   : > { %1815 = vrot.lane.b32.xlu1 %v15828_v18, %s21601_s12  ;;  %1813 = vrot.lane.b32.xlu0 %v15826_v17, %s21601_s12 }
 0x171   : > { %1817 = vrot.lane.b32.xlu1 %v15836_v20, %s21601_s12  ;;  %1811 = vrot.lane.b32.xlu0 %v15834_v19, %s21601_s12 }
 0x173   : > { %v800_v21 = vpop.permute.xlu1 %799  ;;  %v798_v22 = vpop.permute.xlu0 %797 }
 0x174   : > { %v813_v34 = vsel %vm811_vm7, %v798_v22, %v800_v21 }
 0x175   : > { %1983 = vrot.lane.b32.xlu1 %v15816_v12, %s21599_s13  ;;  %1977 = vrot.lane.b32.xlu0 %v15814_v11, %s21599_s13 }
 0x177   : > { %v802_v23 = vpop.permute.xlu1 %801  ;;  %v796_v24 = vpop.permute.xlu0 %795 }
 0x178   : > { %v814_v37 = vsel %vm811_vm7, %v800_v21, %v802_v23  ;;  %v812_v39 = vsel %vm811_vm7, %v796_v24, %v798_v22 }
 0x179   : > { %2155 = vrot.lane.b32.xlu1 %v15802_v7, %s21597_s14  ;;  %2153 = vrot.lane.b32.xlu0 %v15800_v6, %s21597_s14 }
 0x17b   : > { %v15946_v25 = vpop.permute.xlu1 %953  ;;  %v15948_v26 = vpop.permute.xlu0 %951 }
 0x17c   : > { %v967_v56 = vsel %vm965_vm9, %v15948_v26, %v15946_v25 }
 0x17d   : > { %1989 = vrot.lane.b32.xlu1 %v15828_v18, %s21599_s13  ;;  %1987 = vrot.lane.b32.xlu0 %v15826_v17, %s21599_s13 }
 0x17f   : > { %v808_v27 = vpop.permute.xlu1 %807  ;;  %v806_v28 = vpop.permute.xlu0 %805 }
 0x180   : > { %v816_v29 = vsel %vm811_vm7, %v806_v28, %v808_v27 }
 0x181   : > { %1991 = vrot.lane.b32.xlu1 %v15836_v20, %s21599_s13  ;;  %1985 = vrot.lane.b32.xlu0 %v15834_v19, %s21599_s13 }
 0x182   : > { %845 = vmatprep.subr.bf16.mxu0 %v816_v29  ;;  %v15416_v29 = vld [vmem:[#allocation2 + $0x38] ss:$20 sps:$4 sm:$0xff]  }
 0x183   : > { %v810_v30 = vpop.permute.xlu1 %809  ;;  %v804_v31 = vpop.permute.xlu0 %803 }
 0x184   : > { %v815_v32 = vsel %vm811_vm7, %v804_v31, %v806_v28  ;;  %898 = vmatprep.subr.bf16.mxu1 %v810_v30  ;;  %v817_v33 = vsel %vm811_vm7, %v808_v27, %v810_v30 }
 0x185   : > { %2157 = vrot.lane.b32.xlu1 %v15816_v12, %s21597_s14  ;;  %899 = vmatpush1.bf16.msra.mxu1 %v817_v33  ;;  %v15417_v33 = vld [vmem:[%s21535_s2 + $0x28] sm:$0xff]  }
 0x186   : > { %2151 = vrot.lane.b32.xlu0 %v15814_v11, %s21597_s14  ;;  %846 = vmatpush1.bf16.msra.mxu0 %v815_v32 }
 0x187   : > { %847 = vmatprep.subr.bf16.mxu0 %v813_v34  ;;  %900 = vmatprep.subr.bf16.mxu1 %v802_v23  ;;  %v956_v35 = vpop.permute.xlu1 %955  ;;  %v950_v36 = vpop.permute.xlu0 %949 }
 0x188   : > { %v968_v59 = vsel %vm965_vm9, %v15946_v25, %v956_v35  ;;  %v966_v61 = vsel %vm965_vm9, %v950_v36, %v15948_v26  ;;  %v15415_v25 = vld [vmem:[%s21535_s2 + $0x20] sm:$0xff]  }
 0x189   : > { %2329 = vrot.lane.b32.xlu1 %v15802_v7, %s21595_s17  ;;  %901 = vmatpush1.bf16.msra.mxu1 %v814_v37 }
 0x18a   : > { %2327 = vrot.lane.b32.xlu0 %v15800_v6, %s21595_s17  ;;  %848 = vmatpush1.bf16.msra.mxu0 %v812_v39 }
 0x18b   : > { %v15975_v40 = vpop.permute.xlu1 %1111  ;;  %v15977_v41 = vpop.permute.xlu0 %1109 }
 0x18c   : > { %14486 = vmatmul.mubr.msk.bf16.vlgmr.msra.gmra.mxu1 %vm826_vm8, %v15410_v38  ;;  %v1125_v21 = vsel %vm1123_vm10, %v15977_v41, %v15975_v40 }
 0x18d   : > { %14484 = vmatmul.mubr.msk.bf16.vlgmr.msra.gmra.mxu0 %vm826_vm8, %v15410_v38  ;;  %2163 = vrot.lane.b32.xlu1 %v15828_v18, %s21597_s14 }
 0x18e   : > { %2161 = vrot.lane.b32.xlu0 %v15826_v17, %s21597_s14  ;;  %928 = vmatprep.mubr.bf16.mxu1 %v21572_v2 }
 0x18f   : > { %v962_v42 = vpop.permute.xlu1 %961  ;;  %v960_v45 = vpop.permute.xlu0 %959  ;;  %875 = vmatprep.mubr.bf16.mxu0 %v21572_v2 }
 0x190   : > { %v970_v48 = vsel %vm965_vm9, %v960_v45, %v962_v42 }
 0x191   : > { %2165 = vrot.lane.b32.xlu1 %v15836_v20, %s21597_s14  ;;  %998 = vmatprep.subr.bf16.mxu0 %v970_v48 }
 0x192   : > { %2159 = vrot.lane.b32.xlu0 %v15834_v19, %s21597_s14 }
 0x193   : > { %v964_v52 = vpop.permute.xlu1 %963  ;;  %v958_v53 = vpop.permute.xlu0 %957 }
 0x194   : > { %v969_v54 = vsel %vm965_vm9, %v958_v53, %v960_v45  ;;  %14487 = vmatmul.mubr.msk.bf16.gmra.mxu1 %vm826_vm8, %v15411_v50  ;;  %1051 = vmatprep.subr.bf16.mxu1 %v964_v52  ;;  %v971_v55 = vsel %vm965_vm9, %v962_v42, %v964_v52 }
 0x195   : > { %14485 = vmatmul.mubr.msk.bf16.gmra.mxu0 %vm826_vm8, %v15411_v50  ;;  %2331 = vrot.lane.b32.xlu1 %v15816_v12, %s21595_s17  ;;  %v15419_v50 = vld [vmem:[%s21535_s2 + $0x38] sm:$0xff]  }
 0x196   : > { %1052 = vmatpush1.bf16.msra.mxu1 %v971_v55  ;;  %2325 = vrot.lane.b32.xlu0 %v15814_v11, %s21595_s17 }
 0x197   : > { %999 = vmatpush1.bf16.msra.mxu0 %v969_v54  ;;  %1053 = vmatprep.subr.bf16.mxu1 %v956_v35  ;;  %v1114_v57 = vpop.permute.xlu1 %1113  ;;  %v1108_v58 = vpop.permute.xlu0 %1107 }
 0x198   : > { %1000 = vmatprep.subr.bf16.mxu0 %v967_v56  ;;  %1071 = vmatprep.mubr.bf16.mxu1 %v21572_v2  ;;  %v1126_v24 = vsel %vm1123_vm10, %v15975_v40, %v1114_v57  ;;  %v1124_v26 = vsel %vm1123_vm10, %v1108_v58, %v15977_v41 }
 0x199   : > { %2555 = vrot.lane.b32.xlu1 %v15800_v6, %s21593_s20  ;;  %1018 = vmatprep.mubr.bf16.mxu0 %v21572_v2 }
 0x19a   : > { %1054 = vmatpush1.bf16.msra.mxu1 %v968_v59  ;;  %2557 = vrot.lane.b32.xlu0 %v15802_v7, %s21593_s20  ;;  %v2908_v59 = vld [vmem:[#allocation2 + $0x34] sm:$0xff] }
 0x19b   : > { %1001 = vmatpush1.bf16.msra.mxu0 %v966_v61  ;;  %v16019_v62 = vpop.permute.xlu1 %1285  ;;  %v16021_v63 = vpop.permute.xlu0 %1283  ;;  %v15420_v61 = vld [vmem:[%s21535_s2 + $0x40] sm:$0xff]  }
 0x19c   : > { %v1299_v38 = vsel %vm1297_vm11, %v16021_v63, %v16019_v62 }
 0x19d   : > { %14492 = vmatmul.mubr.msk.bf16.vlgmr.msra.gmra.mxu1 %vm826_vm8, %v15412_v60  ;;  %2337 = vrot.lane.b32.xlu1 %v15828_v18, %s21595_s17 }
 0x19e   : > { %14490 = vmatmul.mubr.msk.bf16.vlgmr.msra.gmra.mxu0 %vm826_vm8, %v15412_v60  ;;  %2335 = vrot.lane.b32.xlu0 %v15826_v17, %s21595_s17  ;;  %v2910_v60 = vld [vmem:[#allocation2 + $0x48] sm:$0xff] }
 0x19f   : > { %v1120_v0 = vpop.permute.xlu1 %1119  ;;  %v1118_v1 = vpop.permute.xlu0 %1117  ;;  %1081 = vmatprep.mubr.bf16.mxu1 %v21572_v2  ;;  %1028 = vmatprep.mubr.bf16.mxu0 %v21572_v2 }
 0x1a0   : > { %v1128_v3 = vsel %vm1123_vm10, %v1118_v1, %v1120_v0 }
 0x1a1   : > { %2339 = vrot.lane.b32.xlu1 %v15836_v20, %s21595_s17  ;;  %1156 = vmatprep.subr.bf16.mxu0 %v1128_v3  ;;  %v16164_v3 = vcombine.high %v2908_v59, %v2910_v60 }
 0x1a2   : > { %2333 = vrot.lane.b32.xlu0 %v15834_v19, %s21595_s17 }
 0x1a3   : > { %v1122_v5 = vpop.permute.xlu1 %1121  ;;  %v1116_v13 = vpop.permute.xlu0 %1115 }
 0x1a4   : > { %v1127_v14 = vsel %vm1123_vm10, %v1116_v13, %v1118_v1  ;;  %1209 = vmatprep.subr.bf16.mxu1 %v1122_v5  ;;  %v1129_v15 = vsel %vm1123_vm10, %v1120_v0, %v1122_v5 }
 0x1a5   : > { %14493 = vmatmul.mubr.msk.bf16.gmra.mxu1 %vm826_vm8, %v15413_v4  ;;  %2559 = vrot.lane.b32.xlu1 %v15816_v12, %s21593_s20 }
 0x1a6   : > { %14491 = vmatmul.mubr.msk.bf16.gmra.mxu0 %vm826_vm8, %v15413_v4  ;;  %1210 = vmatpush1.bf16.msra.mxu1 %v1129_v15 }
 0x1a7   : > { %2561 = vrot.lane.b32.xlu0 %v16044_v16, %s21593_s20  ;;  %1157 = vmatpush1.bf16.msra.mxu0 %v1127_v14  ;;  %v1288_v22 = vpop.permute.xlu1 %1287  ;;  %v1282_v23 = vpop.permute.xlu0 %1281  ;;  %v15421_v14 = vld [vmem:[%s21535_s2 + $0x48] sm:$0xff]  }
 0x1a8   : > { %1158 = vmatprep.subr.bf16.mxu0 %v1125_v21  ;;  %1211 = vmatprep.subr.bf16.mxu1 %v1114_v57  ;;  %v1298_v41 = vsel %vm1297_vm11, %v1282_v23, %v16021_v63  ;;  %v16151_v63 = vcombine.low %v2908_v59, %v2910_v60  ;;  %v15426_v60 = vld [vmem:[%s21535_s2 + $0x70] sm:$0xff]  }
 0x1a9   : > { %2567 = vrot.lane.b32.xlu1 %v15828_v18, %s21593_s20  ;;  %1229 = vmatprep.mubr.bf16.mxu1 %v21572_v2 }
 0x1aa   : > { %1212 = vmatpush1.bf16.msra.mxu1 %v1126_v24  ;;  %1176 = vmatprep.mubr.bf16.mxu0 %v21572_v2 }
 0x1ab   : > { %2565 = vrot.lane.b32.xlu0 %v15826_v17, %s21593_s20  ;;  %1159 = vmatpush1.bf16.msra.mxu0 %v1124_v26  ;;  %v16065_v27 = vpop.permute.xlu1 %1459  ;;  %v16067_v28 = vpop.permute.xlu0 %1457 }
 0x1ad   : > { %14502 = vmatmul.mubr.msk.bf16.vlgmr.msra.gmra.mxu1 %vm826_vm8, %v15415_v25  ;;  %2571 = vrot.lane.b32.xlu1 %v15416_v29, %s21593_s20 }
 0x1ae   : > { %14500 = vmatmul.mubr.msk.bf16.vlgmr.msra.gmra.mxu0 %vm826_vm8, %v15415_v25  ;;  %1239 = vmatprep.mubr.bf16.mxu1 %v21572_v2 }
 0x1af   : > { %2569 = vrot.lane.b32.xlu0 %v15836_v20, %s21593_s20  ;;  %v1294_v30 = vpop.permute.xlu1 %1293  ;;  %v1292_v31 = vpop.permute.xlu0 %1291  ;;  %1186 = vmatprep.mubr.bf16.mxu0 %v21572_v2 }
 0x1b0   : > { %v1302_v32 = vsel %vm1297_vm11, %v1292_v31, %v1294_v30 }
 0x1b1   : > { %2553 = vrot.lane.b32.xlu1 %v15814_v11, %s21593_s20  ;;  %1330 = vmatprep.subr.bf16.mxu0 %v1302_v32 }
 0x1b3   : > { %2563 = vrot.lane.b32.xlu0 %v15834_v19, %s21593_s20  ;;  %v1296_v34 = vpop.permute.xlu1 %1295  ;;  %v1290_v35 = vpop.permute.xlu0 %1289 }
 0x1b4   : > { %v1301_v36 = vsel %vm1297_vm11, %v1290_v35, %v1292_v31  ;;  %1383 = vmatprep.subr.bf16.mxu1 %v1296_v34  ;;  %v1303_v37 = vsel %vm1297_vm11, %v1294_v30, %v1296_v34  ;;  %v15423_v35 = vld [vmem:[%s21535_s2 + $0x58] sm:$0xff]  }
 0x1b5   : > { %14503 = vmatmul.mubr.msk.bf16.gmra.mxu1 %vm826_vm8, %v15417_v33  ;;  %2735 = vrot.lane.b32.xlu1 %v15800_v6, %s21589_s19  ;;  %v1300_v6 = vsel %vm1297_vm11, %v16019_v62, %v1288_v22 }
 0x1b6   : > { %14501 = vmatmul.mubr.msk.bf16.gmra.mxu0 %vm826_vm8, %v15417_v33  ;;  %1384 = vmatpush1.bf16.msra.mxu1 %v1303_v37 }
 0x1b7   : > { %2737 = vrot.lane.b32.xlu0 %v15802_v7, %s21589_s19  ;;  %1331 = vmatpush1.bf16.msra.mxu0 %v1301_v36  ;;  %v1462_v39 = vpop.permute.xlu1 %1461  ;;  %v1456_v40 = vpop.permute.xlu0 %1455  ;;  %v15418_v7 = vld [vmem:[%s21535_s2 + $0x30] sm:$0xff]  }
 0x1b8   : > { %1332 = vmatprep.subr.bf16.mxu0 %v1299_v38  ;;  %1385 = vmatprep.subr.bf16.mxu1 %v1288_v22  ;;  %v1472_v62 = vsel %vm1471_vm12, %v1456_v40, %v16067_v28 }
 0x1b9   : > { %2747 = vrot.lane.b32.xlu1 %v15828_v18, %s21589_s19  ;;  %1403 = vmatprep.mubr.bf16.mxu1 %v21572_v2 }
 0x1ba   : > { %1386 = vmatpush1.bf16.msra.mxu1 %v1300_v6  ;;  %1350 = vmatprep.mubr.bf16.mxu0 %v21572_v2 }
 0x1bb   : > { %2745 = vrot.lane.b32.xlu0 %v15826_v17, %s21589_s19  ;;  %1333 = vmatpush1.bf16.msra.mxu0 %v1298_v41  ;;  %v16108_v18 = vpop.permute.xlu1 %1633  ;;  %v16110_v42 = vpop.permute.xlu0 %1631 }
 0x1bc   : > { %v1647_v24 = vsel %vm1645_vm13, %v16110_v42, %v16108_v18 }
 0x1bd   : > { %14512 = vmatmul.mubr.msk.bf16.vlgmr.msra.gmra.mxu1 %vm826_vm8, %v15418_v7  ;;  %2751 = vrot.lane.b32.xlu1 %v15416_v29, %s21589_s19 }
 0x1be   : > { %14510 = vmatmul.mubr.msk.bf16.vlgmr.msra.gmra.mxu0 %vm826_vm8, %v15418_v7  ;;  %1413 = vmatprep.mubr.bf16.mxu1 %v21572_v2 }
 0x1bf   : > { %2749 = vrot.lane.b32.xlu0 %v15836_v20, %s21589_s19  ;;  %v1468_v45 = vpop.permute.xlu1 %1467  ;;  %v1466_v48 = vpop.permute.xlu0 %1465  ;;  %1360 = vmatprep.mubr.bf16.mxu0 %v21572_v2  ;;  %v2906_v20 = vld [vmem:[#allocation2 + $0x20] sm:$0xff] }
 0x1c0   : > { %v1476_v17 = vsel %vm1471_vm12, %v1466_v48, %v1468_v45 }
 0x1c1   : > { %2739 = vrot.lane.b32.xlu1 %v15816_v12, %s21589_s19  ;;  %1504 = vmatprep.subr.bf16.mxu0 %v1476_v17  ;;  %v2904_v12 = vld [vmem:[#allocation2 + $0xc] sm:$0xff] }
 0x1c2   : > { %v16133_v56 = vcombine.low %v2904_v12, %v2906_v20  ;;  %v16175_v15 = vcombine.high %v2904_v12, %v2906_v20 }
 0x1c3   : > { %2743 = vrot.lane.b32.xlu0 %v15834_v19, %s21589_s19  ;;  %v1470_v52 = vpop.permute.xlu1 %1469  ;;  %v1464_v53 = vpop.permute.xlu0 %1463  ;;  %v1473_v19 = vsel %vm1471_vm12, %v16067_v28, %v16065_v27  ;;  %v15422_v28 = vld [vmem:[%s21535_s2 + $0x50] sm:$0xff]  }
 0x1c4   : > { %v1475_v54 = vsel %vm1471_vm12, %v1464_v53, %v1466_v48  ;;  %1557 = vmatprep.subr.bf16.mxu1 %v1470_v52  ;;  %v1477_v55 = vsel %vm1471_vm12, %v1468_v45, %v1470_v52  ;;  %v15425_v53 = vld [vmem:[%s21535_s2 + $0x68] sm:$0xff]  }
 0x1c5   : > { %14513 = vmatmul.mubr.msk.bf16.gmra.mxu1 %vm826_vm8, %v15419_v50  ;;  %2733 = vrot.lane.b32.xlu1 %v15814_v11, %s21589_s19  ;;  %v1474_v11 = vsel %vm1471_vm12, %v16065_v27, %v1462_v39 }
 0x1c6   : > { %14511 = vmatmul.mubr.msk.bf16.gmra.mxu0 %vm826_vm8, %v15419_v50  ;;  %1558 = vmatpush1.bf16.msra.mxu1 %v1477_v55 }
 0x1c7   : > { %2741 = vrot.lane.b32.xlu0 %v16044_v16, %s21589_s19  ;;  %1505 = vmatpush1.bf16.msra.mxu0 %v1475_v54  ;;  %v1636_v57 = vpop.permute.xlu1 %1635  ;;  %v1630_v58 = vpop.permute.xlu0 %1629 }
 0x1c8   : > { %1506 = vmatprep.subr.bf16.mxu0 %v1473_v19  ;;  %1559 = vmatprep.subr.bf16.mxu1 %v1462_v39  ;;  %v1648_v27 = vsel %vm1645_vm13, %v16108_v18, %v1636_v57  ;;  %v1646_v29 = vsel %vm1645_vm13, %v1630_v58, %v16110_v42  ;;  %v15424_v18 = vld [vmem:[%s21535_s2 + $0x60] sm:$0xff]  }
 0x1c9   : > { %3108 = vrot.lane.b32.xlu1 %v16133_v56, %s21586_s25  ;;  %1577 = vmatprep.mubr.bf16.mxu1 %v21572_v2 }
 0x1ca   : > { %1560 = vmatpush1.bf16.msra.mxu1 %v1474_v11  ;;  %1524 = vmatprep.mubr.bf16.mxu0 %v21572_v2 }
 0x1cb   : > { %3106 = vrot.lane.b32.xlu0 %v15788_v44, %s21586_s25  ;;  %1507 = vmatpush1.bf16.msra.mxu0 %v1472_v62  ;;  %v16155_v0 = vpop.permute.xlu1 %1807  ;;  %v16157_v1 = vpop.permute.xlu0 %1805 }
 0x1cc   : > { %v1821_v40 = vsel %vm1819_vm14, %v16157_v1, %v16155_v0 }
 0x1cd   : > { %14522 = vmatmul.mubr.msk.bf16.vlgmr.msra.gmra.mxu1 %vm826_vm8, %v15420_v61  ;;  %3116 = vrot.lane.b32.xlu1 %v16151_v63, %s21586_s25 }
 0x1ce   : > { %14520 = vmatmul.mubr.msk.bf16.vlgmr.msra.gmra.mxu0 %vm826_vm8, %v15420_v61  ;;  %1587 = vmatprep.mubr.bf16.mxu1 %v21572_v2 }
 0x1cf   : > { %3114 = vrot.lane.b32.xlu0 %v15806_v10, %s21586_s25  ;;  %v1642_v4 = vpop.permute.xlu1 %1641  ;;  %v1640_v5 = vpop.permute.xlu0 %1639  ;;  %1534 = vmatprep.mubr.bf16.mxu0 %v21572_v2 }
 0x1d0   : > { %v1650_v13 = vsel %vm1645_vm13, %v1640_v5, %v1642_v4 }
 0x1d1   : > { %3118 = vrot.lane.b32.xlu1 %v16164_v3, %s21586_s25  ;;  %1678 = vmatprep.subr.bf16.mxu0 %v1650_v13 }
 0x1d3   : > { %3112 = vrot.lane.b32.xlu0 %v15804_v8, %s21586_s25  ;;  %v1644_v16 = vpop.permute.xlu1 %1643  ;;  %v1638_v21 = vpop.permute.xlu0 %1637 }
 0x1d4   : > { %v1649_v22 = vsel %vm1645_vm13, %v1638_v21, %v1640_v5  ;;  %1731 = vmatprep.subr.bf16.mxu1 %v1644_v16  ;;  %v1651_v23 = vsel %vm1645_vm13, %v1642_v4, %v1644_v16  ;;  %v15427_v5 = vld [vmem:[%s21535_s2 + $0x78] sm:$0xff]  }
 0x1d5   : > { %14523 = vmatmul.mubr.msk.bf16.gmra.mxu1 %vm826_vm8, %v15421_v14  ;;  %3110 = vrot.lane.b32.xlu1 %v16175_v15, %s21586_s25 }
 0x1d6   : > { %14521 = vmatmul.mubr.msk.bf16.gmra.mxu0 %vm826_vm8, %v15421_v14  ;;  %1732 = vmatpush1.bf16.msra.mxu1 %v1651_v23 }
 0x1d7   : > { %3104 = vrot.lane.b32.xlu0 %v15786_v43, %s21586_s25  ;;  %1679 = vmatpush1.bf16.msra.mxu0 %v1649_v22  ;;  %v1810_v25 = vpop.permute.xlu1 %1809  ;;  %v1804_v26 = vpop.permute.xlu0 %1803 }
 0x1d8   : > { %1680 = vmatprep.subr.bf16.mxu0 %v1647_v24  ;;  %1733 = vmatprep.subr.bf16.mxu1 %v1636_v57  ;;  %v1822_v41 = vsel %vm1819_vm14, %v16155_v0, %v1810_v25  ;;  %v1820_v42 = vsel %vm1819_vm14, %v1804_v26, %v16157_v1  ;;  %v15428_v26 = vld [vmem:[%s21535_s2 + $0x80] sm:$0xff]  }
 0x1d9   : > { %3282 = vrot.lane.b32.xlu1 %v16133_v56, %s21584_s22  ;;  %1751 = vmatprep.mubr.bf16.mxu1 %v21572_v2 }
 0x1da   : > { %1734 = vmatpush1.bf16.msra.mxu1 %v1648_v27  ;;  %1698 = vmatprep.mubr.bf16.mxu0 %v21572_v2 }
 0x1db   : > { %3280 = vrot.lane.b32.xlu0 %v15788_v44, %s21584_s22  ;;  %1681 = vmatpush1.bf16.msra.mxu0 %v1646_v29  ;;  %v16203_v30 = vpop.permute.xlu1 %1981  ;;  %v16205_v31 = vpop.permute.xlu0 %1979 }
 0x1dc   : > { %v1995_v19 = vsel %vm1993_vm15, %v16205_v31, %v16203_v30 }
 0x1dd   : > { %14532 = vmatmul.mubr.msk.bf16.vlgmr.msra.gmra.mxu1 %vm826_vm8, %v15422_v28  ;;  %3290 = vrot.lane.b32.xlu1 %v16151_v63, %s21584_s22 }
 0x1de   : > { %14530 = vmatmul.mubr.msk.bf16.vlgmr.msra.gmra.mxu0 %vm826_vm8, %v15422_v28  ;;  %1761 = vmatprep.mubr.bf16.mxu1 %v21572_v2 }
 0x1df   : > { %3288 = vrot.lane.b32.xlu0 %v15806_v10, %s21584_s22  ;;  %v1816_v32 = vpop.permute.xlu1 %1815  ;;  %v1814_v33 = vpop.permute.xlu0 %1813  ;;  %1708 = vmatprep.mubr.bf16.mxu0 %v21572_v2 }
 0x1e0   : > { %v1824_v34 = vsel %vm1819_vm14, %v1814_v33, %v1816_v32 }
 0x1e1   : > { %3292 = vrot.lane.b32.xlu1 %v16164_v3, %s21584_s22  ;;  %1852 = vmatprep.subr.bf16.mxu0 %v1824_v34 }
 0x1e3   : > { %3286 = vrot.lane.b32.xlu0 %v15804_v8, %s21584_s22  ;;  %v1818_v36 = vpop.permute.xlu1 %1817  ;;  %v1812_v37 = vpop.permute.xlu0 %1811 }
 0x1e4   : > { %v1823_v38 = vsel %vm1819_vm14, %v1812_v37, %v1814_v33  ;;  %1905 = vmatprep.subr.bf16.mxu1 %v1818_v36  ;;  %v1825_v39 = vsel %vm1819_vm14, %v1816_v32, %v1818_v36  ;;  %v15429_v33 = vld [vmem:[%s21535_s2 + $0x88] sm:$0xff]  }
 0x1e5   : > { %14533 = vmatmul.mubr.msk.bf16.gmra.mxu1 %vm826_vm8, %v15423_v35  ;;  %3284 = vrot.lane.b32.xlu1 %v16175_v15, %s21584_s22 }
 0x1e6   : > { %14531 = vmatmul.mubr.msk.bf16.gmra.mxu0 %vm826_vm8, %v15423_v35  ;;  %1906 = vmatpush1.bf16.msra.mxu1 %v1825_v39 }
 0x1e7   : > { %3278 = vrot.lane.b32.xlu0 %v15786_v43, %s21584_s22  ;;  %1853 = vmatpush1.bf16.msra.mxu0 %v1823_v38  ;;  %v1984_v6 = vpop.permute.xlu1 %1983  ;;  %v1978_v7 = vpop.permute.xlu0 %1977 }
 0x1e8   : > { %1854 = vmatprep.subr.bf16.mxu0 %v1821_v40  ;;  %1907 = vmatprep.subr.bf16.mxu1 %v1810_v25  ;;  %v1996_v59 = vsel %vm1993_vm15, %v16203_v30, %v1984_v6  ;;  %v1994_v11 = vsel %vm1993_vm15, %v1978_v7, %v16205_v31  ;;  %v15430_v7 = vld [vmem:[%s21535_s2 + $0x90] sm:$0xff]  }
 0x1e9   : > { %3456 = vrot.lane.b32.xlu1 %v16133_v56, %s21563_s18  ;;  %1925 = vmatprep.mubr.bf16.mxu1 %v21572_v2 }
 0x1ea   : > { %1908 = vmatpush1.bf16.msra.mxu1 %v1822_v41  ;;  %1872 = vmatprep.mubr.bf16.mxu0 %v21572_v2 }
 0x1eb   : > { %3454 = vrot.lane.b32.xlu0 %v15788_v44, %s21563_s18  ;;  %1855 = vmatpush1.bf16.msra.mxu0 %v1820_v42  ;;  %v16247_v45 = vpop.permute.xlu1 %2155  ;;  %v16249_v48 = vpop.permute.xlu0 %2153 }
 0x1ec   : > { %v2169_v22 = vsel %vm2167_vm0, %v16249_v48, %v16247_v45 }
 0x1ed   : > { %14542 = vmatmul.mubr.msk.bf16.vlgmr.msra.gmra.mxu1 %vm826_vm8, %v15424_v18  ;;  %3464 = vrot.lane.b32.xlu1 %v16151_v63, %s21563_s18 }
 0x1ee   : > { %14540 = vmatmul.mubr.msk.bf16.vlgmr.msra.gmra.mxu0 %vm826_vm8, %v15424_v18  ;;  %1935 = vmatprep.mubr.bf16.mxu1 %v21572_v2 }
 0x1ef   : > { %3462 = vrot.lane.b32.xlu0 %v15806_v10, %s21563_s18  ;;  %v1990_v17 = vpop.permute.xlu1 %1989  ;;  %v1988_v50 = vpop.permute.xlu0 %1987  ;;  %1882 = vmatprep.mubr.bf16.mxu0 %v21572_v2 }
 0x1f0   : > { %v1998_v52 = vsel %vm1993_vm15, %v1988_v50, %v1990_v17 }
 0x1f1   : > { %3466 = vrot.lane.b32.xlu1 %v16164_v3, %s21563_s18  ;;  %2026 = vmatprep.subr.bf16.mxu0 %v1998_v52 }
 0x1f3   : > { %3460 = vrot.lane.b32.xlu0 %v15804_v8, %s21563_s18  ;;  %v1992_v20 = vpop.permute.xlu1 %1991  ;;  %v1986_v54 = vpop.permute.xlu0 %1985 }
 0x1f4   : > { %v1997_v55 = vsel %vm1993_vm15, %v1986_v54, %v1988_v50  ;;  %2079 = vmatprep.subr.bf16.mxu1 %v1992_v20  ;;  %v1999_v12 = vsel %vm1993_vm15, %v1990_v17, %v1992_v20  ;;  %v15431_v50 = vld [vmem:[%s21535_s2 + $0x98] sm:$0xff]  }
 0x1f5   : > { %14543 = vmatmul.mubr.msk.bf16.gmra.mxu1 %vm826_vm8, %v15425_v53  ;;  %3458 = vrot.lane.b32.xlu1 %v16175_v15, %s21563_s18 }
 0x1f6   : > { %14541 = vmatmul.mubr.msk.bf16.gmra.mxu0 %vm826_vm8, %v15425_v53  ;;  %2080 = vmatpush1.bf16.msra.mxu1 %v1999_v12 }
 0x1f7   : > { %3452 = vrot.lane.b32.xlu0 %v15786_v43, %s21563_s18  ;;  %2027 = vmatpush1.bf16.msra.mxu0 %v1997_v55  ;;  %v2158_v57 = vpop.permute.xlu1 %2157  ;;  %s21695_s18 = smov 110  }
 0x1f8   : > { %2028 = vmatprep.subr.bf16.mxu0 %v1995_v19  ;;  %2081 = vmatprep.subr.bf16.mxu1 %v1984_v6  ;;  %v2152_v58 = vpop.permute.xlu0 %2151  ;;  %v2170_v25 = vsel %vm2167_vm0, %v16247_v45, %v2158_v57 }
 0x1f9   : > { %3638 = vrot.lane.b32.xlu1 %v16151_v63, %s21559_s16  ;;  %2099 = vmatprep.mubr.bf16.mxu1 %v21572_v2  ;;  %v2168_v27 = vsel %vm2167_vm0, %v2152_v58, %v16249_v48 }
 0x1fa   : > { %2082 = vmatpush1.bf16.msra.mxu1 %v1996_v59  ;;  %2046 = vmatprep.mubr.bf16.mxu0 %v21572_v2 }
 0x1fb   : > { %3636 = vrot.lane.b32.xlu0 %v15806_v10, %s21559_s16  ;;  %2029 = vmatpush1.bf16.msra.mxu0 %v1994_v11  ;;  %v16291_v61 = vpop.permute.xlu1 %2329 }
 0x1fc   : > { %v16293_v62 = vpop.permute.xlu0 %2327 }
 0x1fd   : > { %14552 = vmatmul.mubr.msk.bf16.vlgmr.msra.gmra.mxu1 %vm826_vm8, %v15426_v60  ;;  %3640 = vrot.lane.b32.xlu1 %v16164_v3, %s21559_s16  ;;  %v2343_v38 = vsel %vm21592_vm1, %v16293_v62, %v16291_v61 }
 0x1fe   : > { %14550 = vmatmul.mubr.msk.bf16.vlgmr.msra.gmra.mxu0 %vm826_vm8, %v15426_v60  ;;  %2109 = vmatprep.mubr.bf16.mxu1 %v21572_v2  ;;  %v15432_v60 = vld [vmem:[%s21535_s2 + $0xa0] sm:$0xff]  }
 0x1ff   : > { %3634 = vrot.lane.b32.xlu0 %v15804_v8, %s21559_s16  ;;  %v2164_v0 = vpop.permute.xlu1 %2163  ;;  %2056 = vmatprep.mubr.bf16.mxu0 %v21572_v2 }
 0x200   : > { %v2162_v1 = vpop.permute.xlu0 %2161 }
 0x201   : > { %3630 = vrot.lane.b32.xlu1 %v16133_v56, %s21559_s16  ;;  %v2172_v4 = vsel %vm2167_vm0, %v2162_v1, %v2164_v0 }
 0x202   : > { %2200 = vmatprep.subr.bf16.mxu0 %v2172_v4 }
 0x203   : > { %3628 = vrot.lane.b32.xlu0 %v15788_v44, %s21559_s16  ;;  %v2166_v13 = vpop.permute.xlu1 %2165 }
 0x204   : > { %v2160_v14 = vpop.permute.xlu0 %2159  ;;  %2253 = vmatprep.subr.bf16.mxu1 %v2166_v13  ;;  %v2173_v16 = vsel %vm2167_vm0, %v2164_v0, %v2166_v13 }
 0x205   : > { %v2171_v21 = vsel %vm2167_vm0, %v2160_v14, %v2162_v1  ;;  %14553 = vmatmul.mubr.msk.bf16.gmra.mxu1 %vm826_vm8, %v15427_v5  ;;  %3632 = vrot.lane.b32.xlu1 %v16175_v15, %s21559_s16 }
 0x206   : > { %14551 = vmatmul.mubr.msk.bf16.gmra.mxu0 %vm826_vm8, %v15427_v5  ;;  %2254 = vmatpush1.bf16.msra.mxu1 %v2173_v16  ;;  %v15433_v5 = vld [vmem:[%s21535_s2 + $0xa8] sm:$0xff]  }
 0x207   : > { %3626 = vrot.lane.b32.xlu0 %v15786_v43, %s21559_s16  ;;  %2201 = vmatpush1.bf16.msra.mxu0 %v2171_v21  ;;  %v2332_v23 = vpop.permute.xlu1 %2331  ;;  %s21827_s16 = smov 1  }
 0x208   : > { %2202 = vmatprep.subr.bf16.mxu0 %v2169_v22  ;;  %2255 = vmatprep.subr.bf16.mxu1 %v2158_v57  ;;  %v2326_v24 = vpop.permute.xlu0 %2325  ;;  %v2344_v6 = vsel %vm21592_vm1, %v16291_v61, %v2332_v23 }
 0x209   : > { %3812 = vrot.lane.b32.xlu1 %v16151_v63, %s21546_s21  ;;  %2273 = vmatprep.mubr.bf16.mxu1 %v21572_v2  ;;  %v2342_v41 = vsel %vm21592_vm1, %v2326_v24, %v16293_v62 }
 0x20a   : > { %2256 = vmatpush1.bf16.msra.mxu1 %v2170_v25  ;;  %2220 = vmatprep.mubr.bf16.mxu0 %v21572_v2 }
 0x20b   : > { %3810 = vrot.lane.b32.xlu0 %v15806_v10, %s21546_s21  ;;  %2203 = vmatpush1.bf16.msra.mxu0 %v2168_v27  ;;  %v16335_v28 = vpop.permute.xlu1 %2555 }
 0x20c   : > { %v16337_v29 = vpop.permute.xlu0 %2557 }
 0x20d   : > { %14562 = vmatmul.mubr.msk.bf16.vlgmr.msra.gmra.mxu1 %vm826_vm8, %v15428_v26  ;;  %3814 = vrot.lane.b32.xlu1 %v16164_v3, %s21546_s21  ;;  %v2575_v19 = vsel %vm21591_vm2, %v16335_v28, %v16337_v29 }
 0x20e   : > { %14560 = vmatmul.mubr.msk.bf16.vlgmr.msra.gmra.mxu0 %vm826_vm8, %v15428_v26  ;;  %2283 = vmatprep.mubr.bf16.mxu1 %v21572_v2 }
 0x20f   : > { %3808 = vrot.lane.b32.xlu0 %v15804_v8, %s21546_s21  ;;  %v2338_v30 = vpop.permute.xlu1 %2337  ;;  %2230 = vmatprep.mubr.bf16.mxu0 %v21572_v2 }
 0x210   : > { %v2336_v31 = vpop.permute.xlu0 %2335 }
 0x211   : > { %3804 = vrot.lane.b32.xlu1 %v16133_v56, %s21546_s21  ;;  %v2346_v32 = vsel %vm21592_vm1, %v2336_v31, %v2338_v30 }
 0x212   : > { %2374 = vmatprep.subr.bf16.mxu0 %v2346_v32 }
 0x213   : > { %3802 = vrot.lane.b32.xlu0 %v15788_v44, %s21546_s21  ;;  %v2340_v34 = vpop.permute.xlu1 %2339 }
 0x214   : > { %v2334_v35 = vpop.permute.xlu0 %2333  ;;  %2427 = vmatprep.subr.bf16.mxu1 %v2340_v34  ;;  %v2347_v36 = vsel %vm21592_vm1, %v2338_v30, %v2340_v34 }
 0x215   : > { %v2345_v37 = vsel %vm21592_vm1, %v2334_v35, %v2336_v31  ;;  %14563 = vmatmul.mubr.msk.bf16.gmra.mxu1 %vm826_vm8, %v15429_v33  ;;  %3806 = vrot.lane.b32.xlu1 %v16175_v15, %s21546_s21  ;;  %v15435_v35 = vld [vmem:[%s21535_s2 + $0xb8] sm:$0xff]  }
 0x216   : > { %14561 = vmatmul.mubr.msk.bf16.gmra.mxu0 %vm826_vm8, %v15429_v33  ;;  %2428 = vmatpush1.bf16.msra.mxu1 %v2347_v36 }
 0x217   : > { %3800 = vrot.lane.b32.xlu0 %v15786_v43, %s21546_s21  ;;  %2375 = vmatpush1.bf16.msra.mxu0 %v2345_v37  ;;  %v2560_v39 = vpop.permute.xlu1 %2559  ;;  %s21557_s21 = smov 89  }
 0x218   : > { %2376 = vmatprep.subr.bf16.mxu0 %v2343_v38  ;;  %2429 = vmatprep.subr.bf16.mxu1 %v2332_v23  ;;  %v2576_v57 = vsel %vm21591_vm2, %v16337_v29, %v2560_v39 }
 0x219   : > { %v2562_v40 = vpop.permute.xlu0 %2561  ;;  %3986 = vrot.lane.b32.xlu1 %v16151_v63, %s21542_s24  ;;  %2447 = vmatprep.mubr.bf16.mxu1 %v21572_v2 }
 0x21a   : > { %2430 = vmatpush1.bf16.msra.mxu1 %v2344_v6  ;;  %2394 = vmatprep.mubr.bf16.mxu0 %v21572_v2  ;;  %v2577_v54 = vsel %vm21591_vm2, %v2560_v39, %v2562_v40  ;;  %v15436_v40 = vld [vmem:[%s21535_s2 + $0xc0] sm:$0xff]  }
 0x21b   : > { %3984 = vrot.lane.b32.xlu0 %v15806_v10, %s21542_s24  ;;  %2377 = vmatpush1.bf16.msra.mxu0 %v2342_v41  ;;  %v2568_v18 = vpop.permute.xlu1 %2567 }
 0x21d   : > { %v2566_v42 = vpop.permute.xlu0 %2565  ;;  %14572 = vmatmul.mubr.msk.bf16.vlgmr.msra.gmra.mxu1 %vm826_vm8, %v15430_v7  ;;  %3988 = vrot.lane.b32.xlu1 %v16164_v3, %s21542_s24 }
 0x21e   : > { %14570 = vmatmul.mubr.msk.bf16.vlgmr.msra.gmra.mxu0 %vm826_vm8, %v15430_v7  ;;  %v2579_v45 = vsel %vm21591_vm2, %v2566_v42, %v2568_v18  ;;  %2457 = vmatprep.mubr.bf16.mxu1 %v21572_v2 }
 0x21f   : > { %3982 = vrot.lane.b32.xlu0 %v15804_v8, %s21542_s24  ;;  %2608 = vmatprep.subr.bf16.mxu0 %v2579_v45  ;;  %v2572_v48 = vpop.permute.xlu1 %2571 }
 0x220   : > { %2404 = vmatprep.mubr.bf16.mxu0 %v21572_v2 }
 0x221   : > { %v2570_v17 = vpop.permute.xlu0 %2569  ;;  %3978 = vrot.lane.b32.xlu1 %v16133_v56, %s21542_s24 }
 0x222   : > { %v2581_v52 = vsel %vm21591_vm2, %v2570_v17, %v2572_v48  ;;  %v2580_v53 = vsel %vm21591_vm2, %v2568_v18, %v2570_v17 }
 0x223   : > { %3976 = vrot.lane.b32.xlu0 %v15788_v44, %s21542_s24  ;;  %2661 = vmatprep.subr.bf16.mxu1 %v2581_v52  ;;  %v2554_v20 = vpop.permute.xlu1 %2553 }
 0x224   : > { %2662 = vmatpush1.bf16.msra.mxu1 %v2580_v53  ;;  %v2574_v11 = vsel %vm21591_vm2, %v2554_v20, %v16335_v28  ;;  %v15434_v28 = vld [vmem:[%s21535_s2 + $0xb0] sm:$0xff]  }
 0x225   : > { %2663 = vmatprep.subr.bf16.mxu1 %v2577_v54  ;;  %v2564_v55 = vpop.permute.xlu0 %2563  ;;  %14573 = vmatmul.mubr.msk.bf16.gmra.mxu1 %vm826_vm8, %v15431_v50 }
 0x226   : > { %v2578_v12 = vsel %vm21591_vm2, %v2564_v55, %v2566_v42  ;;  %14571 = vmatmul.mubr.msk.bf16.gmra.mxu0 %vm826_vm8, %v15431_v50  ;;  %3980 = vrot.lane.b32.xlu1 %v16175_v15, %s21542_s24 }
 0x227   : > { %3974 = vrot.lane.b32.xlu0 %v15786_v43, %s21542_s24  ;;  %2609 = vmatpush1.bf16.msra.mxu0 %v2578_v12  ;;  %v2736_v58 = vpop.permute.xlu1 %2735  ;;  %s21544_s24 = smov 106  }
 0x228   : > { %2610 = vmatprep.subr.bf16.mxu0 %v2575_v19  ;;  %2664 = vmatpush1.bf16.msra.mxu1 %v2576_v57  ;;  %v15437_v57 = vld [vmem:[%s21535_s2 + $0xc8] sm:$0xff]  }
 0x229   : > { %v2738_v59 = vpop.permute.xlu0 %2737  ;;  %2681 = vmatprep.mubr.bf16.mxu1 %v21572_v2  ;;  %2628 = vmatprep.mubr.bf16.mxu0 %v21572_v2 }
 0x22a   : > { %4160 = vrot.lane.b32.xlu1 %v16151_v63, %s21544_s24  ;;  %v2755_v23 = vsel %vm21588_vm3, %v2736_v58, %v2738_v59 }
 0x22b   : > { %4158 = vrot.lane.b32.xlu0 %v15806_v10, %s21544_s24  ;;  %2611 = vmatpush1.bf16.msra.mxu0 %v2574_v11  ;;  %v2748_v61 = vpop.permute.xlu1 %2747 }
 0x22d   : > { %v2746_v62 = vpop.permute.xlu0 %2745  ;;  %14592 = vmatmul.mubr.msk.bf16.vlgmr.msra.gmra.mxu1 %vm826_vm8, %v15432_v60 }
 0x22e   : > { %14590 = vmatmul.mubr.msk.bf16.vlgmr.msra.gmra.mxu0 %vm826_vm8, %v15432_v60  ;;  %4162 = vrot.lane.b32.xlu1 %v16164_v3, %s21544_s24  ;;  %v2759_v0 = vsel %vm21588_vm3, %v2746_v62, %v2748_v61 }
 0x22f   : > { %4156 = vrot.lane.b32.xlu0 %v15804_v8, %s21544_s24  ;;  %2788 = vmatprep.subr.bf16.mxu0 %v2759_v0  ;;  %v2752_v1 = vpop.permute.xlu1 %2751 }
 0x230   : > { %2638 = vmatprep.mubr.bf16.mxu0 %v21572_v2  ;;  %2691 = vmatprep.mubr.bf16.mxu1 %v21572_v2 }
 0x231   : > { %v2750_v4 = vpop.permute.xlu0 %2749 }
 0x232   : > { %4152 = vrot.lane.b32.xlu1 %v16133_v56, %s21544_s24  ;;  %v2761_v13 = vsel %vm21588_vm3, %v2750_v4, %v2752_v1  ;;  %v2760_v14 = vsel %vm21588_vm3, %v2748_v61, %v2750_v4 }
 0x233   : > { %4150 = vrot.lane.b32.xlu0 %v15788_v44, %s21544_s24  ;;  %2841 = vmatprep.subr.bf16.mxu1 %v2761_v13  ;;  %v2740_v16 = vpop.permute.xlu1 %2739 }
 0x234   : > { %2842 = vmatpush1.bf16.msra.mxu1 %v2760_v14  ;;  %v2756_v30 = vsel %vm21588_vm3, %v2738_v59, %v2740_v16 }
 0x235   : > { %v2744_v21 = vpop.permute.xlu0 %2743  ;;  %14593 = vmatmul.mubr.msk.bf16.gmra.mxu1 %vm826_vm8, %v15433_v5 }
 0x236   : > { %v2758_v22 = vsel %vm21588_vm3, %v2744_v21, %v2746_v62  ;;  %14591 = vmatmul.mubr.msk.bf16.gmra.mxu0 %vm826_vm8, %v15433_v5  ;;  %4154 = vrot.lane.b32.xlu1 %v16175_v15, %s21544_s24  ;;  %v15438_v21 = vld [vmem:[%s21535_s2 + $0xd0] sm:$0xff]  }
 0x237   : > { %4148 = vrot.lane.b32.xlu0 %v15786_v43, %s21544_s24  ;;  %2789 = vmatpush1.bf16.msra.mxu0 %v2758_v22  ;;  %v2734_v24 = vpop.permute.xlu1 %2733  ;;  %s21698_s24 = smov 107  }
 0x238   : > { %2790 = vmatprep.subr.bf16.mxu0 %v2755_v23  ;;  %v2754_v25 = vsel %vm21588_vm3, %v2734_v24, %v2736_v58  ;;  %2808 = vmatprep.mubr.bf16.mxu0 %v21572_v2 }
 0x239   : > { %v2742_v26 = vpop.permute.xlu0 %2741  ;;  %2861 = vmatprep.mubr.bf16.mxu1 %v21572_v2 }
 0x23a   : > { %4334 = vrot.lane.b32.xlu1 %v16151_v63, %s21548_s15  ;;  %v2757_v27 = vsel %vm21588_vm3, %v2740_v16, %v2742_v26 }
 0x23b   : > { %4332 = vrot.lane.b32.xlu0 %v15806_v10, %s21548_s15  ;;  %2791 = vmatpush1.bf16.msra.mxu0 %v2754_v25  ;;  %v16458_v29 = vpop.permute.xlu1 %3108 }
 0x23c   : > { %2843 = vmatprep.subr.bf16.mxu1 %v2757_v27  ;;  %2979 = vmatprep.subr.bf16.mxu0 %v15806_v10 }
 0x23d   : > { %2844 = vmatpush1.bf16.msra.mxu1 %v2756_v30  ;;  %v3107_v31 = vpop.permute.xlu0 %3106 }
 0x23e   : > { %3032 = vmatprep.subr.bf16.mxu1 %v16164_v3  ;;  %14600 = vmatmul.mubr.msk.bf16.vlgmr.msra.gmra.mxu0 %vm826_vm8, %v15434_v28  ;;  %v3122_v50 = vsel %vm21550_vm4, %v3107_v31, %v16458_v29 }
 0x23f   : > { %4336 = vrot.lane.b32.xlu1 %v16164_v3, %s21548_s15  ;;  %4330 = vrot.lane.b32.xlu0 %v15804_v8, %s21548_s15  ;;  %v3117_v32 = vpop.permute.xlu1 %3116 }
 0x240   : > { %14602 = vmatmul.mubr.msk.bf16.vlgmr.msra.gmra.mxu1 %vm826_vm8, %v15434_v28  ;;  %2980 = vmatpush1.bf16.msra.mxu0 %v15804_v8 }
 0x241   : > { %2981 = vmatprep.subr.bf16.mxu0 %v15788_v44  ;;  %3033 = vmatpush1.bf16.msra.mxu1 %v16151_v63  ;;  %v3115_v33 = vpop.permute.xlu0 %3114 }
 0x242   : > { %3034 = vmatprep.subr.bf16.mxu1 %v16175_v15  ;;  %v3125_v34 = vsel %vm21550_vm4, %v3115_v33, %v3117_v32  ;;  %2818 = vmatprep.mubr.bf16.mxu0 %v21572_v2 }
 0x243   : > { %4326 = vrot.lane.b32.xlu1 %v16133_v56, %s21548_s15  ;;  %4324 = vrot.lane.b32.xlu0 %v15788_v44, %s21548_s15  ;;  %v3119_v36 = vpop.permute.xlu1 %3118 }
 0x244   : > { %2982 = vmatpush1.bf16.msra.mxu0 %v15786_v43  ;;  %2871 = vmatprep.mubr.bf16.mxu1 %v21572_v2  ;;  %v3126_v52 = vsel %vm21550_vm4, %v3117_v32, %v3119_v36 }
 0x245   : > { %3035 = vmatpush1.bf16.msra.mxu1 %v16133_v56  ;;  %3153 = vmatprep.subr.bf16.mxu0 %v3125_v34  ;;  %v3113_v37 = vpop.permute.xlu0 %3112 }
 0x246   : > { %14601 = vmatmul.mubr.msk.bf16.gmra.mxu0 %vm826_vm8, %v15435_v35  ;;  %3206 = vmatprep.subr.bf16.mxu1 %v3119_v36  ;;  %v3124_v42 = vsel %vm21550_vm4, %v3113_v37, %v3115_v33 }
 0x247   : > { %4328 = vrot.lane.b32.xlu1 %v16175_v15, %s21548_s15  ;;  %4322 = vrot.lane.b32.xlu0 %v15786_v43, %s21548_s15  ;;  %v3111_v38 = vpop.permute.xlu1 %3110  ;;  %s21551_s15 = smov 88  }
 0x248   : > { %14603 = vmatmul.mubr.msk.bf16.gmra.mxu1 %vm826_vm8, %v15435_v35  ;;  %2999 = vmatprep.mubr.bf16.mxu0 %v21572_v2  ;;  %v3123_v60 = vsel %vm21550_vm4, %v16458_v29, %v3111_v38 }
 0x249   : > { %v3105_v39 = vpop.permute.xlu0 %3104  ;;  %3052 = vmatprep.mubr.bf16.mxu1 %v21572_v2 }
 0x24a   : > { %v3121_v55 = vsel %vm21550_vm4, %v3105_v39, %v3107_v31  ;;  %vm21556_vm4 = vcmask 900096  }
 0x24b   : > { %4508 = vrot.lane.b32.xlu1 %v16151_v63, %s21557_s21  ;;  %4506 = vrot.lane.b32.xlu0 %v15806_v10, %s21557_s21  ;;  %v16500_v6 = vpop.permute.xlu1 %3282 }
 0x24c   : > { %v920_v7 = vpop.f32.mrf.mxu1 }
 0x24d   : > { %v16502_v41 = vpop.permute.xlu0 %3280  ;;  %v867_v18 = vpop.f32.mrf.mxu0 }
 0x24e   : > { %14618 = vmatmul.mubr.msk.bf16.vlgmr.msra.gmra.mxu0 %vm826_vm8, %v15436_v40  ;;  %v16506_v45 = vpop.f32.mrf.mxu1  ;;  %v3296_v32 = vsel %vm21553_vm5, %v16502_v41, %v16500_v6 }
 0x24f   : > { %3154 = vmatpush1.bf16.msra.mxu0 %v3124_v42  ;;  %4510 = vrot.lane.b32.xlu1 %v16164_v3, %s21557_s21  ;;  %v16510_v48 = vpop.f32.mrf.mxu0  ;;  %v16512_v17 = vpop.permute.xlu1 %3290  ;;  %v15439_v42 = vld [vmem:[%s21535_s2 + $0xd8] sm:$0xff]  }
 0x250   : > { %4504 = vrot.lane.b32.xlu0 %v15804_v8, %s21557_s21  ;;  %14620 = vmatmul.mubr.msk.bf16.vlgmr.msra.gmra.mxu1 %vm826_vm8, %v15436_v40  ;;  %v16520_v53 = vpop.f32.mrf.mxu1 }
 0x251   : > { %3155 = vmatprep.subr.bf16.mxu0 %v3122_v50  ;;  %3207 = vmatpush1.bf16.msra.mxu1 %v3126_v52  ;;  %v3289_v20 = vpop.permute.xlu0 %3288  ;;  %v16522_v54 = vpop.f32.mrf.mxu0 }
 0x252   : > { %3208 = vmatprep.subr.bf16.mxu1 %v3111_v38  ;;  %v3299_v12 = vsel %vm21553_vm5, %v3289_v20, %v16512_v17  ;;  %v16527_v19 = vpop.f32.mrf.mxu1  ;;  %3009 = vmatprep.mubr.bf16.mxu0 %v21572_v2 }
 0x253   : > { %3156 = vmatpush1.bf16.msra.mxu0 %v3121_v55  ;;  %4500 = vrot.lane.b32.xlu1 %v16133_v56, %s21557_s21  ;;  %v16535_v58 = vpop.f32.mrf.mxu0  ;;  %v3293_v59 = vpop.permute.xlu1 %3292 }
 0x254   : > { %4498 = vrot.lane.b32.xlu0 %v15788_v44, %s21557_s21  ;;  %3327 = vmatprep.subr.bf16.mxu0 %v3299_v12  ;;  %v16541_v11 = vpop.f32.mrf.mxu1  ;;  %v3300_v33 = vsel %vm21553_vm5, %v16512_v17, %v3293_v59 }
 0x255   : > { %3209 = vmatpush1.bf16.msra.mxu1 %v3123_v60  ;;  %v3287_v61 = vpop.permute.xlu0 %3286  ;;  %v16543_v62 = vpop.f32.mrf.mxu0  ;;  %3062 = vmatprep.mubr.bf16.mxu1 %v21572_v2 }
 0x256   : > { %14619 = vmatmul.mubr.msk.bf16.gmra.mxu0 %vm826_vm8, %v15437_v57  ;;  %3380 = vmatprep.subr.bf16.mxu1 %v3293_v59  ;;  %v16547_v0 = vpop.f32.mrf.mxu1  ;;  %v3298_v26 = vsel %vm21553_vm5, %v3287_v61, %v3289_v20 }
 0x257   : > { %4502 = vrot.lane.b32.xlu1 %v16175_v15, %s21557_s21  ;;  %v16551_v1 = vpop.f32.mrf.mxu0  ;;  %v3285_v4 = vpop.permute.xlu1 %3284  ;;  %3173 = vmatprep.mubr.bf16.mxu0 %v21572_v2 }
 0x258   : > { %4496 = vrot.lane.b32.xlu0 %v15786_v43, %s21557_s21  ;;  %14621 = vmatmul.mubr.msk.bf16.gmra.mxu1 %vm826_vm8, %v15437_v57  ;;  %v16557_v5 = vpop.f32.mrf.mxu1  ;;  %v3297_v17 = vsel %vm21553_vm5, %v16500_v6, %v3285_v4  ;;  %s21696_s21 = smov 109  }
 0x259   : > { %v3279_v13 = vpop.permute.xlu0 %3278  ;;  %v16559_v14 = vpop.f32.mrf.mxu0  ;;  %3226 = vmatprep.mubr.bf16.mxu1 %v21572_v2 }
 0x25a   : > { %v16562_v16 = vpop.f32.mrf.mxu1  ;;  %v3295_v39 = vsel %vm21553_vm5, %v3279_v13, %v16502_v41  ;;  %v15440_v13 = vld [vmem:[%s21535_s2 + $0xe0] sm:$0xff]   ;;  %vm21565_vm5 = vcmask 891904  }
 0x25b   : > { %4682 = vrot.lane.b32.xlu1 %v16151_v63, %s21551_s15  ;;  %v16569_v22 = vpop.f32.mrf.mxu0  ;;  %v16571_v23 = vpop.permute.xlu1 %3456 }
 0x25c   : > { %4680 = vrot.lane.b32.xlu0 %v15806_v10, %s21551_s15 }
 0x25d   : > { %v16575_v24 = vpop.permute.xlu0 %3454  ;;  %v1073_v25 = vpop.f32.mrf.mxu1 }
 0x25e   : > { %v1020_v27 = vpop.f32.mrf.mxu0  ;;  %v16578_v28 = vadd.f32 %v1073_v25, %v920_v7  ;;  %14628 = vmatmul.mubr.msk.bf16.vlgmr.msra.gmra.mxu0 %vm826_vm8, %v15438_v21 }
 0x25f   : > { %v16581_v29 = vadd.f32 %v1020_v27, %v867_v18  ;;  %3328 = vmatpush1.bf16.msra.mxu0 %v3298_v26  ;;  %4684 = vrot.lane.b32.xlu1 %v16164_v3, %s21551_s15  ;;  %v1075_v30 = vpop.f32.mrf.mxu1  ;;  %v16585_v31 = vpop.permute.xlu1 %3464 }
 0x260   : > { %4678 = vrot.lane.b32.xlu0 %v15804_v8, %s21551_s15  ;;  %14630 = vmatmul.mubr.msk.bf16.vlgmr.msra.gmra.mxu1 %vm826_vm8, %v15438_v21  ;;  %v1022_v34 = vpop.f32.mrf.mxu0  ;;  %v16596_v35 = vadd.f32 %v1075_v30, %v16506_v45 }
 0x261   : > { %3329 = vmatprep.subr.bf16.mxu0 %v3296_v32  ;;  %3381 = vmatpush1.bf16.msra.mxu1 %v3300_v33  ;;  %v16599_v36 = vadd.f32 %v1022_v34, %v16510_v48  ;;  %v3463_v37 = vpop.permute.xlu0 %3462  ;;  %v1077_v38 = vpop.f32.mrf.mxu1 }
 0x262   : > { %3382 = vmatprep.subr.bf16.mxu1 %v3285_v4  ;;  %v1024_v40 = vpop.f32.mrf.mxu0  ;;  %v16604_v7 = vadd.f32 %v1077_v38, %v16520_v53  ;;  %v3473_v18 = vsel %vm21556_vm4, %v3463_v37, %v16585_v31  ;;  %3183 = vmatprep.mubr.bf16.mxu0 %v21572_v2 }
 0x263   : > { %v16613_v45 = vadd.f32 %v1024_v40, %v16522_v54  ;;  %3330 = vmatpush1.bf16.msra.mxu0 %v3295_v39  ;;  %4674 = vrot.lane.b32.xlu1 %v16133_v56, %s21551_s15  ;;  %v1079_v41 = vpop.f32.mrf.mxu1  ;;  %v3467_v48 = vpop.permute.xlu1 %3466 }
 0x264   : > { %4672 = vrot.lane.b32.xlu0 %v15788_v44, %s21551_s15  ;;  %3501 = vmatprep.subr.bf16.mxu0 %v3473_v18  ;;  %v1026_v50 = vpop.f32.mrf.mxu0  ;;  %v16622_v52 = vadd.f32 %v1079_v41, %v16527_v19 }
 0x265   : > { %3383 = vmatpush1.bf16.msra.mxu1 %v3297_v17  ;;  %v16625_v53 = vadd.f32 %v1026_v50, %v16535_v58  ;;  %v3461_v20 = vpop.permute.xlu0 %3460  ;;  %v1083_v54 = vpop.f32.mrf.mxu1  ;;  %3236 = vmatprep.mubr.bf16.mxu1 %v21572_v2 }
 0x266   : > { %v1030_v55 = vpop.f32.mrf.mxu0  ;;  %v16629_v12 = vadd.f32 %v1083_v54, %v16541_v11  ;;  %14629 = vmatmul.mubr.msk.bf16.gmra.mxu0 %vm826_vm8, %v15439_v42  ;;  %3554 = vmatprep.subr.bf16.mxu1 %v3467_v48  ;;  %v3472_v30 = vsel %vm21556_vm4, %v3461_v20, %v3463_v37 }
 0x267   : > { %v16633_v6 = vadd.f32 %v1030_v55, %v16543_v62  ;;  %4676 = vrot.lane.b32.xlu1 %v16175_v15, %s21551_s15  ;;  %v1085_v19 = vpop.f32.mrf.mxu1  ;;  %v3459_v57 = vpop.permute.xlu1 %3458  ;;  %3347 = vmatprep.mubr.bf16.mxu0 %v21572_v2 }
 0x268   : > { %4670 = vrot.lane.b32.xlu0 %v15786_v43, %s21551_s15  ;;  %14631 = vmatmul.mubr.msk.bf16.gmra.mxu1 %vm826_vm8, %v15439_v42  ;;  %v1032_v58 = vpop.f32.mrf.mxu0  ;;  %v16642_v59 = vadd.f32 %v1085_v19, %v16547_v0  ;;  %s21554_s15 = smov 87  }
 0x269   : > { %v16645_v60 = vadd.f32 %v1032_v58, %v16551_v1  ;;  %v3453_v11 = vpop.permute.xlu0 %3452  ;;  %v1087_v61 = vpop.f32.mrf.mxu1  ;;  %3400 = vmatprep.mubr.bf16.mxu1 %v21572_v2 }
 0x26a   : > { %v1034_v62 = vpop.f32.mrf.mxu0  ;;  %v16649_v4 = vadd.f32 %v1087_v61, %v16557_v5  ;;  %v3469_v42 = vsel %vm21556_vm4, %v3453_v11, %v16575_v24 }
 0x26b   : > { %v16655_v21 = vadd.f32 %v1034_v62, %v16559_v14  ;;  %4856 = vrot.lane.b32.xlu1 %v16151_v63, %s21554_s15  ;;  %v1089_v0 = vpop.f32.mrf.mxu1  ;;  %v16659_v1 = vpop.permute.xlu1 %3638 }
 0x26c   : > { %4854 = vrot.lane.b32.xlu0 %v15806_v10, %s21554_s15  ;;  %v1036_v25 = vpop.f32.mrf.mxu0  ;;  %v16664_v5 = vadd.f32 %v1089_v0, %v16562_v16  ;;  %v15442_v0 = vld [vmem:[%s21535_s2 + $0xf0] sm:$0xff]  }
 0x26d   : > { %v16667_v26 = vadd.f32 %v1036_v25, %v16569_v22  ;;  %v16669_v27 = vpop.permute.xlu0 %3636  ;;  %v1231_v14 = vpop.f32.mrf.mxu1 }
 0x26e   : > { %v1178_v32 = vpop.f32.mrf.mxu0  ;;  %v16673_v33 = vadd.f32 %v1231_v14, %v16578_v28  ;;  %14638 = vmatmul.mubr.msk.bf16.vlgmr.msra.gmra.mxu0 %vm826_vm8, %v15440_v13  ;;  %v3470_v28 = vsel %vm21556_vm4, %v16575_v24, %v16571_v23  ;;  %v3647_v24 = vsel %vm21565_vm5, %v16669_v27, %v16659_v1 }
 0x26f   : > { %v16677_v34 = vadd.f32 %v1178_v32, %v16581_v29  ;;  %3502 = vmatpush1.bf16.msra.mxu0 %v3472_v30  ;;  %4858 = vrot.lane.b32.xlu1 %v16164_v3, %s21554_s15  ;;  %v1233_v16 = vpop.f32.mrf.mxu1  ;;  %v16681_v22 = vpop.permute.xlu1 %3640  ;;  %v3474_v29 = vsel %vm21556_vm4, %v16585_v31, %v3467_v48  ;;  %v15441_v31 = vld [vmem:[%s21535_s2 + $0xe8] sm:$0xff]   ;;  %v3471_v48 = vsel %vm21556_vm4, %v16571_v23, %v3459_v57  ;;  %vm21566_vm4 = vcmask 883712  }
 0x270   : > { %4852 = vrot.lane.b32.xlu0 %v15804_v8, %s21554_s15  ;;  %14640 = vmatmul.mubr.msk.bf16.vlgmr.msra.gmra.mxu1 %vm826_vm8, %v15440_v13  ;;  %v1180_v37 = vpop.f32.mrf.mxu0  ;;  %v16692_v38 = vadd.f32 %v1233_v16, %v16596_v35 }
 0x271   : > { %3503 = vmatprep.subr.bf16.mxu0 %v3470_v28  ;;  %3555 = vmatpush1.bf16.msra.mxu1 %v3474_v29  ;;  %v16695_v39 = vadd.f32 %v1180_v37, %v16599_v36  ;;  %v3635_v40 = vpop.permute.xlu0 %3634  ;;  %v1235_v18 = vpop.f32.mrf.mxu1 }
 0x272   : > { %3556 = vmatprep.subr.bf16.mxu1 %v3459_v57  ;;  %v1182_v41 = vpop.f32.mrf.mxu0  ;;  %v16700_v17 = vadd.f32 %v1235_v18, %v16604_v7  ;;  %3357 = vmatprep.mubr.bf16.mxu0 %v21572_v2  ;;  %v3646_v16 = vsel %vm21565_vm5, %v3635_v40, %v16669_v27 }
 0x273   : > { %v16707_v35 = vadd.f32 %v1182_v41, %v16613_v45  ;;  %3504 = vmatpush1.bf16.msra.mxu0 %v3469_v42  ;;  %4848 = vrot.lane.b32.xlu1 %v16133_v56, %s21554_s15  ;;  %v1237_v36 = vpop.f32.mrf.mxu1  ;;  %v16714_v7 = vpop.permute.xlu1 %3630 }
 0x274   : > { %4846 = vrot.lane.b32.xlu0 %v15788_v44, %s21554_s15  ;;  %3675 = vmatprep.subr.bf16.mxu0 %v3647_v24  ;;  %v1184_v45 = vpop.f32.mrf.mxu0  ;;  %v16721_v50 = vadd.f32 %v1237_v36, %v16622_v52 }
 0x275   : > { %3557 = vmatpush1.bf16.msra.mxu1 %v3471_v48  ;;  %v16724_v20 = vadd.f32 %v1184_v45, %v16625_v53  ;;  %v3629_v54 = vpop.permute.xlu0 %3628  ;;  %v1241_v55 = vpop.f32.mrf.mxu1  ;;  %3410 = vmatprep.mubr.bf16.mxu1 %v21572_v2 }
 0x276   : > { %3728 = vmatprep.subr.bf16.mxu1 %v16681_v22  ;;  %v1188_v19 = vpop.f32.mrf.mxu0  ;;  %v16729_v58 = vadd.f32 %v1241_v55, %v16629_v12  ;;  %14639 = vmatmul.mubr.msk.bf16.gmra.mxu0 %vm826_vm8, %v15441_v31  ;;  %v3644_v27 = vsel %vm21565_vm5, %v3629_v54, %v16714_v7  ;;  %v14745_v55 = vld [vmem:[%s21538_s5 + $0x38] sm:$0xff] }
 0x277   : > { %v16733_v23 = vadd.f32 %v1188_v19, %v16633_v6  ;;  %4850 = vrot.lane.b32.xlu1 %v16175_v15, %s21554_s15  ;;  %v1243_v52 = vpop.f32.mrf.mxu1  ;;  %v3633_v53 = vpop.permute.xlu1 %3632  ;;  %3521 = vmatprep.mubr.bf16.mxu0 %v21572_v2 }
 0x278   : > { %4844 = vrot.lane.b32.xlu0 %v15786_v43, %s21554_s15  ;;  %14641 = vmatmul.mubr.msk.bf16.gmra.mxu1 %vm826_vm8, %v15441_v31  ;;  %v1190_v57 = vpop.f32.mrf.mxu0  ;;  %v16742_v12 = vadd.f32 %v1243_v52, %v16642_v59  ;;  %s21561_s15 = smov 86  }
 0x279   : > { %v16745_v11 = vadd.f32 %v1190_v57, %v16645_v60  ;;  %v3627_v6 = vpop.permute.xlu0 %3626  ;;  %v1245_v61 = vpop.f32.mrf.mxu1  ;;  %3574 = vmatprep.mubr.bf16.mxu1 %v21572_v2 }
 0x27a   : > { %v1192_v62 = vpop.f32.mrf.mxu0  ;;  %v16749_v13 = vadd.f32 %v1245_v61, %v16649_v4  ;;  %v3643_v40 = vsel %vm21565_vm5, %v3627_v6, %v3629_v54 }
 0x27b   : > { %v16755_v25 = vadd.f32 %v1192_v62, %v16655_v21  ;;  %5030 = vrot.lane.b32.xlu1 %v16151_v63, %s21561_s15  ;;  %v1247_v59 = vpop.f32.mrf.mxu1  ;;  %v16759_v60 = vpop.permute.xlu1 %3812  ;;  %v14743_v62 = vld [vmem:[%s21538_s5 + $0x28] sm:$0xff] }
 0x27c   : > { %5028 = vrot.lane.b32.xlu0 %v15806_v10, %s21561_s15  ;;  %v1194_v14 = vpop.f32.mrf.mxu0  ;;  %v16764_v4 = vadd.f32 %v1247_v59, %v16664_v5  ;;  %v14742_v59 = vld [vmem:[%s21538_s5 + $0x20] sm:$0xff] }
 0x27d   : > { %v16767_v30 = vadd.f32 %v1194_v14, %v16667_v26  ;;  %v16769_v32 = vpop.permute.xlu0 %3810  ;;  %v1405_v21 = vpop.f32.mrf.mxu1 }
 0x27e   : > { %v1352_v63 = vpop.f32.mrf.mxu0  ;;  %v16774_v28 = vadd.f32 %v1405_v21, %v16673_v33  ;;  %14648 = vmatmul.mubr.msk.bf16.vlgmr.msra.gmra.mxu0 %vm826_vm8, %v15442_v0  ;;  %v3648_v33 = vsel %vm21565_vm5, %v16659_v1, %v16681_v22  ;;  %v15443_v1 = vld [vmem:[%s21535_s2 + $0xf8] sm:$0xff]  }
 0x27f   : > { %v16778_v10 = vadd.f32 %v1352_v63, %v16677_v34  ;;  %3676 = vmatpush1.bf16.msra.mxu0 %v3646_v16  ;;  %5032 = vrot.lane.b32.xlu1 %v16164_v3, %s21561_s15  ;;  %v1407_v5 = vpop.f32.mrf.mxu1  ;;  %v16782_v26 = vpop.permute.xlu1 %3814 }
 0x280   : > { %5026 = vrot.lane.b32.xlu0 %v15804_v8, %s21561_s15  ;;  %14650 = vmatmul.mubr.msk.bf16.vlgmr.msra.gmra.mxu1 %vm826_vm8, %v15442_v0  ;;  %v1354_v34 = vpop.f32.mrf.mxu0  ;;  %v16793_v29 = vadd.f32 %v1407_v5, %v16692_v38  ;;  %v3821_v38 = vsel %vm21566_vm4, %v16769_v32, %v16759_v60 }
 0x281   : > { %3677 = vmatprep.subr.bf16.mxu0 %v3644_v27  ;;  %3729 = vmatpush1.bf16.msra.mxu1 %v3648_v33  ;;  %v16796_v3 = vadd.f32 %v1354_v34, %v16695_v39  ;;  %v3809_v8 = vpop.permute.xlu0 %3808  ;;  %v1409_v37 = vpop.f32.mrf.mxu1 }
 0x282   : > { %3730 = vmatprep.subr.bf16.mxu1 %v3633_v53  ;;  %v1356_v18 = vpop.f32.mrf.mxu0  ;;  %v16800_v42 = vadd.f32 %v1409_v37, %v16700_v17  ;;  %3531 = vmatprep.mubr.bf16.mxu0 %v21572_v2  ;;  %v3645_v17 = vsel %vm21565_vm5, %v16714_v7, %v3633_v53  ;;  %v15444_v53 = vld [vmem:[%s21535_s2 + $0x100] sm:$0xff]   ;;  %v3820_v14 = vsel %vm21566_vm4, %v3809_v8, %v16769_v32  ;;  %vm21567_vm5 = vcmask 875520  }
 0x283   : > { %v16807_v22 = vadd.f32 %v1356_v18, %v16707_v35  ;;  %3678 = vmatpush1.bf16.msra.mxu0 %v3643_v40  ;;  %5022 = vrot.lane.b32.xlu1 %v16133_v56, %s21561_s15  ;;  %v1411_v39 = vpop.f32.mrf.mxu1  ;;  %v16814_v41 = vpop.permute.xlu1 %3804  ;;  %v3822_v32 = vsel %vm21566_vm4, %v16759_v60, %v16782_v26 }
 0x284   : > { %5020 = vrot.lane.b32.xlu0 %v15788_v44, %s21561_s15  ;;  %3849 = vmatprep.subr.bf16.mxu0 %v3821_v38  ;;  %v1358_v31 = vpop.f32.mrf.mxu0  ;;  %v16821_v35 = vadd.f32 %v1411_v39, %v16721_v50 }
 0x285   : > { %3731 = vmatpush1.bf16.msra.mxu1 %v3645_v17  ;;  %v16824_v56 = vadd.f32 %v1358_v31, %v16724_v20  ;;  %v3803_v24 = vpop.permute.xlu0 %3802  ;;  %v1415_v36 = vpop.f32.mrf.mxu1  ;;  %3584 = vmatprep.mubr.bf16.mxu1 %v21572_v2 }
 0x286   : > { %3902 = vmatprep.subr.bf16.mxu1 %v16782_v26  ;;  %v1362_v48 = vpop.f32.mrf.mxu0  ;;  %v16829_v44 = vadd.f32 %v1415_v36, %v16729_v58  ;;  %14649 = vmatmul.mubr.msk.bf16.gmra.mxu0 %vm826_vm8, %v15443_v1 }
 0x287   : > { %v16833_v7 = vadd.f32 %v1362_v48, %v16733_v23  ;;  %5024 = vrot.lane.b32.xlu1 %v16175_v15, %s21561_s15  ;;  %v1417_v45 = vpop.f32.mrf.mxu1  ;;  %v3807_v50 = vpop.permute.xlu1 %3806  ;;  %3695 = vmatprep.mubr.bf16.mxu0 %v21572_v2  ;;  %v14744_v23 = vld [vmem:[%s21538_s5 + $0x30] sm:$0xff] }
 0x288   : > { %5018 = vrot.lane.b32.xlu0 %v15786_v43, %s21561_s15  ;;  %14651 = vmatmul.mubr.msk.bf16.gmra.mxu1 %vm826_vm8, %v15443_v1  ;;  %v1364_v20 = vpop.f32.mrf.mxu0  ;;  %v16842_v54 = vadd.f32 %v1417_v45, %v16742_v12  ;;  %s21697_s15 = smov 108  }
 0x289   : > { %v16848_v19 = vadd.f32 %v1364_v20, %v16745_v11  ;;  %v3801_v15 = vpop.permute.xlu0 %3800  ;;  %v1419_v58 = vpop.f32.mrf.mxu1  ;;  %3748 = vmatprep.mubr.bf16.mxu1 %v21572_v2 }
 0x28a   : > { %v1366_v43 = vpop.f32.mrf.mxu0  ;;  %v16855_v52 = vadd.f32 %v1419_v58, %v16749_v13  ;;  %v3817_v8 = vsel %vm21566_vm4, %v3801_v15, %v3803_v24 }
 0x28b   : > { %v16861_v57 = vadd.f32 %v1366_v43, %v16755_v25  ;;  %5199 = vperm.xlu1 %15377, %v14745_v55   ;;  %v1421_v12 = vpop.f32.mrf.mxu1  ;;  %v16863_v11 = vpop.permute.xlu1 %3986  ;;  %v15446_v55 = vld [vmem:[%s21535_s2 + $0x110] sm:$0xff]  }
 0x28c   : > { %5194 = vperm.xlu0 %15376, %v14744_v23   ;;  %v1368_v6 = vpop.f32.mrf.mxu0  ;;  %v16866_v61 = vadd.f32 %v1421_v12, %v16764_v4 }
 0x28d   : > { %v16872_v13 = vadd.f32 %v1368_v6, %v16767_v30  ;;  %v16874_v0 = vpop.permute.xlu0 %3984  ;;  %v1579_v25 = vpop.f32.mrf.mxu1 }
 0x28e   : > { %v1526_v21 = vpop.f32.mrf.mxu0  ;;  %v16882_v4 = vadd.f32 %v1579_v25, %v16774_v28  ;;  %14658 = vmatmul.mubr.msk.bf16.vlgmr.msra.gmra.mxu0 %vm826_vm8, %v15444_v53  ;;  %v3818_v28 = vsel %vm21566_vm4, %v3803_v24, %v16814_v41 }
 0x28f   : > { %v16886_v16 = vadd.f32 %v1526_v21, %v16778_v10  ;;  %3850 = vmatpush1.bf16.msra.mxu0 %v3820_v14  ;;  %5189 = vperm.xlu1 %15377, %v14743_v62   ;;  %v1581_v30 = vpop.f32.mrf.mxu1  ;;  %v16888_v63 = vpop.permute.xlu1 %3988 }
 0x290   : > { %14660 = vmatmul.mubr.msk.bf16.vlgmr.msra.gmra.mxu1 %vm826_vm8, %v15444_v53  ;;  %5184 = vperm.xlu0 %15376, %v14742_v59   ;;  %v1528_v5 = vpop.f32.mrf.mxu0  ;;  %v16897_v27 = vadd.f32 %v1581_v30, %v16793_v29  ;;  %v15445_v29 = vld [vmem:[%s21535_s2 + $0x108] sm:$0xff]  }
 0x291   : > { %3903 = vmatpush1.bf16.msra.mxu1 %v3822_v32  ;;  %3851 = vmatprep.subr.bf16.mxu0 %v3818_v28  ;;  %v16900_v10 = vadd.f32 %v1528_v5, %v16796_v3  ;;  %v3983_v33 = vpop.permute.xlu0 %3982  ;;  %v1583_v34 = vpop.f32.mrf.mxu1  ;;  %v3995_v3 = vsel %vm21567_vm5, %v16874_v0, %v16863_v11 }
 0x292   : > { %3904 = vmatprep.subr.bf16.mxu1 %v3807_v50  ;;  %v1530_v60 = vpop.f32.mrf.mxu0  ;;  %v16904_v26 = vadd.f32 %v1583_v34, %v16800_v42  ;;  %3705 = vmatprep.mubr.bf16.mxu0 %v21572_v2  ;;  %v3819_v42 = vsel %vm21566_vm4, %v16814_v41, %v3807_v50  ;;  %v3994_v12 = vsel %vm21567_vm5, %v3983_v33, %v16874_v0  ;;  %vm21568_vm4 = vcmask 867328  }
 0x293   : > { %v16911_v37 = vadd.f32 %v1530_v60, %v16807_v22  ;;  %3852 = vmatpush1.bf16.msra.mxu0 %v3817_v8  ;;  %v1585_v40 = vpop.f32.mrf.mxu1  ;;  %v16916_v18 = vpop.permute.xlu1 %3978  ;;  %3758 = vmatprep.mubr.bf16.mxu1 %v21572_v2  ;;  %v3996_v0 = vsel %vm21567_vm5, %v16863_v11, %v16888_v63 }
 0x294   : > { %4023 = vmatprep.subr.bf16.mxu0 %v3995_v3  ;;  %v1532_v1 = vpop.f32.mrf.mxu0  ;;  %v16922_v38 = vadd.f32 %v1585_v40, %v16821_v35 }
 0x295   : > { %3905 = vmatpush1.bf16.msra.mxu1 %v3819_v42  ;;  %v16925_v22 = vadd.f32 %v1532_v1, %v16824_v56  ;;  %v3977_v39 = vpop.permute.xlu0 %3976  ;;  %v1589_v17 = vpop.f32.mrf.mxu1 }
 0x296   : > { %4076 = vmatprep.subr.bf16.mxu1 %v16888_v63  ;;  %v1536_v31 = vpop.f32.mrf.mxu0  ;;  %v16929_v24 = vadd.f32 %v1589_v17, %v16829_v44  ;;  %14659 = vmatmul.mubr.msk.bf16.gmra.mxu0 %vm826_vm8, %v15445_v29  ;;  %v3992_v62 = vsel %vm21567_vm5, %v3977_v39, %v16916_v18  ;;  %v15447_v63 = vld [vmem:[%s21535_s2 + $0x118] sm:$0xff]  }
 0x297   : > { %v16933_v41 = vadd.f32 %v1536_v31, %v16833_v7  ;;  %v1591_v36 = vpop.f32.mrf.mxu1  ;;  %3869 = vmatprep.mubr.bf16.mxu0 %v21572_v2 }
 0x298   : > { %14661 = vmatmul.mubr.msk.bf16.gmra.mxu1 %vm826_vm8, %v15445_v29  ;;  %v1538_v35 = vpop.f32.mrf.mxu0  ;;  %v16938_v56 = vadd.f32 %v1591_v36, %v16842_v54  ;;  %v3981_v48 = vpop.permute.xlu1 %3980 }
 0x299   : > { %v16941_v45 = vadd.f32 %v1538_v35, %v16848_v19  ;;  %v3975_v44 = vpop.permute.xlu0 %3974  ;;  %v1593_v50 = vpop.f32.mrf.mxu1  ;;  %3922 = vmatprep.mubr.bf16.mxu1 %v21572_v2 }
 0x29a   : > { %v1540_v20 = vpop.f32.mrf.mxu0  ;;  %v16945_v7 = vadd.f32 %v1593_v50, %v16855_v52  ;;  %v3991_v30 = vsel %vm21567_vm5, %v3975_v44, %v3977_v39 }
 0x29b   : > { %v16951_v15 = vadd.f32 %v1540_v20, %v16861_v57  ;;  %v1595_v54 = vpop.f32.mrf.mxu1 }
 0x29c   : > { %v1542_v58 = vpop.f32.mrf.mxu0  ;;  %v16954_v19 = vadd.f32 %v1595_v54, %v16866_v61  ;;  %v16956_v23 = vpop.permute.xlu1 %4160 }
 0x29d   : > { %v16959_v43 = vadd.f32 %v1542_v58, %v16872_v13  ;;  %v16961_v53 = vpop.permute.xlu0 %4158  ;;  %v1753_v52 = vpop.f32.mrf.mxu1 }
 0x29e   : > { %v1700_v6 = vpop.f32.mrf.mxu0  ;;  %v16966_v57 = vadd.f32 %v1753_v52, %v16882_v4  ;;  %14668 = vmatmul.mubr.msk.bf16.vlgmr.msra.gmra.mxu0 %vm826_vm8, %v15446_v55  ;;  %v4169_v5 = vsel %vm21568_vm4, %v16961_v53, %v16956_v23 }
 0x29f   : > { %v16970_v61 = vadd.f32 %v1700_v6, %v16886_v16  ;;  %4024 = vmatpush1.bf16.msra.mxu0 %v3994_v12  ;;  %v1755_v13 = vpop.f32.mrf.mxu1  ;;  %3879 = vmatprep.mubr.bf16.mxu0 %v21572_v2 }
 0x2a0   : > { %14670 = vmatmul.mubr.msk.bf16.vlgmr.msra.gmra.mxu1 %vm826_vm8, %v15446_v55  ;;  %4025 = vmatprep.subr.bf16.mxu0 %v3992_v62  ;;  %v1702_v25 = vpop.f32.mrf.mxu0  ;;  %v16980_v59 = vadd.f32 %v1755_v13, %v16897_v27  ;;  %v16982_v14 = vpop.permute.xlu1 %4162 }
 0x2a1   : > { %4077 = vmatpush1.bf16.msra.mxu1 %v3996_v0  ;;  %v16985_v21 = vadd.f32 %v1702_v25, %v16900_v10  ;;  %v4157_v4 = vpop.permute.xlu0 %4156  ;;  %v1757_v16 = vpop.f32.mrf.mxu1  ;;  %3932 = vmatprep.mubr.bf16.mxu1 %v21572_v2  ;;  %v3993_v10 = vsel %vm21567_vm5, %v16916_v18, %v3981_v48  ;;  %vm21569_vm5 = vcmask 736256  }
 0x2a2   : > { %4078 = vmatprep.subr.bf16.mxu1 %v3981_v48  ;;  %v1704_v32 = vpop.f32.mrf.mxu0  ;;  %v16990_v11 = vadd.f32 %v1757_v16, %v16904_v26 }
 0x2a3   : > { %v16996_v28 = vadd.f32 %v1704_v32, %v16911_v37  ;;  %4026 = vmatpush1.bf16.msra.mxu0 %v3991_v30  ;;  %v1759_v27 = vpop.f32.mrf.mxu1 }
 0x2a4   : > { %4197 = vmatprep.subr.bf16.mxu0 %v4169_v5  ;;  %v1706_v33 = vpop.f32.mrf.mxu0  ;;  %v17004_v34 = vadd.f32 %v1759_v27, %v16922_v38  ;;  %v4153_v8 = vpop.permute.xlu1 %4152 }
 0x2a5   : > { %4079 = vmatpush1.bf16.msra.mxu1 %v3993_v10  ;;  %v17007_v60 = vadd.f32 %v1706_v33, %v16925_v22  ;;  %v4151_v26 = vpop.permute.xlu0 %4150  ;;  %v1763_v29 = vpop.f32.mrf.mxu1 }
 0x2a6   : > { %4250 = vmatprep.subr.bf16.mxu1 %v16982_v14  ;;  %v1710_v37 = vpop.f32.mrf.mxu0  ;;  %v17011_v3 = vadd.f32 %v1763_v29, %v16929_v24  ;;  %14669 = vmatmul.mubr.msk.bf16.gmra.mxu0 %vm826_vm8, %v15447_v63  ;;  %v4166_v58 = vsel %vm21568_vm4, %v4151_v26, %v4153_v8 }
 0x2a7   : > { %v17015_v40 = vadd.f32 %v1710_v37, %v16933_v41  ;;  %v1765_v18 = vpop.f32.mrf.mxu1  ;;  %4043 = vmatprep.mubr.bf16.mxu0 %v21572_v2  ;;  %v15448_v41 = vld [vmem:[%s21535_s2 + $0x120] sm:$0xff]  }
 0x2a8   : > { %14671 = vmatmul.mubr.msk.bf16.gmra.mxu1 %vm826_vm8, %v15447_v63  ;;  %v1712_v42 = vpop.f32.mrf.mxu0  ;;  %v17020_v1 = vadd.f32 %v1765_v18, %v16938_v56  ;;  %v4155_v38 = vpop.permute.xlu1 %4154 }
 0x2a9   : > { %v17023_v22 = vadd.f32 %v1712_v42, %v16941_v45  ;;  %v4149_v39 = vpop.permute.xlu0 %4148  ;;  %v1767_v17 = vpop.f32.mrf.mxu1  ;;  %4096 = vmatprep.mubr.bf16.mxu1 %v21572_v2 }
 0x2aa   : > { %v1714_v31 = vpop.f32.mrf.mxu0  ;;  %v17027_v24 = vadd.f32 %v1767_v17, %v16945_v7  ;;  %v4168_v7 = vsel %vm21568_vm4, %v4157_v4, %v16961_v53 }
 0x2ab   : > { %v17033_v36 = vadd.f32 %v1714_v31, %v16951_v15  ;;  %v1769_v35 = vpop.f32.mrf.mxu1 }
 0x2ac   : > { %v1716_v56 = vpop.f32.mrf.mxu0  ;;  %v17036_v48 = vadd.f32 %v1769_v35, %v16954_v19  ;;  %v17038_v45 = vpop.permute.xlu1 %4334 }
 0x2ad   : > { %v17041_v44 = vadd.f32 %v1716_v56, %v16959_v43  ;;  %v17043_v50 = vpop.permute.xlu0 %4332  ;;  %v1927_v20 = vpop.f32.mrf.mxu1  ;;  %v4170_v43 = vsel %vm21568_vm4, %v16956_v23, %v16982_v14  ;;  %v15449_v23 = vld [vmem:[%s21535_s2 + $0x128] sm:$0xff]   ;;  %v4167_v14 = vsel %vm21568_vm4, %v4153_v8, %v4155_v38 }
 0x2ae   : > { %v1874_v55 = vpop.f32.mrf.mxu0  ;;  %v17048_v15 = vadd.f32 %v1927_v20, %v16966_v57  ;;  %14678 = vmatmul.mubr.msk.bf16.vlgmr.msra.gmra.mxu0 %vm826_vm8, %v15448_v41 }
 0x2af   : > { %v17052_v54 = vadd.f32 %v1874_v55, %v16970_v61  ;;  %4198 = vmatpush1.bf16.msra.mxu0 %v4168_v7  ;;  %v1929_v19 = vpop.f32.mrf.mxu1  ;;  %4053 = vmatprep.mubr.bf16.mxu0 %v21572_v2  ;;  %v4165_v61 = vsel %vm21568_vm4, %v4149_v39, %v4151_v26  ;;  %vm21570_vm4 = vcmask 728064  }
 0x2b0   : > { %14680 = vmatmul.mubr.msk.bf16.vlgmr.msra.gmra.mxu1 %vm826_vm8, %v15448_v41  ;;  %4199 = vmatprep.subr.bf16.mxu0 %v4166_v58  ;;  %v1876_v53 = vpop.f32.mrf.mxu0  ;;  %v17061_v52 = vadd.f32 %v1929_v19, %v16980_v59  ;;  %v4343_v59 = vsel %vm21569_vm5, %v17043_v50, %v17038_v45 }
 0x2b1   : > { %4251 = vmatpush1.bf16.msra.mxu1 %v4170_v43  ;;  %v17064_v12 = vadd.f32 %v1876_v53, %v16985_v21  ;;  %v4337_v6 = vpop.permute.xlu1 %4336  ;;  %v4331_v57 = vpop.permute.xlu0 %4330  ;;  %4106 = vmatprep.mubr.bf16.mxu1 %v21572_v2 }
 0x2b2   : > { %4252 = vmatprep.subr.bf16.mxu1 %v4155_v38  ;;  %v1878_v62 = vpop.f32.mrf.mxu0  ;;  %v1931_v13 = vpop.f32.mrf.mxu1  ;;  %v4342_v31 = vsel %vm21569_vm5, %v4331_v57, %v17043_v50 }
 0x2b3   : > { %v17072_v0 = vadd.f32 %v1878_v62, %v16996_v28  ;;  %v17075_v25 = vadd.f32 %v1931_v13, %v16990_v11  ;;  %4200 = vmatpush1.bf16.msra.mxu0 %v4165_v61 }
 0x2b4   : > { %4371 = vmatprep.subr.bf16.mxu0 %v4343_v59  ;;  %v1880_v21 = vpop.f32.mrf.mxu0  ;;  %v1933_v4 = vpop.f32.mrf.mxu1 }
 0x2b5   : > { %4253 = vmatpush1.bf16.msra.mxu1 %v4167_v14  ;;  %v17082_v16 = vadd.f32 %v1880_v21, %v17007_v60  ;;  %v17085_v30 = vadd.f32 %v1933_v4, %v17004_v34  ;;  %v4327_v32 = vpop.permute.xlu1 %4326  ;;  %v4325_v11 = vpop.permute.xlu0 %4324 }
 0x2b6   : > { %4424 = vmatprep.subr.bf16.mxu1 %v4337_v6  ;;  %v1884_v63 = vpop.f32.mrf.mxu0  ;;  %v1937_v28 = vpop.f32.mrf.mxu1  ;;  %14679 = vmatmul.mubr.msk.bf16.gmra.mxu0 %vm826_vm8, %v15449_v23  ;;  %v4340_v56 = vsel %vm21569_vm5, %v4325_v11, %v4327_v32 }
 0x2b7   : > { %v17089_v5 = vadd.f32 %v1884_v63, %v17015_v40  ;;  %v17092_v27 = vadd.f32 %v1937_v28, %v17011_v3  ;;  %4217 = vmatprep.mubr.bf16.mxu0 %v21572_v2  ;;  %v15450_v3 = vld [vmem:[%s21535_s2 + $0x130] sm:$0xff]   ;;  %v15452_v28 = vld [vmem:[%s21535_s2 + $0x140] sm:$0xff]  }
 0x2b8   : > { %14681 = vmatmul.mubr.msk.bf16.gmra.mxu1 %vm826_vm8, %v15449_v23  ;;  %v1886_v10 = vpop.f32.mrf.mxu0  ;;  %v1939_v33 = vpop.f32.mrf.mxu1 }
 0x2b9   : > { %v17097_v34 = vadd.f32 %v1886_v10, %v17023_v22  ;;  %v17100_v8 = vadd.f32 %v1939_v33, %v17020_v1  ;;  %v4329_v60 = vpop.permute.xlu1 %4328  ;;  %v4323_v26 = vpop.permute.xlu0 %4322  ;;  %4270 = vmatprep.mubr.bf16.mxu1 %v21572_v2 }
 0x2ba   : > { %v1888_v29 = vpop.f32.mrf.mxu0  ;;  %v1941_v37 = vpop.f32.mrf.mxu1 }
 0x2bb   : > { %v17107_v40 = vadd.f32 %v1888_v29, %v17033_v36  ;;  %v17110_v18 = vadd.f32 %v1941_v37, %v17027_v24 }
 0x2bc   : > { %v1890_v42 = vpop.f32.mrf.mxu0  ;;  %v1943_v38 = vpop.f32.mrf.mxu1 }
 0x2bd   : > { %v17113_v1 = vadd.f32 %v1890_v42, %v17041_v44  ;;  %v17116_v22 = vadd.f32 %v1943_v38, %v17036_v48  ;;  %v17118_v39 = vpop.permute.xlu1 %4508  ;;  %v17120_v17 = vpop.permute.xlu0 %4506  ;;  %v4344_v48 = vsel %vm21569_vm5, %v17038_v45, %v4337_v6  ;;  %v15451_v45 = vld [vmem:[%s21535_s2 + $0x138] sm:$0xff]  }
 0x2be   : > { %v2048_v41 = vpop.f32.mrf.mxu0  ;;  %v2101_v36 = vpop.f32.mrf.mxu1  ;;  %14688 = vmatmul.mubr.msk.bf16.vlgmr.msra.gmra.mxu0 %vm826_vm8, %v15450_v3  ;;  %v4517_v53 = vsel %vm21570_vm4, %v17120_v17, %v17118_v39 }
 0x2bf   : > { %v17126_v24 = vadd.f32 %v2048_v41, %v17052_v54  ;;  %v17129_v35 = vadd.f32 %v2101_v36, %v17048_v15  ;;  %4372 = vmatpush1.bf16.msra.mxu0 %v4342_v31  ;;  %4227 = vmatprep.mubr.bf16.mxu0 %v21572_v2  ;;  %v4339_v15 = vsel %vm21569_vm5, %v4323_v26, %v4325_v11 }
 0x2c0   : > { %14690 = vmatmul.mubr.msk.bf16.vlgmr.msra.gmra.mxu1 %vm826_vm8, %v15450_v3  ;;  %4373 = vmatprep.subr.bf16.mxu0 %v4340_v56  ;;  %v2050_v44 = vpop.f32.mrf.mxu0  ;;  %v2103_v50 = vpop.f32.mrf.mxu1 }
 0x2c1   : > { %4425 = vmatpush1.bf16.msra.mxu1 %v4344_v48  ;;  %v17137_v20 = vadd.f32 %v2050_v44, %v17064_v12  ;;  %v17140_v7 = vadd.f32 %v2103_v50, %v17061_v52  ;;  %v4511_v55 = vpop.permute.xlu1 %4510  ;;  %4280 = vmatprep.mubr.bf16.mxu1 %v21572_v2  ;;  %v4341_v12 = vsel %vm21569_vm5, %v4327_v32, %v4329_v60  ;;  %vm21571_vm5 = vcmask 719872  }
 0x2c2   : > { %4426 = vmatprep.subr.bf16.mxu1 %v4329_v60  ;;  %v4505_v54 = vpop.permute.xlu0 %4504  ;;  %v2052_v58 = vpop.f32.mrf.mxu0 }
 0x2c3   : > { %v17148_v19 = vadd.f32 %v2052_v58, %v17072_v0  ;;  %v2105_v43 = vpop.f32.mrf.mxu1  ;;  %4374 = vmatpush1.bf16.msra.mxu0 %v4339_v15  ;;  %v4516_v26 = vsel %vm21570_vm4, %v4505_v54, %v17120_v17 }
 0x2c4   : > { %v17154_v52 = vadd.f32 %v2105_v43, %v17075_v25  ;;  %4545 = vmatprep.subr.bf16.mxu0 %v4517_v53  ;;  %v2054_v6 = vpop.f32.mrf.mxu0 }
 0x2c5   : > { %4427 = vmatpush1.bf16.msra.mxu1 %v4341_v12  ;;  %v17158_v57 = vadd.f32 %v2054_v6, %v17082_v16  ;;  %v2107_v61 = vpop.f32.mrf.mxu1  ;;  %v4501_v62 = vpop.permute.xlu1 %4500 }
 0x2c6   : > { %v17161_v13 = vadd.f32 %v2107_v61, %v17085_v30  ;;  %4598 = vmatprep.subr.bf16.mxu1 %v4511_v55  ;;  %v4499_v23 = vpop.permute.xlu0 %4498  ;;  %v2058_v0 = vpop.f32.mrf.mxu0  ;;  %14689 = vmatmul.mubr.msk.bf16.gmra.mxu0 %vm826_vm8, %v15451_v45 }
 0x2c7   : > { %v17165_v25 = vadd.f32 %v2058_v0, %v17089_v5  ;;  %v2111_v59 = vpop.f32.mrf.mxu1  ;;  %4391 = vmatprep.mubr.bf16.mxu0 %v21572_v2  ;;  %v4514_v42 = vsel %vm21570_vm4, %v4499_v23, %v4501_v62 }
 0x2c8   : > { %v17169_v14 = vadd.f32 %v2111_v59, %v17092_v27  ;;  %14691 = vmatmul.mubr.msk.bf16.gmra.mxu1 %vm826_vm8, %v15451_v45  ;;  %v2060_v21 = vpop.f32.mrf.mxu0 }
 0x2c9   : > { %v17173_v4 = vadd.f32 %v2060_v21, %v17097_v34  ;;  %v2113_v16 = vpop.f32.mrf.mxu1  ;;  %v4503_v30 = vpop.permute.xlu1 %4502  ;;  %4444 = vmatprep.mubr.bf16.mxu1 %v21572_v2 }
 0x2ca   : > { %v17177_v32 = vadd.f32 %v2113_v16, %v17100_v8  ;;  %v4497_v11 = vpop.permute.xlu0 %4496  ;;  %v2062_v63 = vpop.f32.mrf.mxu0 }
 0x2cb   : > { %v17183_v5 = vadd.f32 %v2062_v63, %v17107_v40  ;;  %v2115_v27 = vpop.f32.mrf.mxu1  ;;  %v4513_v36 = vsel %vm21570_vm4, %v4497_v11, %v4499_v23 }
 0x2cc   : > { %v17186_v10 = vadd.f32 %v2115_v27, %v17110_v18  ;;  %v2064_v33 = vpop.f32.mrf.mxu0 }
 0x2cd   : > { %v17189_v34 = vadd.f32 %v2064_v33, %v17113_v1  ;;  %v2117_v60 = vpop.f32.mrf.mxu1  ;;  %v17191_v8 = vpop.permute.xlu1 %4682  ;;  %v4518_v1 = vsel %vm21570_vm4, %v17118_v39, %v4511_v55  ;;  %v15453_v39 = vld [vmem:[%s21535_s2 + $0x148] sm:$0xff]  }
 0x2ce   : > { %v17196_v29 = vadd.f32 %v2117_v60, %v17116_v22  ;;  %v17198_v37 = vpop.permute.xlu0 %4680  ;;  %v2222_v3 = vpop.f32.mrf.mxu0  ;;  %14698 = vmatmul.mubr.msk.bf16.vlgmr.msra.gmra.mxu0 %vm826_vm8, %v15452_v28 }
 0x2cf   : > { %v17202_v40 = vadd.f32 %v2222_v3, %v17126_v24  ;;  %v2275_v18 = vpop.f32.mrf.mxu1  ;;  %4546 = vmatpush1.bf16.msra.mxu0 %v4516_v26  ;;  %4401 = vmatprep.mubr.bf16.mxu0 %v21572_v2  ;;  %v4691_v50 = vsel %vm21571_vm5, %v17198_v37, %v17191_v8 }
 0x2d0   : > { %v17207_v38 = vadd.f32 %v2275_v18, %v17129_v35  ;;  %14700 = vmatmul.mubr.msk.bf16.vlgmr.msra.gmra.mxu1 %vm826_vm8, %v15452_v28  ;;  %4547 = vmatprep.subr.bf16.mxu0 %v4514_v42  ;;  %v2224_v22 = vpop.f32.mrf.mxu0 }
 0x2d1   : > { %4599 = vmatpush1.bf16.msra.mxu1 %v4518_v1  ;;  %v17213_v17 = vadd.f32 %v2224_v22, %v17137_v20  ;;  %v2277_v31 = vpop.f32.mrf.mxu1  ;;  %v4685_v41 = vpop.permute.xlu1 %4684  ;;  %4454 = vmatprep.mubr.bf16.mxu1 %v21572_v2 }
 0x2d2   : > { %v17218_v24 = vadd.f32 %v2277_v31, %v17140_v7  ;;  %4600 = vmatprep.subr.bf16.mxu1 %v4503_v30  ;;  %v4679_v35 = vpop.permute.xlu0 %4678  ;;  %v2226_v56 = vpop.f32.mrf.mxu0  ;;  %v4515_v7 = vsel %vm21570_vm4, %v4501_v62, %v4503_v30  ;;  %v4692_v60 = vsel %vm21571_vm5, %v17191_v8, %v4685_v41  ;;  %vm4860_vm4 = vcmask 711680   ;;  %v15455_v8 = vld [vmem:[%s21535_s2 + $0x158] sm:$0xff]  }
 0x2d3   : > { %v17224_v48 = vadd.f32 %v2226_v56, %v17148_v19  ;;  %v2279_v44 = vpop.f32.mrf.mxu1  ;;  %4548 = vmatpush1.bf16.msra.mxu0 %v4513_v36  ;;  %v4690_v11 = vsel %vm21571_vm5, %v4679_v35, %v17198_v37 }
 0x2d4   : > { %v17230_v20 = vadd.f32 %v2279_v44, %v17154_v52  ;;  %4719 = vmatprep.subr.bf16.mxu0 %v4691_v50  ;;  %v2228_v55 = vpop.f32.mrf.mxu0 }
 0x2d5   : > { %4601 = vmatpush1.bf16.msra.mxu1 %v4515_v7  ;;  %v17234_v15 = vadd.f32 %v2228_v55, %v17158_v57  ;;  %v2281_v54 = vpop.f32.mrf.mxu1  ;;  %v4675_v58 = vpop.permute.xlu1 %4674 }
 0x2d6   : > { %v17237_v45 = vadd.f32 %v2281_v54, %v17161_v13  ;;  %4772 = vmatprep.subr.bf16.mxu1 %v4685_v41  ;;  %v4673_v19 = vpop.permute.xlu0 %4672  ;;  %v2232_v43 = vpop.f32.mrf.mxu0  ;;  %14699 = vmatmul.mubr.msk.bf16.gmra.mxu0 %vm826_vm8, %v15453_v39 }
 0x2d7   : > { %v17241_v53 = vadd.f32 %v2232_v43, %v17165_v25  ;;  %v2285_v52 = vpop.f32.mrf.mxu1  ;;  %4565 = vmatprep.mubr.bf16.mxu0 %v21572_v2  ;;  %v15454_v25 = vld [vmem:[%s21535_s2 + $0x150] sm:$0xff]   ;;  %v4688_v33 = vsel %vm21571_vm5, %v4673_v19, %v4675_v58 }
 0x2d8   : > { %v17245_v12 = vadd.f32 %v2285_v52, %v17169_v14  ;;  %14701 = vmatmul.mubr.msk.bf16.gmra.mxu1 %vm826_vm8, %v15453_v39  ;;  %v2234_v6 = vpop.f32.mrf.mxu0 }
 0x2d9   : > { %v17249_v57 = vadd.f32 %v2234_v6, %v17173_v4  ;;  %v2287_v61 = vpop.f32.mrf.mxu1  ;;  %v4677_v62 = vpop.permute.xlu1 %4676  ;;  %4618 = vmatprep.mubr.bf16.mxu1 %v21572_v2 }
 0x2da   : > { %v17253_v13 = vadd.f32 %v2287_v61, %v17177_v32  ;;  %v4671_v23 = vpop.permute.xlu0 %4670  ;;  %v2236_v0 = vpop.f32.mrf.mxu0  ;;  %v4689_v41 = vsel %vm21571_vm5, %v4675_v58, %v4677_v62 }
 0x2db   : > { %v17259_v59 = vadd.f32 %v2236_v0, %v17183_v5  ;;  %v2289_v14 = vpop.f32.mrf.mxu1 }
 0x2dc   : > { %v17262_v21 = vadd.f32 %v2289_v14, %v17186_v10  ;;  %v2238_v4 = vpop.f32.mrf.mxu0 }
 0x2dd   : > { %v17265_v16 = vadd.f32 %v2238_v4, %v17189_v34  ;;  %v2291_v30 = vpop.f32.mrf.mxu1  ;;  %v17267_v32 = vpop.permute.xlu1 %4856 }
 0x2de   : > { %v17272_v63 = vadd.f32 %v2291_v30, %v17196_v29  ;;  %v17274_v28 = vpop.permute.xlu0 %4854  ;;  %v2396_v5 = vpop.f32.mrf.mxu0  ;;  %14708 = vmatmul.mubr.msk.bf16.vlgmr.msra.gmra.mxu0 %vm826_vm8, %v15454_v25 }
 0x2df   : > { %v17278_v27 = vadd.f32 %v2396_v5, %v17202_v40  ;;  %v2449_v10 = vpop.f32.mrf.mxu1  ;;  %4720 = vmatpush1.bf16.msra.mxu0 %v4690_v11  ;;  %4575 = vmatprep.mubr.bf16.mxu0 %v21572_v2  ;;  %v4687_v40 = vsel %vm21571_vm5, %v4671_v23, %v4673_v19  ;;  %vm5034_vm5 = vcmask 703488  }
 0x2e0   : > { %v17283_v34 = vadd.f32 %v2449_v10, %v17207_v38  ;;  %14710 = vmatmul.mubr.msk.bf16.vlgmr.msra.gmra.mxu1 %vm826_vm8, %v15454_v25  ;;  %4721 = vmatprep.subr.bf16.mxu0 %v4688_v33  ;;  %v2398_v26 = vpop.f32.mrf.mxu0  ;;  %v15457_v33 = vld [vmem:[%s21535_s2 + $0x168] sm:$0xff]  }
 0x2e1   : > { %4773 = vmatpush1.bf16.msra.mxu1 %v4692_v60  ;;  %v17289_v29 = vadd.f32 %v2398_v26, %v17213_v17  ;;  %v2451_v37 = vpop.f32.mrf.mxu1  ;;  %v4859_v3 = vpop.permute.xlu1 %4858  ;;  %4628 = vmatprep.mubr.bf16.mxu1 %v21572_v2  ;;  %v4865_v17 = vsel %vm4860_vm4, %v17274_v28, %v17267_v32 }
 0x2e2   : > { %v17294_v18 = vadd.f32 %v2451_v37, %v17218_v24  ;;  %4774 = vmatprep.subr.bf16.mxu1 %v4677_v62  ;;  %v4853_v42 = vpop.permute.xlu0 %4852  ;;  %v2400_v38 = vpop.f32.mrf.mxu0  ;;  %v4866_v30 = vsel %vm4860_vm4, %v17267_v32, %v4859_v3 }
 0x2e3   : > { %v17300_v1 = vadd.f32 %v2400_v38, %v17224_v48  ;;  %v2453_v22 = vpop.f32.mrf.mxu1  ;;  %4722 = vmatpush1.bf16.msra.mxu0 %v4687_v40 }
 0x2e4   : > { %v17306_v31 = vadd.f32 %v2453_v22, %v17230_v20  ;;  %4893 = vmatprep.subr.bf16.mxu0 %v4865_v17  ;;  %v2402_v36 = vpop.f32.mrf.mxu0 }
 0x2e5   : > { %4775 = vmatpush1.bf16.msra.mxu1 %v4689_v41  ;;  %v17310_v24 = vadd.f32 %v2402_v36, %v17234_v15  ;;  %v2455_v35 = vpop.f32.mrf.mxu1  ;;  %v4849_v56 = vpop.permute.xlu1 %4848 }
 0x2e6   : > { %v17313_v39 = vadd.f32 %v2455_v35, %v17237_v45  ;;  %4946 = vmatprep.subr.bf16.mxu1 %v4859_v3  ;;  %v4847_v48 = vpop.permute.xlu0 %4846  ;;  %v2406_v44 = vpop.f32.mrf.mxu0  ;;  %14709 = vmatmul.mubr.msk.bf16.gmra.mxu0 %vm826_vm8, %v15455_v8 }
 0x2e7   : > { %v17317_v50 = vadd.f32 %v2406_v44, %v17241_v53  ;;  %v2459_v20 = vpop.f32.mrf.mxu1  ;;  %4739 = vmatprep.mubr.bf16.mxu0 %v21572_v2  ;;  %v15456_v53 = vld [vmem:[%s21535_s2 + $0x160] sm:$0xff]   ;;  %v4862_v4 = vsel %vm4860_vm4, %v4847_v48, %v4849_v56 }
 0x2e8   : > { %v17321_v7 = vadd.f32 %v2459_v20, %v17245_v12  ;;  %14711 = vmatmul.mubr.msk.bf16.gmra.mxu1 %vm826_vm8, %v15455_v8  ;;  %v2408_v55 = vpop.f32.mrf.mxu0 }
 0x2e9   : > { %v17325_v15 = vadd.f32 %v2408_v55, %v17249_v57  ;;  %v2461_v54 = vpop.f32.mrf.mxu1  ;;  %v4851_v58 = vpop.permute.xlu1 %4850  ;;  %4792 = vmatprep.mubr.bf16.mxu1 %v21572_v2 }
 0x2ea   : > { %v17329_v45 = vadd.f32 %v2461_v54, %v17253_v13  ;;  %v4845_v19 = vpop.permute.xlu0 %4844  ;;  %v2410_v43 = vpop.f32.mrf.mxu0  ;;  %v4864_v13 = vsel %vm4860_vm4, %v4853_v42, %v17274_v28  ;;  %v4863_v37 = vsel %vm4860_vm4, %v4849_v56, %v4851_v58 }
 0x2eb   : > { %v17335_v52 = vadd.f32 %v2410_v43, %v17259_v59  ;;  %v2463_v12 = vpop.f32.mrf.mxu1  ;;  %v4861_v5 = vsel %vm4860_vm4, %v4845_v19, %v4847_v48 }
 0x2ec   : > { %v17338_v6 = vadd.f32 %v2463_v12, %v17262_v21  ;;  %v2412_v57 = vpop.f32.mrf.mxu0 }
 0x2ed   : > { %v17341_v61 = vadd.f32 %v2412_v57, %v17265_v16  ;;  %v2465_v62 = vpop.f32.mrf.mxu1  ;;  %v17349_v59 = vpop.permute.xlu1 %5030 }
 0x2ee   : > { %v17346_v23 = vadd.f32 %v2465_v62, %v17272_v63  ;;  %v5029_v0 = vpop.permute.xlu0 %5028  ;;  %v2630_v25 = vpop.f32.mrf.mxu0  ;;  %14718 = vmatmul.mubr.msk.bf16.vlgmr.msra.gmra.mxu0 %vm826_vm8, %v15456_v53 }
 0x2ef   : > { %v2702_v14 = vadd.f32 %v2630_v25, %v17278_v27  ;;  %v2683_v21 = vpop.f32.mrf.mxu1  ;;  %4894 = vmatpush1.bf16.msra.mxu0 %v4864_v13  ;;  %4749 = vmatprep.mubr.bf16.mxu0 %v21572_v2  ;;  %v5039_v26 = vsel %vm5034_vm5, %v5029_v0, %v17349_v59  ;;  %v15459_v25 = vld [vmem:[%s21535_s2 + $0x178] sm:$0xff]  }
 0x2f0   : > { %v17355_v16 = vadd.f32 %v2683_v21, %v17283_v34  ;;  %14720 = vmatmul.mubr.msk.bf16.vlgmr.msra.gmra.mxu1 %vm826_vm8, %v15456_v53  ;;  %4895 = vmatprep.subr.bf16.mxu0 %v4862_v4  ;;  %v2632_v11 = vpop.f32.mrf.mxu0 }
 0x2f1   : > { %4947 = vmatpush1.bf16.msra.mxu1 %v4866_v30  ;;  %v2703_v63 = vadd.f32 %v2632_v11, %v17289_v29  ;;  %v2685_v28 = vpop.f32.mrf.mxu1  ;;  %4802 = vmatprep.mubr.bf16.mxu1 %v21572_v2  ;;  %v5033_v40 = vpop.permute.xlu1 %5032 }
 0x2f2   : > { %v17364_v27 = vadd.f32 %v2685_v28, %v17294_v18  ;;  %4948 = vmatprep.subr.bf16.mxu1 %v4851_v58  ;;  %v2634_v10 = vpop.f32.mrf.mxu0  ;;  %v5027_v32 = vpop.permute.xlu0 %5026  ;;  %v5040_v12 = vsel %vm5034_vm5, %v17349_v59, %v5033_v40 }
 0x2f3   : > { %v2706_v34 = vadd.f32 %v2634_v10, %v17300_v1  ;;  %v2687_v60 = vpop.f32.mrf.mxu1  ;;  %4896 = vmatpush1.bf16.msra.mxu0 %v4861_v5  ;;  %v5038_v54 = vsel %vm5034_vm5, %v5027_v32, %v5029_v0 }
 0x2f4   : > { %v2708_v29 = vadd.f32 %v2687_v60, %v17306_v31  ;;  %5067 = vmatprep.subr.bf16.mxu0 %v5039_v26  ;;  %v2636_v3 = vpop.f32.mrf.mxu0 }
 0x2f5   : > { %4949 = vmatpush1.bf16.msra.mxu1 %v4863_v37  ;;  %v17375_v18 = vadd.f32 %v2636_v3, %v17310_v24  ;;  %v2689_v42 = vpop.f32.mrf.mxu1  ;;  %v5023_v48 = vpop.permute.xlu1 %5022 }
 0x2f6   : > { %v17378_v38 = vadd.f32 %v2689_v42, %v17313_v39  ;;  %5120 = vmatprep.subr.bf16.mxu1 %v5033_v40  ;;  %v2640_v8 = vpop.f32.mrf.mxu0  ;;  %14719 = vmatmul.mubr.msk.bf16.gmra.mxu0 %vm826_vm8, %v15457_v33  ;;  %v5021_v41 = vpop.permute.xlu0 %5020  ;;  %v15458_v39 = vld [vmem:[%s21535_s2 + $0x170] sm:$0xff]  }
 0x2f7   : > { %v2710_v1 = vadd.f32 %v2640_v8, %v17317_v50  ;;  %v2693_v22 = vpop.f32.mrf.mxu1  ;;  %4913 = vmatprep.mubr.bf16.mxu0 %v21572_v2  ;;  %v5036_v53 = vsel %vm5034_vm5, %v5021_v41, %v5023_v48 }
 0x2f8   : > { %v2712_v17 = vadd.f32 %v2693_v22, %v17321_v7  ;;  %14721 = vmatmul.mubr.msk.bf16.gmra.mxu1 %vm826_vm8, %v15457_v33  ;;  %v2642_v31 = vpop.f32.mrf.mxu0 }
 0x2f9   : > { %v2711_v36 = vadd.f32 %v2642_v31, %v17325_v15  ;;  %v2695_v24 = vpop.f32.mrf.mxu1  ;;  %4966 = vmatprep.mubr.bf16.mxu1 %v21572_v2  ;;  %v5025_v57 = vpop.permute.xlu1 %5024 }
 0x2fa   : > { %v2713_v35 = vadd.f32 %v2695_v24, %v17329_v45  ;;  %v2644_v56 = vpop.f32.mrf.mxu0  ;;  %v5019_v19 = vpop.permute.xlu0 %5018  ;;  %v5037_v4 = vsel %vm5034_vm5, %v5023_v48, %v5025_v57  ;;  %v15461_v24 = vld [vmem:[%s21535_s2 + $0x188] sm:$0xff]  }
 0x2fb   : > { %v2714_v44 = vadd.f32 %v2644_v56, %v17335_v52  ;;  %v2697_v50 = vpop.f32.mrf.mxu1  ;;  %v5035_v13 = vsel %vm5034_vm5, %v5019_v19, %v5021_v41 }
 0x2fc   : > { %v2716_v20 = vadd.f32 %v2697_v50, %v17338_v6  ;;  %v2646_v7 = vpop.f32.mrf.mxu0 }
 0x2fd   : > { %v17394_v55 = vadd.f32 %v2646_v7, %v17341_v61  ;;  %v2699_v15 = vpop.f32.mrf.mxu1 }
 0x2fe   : > { %v17398_v58 = vadd.f32 %v2699_v15, %v17346_v23  ;;  %v2810_v45 = vpop.f32.mrf.mxu0  ;;  %14728 = vmatmul.mubr.msk.bf16.vlgmr.msra.gmra.mxu0 %vm826_vm8, %v15458_v39 }
 0x2ff   : > { %v2882_v43 = vadd.f32 %v2810_v45, %v2702_v14  ;;  %5068 = vmatpush1.bf16.msra.mxu0 %v5038_v54  ;;  %4923 = vmatprep.mubr.bf16.mxu0 %v21572_v2 }
 0x300   : > { %v2863_v52 = vpop.f32.mrf.mxu1  ;;  %14730 = vmatmul.mubr.msk.bf16.vlgmr.msra.gmra.mxu1 %vm826_vm8, %v15458_v39  ;;  %5069 = vmatprep.subr.bf16.mxu0 %v5036_v53  ;;  %v2812_v6 = vpop.f32.mrf.mxu0 }
 0x301   : > { %v2884_v61 = vadd.f32 %v2863_v52, %v17355_v16  ;;  %5121 = vmatpush1.bf16.msra.mxu1 %v5040_v12  ;;  %v2883_v62 = vadd.f32 %v2812_v6, %v2703_v63  ;;  %4976 = vmatprep.mubr.bf16.mxu1 %v21572_v2 }
 0x302   : > { %5122 = vmatprep.subr.bf16.mxu1 %v5025_v57  ;;  %v2865_v23 = vpop.f32.mrf.mxu1  ;;  %v2814_v0 = vpop.f32.mrf.mxu0 }
 0x303   : > { %v2885_v14 = vadd.f32 %v2865_v23, %v17364_v27  ;;  %v2886_v59 = vadd.f32 %v2814_v0, %v2706_v34  ;;  %5070 = vmatpush1.bf16.msra.mxu0 %v5035_v13  ;;  %v15460_v34 = vld [vmem:[%s21535_s2 + $0x180] sm:$0xff]  }
 0x304   : > { %v2867_v21 = vpop.f32.mrf.mxu1  ;;  %v17414_v16 = vpop.f32.mrf.mxu0 }
 0x305   : > { %v2888_v30 = vadd.f32 %v2867_v21, %v2708_v29  ;;  %5123 = vmatpush1.bf16.msra.mxu1 %v5037_v4 }
 0x306   : > { %v17416_v11 = vpop.f32.mrf.mxu1  ;;  %14729 = vmatmul.mubr.msk.bf16.gmra.mxu0 %vm826_vm8, %v15459_v25  ;;  %v2820_v63 = vpop.f32.mrf.mxu0 }
 0x307   : > { %5087 = vmatprep.mubr.bf16.mxu0 %v21572_v2  ;;  %v2890_v28 = vadd.f32 %v2820_v63, %v2710_v1 }
 0x308   : > { %v2873_v5 = vpop.f32.mrf.mxu1  ;;  %14731 = vmatmul.mubr.msk.bf16.gmra.mxu1 %vm826_vm8, %v15459_v25  ;;  %v2822_v10 = vpop.f32.mrf.mxu0 }
 0x309   : > { %v2892_v27 = vadd.f32 %v2873_v5, %v2712_v17  ;;  %5140 = vmatprep.mubr.bf16.mxu1 %v21572_v2  ;;  %v2891_v33 = vadd.f32 %v2822_v10, %v2711_v36 }
 0x30a   : > { %v2875_v32 = vpop.f32.mrf.mxu1  ;;  %v2824_v26 = vpop.f32.mrf.mxu0 }
 0x30b   : > { %v2893_v60 = vadd.f32 %v2875_v32, %v2713_v35  ;;  %v2894_v29 = vadd.f32 %v2824_v26, %v2714_v44 }
 0x30c   : > { %v2877_v37 = vpop.f32.mrf.mxu1  ;;  %v17425_v40 = vpop.f32.mrf.mxu0 }
 0x30d   : > { %v2896_v3 = vadd.f32 %v2877_v37, %v2716_v20 }
 0x30e   : > { %v17427_v42 = vpop.f32.mrf.mxu1  ;;  %14738 = vmatmul.mubr.msk.bf16.vlgmr.msra.gmra.mxu0 %vm826_vm8, %v15460_v34  ;;  %v3001_v8 = vpop.f32.mrf.mxu0 }
 0x30f   : > { %5097 = vmatprep.mubr.bf16.mxu0 %v21572_v2  ;;  %v3073_v1 = vadd.f32 %v3001_v8, %v2882_v43 }
 0x310   : > { %v3054_v22 = vpop.f32.mrf.mxu1  ;;  %14740 = vmatmul.mubr.msk.bf16.vlgmr.msra.gmra.mxu1 %vm826_vm8, %v15460_v34  ;;  %v3003_v31 = vpop.f32.mrf.mxu0 }
 0x311   : > { %v3075_v17 = vadd.f32 %v3054_v22, %v2884_v61  ;;  %5150 = vmatprep.mubr.bf16.mxu1 %v21572_v2  ;;  %v3074_v41 = vadd.f32 %v3003_v31, %v2883_v62 }
 0x312   : > { %v3056_v36 = vpop.f32.mrf.mxu1  ;;  %v3005_v56 = vpop.f32.mrf.mxu0 }
 0x313   : > { %v3076_v35 = vadd.f32 %v3056_v36, %v2885_v14  ;;  %v3077_v39 = vadd.f32 %v3005_v56, %v2886_v59 }
 0x314   : > { %v3058_v48 = vpop.f32.mrf.mxu1  ;;  %v17436_v50 = vpop.f32.mrf.mxu0 }
 0x315   : > { %v3079_v44 = vadd.f32 %v3058_v48, %v2888_v30 }
 0x316   : > { %v17438_v20 = vpop.f32.mrf.mxu1  ;;  %14739 = vmatmul.mubr.msk.bf16.gmra.mxu0 %vm826_vm8, %v15461_v24  ;;  %v3011_v7 = vpop.f32.mrf.mxu0 }
 0x317   : > { %5433 = vmatprep.mubr.bf16.mxu0 %v21572_v2  ;;  %v3081_v15 = vadd.f32 %v3011_v7, %v2890_v28 }
 0x318   : > { %v3064_v54 = vpop.f32.mrf.mxu1  ;;  %14741 = vmatmul.mubr.msk.bf16.gmra.mxu1 %vm826_vm8, %v15461_v24  ;;  %v3013_v19 = vpop.f32.mrf.mxu0 }
 0x319   : > { %v3083_v45 = vadd.f32 %v3064_v54, %v2892_v27  ;;  %5486 = vmatprep.mubr.bf16.mxu1 %v21572_v2  ;;  %v3082_v43 = vadd.f32 %v3013_v19, %v2891_v33 }
 0x31a   : > { %v3066_v53 = vpop.f32.mrf.mxu1  ;;  %v3015_v12 = vpop.f32.mrf.mxu0 }
 0x31b   : > { %v3084_v52 = vadd.f32 %v3066_v53, %v2893_v60  ;;  %v3085_v6 = vadd.f32 %v3015_v12, %v2894_v29 }
 0x31c   : > { %v3068_v57 = vpop.f32.mrf.mxu1  ;;  %v17444_v62 = vpop.f32.mrf.mxu0 }
 0x31d   : > { %v3087_v61 = vadd.f32 %v3068_v57, %v2896_v3 }
 0x31e   : > { %v17446_v13 = vpop.f32.mrf.mxu1  ;;  %v3175_v23 = vpop.f32.mrf.mxu0 }
 0x31f   : > { %v3247_v0 = vadd.f32 %v3175_v23, %v3073_v1 }
 0x320   : > { %v3228_v25 = vpop.f32.mrf.mxu1  ;;  %v3177_v59 = vpop.f32.mrf.mxu0 }
 0x321   : > { %v3249_v14 = vadd.f32 %v3228_v25, %v3075_v17  ;;  %v3248_v21 = vadd.f32 %v3177_v59, %v3074_v41 }
 0x322   : > { %v3230_v4 = vpop.f32.mrf.mxu1  ;;  %v3179_v63 = vpop.f32.mrf.mxu0 }
 0x323   : > { %v3250_v30 = vadd.f32 %v3230_v4, %v3076_v35  ;;  %v3251_v28 = vadd.f32 %v3179_v63, %v3077_v39 }
 0x324   : > { %v3232_v5 = vpop.f32.mrf.mxu1  ;;  %v17448_v10 = vpop.f32.mrf.mxu0 }
 0x325   : > { %v3253_v27 = vadd.f32 %v3232_v5, %v3079_v44 }
 0x326   : > { %v17450_v33 = vpop.f32.mrf.mxu1  ;;  %v3185_v32 = vpop.f32.mrf.mxu0 }
 0x327   : > { %v3255_v34 = vadd.f32 %v3185_v32, %v3081_v15 }
 0x328   : > { %v3238_v60 = vpop.f32.mrf.mxu1  ;;  %v3187_v29 = vpop.f32.mrf.mxu0 }
 0x329   : > { %v3257_v26 = vadd.f32 %v3238_v60, %v3083_v45  ;;  %v3256_v37 = vadd.f32 %v3187_v29, %v3082_v43 }
 0x32a   : > { %v3240_v3 = vpop.f32.mrf.mxu1  ;;  %v3189_v1 = vpop.f32.mrf.mxu0 }
 0x32b   : > { %v3258_v8 = vadd.f32 %v3240_v3, %v3084_v52  ;;  %v3259_v22 = vadd.f32 %v3189_v1, %v3085_v6 }
 0x32c   : > { %v3242_v17 = vpop.f32.mrf.mxu1  ;;  %v17452_v41 = vpop.f32.mrf.mxu0 }
 0x32d   : > { %v3261_v31 = vadd.f32 %v3242_v17, %v3087_v61 }
 0x32e   : > { %v17454_v36 = vpop.f32.mrf.mxu1  ;;  %v3349_v24 = vpop.f32.mrf.mxu0 }
 0x32f   : > { %v3421_v35 = vadd.f32 %v3349_v24, %v3247_v0 }
 0x330   : > { %v3402_v56 = vpop.f32.mrf.mxu1  ;;  %v3351_v48 = vpop.f32.mrf.mxu0 }
 0x331   : > { %v3423_v39 = vadd.f32 %v3402_v56, %v3249_v14  ;;  %v3422_v44 = vadd.f32 %v3351_v48, %v3248_v21 }
 0x332   : > { %v3404_v7 = vpop.f32.mrf.mxu1  ;;  %v3353_v54 = vpop.f32.mrf.mxu0 }
 0x333   : > { %v3424_v15 = vadd.f32 %v3404_v7, %v3250_v30  ;;  %v3425_v45 = vadd.f32 %v3353_v54, %v3251_v28 }
 0x334   : > { %v3406_v19 = vpop.f32.mrf.mxu1  ;;  %v17456_v53 = vpop.f32.mrf.mxu0 }
 0x335   : > { %v3427_v43 = vadd.f32 %v3406_v19, %v3253_v27 }
 0x336   : > { %v17458_v52 = vpop.f32.mrf.mxu1  ;;  %v3359_v12 = vpop.f32.mrf.mxu0 }
 0x337   : > { %v3429_v6 = vadd.f32 %v3359_v12, %v3255_v34 }
 0x338   : > { %v3412_v57 = vpop.f32.mrf.mxu1  ;;  %v3361_v23 = vpop.f32.mrf.mxu0 }
 0x339   : > { %v3431_v61 = vadd.f32 %v3412_v57, %v3257_v26  ;;  %v3430_v0 = vadd.f32 %v3361_v23, %v3256_v37 }
 0x33a   : > { %v3414_v25 = vpop.f32.mrf.mxu1  ;;  %v3363_v59 = vpop.f32.mrf.mxu0 }
 0x33b   : > { %v3432_v14 = vadd.f32 %v3414_v25, %v3258_v8  ;;  %v3433_v21 = vadd.f32 %v3363_v59, %v3259_v22 }
 0x33c   : > { %v3416_v4 = vpop.f32.mrf.mxu1  ;;  %v17460_v63 = vpop.f32.mrf.mxu0 }
 0x33d   : > { %v3435_v30 = vadd.f32 %v3416_v4, %v3261_v31 }
 0x33e   : > { %v17462_v28 = vpop.f32.mrf.mxu1  ;;  %v3523_v5 = vpop.f32.mrf.mxu0 }
 0x33f   : > { %v3595_v27 = vadd.f32 %v3523_v5, %v3421_v35 }
 0x340   : > { %v3576_v32 = vpop.f32.mrf.mxu1  ;;  %v3525_v29 = vpop.f32.mrf.mxu0 }
 0x341   : > { %v3597_v60 = vadd.f32 %v3576_v32, %v3423_v39  ;;  %v3596_v34 = vadd.f32 %v3525_v29, %v3422_v44 }
 0x342   : > { %v3578_v3 = vpop.f32.mrf.mxu1  ;;  %v3527_v1 = vpop.f32.mrf.mxu0 }
 0x343   : > { %v3598_v26 = vadd.f32 %v3578_v3, %v3424_v15  ;;  %v3599_v37 = vadd.f32 %v3527_v1, %v3425_v45 }
 0x344   : > { %v3580_v17 = vpop.f32.mrf.mxu1  ;;  %v17464_v24 = vpop.f32.mrf.mxu0 }
 0x345   : > { %v3601_v8 = vadd.f32 %v3580_v17, %v3427_v43 }
 0x346   : > { %v17466_v22 = vpop.f32.mrf.mxu1  ;;  %v3533_v31 = vpop.f32.mrf.mxu0 }
 0x347   : > { %v3603_v56 = vadd.f32 %v3533_v31, %v3429_v6 }
 0x348   : > { %v3586_v48 = vpop.f32.mrf.mxu1  ;;  %v3535_v54 = vpop.f32.mrf.mxu0 }
 0x349   : > { %v3605_v7 = vadd.f32 %v3586_v48, %v3431_v61  ;;  %v3604_v35 = vadd.f32 %v3535_v54, %v3430_v0 }
 0x34a   : > { %v3588_v19 = vpop.f32.mrf.mxu1  ;;  %v3537_v12 = vpop.f32.mrf.mxu0 }
 0x34b   : > { %v3606_v39 = vadd.f32 %v3588_v19, %v3432_v14  ;;  %v3607_v44 = vadd.f32 %v3537_v12, %v3433_v21 }
 0x34c   : > { %v3590_v57 = vpop.f32.mrf.mxu1  ;;  %v17468_v23 = vpop.f32.mrf.mxu0 }
 0x34d   : > { %v3609_v15 = vadd.f32 %v3590_v57, %v3435_v30 }
 0x34e   : > { %v17470_v45 = vpop.f32.mrf.mxu1  ;;  %v3697_v43 = vpop.f32.mrf.mxu0 }
 0x34f   : > { %v3769_v25 = vadd.f32 %v3697_v43, %v3595_v27 }
 0x350   : > { %v3750_v59 = vpop.f32.mrf.mxu1  ;;  %v3699_v5 = vpop.f32.mrf.mxu0 }
 0x351   : > { %v3771_v4 = vadd.f32 %v3750_v59, %v3597_v60  ;;  %v3770_v6 = vadd.f32 %v3699_v5, %v3596_v34 }
 0x352   : > { %v3752_v32 = vpop.f32.mrf.mxu1  ;;  %v3701_v29 = vpop.f32.mrf.mxu0 }
 0x353   : > { %v3772_v61 = vadd.f32 %v3752_v32, %v3598_v26  ;;  %v3773_v0 = vadd.f32 %v3701_v29, %v3599_v37 }
 0x354   : > { %v3754_v3 = vpop.f32.mrf.mxu1  ;;  %v17472_v1 = vpop.f32.mrf.mxu0 }
 0x355   : > { %v3775_v14 = vadd.f32 %v3754_v3, %v3601_v8 }
 0x356   : > { %v17474_v21 = vpop.f32.mrf.mxu1  ;;  %v3707_v30 = vpop.f32.mrf.mxu0 }
 0x357   : > { %v3777_v17 = vadd.f32 %v3707_v30, %v3603_v56 }
 0x358   : > { %v3760_v31 = vpop.f32.mrf.mxu1  ;;  %v3709_v54 = vpop.f32.mrf.mxu0 }
 0x359   : > { %v3779_v48 = vadd.f32 %v3760_v31, %v3605_v7  ;;  %v3778_v27 = vadd.f32 %v3709_v54, %v3604_v35 }
 0x35a   : > { %v3762_v19 = vpop.f32.mrf.mxu1  ;;  %v3711_v12 = vpop.f32.mrf.mxu0 }
 0x35b   : > { %v3780_v60 = vadd.f32 %v3762_v19, %v3606_v39  ;;  %v3781_v34 = vadd.f32 %v3711_v12, %v3607_v44 }
 0x35c   : > { %v3764_v57 = vpop.f32.mrf.mxu1  ;;  %v17476_v43 = vpop.f32.mrf.mxu0 }
 0x35d   : > { %v3783_v26 = vadd.f32 %v3764_v57, %v3609_v15 }
 0x35e   : > { %v17478_v37 = vpop.f32.mrf.mxu1  ;;  %v3871_v8 = vpop.f32.mrf.mxu0 }
 0x35f   : > { %v3943_v59 = vadd.f32 %v3871_v8, %v3769_v25 }
 0x360   : > { %v3924_v5 = vpop.f32.mrf.mxu1  ;;  %v3873_v29 = vpop.f32.mrf.mxu0 }
 0x361   : > { %v3945_v32 = vadd.f32 %v3924_v5, %v3771_v4  ;;  %v3944_v56 = vadd.f32 %v3873_v29, %v3770_v6 }
 0x362   : > { %v3926_v3 = vpop.f32.mrf.mxu1  ;;  %v3875_v30 = vpop.f32.mrf.mxu0 }
 0x363   : > { %v3946_v7 = vadd.f32 %v3926_v3, %v3772_v61  ;;  %v3947_v35 = vadd.f32 %v3875_v30, %v3773_v0 }
 0x364   : > { %v3928_v31 = vpop.f32.mrf.mxu1  ;;  %v17480_v54 = vpop.f32.mrf.mxu0 }
 0x365   : > { %v3949_v39 = vadd.f32 %v3928_v31, %v3775_v14 }
 0x366   : > { %v17482_v44 = vpop.f32.mrf.mxu1  ;;  %v3881_v15 = vpop.f32.mrf.mxu0 }
 0x367   : > { %v3951_v19 = vadd.f32 %v3881_v15, %v3777_v17 }
 0x368   : > { %v3934_v12 = vpop.f32.mrf.mxu1  ;;  %v3883_v2 = vpop.f32.mrf.mxu0 }
 0x369   : > { %v3953_v57 = vadd.f32 %v3934_v12, %v3779_v48  ;;  %v3952_v25 = vadd.f32 %v3883_v2, %v3778_v27 }
 0x36a   : > { %v3936_v8 = vpop.f32.mrf.mxu1  ;;  %v3885_v5 = vpop.f32.mrf.mxu0 }
 0x36b   : > { %v3954_v4 = vadd.f32 %v3936_v8, %v3780_v60  ;;  %v3955_v6 = vadd.f32 %v3885_v5, %v3781_v34 }
 0x36c   : > { %v3938_v29 = vpop.f32.mrf.mxu1  ;;  %v17484_v3 = vpop.f32.mrf.mxu0 }
 0x36d   : > { %v3957_v61 = vadd.f32 %v3938_v29, %v3783_v26 }
 0x36e   : > { %v17486_v0 = vpop.f32.mrf.mxu1  ;;  %v4045_v14 = vpop.f32.mrf.mxu0 }
 0x36f   : > { %v4117_v30 = vadd.f32 %v4045_v14, %v3943_v59 }
 0x370   : > { %v4098_v31 = vpop.f32.mrf.mxu1  ;;  %v4047_v51 = vpop.f32.mrf.mxu0 }
 0x371   : > { %v4119_v9 = vadd.f32 %v4098_v31, %v3945_v32  ;;  %v4118_v17 = vadd.f32 %v4047_v51, %v3944_v56 }
 0x372   : > { %v4100_v15 = vpop.f32.mrf.mxu1  ;;  %v4049_v12 = vpop.f32.mrf.mxu0 }
 0x373   : > { %v4120_v48 = vadd.f32 %v4100_v15, %v3946_v7  ;;  %v4121_v2 = vadd.f32 %v4049_v12, %v3947_v35 }
 0x374   : > { %v4102_v27 = vpop.f32.mrf.mxu1  ;;  %v17488_v8 = vpop.f32.mrf.mxu0 }
 0x375   : > { %v4123_v60 = vadd.f32 %v4102_v27, %v3949_v39 }
 0x376   : > { %v17490_v34 = vpop.f32.mrf.mxu1  ;;  %v4055_v26 = vpop.f32.mrf.mxu0 }
 0x377   : > { %v4125_v5 = vadd.f32 %v4055_v26, %v3951_v19 }
 0x378   : > { %v4108_v29 = vpop.f32.mrf.mxu1  ;;  %v4057_v46 = vpop.f32.mrf.mxu0 }
 0x379   : > { %v4127_v49 = vadd.f32 %v4108_v29, %v3953_v57  ;;  %v4126_v59 = vadd.f32 %v4057_v46, %v3952_v25 }
 0x37a   : > { %v4110_v14 = vpop.f32.mrf.mxu1  ;;  %v4059_v31 = vpop.f32.mrf.mxu0 }
 0x37b   : > { %v4128_v32 = vadd.f32 %v4110_v14, %v3954_v4  ;;  %v4129_v51 = vadd.f32 %v4059_v31, %v3955_v6 }
 0x37c   : > { %v4112_v56 = vpop.f32.mrf.mxu1  ;;  %v17492_v15 = vpop.f32.mrf.mxu0 }
 0x37d   : > { %v4131_v7 = vadd.f32 %v4112_v56, %v3957_v61 }
 0x37e   : > { %v17494_v35 = vpop.f32.mrf.mxu1  ;;  %v4219_v39 = vpop.f32.mrf.mxu0 }
 0x37f   : > { %v17496_v12 = vadd.f32 %v4219_v39, %v4117_v30 }
 0x380   : > { %v4272_v27 = vpop.f32.mrf.mxu1  ;;  %v4221_v19 = vpop.f32.mrf.mxu0 }
 0x381   : > { %v17498_v47 = vadd.f32 %v4272_v27, %v4119_v9  ;;  %v17500_v57 = vadd.f32 %v4221_v19, %v4118_v17 }
 0x382   : > { %v4274_v46 = vpop.f32.mrf.mxu1  ;;  %v4223_v4 = vpop.f32.mrf.mxu0 }
 0x383   : > { %v17502_v25 = vadd.f32 %v4274_v46, %v4120_v48  ;;  %v17504_v6 = vadd.f32 %v4223_v4, %v4121_v2 }
 0x384   : > { %v4276_v61 = vpop.f32.mrf.mxu1  ;;  %v17508_v29 = vpop.f32.mrf.mxu0 }
 0x385   : > { %v17506_v26 = vadd.f32 %v4276_v61, %v4123_v60 }
 0x386   : > { %v17510_v14 = vpop.f32.mrf.mxu1  ;;  %v4229_v30 = vpop.f32.mrf.mxu0 }
 0x387   : > { %v17512_v31 = vadd.f32 %v4229_v30, %v4125_v5 }
 0x388   : > { %v4282_v9 = vpop.f32.mrf.mxu1  ;;  %v4231_v17 = vpop.f32.mrf.mxu0 }
 0x389   : > { %21625 = vst [vmem:[#allocation9_spill] sm:$0xff] %v17512_v31  ;;  %v17514_v56 = vadd.f32 %v4282_v9, %v4127_v49  ;;  %v17516_v39 = vadd.f32 %v4231_v17, %v4126_v59 }
 0x38a   : > { %v4284_v48 = vpop.f32.mrf.mxu1  ;;  %v4233_v2 = vpop.f32.mrf.mxu0 }
 0x38b   : > { %21626 = vst [vmem:[#allocation10_spill] sm:$0xff] %v17514_v56  ;;  %21627 = vst [vmem:[#allocation11_spill] sm:$0xff] %v17516_v39  ;;  %v17518_v27 = vadd.f32 %v4284_v48, %v4128_v32  ;;  %v17520_v19 = vadd.f32 %v4233_v2, %v4129_v51 }
 0x38c   : > { %v4286_v60 = vpop.f32.mrf.mxu1  ;;  %v17524_v4 = vpop.f32.mrf.mxu0 }
 0x38d   : > { %21628 = vst [vmem:[#allocation12_spill] sm:$0xff] %v17518_v27  ;;  %21629 = vst [vmem:[#allocation13_spill] sm:$0xff] %v17520_v19  ;;  %v17522_v46 = vadd.f32 %v4286_v60, %v4131_v7 }
 0x38e   : > { %v17526_v61 = vpop.f32.mrf.mxu1  ;;  %v17528_v5 = vpop.f32.mrf.mxu0 }
 0x38f   : > { %21630 = vst [vmem:[#allocation14_spill] sm:$0xff] %v17522_v46 }
 0x390   : > { %v17530_v49 = vpop.f32.mrf.mxu1  ;;  %v17532_v30 = vpop.f32.mrf.mxu0 }
 0x392   : > { %v17534_v59 = vpop.f32.mrf.mxu1  ;;  %v17536_v32 = vpop.f32.mrf.mxu0 }
 0x394   : > { %v17538_v9 = vpop.f32.mrf.mxu1  ;;  %v17540_v51 = vpop.f32.mrf.mxu0 }
 0x396   : > { %v17542_v7 = vpop.f32.mrf.mxu1  ;;  %v17544_v17 = vpop.f32.mrf.mxu0 }
 0x397   : > { %21631 = vst [vmem:[#allocation15_spill] sm:$0xff] %v17542_v7  ;;  %21632 = vst [vmem:[#allocation16_spill] sm:$0xff] %v17544_v17 }
 0x398   : > { %v17546_v48 = vpop.f32.mrf.mxu1  ;;  %v17548_v2 = vpop.f32.mrf.mxu0 }
 0x399   : > { %21633 = vst [vmem:[#allocation17_spill] sm:$0xff] %v17546_v48  ;;  %21634 = vst [vmem:[#allocation18_spill] sm:$0xff] %v17548_v2 }
 0x39a   : > { %v17550_v60 = vpop.f32.mrf.mxu1  ;;  %v17552_v46 = vpop.f32.mrf.mxu0 }
 0x39b   : > { %21635 = vst [vmem:[#allocation19_spill] sm:$0xff] %v17550_v60  ;;  %21636 = vst [vmem:[#allocation20_spill] sm:$0xff] %v17552_v46 }
 0x39c   : > { %v17554_v19 = vpop.f32.mrf.mxu1  ;;  %v17556_v27 = vpop.f32.mrf.mxu0 }
 0x39d   : > { %21637 = vst [vmem:[#allocation21_spill] sm:$0xff] %v17554_v19  ;;  %21638 = vst [vmem:[#allocation22_spill] sm:$0xff] %v17556_v27 }
 0x39e   : > { %v17558_v39 = vpop.f32.mrf.mxu1  ;;  %v17560_v56 = vpop.f32.mrf.mxu0 }
 0x39f   : > { %21639 = vst [vmem:[#allocation23_spill] sm:$0xff] %v17558_v39  ;;  %21640 = vst [vmem:[#allocation24_spill] sm:$0xff] %v17560_v56 }
 0x3a0   : > { %v17562_v31 = vpop.f32.mrf.mxu1  ;;  %v17564_v7 = vpop.f32.mrf.mxu0 }
 0x3a1   : > { %21641 = vst [vmem:[#allocation25_spill] sm:$0xff] %v17562_v31  ;;  %21642 = vst [vmem:[#allocation26_spill] sm:$0xff] %v17564_v7 }
 0x3a2   : > { %v17566_v17 = vpop.f32.mrf.mxu1  ;;  %v17568_v48 = vpop.f32.mrf.mxu0 }
 0x3a3   : > { %21643 = vst [vmem:[#allocation27_spill] sm:$0xff] %v17566_v17  ;;  %21644 = vst [vmem:[#allocation28_spill] sm:$0xff] %v17568_v48 }
 0x3a4   : > { %v17570_v2 = vpop.f32.mrf.mxu1  ;;  %v17572_v60 = vpop.f32.mrf.mxu0 }
 0x3a5   : > { %21645 = vst [vmem:[#allocation29_spill] sm:$0xff] %v17570_v2  ;;  %21646 = vst [vmem:[#allocation30_spill] sm:$0xff] %v17572_v60 }
 0x3a6   : > { %v17574_v46 = vpop.f32.mrf.mxu1  ;;  %v17576_v19 = vpop.f32.mrf.mxu0 }
 0x3a7   : > { %21647 = vst [vmem:[#allocation31_spill] sm:$0xff] %v17574_v46 }
 0x3a8   : > { %v17578_v27 = vpop.f32.mrf.mxu1  ;;  %v17580_v39 = vpop.f32.mrf.mxu0 }
 0x3a9   : > { %21648 = vst [vmem:[#allocation32_spill] sm:$0xff] %v17578_v27  ;;  %21649 = vst [vmem:[#allocation33_spill] sm:$0xff] %v17580_v39  ;;  %v2887_v27 = vadd.f32 %v17414_v16, %v17375_v18 }
 0x3aa   : > { %v17582_v56 = vpop.f32.mrf.mxu1  ;;  %v17584_v31 = vpop.f32.mrf.mxu0 }
 0x3ab   : > { %21650 = vst [vmem:[#allocation34_spill] sm:$0xff] %v17582_v56  ;;  %v2889_v56 = vadd.f32 %v17416_v11, %v17378_v38 }
 0x3ac   : > { %v17586_v7 = vpop.f32.mrf.mxu1  ;;  %v17588_v17 = vpop.f32.mrf.mxu0 }
 0x3ad   : > { %21651 = vst [vmem:[#allocation35_spill] sm:$0xff] %v17586_v7  ;;  %21652 = vst [vmem:[#allocation36_spill] sm:$0xff] %v17588_v17  ;;  %v2895_v7 = vadd.f32 %v17425_v40, %v17394_v55 }
 0x3ae   : > { %v17590_v48 = vpop.f32.mrf.mxu1  ;;  %v17592_v2 = vpop.f32.mrf.mxu0 }
 0x3af   : > { %21653 = vst [vmem:[#allocation37_spill] sm:$0xff] %v17590_v48  ;;  %21654 = vst [vmem:[#allocation38_spill] sm:$0xff] %v17592_v2  ;;  %v2897_v48 = vadd.f32 %v17427_v42, %v17398_v58  ;;  %v3086_v18 = vadd.f32 %v17444_v62, %v2895_v7 }
 0x3b0   : > { %v17594_v60 = vpop.f32.mrf.mxu1  ;;  %v17596_v46 = vpop.f32.mrf.mxu0 }
 0x3b1   : > { %21655 = vst [vmem:[#allocation39_spill] sm:$0xff] %v17594_v60  ;;  %21656 = vst [vmem:[#allocation40_spill] sm:$0xff] %v17596_v46  ;;  %v3078_v60 = vadd.f32 %v17436_v50, %v2887_v27  ;;  %v3080_v46 = vadd.f32 %v17438_v20, %v2889_v56  ;;  %v3088_v38 = vadd.f32 %v17446_v13, %v2897_v48 }
 0x3b2   : > { %v17602_v39 = vpop.f32.mrf.mxu1  ;;  %v17608_v17 = vpop.f32.mrf.mxu0  ;;  %v3260_v58 = vadd.f32 %v17452_v41, %v3086_v18 }
 0x3b3   : > { %v3252_v11 = vadd.f32 %v17448_v10, %v3078_v60  ;;  %v3254_v55 = vadd.f32 %v17450_v33, %v3080_v46  ;;  %v3262_v42 = vadd.f32 %v17454_v36, %v3088_v38 }
 0x3b4   : > { %v17612_v2 = vpop.f32.mrf.mxu1  ;;  %v17616_v16 = vpop.f32.mrf.mxu0  ;;  %v3434_v13 = vadd.f32 %v17460_v63, %v3260_v58 }
 0x3b5   : > { %v3426_v20 = vadd.f32 %v17456_v53, %v3252_v11  ;;  %v3428_v62 = vadd.f32 %v17458_v52, %v3254_v55  ;;  %v3436_v10 = vadd.f32 %v17462_v28, %v3262_v42 }
 0x3b6   : > { %v17620_v40 = vpop.f32.mrf.mxu1  ;;  %v17624_v50 = vpop.f32.mrf.mxu0  ;;  %v3608_v36 = vadd.f32 %v17468_v23, %v3434_v13  ;;  %v21660_v13 = vld [vmem:[#allocation10_spill] sm:$0xff] }
 0x3b7   : > { %v3600_v33 = vadd.f32 %v17464_v24, %v3426_v20  ;;  %v3602_v41 = vadd.f32 %v17466_v22, %v3428_v62  ;;  %v3610_v53 = vadd.f32 %v17470_v45, %v3436_v10  ;;  %v21659_v20 = vld [vmem:[#allocation16_spill] sm:$0xff] }
 0x3b8   : > { %v17628_v56 = vpop.f32.mrf.mxu1  ;;  %v17632_v27 = vpop.f32.mrf.mxu0  ;;  %v3782_v28 = vadd.f32 %v17476_v43, %v3608_v36 }
 0x3b9   : > { %v3774_v52 = vadd.f32 %v17472_v1, %v3600_v33  ;;  %v3776_v63 = vadd.f32 %v17474_v21, %v3602_v41  ;;  %v3784_v24 = vadd.f32 %v17478_v37, %v3610_v53  ;;  %v21668_v53 = vld [vmem:[#allocation14_spill] sm:$0xff] }
 0x3ba   : > { %v17636_v46 = vpop.f32.mrf.mxu1  ;;  %v17640_v7 = vpop.f32.mrf.mxu0  ;;  %v3956_v45 = vadd.f32 %v17484_v3, %v3782_v28  ;;  %v21670_v28 = vld [vmem:[#allocation22_spill] sm:$0xff] }
 0x3bb   : > { %v3948_v22 = vadd.f32 %v17480_v54, %v3774_v52  ;;  %v3950_v23 = vadd.f32 %v17482_v44, %v3776_v63  ;;  %v3958_v1 = vadd.f32 %v17486_v0, %v3784_v24 }
 0x3bc   : > { %v17644_v48 = vpop.f32.mrf.mxu1  ;;  %v17648_v60 = vpop.f32.mrf.mxu0  ;;  %v4130_v37 = vadd.f32 %v17492_v15, %v3956_v45  ;;  %v4467_v15 = vadd.f32 %v17530_v49, %v17498_v47  ;;  %v21658_v49 = vld [vmem:[#allocation9_spill] sm:$0xff]  ;;  %v21672_v45 = vld [vmem:[#allocation24_spill] sm:$0xff] }
 0x3bd   : > { %v4122_v21 = vadd.f32 %v17488_v8, %v3948_v22  ;;  %v4124_v43 = vadd.f32 %v17490_v34, %v3950_v23  ;;  %v4132_v54 = vadd.f32 %v17494_v35, %v3958_v1  ;;  %v4465_v34 = vadd.f32 %v17528_v5, %v17496_v12  ;;  %v21657_v5 = vld [vmem:[#allocation15_spill] sm:$0xff] }
 0x3be   : > { %v17652_v18 = vpop.f32.mrf.mxu1  ;;  %v17656_v38 = vpop.f32.mrf.mxu0  ;;  %v4304_v0 = vadd.f32 %v17524_v4, %v4130_v37  ;;  %v4466_v35 = vadd.f32 %v17532_v30, %v17500_v57  ;;  %v4471_v4 = vadd.f32 %v17538_v9, %v17506_v26  ;;  %v4473_v62 = vadd.f32 %v21659_v20, %v21658_v49  ;;  %v21661_v57 = vld [vmem:[#allocation17_spill] sm:$0xff]  ;;  %v21667_v9 = vld [vmem:[#allocation20_spill] sm:$0xff]  ;;  %v21671_v22 = vld [vmem:[#allocation23_spill] sm:$0xff] }
 0x3bf   : > { %v4296_v44 = vadd.f32 %v17508_v29, %v4122_v21  ;;  %v4298_v3 = vadd.f32 %v17510_v14, %v4124_v43  ;;  %v4306_v8 = vadd.f32 %v17526_v61, %v4132_v54  ;;  %v4468_v29 = vadd.f32 %v17534_v59, %v17502_v25  ;;  %v21662_v25 = vld [vmem:[#allocation11_spill] sm:$0xff]  ;;  %v21663_v59 = vld [vmem:[#allocation18_spill] sm:$0xff]  ;;  %v21666_v26 = vld [vmem:[#allocation13_spill] sm:$0xff] }
 0x3c0   : > { %v17660_v11 = vpop.f32.mrf.mxu1  ;;  %v17664_v55 = vpop.f32.mrf.mxu0  ;;  %v4469_v14 = vadd.f32 %v17536_v32, %v17504_v6  ;;  %v4475_v30 = vadd.f32 %v21661_v57, %v21660_v13  ;;  %v4474_v33 = vadd.f32 %v21663_v59, %v21662_v25  ;;  %v21664_v6 = vld [vmem:[#allocation12_spill] sm:$0xff]  ;;  %v21665_v32 = vld [vmem:[#allocation19_spill] sm:$0xff]  ;;  %v4477_v36 = vadd.f32 %v21667_v9, %v21666_v26  ;;  %v21673_v21 = vld [vmem:[#allocation25_spill] sm:$0xff] }
 0x3c1   : > { %v4470_v12 = vadd.f32 %v17540_v51, %v4296_v44  ;;  %v4472_v47 = vadd.f32 %v21657_v5, %v4298_v3  ;;  %v4476_v41 = vadd.f32 %v21665_v32, %v21664_v6  ;;  %v21669_v51 = vld [vmem:[#allocation21_spill] sm:$0xff]  ;;  %v4478_v24 = vadd.f32 %v21670_v28, %v4304_v0  ;;  %v21674_v54 = vld [vmem:[#allocation26_spill] sm:$0xff]  ;;  %v21675_v3 = vld [vmem:[#allocation27_spill] sm:$0xff] }
 0x3c2   : > { %v17668_v58 = vpop.f32.mrf.mxu1  ;;  %v17676_v42 = vpop.f32.mrf.mxu0  ;;  %v4479_v52 = vadd.f32 %v21669_v51, %v21668_v53  ;;  %v4480_v23 = vadd.f32 %v21671_v22, %v4306_v8  ;;  %v4639_v1 = vadd.f32 %v21672_v45, %v4465_v34  ;;  %v4641_v43 = vadd.f32 %v21673_v21, %v4467_v15  ;;  %v21676_v49 = vld [vmem:[#allocation28_spill] sm:$0xff]  ;;  %v21677_v13 = vld [vmem:[#allocation29_spill] sm:$0xff]  ;;  %v21678_v59 = vld [vmem:[#allocation30_spill] sm:$0xff] }
 0x3c3   : > { %v4640_v44 = vadd.f32 %v21674_v54, %v4466_v35  ;;  %v4642_v5 = vadd.f32 %v21675_v3, %v4468_v29  ;;  %v4643_v20 = vadd.f32 %v21676_v49, %v4469_v14  ;;  %v4645_v57 = vadd.f32 %v21677_v13, %v4471_v4  ;;  %v21679_v32 = vld [vmem:[#allocation31_spill] sm:$0xff]  ;;  %v21680_v26 = vld [vmem:[#allocation32_spill] sm:$0xff]  ;;  %v21681_v15 = vld [vmem:[#allocation33_spill] sm:$0xff]  ;;  %v17718_v4 = vpop.permute.xlu0 %5194 }
 0x3c4   : > { %v17686_v61 = vpop.f32.mrf.mxu1  ;;  %v4921_v10 = vpop.f32.mrf.mxu0  ;;  %v4644_v6 = vadd.f32 %v21678_v59, %v4470_v12  ;;  %v4646_v0 = vadd.f32 %v21679_v32, %v4472_v47  ;;  %v4647_v8 = vadd.f32 %v17576_v19, %v4473_v62  ;;  %v4649_v34 = vadd.f32 %v21680_v26, %v4475_v30  ;;  %v21682_v51 = vld [vmem:[#allocation34_spill] sm:$0xff]  ;;  %v21683_v28 = vld [vmem:[#allocation35_spill] sm:$0xff]  ;;  %v21684_v45 = vld [vmem:[#allocation36_spill] sm:$0xff] }
 0x3c5   : > { %v4648_v53 = vadd.f32 %v21681_v15, %v4474_v33  ;;  %v4650_v35 = vadd.f32 %v21682_v51, %v4476_v41  ;;  %v4651_v29 = vadd.f32 %v17584_v31, %v4477_v36  ;;  %v4653_v14 = vadd.f32 %v21683_v28, %v4479_v52  ;;  %v21685_v21 = vld [vmem:[#allocation37_spill] sm:$0xff]  ;;  %v21686_v54 = vld [vmem:[#allocation38_spill] sm:$0xff]  ;;  %v21687_v62 = vld [vmem:[#allocation39_spill] sm:$0xff] }
 0x3c6   : > { %v4974_v63 = vpop.f32.mrf.mxu1  ;;  %v4925_v37 = vpop.f32.mrf.mxu0  ;;  %v4652_v12 = vadd.f32 %v21684_v45, %v4478_v24  ;;  %v4654_v47 = vadd.f32 %v21685_v21, %v4480_v23  ;;  %v4813_v19 = vadd.f32 %v21686_v54, %v4639_v1  ;;  %v4815_v30 = vadd.f32 %v21687_v62, %v4641_v43  ;;  %v21688_v49 = vld [vmem:[#allocation40_spill] sm:$0xff] }
 0x3c7   : > { %v4814_v33 = vadd.f32 %v21688_v49, %v4640_v44  ;;  %v4816_v41 = vadd.f32 %v17602_v39, %v4642_v5  ;;  %v4817_v31 = vadd.f32 %v17608_v17, %v4643_v20  ;;  %v4819_v36 = vadd.f32 %v17612_v2, %v4645_v57  ;;  %v17740_v5 = vpop.permute.xlu1 %5199  ;;  %v21690_v62 = vld [vmem:[#allocation4_spill] sm:$0xff] }
 0x3c8   : > { %v4978_v25 = vpop.f32.mrf.mxu1  ;;  %v4927_v9 = vpop.f32.mrf.mxu0  ;;  %v4818_v13 = vadd.f32 %v17616_v16, %v4644_v6  ;;  %v4820_v24 = vadd.f32 %v17620_v40, %v4646_v0  ;;  %v4821_v23 = vadd.f32 %v17624_v50, %v4647_v8  ;;  %v4823_v1 = vadd.f32 %v17628_v56, %v4649_v34 }
 0x3c9   : > { %v4822_v43 = vadd.f32 %v17632_v27, %v4648_v53  ;;  %v4824_v44 = vadd.f32 %v17636_v46, %v4650_v35  ;;  %v4825_v39 = vadd.f32 %v17640_v7, %v4651_v29  ;;  %v4987_v17 = vadd.f32 %v17656_v38, %v4813_v19  ;;  %v5185_v6 = vpop.permute.xlu0 %5184 }
 0x3ca   : > { %v4980_v22 = vpop.f32.mrf.mxu1  ;;  %v4929_v3 = vpop.f32.mrf.mxu0  ;;  %v4827_v16 = vadd.f32 %v17644_v48, %v4653_v14  ;;  %v4826_v40 = vadd.f32 %v17648_v60, %v4652_v12  ;;  %v17745_v50 = vadd.f32 %v17652_v18, %v4654_v47  ;;  %v4989_v56 = vadd.f32 %v17660_v11, %v4815_v30 }
 0x3cb   : > { %v4988_v46 = vadd.f32 %v17664_v55, %v4814_v33  ;;  %v4990_v7 = vadd.f32 %v17668_v58, %v4816_v41  ;;  %v4991_v38 = vadd.f32 %v17676_v42, %v4817_v31  ;;  %v4993_v32 = vadd.f32 %v17686_v61, %v4819_v36  ;;  %v5190_v61 = vpop.permute.xlu1 %5189  ;;  %v21691_v31 = vld [vmem:[#allocation6_spill] sm:$0xff] }
 0x3cc   : > { %v4982_v52 = vpop.f32.mrf.mxu1  ;;  %v17732_v59 = vpop.f32.mrf.mxu0  ;;  %v4992_v48 = vadd.f32 %v4921_v10, %v4818_v13  ;;  %v4994_v0 = vadd.f32 %v4974_v63, %v4820_v24  ;;  %v4995_v18 = vadd.f32 %v4925_v37, %v4821_v23  ;;  %v4997_v26 = vadd.f32 %v4978_v25, %v4823_v1  ;;  %v21689_v25 = vld [vmem:[#allocation5_spill] sm:$0xff]  ;;  %v21692_v1 = vld [vmem:[#allocation7_spill] sm:$0xff] }
 0x3cd   : > { %v4996_v53 = vadd.f32 %v4927_v9, %v4822_v43  ;;  %v4998_v55 = vadd.f32 %v4980_v22, %v4824_v44  ;;  %v4999_v42 = vadd.f32 %v4929_v3, %v4825_v39  ;;  %v5001_v10 = vadd.f32 %v4982_v52, %v4827_v16 }
 0x3ce   : > { %v17738_v2 = vpop.f32.mrf.mxu1  ;;  %v5089_v27 = vpop.f32.mrf.mxu0 }
 0x3cf   : > { %v5161_v20 = vadd.f32 %v5089_v27, %v4987_v17 }
 0x3d0   : > { %v5142_v57 = vpop.f32.mrf.mxu1  ;;  %v5091_v8 = vpop.f32.mrf.mxu0 }
 0x3d1   : > { %v5163_v60 = vadd.f32 %v5142_v57, %v4989_v56  ;;  %v5202_v34 = vadd.f32 %v5185_v6, %v5161_v20  ;;  %v5162_v11 = vadd.f32 %v5091_v8, %v4988_v46  ;;  %v5000_v56 = vadd.f32 %v17732_v59, %v4826_v40 }
 0x3d2   : > { %v5144_v15 = vpop.f32.mrf.mxu1  ;;  %v5093_v35 = vpop.f32.mrf.mxu0 }
 0x3d3   : > { %v5204_v51 = vadd.f32 %v5185_v6, %v5163_v60  ;;  %v5164_v58 = vadd.f32 %v5144_v15, %v4990_v7  ;;  %v5218_v29 = vmax.f32 %v5202_v34, 0.0  ;;  %v5203_v28 = vadd.f32 %v5185_v6, %v5162_v11 }
 0x3d4   : > { %v5165_v14 = vadd.f32 %v5093_v35, %v4991_v38  ;;  %v5146_v45 = vpop.f32.mrf.mxu1  ;;  %v5095_v37 = vpop.f32.mrf.mxu0 }
 0x3d5   : > { %v5220_v63 = vmax.f32 %v5204_v51, 0.0  ;;  %v5205_v12 = vadd.f32 %v5185_v6, %v5164_v58  ;;  %v5167_v21 = vadd.f32 %v5146_v45, %v4993_v32  ;;  %v5234_v47 = vmul.f32 %v5218_v29, %v21689_v25 }
 0x3d6   : > { %v5219_v54 = vmax.f32 %v5203_v28, 0.0  ;;  %v5206_v19 = vadd.f32 %v5190_v61, %v5165_v14  ;;  %v5166_v9 = vadd.f32 %v5095_v37, %v4992_v48  ;;  %v5148_v22 = vpop.f32.mrf.mxu1  ;;  %v5099_v41 = vpop.f32.mrf.mxu0 }
 0x3d7   : > { %v5236_v30 = vmul.f32 %v5220_v63, %v21690_v62  ;;  %v5221_v49 = vmax.f32 %v5205_v12, 0.0  ;;  %v5208_v3 = vadd.f32 %v5190_v61, %v5167_v21  ;;  %v5168_v33 = vadd.f32 %v5148_v22, %v4994_v0 }
 0x3d8   : > { %v5235_v36 = vmul.f32 %v5219_v54, %v21691_v31  ;;  %v5222_v13 = vmax.f32 %v5206_v19, 0.0  ;;  %v5207_v52 = vadd.f32 %v5190_v61, %v5166_v9  ;;  %v5169_v24 = vadd.f32 %v5099_v41, %v4995_v18  ;;  %v5152_v23 = vpop.f32.mrf.mxu1  ;;  %v5101_v16 = vpop.f32.mrf.mxu0 }
 0x3d9   : > { %v5237_v43 = vmul.f32 %v5221_v49, %v21692_v1  ;;  %v5224_v44 = vmax.f32 %v5208_v3, 0.0  ;;  %v5209_v39 = vadd.f32 %v5190_v61, %v5168_v33  ;;  %v5171_v17 = vadd.f32 %v5152_v23, %v4997_v26 }
 0x3da   : > { %v15325_v27 = vpack.c.bf16 %v5235_v36, %v5234_v47  ;;  %v5223_v46 = vmax.f32 %v5207_v52, 0.0  ;;  %v5210_v7 = vadd.f32 %v17718_v4, %v5169_v24  ;;  %v5154_v38 = vpop.f32.mrf.mxu1  ;;  %v5238_v57 = vmul.f32 %v5222_v13, %v21689_v25  ;;  %v5103_v48 = vpop.f32.mrf.mxu0 }
 0x3db   : > { %v15326_v20 = vpack.c.bf16 %v5237_v43, %v5236_v30  ;;  %v5225_v6 = vmax.f32 %v5209_v39, 0.0  ;;  %v5212_v32 = vadd.f32 %v17718_v4, %v5171_v17  ;;  %v5240_v0 = vmul.f32 %v5224_v44, %v21690_v62 }
 0x3dc   : > { %5298 = vst [vmem:[#allocation3 + $0x4] sm:$0xff] %v15325_v27  ;;  %v5239_v60 = vmul.f32 %v5223_v46, %v21691_v31  ;;  %v5170_v8 = vadd.f32 %v5101_v16, %v4996_v53  ;;  %v5172_v18 = vadd.f32 %v5154_v38, %v4998_v55  ;;  %v5156_v59 = vpop.f32.mrf.mxu1  ;;  %v5226_v34 = vmax.f32 %v5210_v7, 0.0  ;;  %v5105_v28 = vpop.f32.mrf.mxu0 }
 0x3dd   : > { %5299 = vst.msk [vmem:[#allocation3 + $0xc] sm:$0xff] %vm15774_vm6, %v15326_v20  ;;  %v5241_v26 = vmul.f32 %v5225_v6, %v21692_v1  ;;  %v5173_v11 = vadd.f32 %v5103_v48, %v4999_v42  ;;  %v5175_v15 = vadd.f32 %v5156_v59, %v5001_v10  ;;  %v5228_v58 = vmax.f32 %v5212_v32, 0.0 }
 0x3de   : > { %v15327_v51 = vpack.c.bf16 %v5239_v60, %v5238_v57  ;;  %v5211_v35 = vadd.f32 %v17718_v4, %v5170_v8  ;;  %v5213_v29 = vadd.f32 %v17718_v4, %v5172_v18  ;;  %v5158_v14 = vpop.f32.mrf.mxu1  ;;  %v5002_v53 = vadd.f32 %v17738_v2, %v17745_v50 }
 0x3df   : > { %v15328_v55 = vpack.c.bf16 %v5241_v26, %v5240_v0  ;;  %v5214_v45 = vadd.f32 %v17740_v5, %v5173_v11  ;;  %v5216_v61 = vadd.f32 %v17740_v5, %v5175_v15  ;;  %v17771_v63 = vpack.c.bf16 %v5238_v57, %v5234_v47 }
 0x3e0   : > { %5300 = vst [vmem:[#allocation3 + $0x18] sm:$0xff] %v15327_v51  ;;  %v17773_v42 = vpack.c.bf16 %v5239_v60, %v5235_v36  ;;  %v5227_v10 = vmax.f32 %v5211_v35, 0.0  ;;  %v5229_v12 = vmax.f32 %v5213_v29, 0.0  ;;  %v5174_v4 = vadd.f32 %v5105_v28, %v5000_v56 }
 0x3e1   : > { %5301 = vst.msk [vmem:[#allocation3 + $0x20] sm:$0xff] %vm15774_vm6, %v15328_v55  ;;  %v5176_v21 = vadd.f32 %v5158_v14, %v5002_v53  ;;  %v5242_v37 = vmul.f32 %v5226_v34, %v21689_v25  ;;  %v5244_v2 = vmul.f32 %v5228_v58, %v21690_v62  ;;  %v5230_v30 = vmax.f32 %v5214_v45, 0.0 }
 0x3e2   : > { %v5243_v50 = vmul.f32 %v5227_v10, %v21691_v31  ;;  %v5245_v54 = vmul.f32 %v5229_v12, %v21692_v1  ;;  %v5215_v47 = vadd.f32 %v17740_v5, %v5174_v4  ;;  %v5232_v49 = vmax.f32 %v5216_v61, 0.0  ;;  %v15462_v10 = vld [vmem:[%s21536_s3 + $0x10] sm:$0xff]  }
 0x3e3   : > { %v5217_v19 = vadd.f32 %v17740_v5, %v5176_v21  ;;  %v5310_v41 = vld [vmem:[#allocation3] sm:$0xff]  ;;  %v5246_v43 = vmul.f32 %v5230_v30, %v21689_v25 }
 0x3e4   : > { %v15329_v9 = vpack.c.bf16 %v5243_v50, %v5242_v37  ;;  %v15330_v22 = vpack.c.bf16 %v5245_v54, %v5244_v2  ;;  %v5231_v3 = vmax.f32 %v5215_v47, 0.0  ;;  %v5311_v24 = vld [vmem:[#allocation3 + $0x8] sm:$0xff]  ;;  %v5248_v44 = vmul.f32 %v5232_v49, %v21690_v62 }
 0x3e5   : > { %v5233_v33 = vmax.f32 %v5217_v19, 0.0  ;;  %v17799_v27 = vpack.c.bf16 %v5246_v43, %v5242_v37  ;;  %v21694_v2 = vmov 0   ;;  %v15463_v47 = vld [vmem:[%s21536_s3 + $0x18] sm:$0xff]  }
 0x3e6   : > { %5302 = vst [vmem:[#allocation3 + $0x2c] sm:$0xff] %v15329_v9  ;;  %5303 = vst.msk [vmem:[#allocation3 + $0x34] sm:$0xff] %vm15774_vm6, %v15330_v22  ;;  %v5247_v13 = vmul.f32 %v5231_v3, %v21691_v31 }
 0x3e7   : > { %v5312_v36 = vld [vmem:[#allocation3 + $0x14] sm:$0xff]  ;;  %v5249_v52 = vmul.f32 %v5233_v33, %v21692_v1 }
 0x3e8   : > { %v17787_v23 = vcombine.high %v5310_v41, %v5312_v36  ;;  %v5313_v5 = vld [vmem:[#allocation3 + $0x1c] sm:$0xff]  ;;  %v15331_v17 = vpack.c.bf16 %v5247_v13, %v5246_v43  ;;  %v17797_v56 = vcombine.low %v5310_v41, %v5312_v36  ;;  %v17801_v46 = vpack.c.bf16 %v5247_v13, %v5243_v50  ;;  %v15465_v13 = vld [vmem:[%s21536_s3] sm:$0xff]  }
 0x3e9   : > { %v17791_v39 = vcombine.low %v5311_v24, %v5313_v5  ;;  %v15332_v16 = vpack.c.bf16 %v5249_v52, %v5248_v44  ;;  %v17805_v7 = vcombine.high %v5311_v24, %v5313_v5 }
 0x3ea   : > { %5367 = vrot.lane.b32.xlu0 %v17787_v23, %s15600_s26  ;;  %5304 = vst [vmem:[#allocation3 + $0x40] sm:$0xff] %v15331_v17 }
 0x3eb   : > { %5369 = vrot.lane.b32.xlu1 %v17791_v39, %s15600_s26  ;;  %5305 = vst.msk [vmem:[#allocation3 + $0x48] sm:$0xff] %vm15774_vm6, %v15332_v16  ;;  %v15466_v16 = vld [vmem:[%s21536_s3 + $0x8] sm:$0xff]  }
 0x3ed   : > { %v5314_v38 = vld [vmem:[#allocation3 + $0x28] sm:$0xff]  ;;  %v5315_v6 = vld [vmem:[#allocation3 + $0x30] sm:$0xff] }
 0x3ee   : > { %5365 = vrot.lane.b32.xlu0 %v17797_v56, %s15600_s26 }
 0x3ef   : > { %5371 = vrot.lane.b32.xlu1 %v17805_v7, %s15600_s26 }
 0x3f1   : > { %v5316_v20 = vld [vmem:[#allocation3 + $0x3c] sm:$0xff] }
 0x3f2   : > { %5519 = vrot.lane.b32.xlu0 %v17787_v23, %s15601_s29  ;;  %v5317_v57 = vld [vmem:[#allocation3 + $0x44] sm:$0xff]  ;;  %v17815_v32 = vcombine.high %v5314_v38, %v5316_v20  ;;  %v17823_v0 = vcombine.low %v5314_v38, %v5316_v20  ;;  %v17995_v41 = vld [vmem:[#allocation3 + $0x38] ss:$20 sps:$4 sm:$0xff]  }
 0x3f3   : > { %5521 = vrot.lane.b32.xlu1 %v17791_v39, %s15601_s29  ;;  %v17817_v48 = vcombine.low %v5315_v6, %v5317_v57  ;;  %v17825_v60 = vcombine.high %v5315_v6, %v5317_v57  ;;  %v18031_v6 = vld [vmem:[#allocation3 + $0x10] ss:$20 sps:$4 sm:$0xff]  }
 0x3f6   : > { %5375 = vrot.lane.b32.xlu0 %v17815_v32, %s15600_s26 }
 0x3f7   : > { %5377 = vrot.lane.b32.xlu1 %v17817_v48, %s15600_s26 }
 0x3fa   : > { %5373 = vrot.lane.b32.xlu0 %v17823_v0, %s15600_s26 }
 0x3fb   : > { %5379 = vrot.lane.b32.xlu1 %v17825_v60, %s15600_s26 }
 0x3fe   : > { %5517 = vrot.lane.b32.xlu0 %v17797_v56, %s15601_s29 }
 0x3ff   : > { %5523 = vrot.lane.b32.xlu1 %v17805_v7, %s15601_s29 }
 0x402   : > { %5676 = vrot.lane.b32.xlu0 %v17787_v23, %s15602_s30 }
 0x403   : > { %5678 = vrot.lane.b32.xlu1 %v17791_v39, %s15602_s30 }
 0x406   : > { %5527 = vrot.lane.b32.xlu0 %v17815_v32, %s15601_s29 }
 0x407   : > { %5529 = vrot.lane.b32.xlu1 %v17817_v48, %s15601_s29 }
 0x40a   : > { %5525 = vrot.lane.b32.xlu0 %v17823_v0, %s15601_s29 }
 0x40b   : > { %5531 = vrot.lane.b32.xlu1 %v17825_v60, %s15601_s29 }
 0x40e   : > { %5674 = vrot.lane.b32.xlu0 %v17797_v56, %s15602_s30 }
 0x40f   : > { %5680 = vrot.lane.b32.xlu1 %v17805_v7, %s15602_s30 }
 0x412   : > { %5849 = vrot.lane.b32.xlu0 %v17787_v23, %s15603_s9 }
 0x413   : > { %5851 = vrot.lane.b32.xlu1 %v17791_v39, %s15603_s9 }
 0x416   : > { %5684 = vrot.lane.b32.xlu0 %v17815_v32, %s15602_s30 }
 0x417   : > { %5686 = vrot.lane.b32.xlu1 %v17817_v48, %s15602_s30 }
 0x41a   : > { %5682 = vrot.lane.b32.xlu0 %v17823_v0, %s15602_s30 }
 0x41b   : > { %5688 = vrot.lane.b32.xlu1 %v17825_v60, %s15602_s30 }
 0x41e   : > { %5847 = vrot.lane.b32.xlu0 %v17797_v56, %s15603_s9 }
 0x41f   : > { %5853 = vrot.lane.b32.xlu1 %v17805_v7, %s15603_s9 }
 0x422   : > { %6022 = vrot.lane.b32.xlu0 %v17787_v23, %s21605_s10 }
 0x423   : > { %6024 = vrot.lane.b32.xlu1 %v17791_v39, %s21605_s10 }
 0x426   : > { %5857 = vrot.lane.b32.xlu0 %v17815_v32, %s15603_s9 }
 0x427   : > { %5859 = vrot.lane.b32.xlu1 %v17817_v48, %s15603_s9 }
 0x42a   : > { %5855 = vrot.lane.b32.xlu0 %v17823_v0, %s15603_s9 }
 0x42b   : > { %5861 = vrot.lane.b32.xlu1 %v17825_v60, %s15603_s9 }
 0x42e   : > { %6020 = vrot.lane.b32.xlu0 %v17797_v56, %s21605_s10 }
 0x42f   : > { %6026 = vrot.lane.b32.xlu1 %v17805_v7, %s21605_s10 }
 0x432   : > { %6195 = vrot.lane.b32.xlu0 %v17787_v23, %s21603_s11 }
 0x433   : > { %6197 = vrot.lane.b32.xlu1 %v17791_v39, %s21603_s11 }
 0x436   : > { %6030 = vrot.lane.b32.xlu0 %v17815_v32, %s21605_s10 }
 0x437   : > { %6032 = vrot.lane.b32.xlu1 %v17817_v48, %s21605_s10 }
 0x43a   : > { %6028 = vrot.lane.b32.xlu0 %v17823_v0, %s21605_s10 }
 0x43b   : > { %6034 = vrot.lane.b32.xlu1 %v17825_v60, %s21605_s10 }
 0x43e   : > { %6193 = vrot.lane.b32.xlu0 %v17797_v56, %s21603_s11 }
 0x43f   : > { %6199 = vrot.lane.b32.xlu1 %v17805_v7, %s21603_s11 }
 0x442   : > { %6368 = vrot.lane.b32.xlu0 %v17787_v23, %s21601_s12 }
 0x443   : > { %6370 = vrot.lane.b32.xlu1 %v17791_v39, %s21601_s12 }
 0x446   : > { %6203 = vrot.lane.b32.xlu0 %v17815_v32, %s21603_s11 }
 0x447   : > { %6205 = vrot.lane.b32.xlu1 %v17817_v48, %s21603_s11 }
 0x44a   : > { %6201 = vrot.lane.b32.xlu0 %v17823_v0, %s21603_s11 }
 0x44b   : > { %6207 = vrot.lane.b32.xlu1 %v17825_v60, %s21603_s11 }
 0x44e   : > { %6366 = vrot.lane.b32.xlu0 %v17797_v56, %s21601_s12 }
 0x44f   : > { %6372 = vrot.lane.b32.xlu1 %v17805_v7, %s21601_s12 }
 0x452   : > { %6541 = vrot.lane.b32.xlu0 %v17787_v23, %s21599_s13 }
 0x453   : > { %6543 = vrot.lane.b32.xlu1 %v17791_v39, %s21599_s13 }
 0x456   : > { %6376 = vrot.lane.b32.xlu0 %v17815_v32, %s21601_s12 }
 0x457   : > { %6378 = vrot.lane.b32.xlu1 %v17817_v48, %s21601_s12 }
 0x45a   : > { %6374 = vrot.lane.b32.xlu0 %v17823_v0, %s21601_s12 }
 0x45b   : > { %6380 = vrot.lane.b32.xlu1 %v17825_v60, %s21601_s12  ;;  %s21823_s12 = smov 19  }
 0x45c   : > { %v5368_v8 = vpop.permute.xlu0 %5367 }
 0x45d   : > { %v5370_v18 = vpop.permute.xlu1 %5369 }
 0x45e   : > { %6539 = vrot.lane.b32.xlu0 %v17797_v56, %s21599_s13  ;;  %v5382_v53 = vsel %vm811_vm7, %v5368_v8, %v5370_v18 }
 0x45f   : > { %6545 = vrot.lane.b32.xlu1 %v17805_v7, %s21599_s13 }
 0x460   : > { %v5366_v59 = vpop.permute.xlu0 %5365 }
 0x461   : > { %v5372_v26 = vpop.permute.xlu1 %5371  ;;  %v5381_v61 = vsel %vm811_vm7, %v5366_v59, %v5368_v8 }
 0x462   : > { %6714 = vrot.lane.b32.xlu0 %v17787_v23, %s21597_s14  ;;  %v5383_v12 = vsel %vm811_vm7, %v5370_v18, %v5372_v26 }
 0x463   : > { %6716 = vrot.lane.b32.xlu1 %v17791_v39, %s21597_s14 }
 0x464   : > { %v17935_v34 = vpop.permute.xlu0 %5519 }
 0x465   : > { %v17937_v11 = vpop.permute.xlu1 %5521 }
 0x466   : > { %6549 = vrot.lane.b32.xlu0 %v17815_v32, %s21599_s13  ;;  %v5534_v49 = vsel %vm965_vm9, %v17935_v34, %v17937_v11 }
 0x467   : > { %6551 = vrot.lane.b32.xlu1 %v17817_v48, %s21599_s13 }
 0x468   : > { %v5376_v15 = vpop.permute.xlu0 %5375 }
 0x469   : > { %v5378_v51 = vpop.permute.xlu1 %5377 }
 0x46a   : > { %6547 = vrot.lane.b32.xlu0 %v17823_v0, %s21599_s13  ;;  %v5385_v58 = vsel %vm811_vm7, %v5376_v15, %v5378_v51 }
 0x46b   : > { %6553 = vrot.lane.b32.xlu1 %v17825_v60, %s21599_s13  ;;  %5413 = vmatprep.subr.bf16.mxu0 %v5385_v58  ;;  %s21824_s13 = smov 18  }
 0x46c   : > { %v5374_v35 = vpop.permute.xlu0 %5373 }
 0x46d   : > { %v5384_v29 = vsel %vm811_vm7, %v5374_v35, %v5376_v15  ;;  %v5380_v28 = vpop.permute.xlu1 %5379 }
 0x46e   : > { %5466 = vmatprep.subr.bf16.mxu1 %v5380_v28  ;;  %6712 = vrot.lane.b32.xlu0 %v17797_v56, %s21597_s14  ;;  %v5386_v14 = vsel %vm811_vm7, %v5378_v51, %v5380_v28 }
 0x46f   : > { %5414 = vmatpush1.bf16.msra.mxu0 %v5384_v29  ;;  %6718 = vrot.lane.b32.xlu1 %v17805_v7, %s21597_s14 }
 0x470   : > { %5415 = vmatprep.subr.bf16.mxu0 %v5382_v53  ;;  %5467 = vmatpush1.bf16.msra.mxu1 %v5386_v14  ;;  %v5518_v55 = vpop.permute.xlu0 %5517  ;;  %v15469_v14 = vld [vmem:[%s21536_s3 + $0x28] sm:$0xff]  }
 0x471   : > { %5468 = vmatprep.subr.bf16.mxu1 %v5372_v26  ;;  %v5524_v45 = vpop.permute.xlu1 %5523  ;;  %v5533_v36 = vsel %vm965_vm9, %v5518_v55, %v17935_v34 }
 0x472   : > { %6887 = vrot.lane.b32.xlu0 %v17787_v23, %s21595_s17  ;;  %v5535_v52 = vsel %vm965_vm9, %v17937_v11, %v5524_v45  ;;  %v15468_v11 = vld [vmem:[%s21536_s3 + $0x20] sm:$0xff]  }
 0x473   : > { %5416 = vmatpush1.bf16.msra.mxu0 %v5381_v61  ;;  %6889 = vrot.lane.b32.xlu1 %v17791_v39, %s21595_s17 }
 0x474   : > { %5469 = vmatpush1.bf16.msra.mxu1 %v5383_v12  ;;  %v17964_v4 = vpop.permute.xlu0 %5676 }
 0x475   : > { %v17966_v21 = vpop.permute.xlu1 %5678 }
 0x476   : > { %14768 = vmatmul.mubr.msk.bf16.vlgmr.msra.gmra.mxu0 %vm826_vm8, %v15462_v10  ;;  %6722 = vrot.lane.b32.xlu0 %v17815_v32, %s21597_s14  ;;  %v5691_v18 = vsel %vm1123_vm10, %v17964_v4, %v17966_v21 }
 0x477   : > { %14770 = vmatmul.mubr.msk.bf16.vlgmr.msra.gmra.mxu1 %vm826_vm8, %v15462_v10  ;;  %6724 = vrot.lane.b32.xlu1 %v17817_v48, %s21597_s14 }
 0x478   : > { %v5528_v37 = vpop.permute.xlu0 %5527  ;;  %5443 = vmatprep.mubr.bf16.mxu0 %v21694_v2  ;;  %5496 = vmatprep.mubr.bf16.mxu1 %v21694_v2 }
 0x479   : > { %v5530_v50 = vpop.permute.xlu1 %5529 }
 0x47a   : > { %6720 = vrot.lane.b32.xlu0 %v17823_v0, %s21597_s14  ;;  %v5537_v54 = vsel %vm965_vm9, %v5528_v37, %v5530_v50 }
 0x47b   : > { %6726 = vrot.lane.b32.xlu1 %v17825_v60, %s21597_s14  ;;  %5565 = vmatprep.subr.bf16.mxu0 %v5537_v54 }
 0x47c   : > { %v5526_v19 = vpop.permute.xlu0 %5525 }
 0x47d   : > { %v5536_v9 = vsel %vm965_vm9, %v5526_v19, %v5528_v37  ;;  %v5532_v22 = vpop.permute.xlu1 %5531 }
 0x47e   : > { %14769 = vmatmul.mubr.msk.bf16.gmra.mxu0 %vm826_vm8, %v15463_v47  ;;  %5618 = vmatprep.subr.bf16.mxu1 %v5532_v22  ;;  %v5538_v30 = vsel %vm965_vm9, %v5530_v50, %v5532_v22 }
 0x47f   : > { %14771 = vmatmul.mubr.msk.bf16.gmra.mxu1 %vm826_vm8, %v15463_v47  ;;  %6885 = vrot.lane.b32.xlu0 %v17797_v56, %s21595_s17 }
 0x480   : > { %5566 = vmatpush1.bf16.msra.mxu0 %v5536_v9  ;;  %6891 = vrot.lane.b32.xlu1 %v17805_v7, %s21595_s17  ;;  %v5675_v3 = vpop.permute.xlu0 %5674 }
 0x481   : > { %5567 = vmatprep.subr.bf16.mxu0 %v5534_v49  ;;  %5619 = vmatpush1.bf16.msra.mxu1 %v5538_v30  ;;  %v5681_v33 = vpop.permute.xlu1 %5680  ;;  %v5690_v26 = vsel %vm1123_vm10, %v5675_v3, %v17964_v4  ;;  %v7467_v30 = vld [vmem:[#allocation3 + $0x48] sm:$0xff]  ;;  %v7465_v49 = vld [vmem:[#allocation3 + $0x34] sm:$0xff] }
 0x482   : > { %5620 = vmatprep.subr.bf16.mxu1 %v5524_v45  ;;  %5585 = vmatprep.mubr.bf16.mxu0 %v21694_v2  ;;  %v5692_v15 = vsel %vm1123_vm10, %v17966_v21, %v5681_v33 }
 0x483   : > { %6895 = vrot.lane.b32.xlu0 %v17815_v32, %s21595_s17  ;;  %5638 = vmatprep.mubr.bf16.mxu1 %v21694_v2 }
 0x484   : > { %5568 = vmatpush1.bf16.msra.mxu0 %v5533_v36  ;;  %7130 = vrot.lane.b32.xlu1 %v17995_v41, %s21593_s20  ;;  %v18010_v24 = vpop.permute.xlu0 %5849 }
 0x485   : > { %5621 = vmatpush1.bf16.msra.mxu1 %v5535_v52  ;;  %v18012_v5 = vpop.permute.xlu1 %5851 }
 0x486   : > { %v5864_v10 = vsel %vm1297_vm11, %v18010_v24, %v18012_v5 }
 0x487   : > { %14774 = vmatmul.mubr.msk.bf16.vlgmr.msra.gmra.mxu0 %vm826_vm8, %v15465_v13  ;;  %6893 = vrot.lane.b32.xlu0 %v17823_v0, %s21595_s17 }
 0x488   : > { %14776 = vmatmul.mubr.msk.bf16.vlgmr.msra.gmra.mxu1 %vm826_vm8, %v15465_v13  ;;  %6897 = vrot.lane.b32.xlu1 %v17817_v48, %s21595_s17  ;;  %v5685_v43 = vpop.permute.xlu0 %5684 }
 0x489   : > { %v5687_v44 = vpop.permute.xlu1 %5686  ;;  %5595 = vmatprep.mubr.bf16.mxu0 %v21694_v2  ;;  %5648 = vmatprep.mubr.bf16.mxu1 %v21694_v2 }
 0x48a   : > { %v5694_v17 = vsel %vm1123_vm10, %v5685_v43, %v5687_v44 }
 0x48b   : > { %7116 = vrot.lane.b32.xlu0 %v17791_v39, %s21593_s20  ;;  %5722 = vmatprep.subr.bf16.mxu0 %v5694_v17 }
 0x48c   : > { %6899 = vrot.lane.b32.xlu1 %v17825_v60, %s21595_s17  ;;  %v5683_v38 = vpop.permute.xlu0 %5682  ;;  %s21720_s17 = smov 86  }
 0x48d   : > { %v5693_v20 = vsel %vm1123_vm10, %v5683_v38, %v5685_v43  ;;  %v5689_v57 = vpop.permute.xlu1 %5688 }
 0x48e   : > { %5775 = vmatprep.subr.bf16.mxu1 %v5689_v57  ;;  %5723 = vmatpush1.bf16.msra.mxu0 %v5693_v20  ;;  %v5695_v8 = vsel %vm1123_vm10, %v5687_v44, %v5689_v57  ;;  %v7461_v44 = vld [vmem:[#allocation3 + $0xc] sm:$0xff]  ;;  %v15473_v20 = vld [vmem:[%s21536_s3 + $0x48] sm:$0xff]  }
 0x48f   : > { %14775 = vmatmul.mubr.msk.bf16.gmra.mxu0 %vm826_vm8, %v15466_v16  ;;  %7120 = vrot.lane.b32.xlu0 %v18031_v6, %s21593_s20 }
 0x490   : > { %14777 = vmatmul.mubr.msk.bf16.gmra.mxu1 %vm826_vm8, %v15466_v16  ;;  %7114 = vrot.lane.b32.xlu1 %v17787_v23, %s21593_s20  ;;  %v5848_v59 = vpop.permute.xlu0 %5847 }
 0x491   : > { %5724 = vmatprep.subr.bf16.mxu0 %v5691_v18  ;;  %5776 = vmatpush1.bf16.msra.mxu1 %v5695_v8  ;;  %v5854_v34 = vpop.permute.xlu1 %5853  ;;  %v5863_v4 = vsel %vm1297_vm11, %v5848_v59, %v18010_v24  ;;  %v18150_v24 = vcombine.high %v7465_v49, %v7467_v30 }
 0x492   : > { %5777 = vmatprep.subr.bf16.mxu1 %v5681_v33  ;;  %5725 = vmatpush1.bf16.msra.mxu0 %v5690_v26  ;;  %v5865_v37 = vsel %vm1297_vm11, %v18012_v5, %v5854_v34  ;;  %v7463_v5 = vld [vmem:[#allocation3 + $0x20] sm:$0xff] }
 0x493   : > { %7124 = vrot.lane.b32.xlu0 %v17815_v32, %s21593_s20  ;;  %5742 = vmatprep.mubr.bf16.mxu0 %v21694_v2  ;;  %v18160_v16 = vcombine.low %v7461_v44, %v7463_v5  ;;  %v18171_v18 = vcombine.high %v7461_v44, %v7463_v5 }
 0x494   : > { %7118 = vrot.lane.b32.xlu1 %v17805_v7, %s21593_s20  ;;  %v18055_v51 = vpop.permute.xlu0 %6022  ;;  %5795 = vmatprep.mubr.bf16.mxu1 %v21694_v2 }
 0x495   : > { %5778 = vmatpush1.bf16.msra.mxu1 %v5692_v15  ;;  %v18058_v58 = vpop.permute.xlu1 %6024 }
 0x497   : > { %14784 = vmatmul.mubr.msk.bf16.vlgmr.msra.gmra.mxu0 %vm826_vm8, %v15468_v11  ;;  %7128 = vrot.lane.b32.xlu0 %v17825_v60, %s21593_s20 }
 0x498   : > { %14786 = vmatmul.mubr.msk.bf16.vlgmr.msra.gmra.mxu1 %vm826_vm8, %v15468_v11  ;;  %7126 = vrot.lane.b32.xlu1 %v17817_v48, %s21593_s20  ;;  %v5858_v35 = vpop.permute.xlu0 %5857 }
 0x499   : > { %v5860_v29 = vpop.permute.xlu1 %5859  ;;  %5752 = vmatprep.mubr.bf16.mxu0 %v21694_v2  ;;  %5805 = vmatprep.mubr.bf16.mxu1 %v21694_v2 }
 0x49a   : > { %v5867_v28 = vsel %vm1297_vm11, %v5858_v35, %v5860_v29 }
 0x49b   : > { %7122 = vrot.lane.b32.xlu0 %v17823_v0, %s21593_s20  ;;  %5895 = vmatprep.subr.bf16.mxu0 %v5867_v28 }
 0x49c   : > { %7112 = vrot.lane.b32.xlu1 %v17797_v56, %s21593_s20  ;;  %v5856_v53 = vpop.permute.xlu0 %5855  ;;  %s21714_s20 = smov 87  }
 0x49d   : > { %v5866_v55 = vsel %vm1297_vm11, %v5856_v53, %v5858_v35  ;;  %v5862_v45 = vpop.permute.xlu1 %5861 }
 0x49e   : > { %5948 = vmatprep.subr.bf16.mxu1 %v5862_v45  ;;  %5896 = vmatpush1.bf16.msra.mxu0 %v5866_v55  ;;  %v5868_v61 = vsel %vm1297_vm11, %v5860_v29, %v5862_v45  ;;  %v15475_v55 = vld [vmem:[%s21536_s3 + $0x58] sm:$0xff]  }
 0x49f   : > { %14785 = vmatmul.mubr.msk.bf16.gmra.mxu0 %vm826_vm8, %v15469_v14  ;;  %7295 = vrot.lane.b32.xlu0 %v17791_v39, %s21589_s19  ;;  %v15470_v39 = vld [vmem:[%s21536_s3 + $0x30] sm:$0xff]  }
 0x4a0   : > { %14787 = vmatmul.mubr.msk.bf16.gmra.mxu1 %vm826_vm8, %v15469_v14  ;;  %7309 = vrot.lane.b32.xlu1 %v17995_v41, %s21589_s19  ;;  %v6021_v12 = vpop.permute.xlu0 %6020  ;;  %v18133_v41 = vcombine.low %v7465_v49, %v7467_v30 }
 0x4a1   : > { %5897 = vmatprep.subr.bf16.mxu0 %v5864_v10  ;;  %5949 = vmatpush1.bf16.msra.mxu1 %v5868_v61  ;;  %v6027_v21 = vpop.permute.xlu1 %6026  ;;  %v6036_v3 = vsel %vm1471_vm12, %v6021_v12, %v18055_v51 }
 0x4a2   : > { %5950 = vmatprep.subr.bf16.mxu1 %v5854_v34  ;;  %5898 = vmatpush1.bf16.msra.mxu0 %v5863_v4  ;;  %v6038_v36 = vsel %vm1471_vm12, %v18058_v58, %v6027_v21 }
 0x4a3   : > { %7303 = vrot.lane.b32.xlu0 %v17815_v32, %s21589_s19  ;;  %5915 = vmatprep.mubr.bf16.mxu0 %v21694_v2 }
 0x4a4   : > { %7293 = vrot.lane.b32.xlu1 %v17787_v23, %s21589_s19  ;;  %v18099_v50 = vpop.permute.xlu0 %6195  ;;  %5968 = vmatprep.mubr.bf16.mxu1 %v21694_v2 }
 0x4a5   : > { %5951 = vmatpush1.bf16.msra.mxu1 %v5865_v37  ;;  %v18102_v54 = vpop.permute.xlu1 %6197 }
 0x4a6   : > { %v6210_v26 = vsel %vm1645_vm13, %v18099_v50, %v18102_v54 }
 0x4a7   : > { %14794 = vmatmul.mubr.msk.bf16.vlgmr.msra.gmra.mxu0 %vm826_vm8, %v15470_v39  ;;  %7307 = vrot.lane.b32.xlu0 %v17825_v60, %s21589_s19  ;;  %v15471_v60 = vld [vmem:[%s21536_s3 + $0x38] sm:$0xff]  }
 0x4a8   : > { %14796 = vmatmul.mubr.msk.bf16.vlgmr.msra.gmra.mxu1 %vm826_vm8, %v15470_v39  ;;  %7305 = vrot.lane.b32.xlu1 %v17817_v48, %s21589_s19  ;;  %v6031_v23 = vpop.permute.xlu0 %6030 }
 0x4a9   : > { %v6033_v32 = vpop.permute.xlu1 %6032  ;;  %5925 = vmatprep.mubr.bf16.mxu0 %v21694_v2  ;;  %5978 = vmatprep.mubr.bf16.mxu1 %v21694_v2 }
 0x4aa   : > { %v6040_v47 = vsel %vm1471_vm12, %v6031_v23, %v6033_v32 }
 0x4ab   : > { %7301 = vrot.lane.b32.xlu0 %v17823_v0, %s21589_s19  ;;  %6068 = vmatprep.subr.bf16.mxu0 %v6040_v47 }
 0x4ac   : > { %7297 = vrot.lane.b32.xlu1 %v17805_v7, %s21589_s19  ;;  %v6029_v48 = vpop.permute.xlu0 %6028  ;;  %v6037_v7 = vsel %vm1471_vm12, %v18055_v51, %v18058_v58  ;;  %v15474_v51 = vld [vmem:[%s21536_s3 + $0x50] sm:$0xff]  }
 0x4ad   : > { %v6039_v19 = vsel %vm1471_vm12, %v6029_v48, %v6031_v23  ;;  %v6035_v9 = vpop.permute.xlu1 %6034 }
 0x4ae   : > { %6121 = vmatprep.subr.bf16.mxu1 %v6035_v9  ;;  %6069 = vmatpush1.bf16.msra.mxu0 %v6039_v19  ;;  %v6041_v22 = vsel %vm1471_vm12, %v6033_v32, %v6035_v9  ;;  %v15477_v19 = vld [vmem:[%s21536_s3 + $0x68] sm:$0xff]  }
 0x4af   : > { %14795 = vmatmul.mubr.msk.bf16.gmra.mxu0 %vm826_vm8, %v15471_v60  ;;  %7299 = vrot.lane.b32.xlu0 %v18031_v6, %s21589_s19 }
 0x4b0   : > { %14797 = vmatmul.mubr.msk.bf16.gmra.mxu1 %vm826_vm8, %v15471_v60  ;;  %7291 = vrot.lane.b32.xlu1 %v17797_v56, %s21589_s19  ;;  %v6194_v0 = vpop.permute.xlu0 %6193  ;;  %v15472_v56 = vld [vmem:[%s21536_s3 + $0x40] sm:$0xff]   ;;  %s21708_s19 = smov 88  }
 0x4b1   : > { %6070 = vmatprep.subr.bf16.mxu0 %v6037_v7  ;;  %6122 = vmatpush1.bf16.msra.mxu1 %v6041_v22  ;;  %v6200_v33 = vpop.permute.xlu1 %6199  ;;  %v6209_v11 = vsel %vm1645_vm13, %v6194_v0, %v18099_v50  ;;  %v15476_v50 = vld [vmem:[%s21536_s3 + $0x60] sm:$0xff]  }
 0x4b2   : > { %6123 = vmatprep.subr.bf16.mxu1 %v6027_v21  ;;  %6071 = vmatpush1.bf16.msra.mxu0 %v6036_v3  ;;  %v6211_v58 = vsel %vm1645_vm13, %v18102_v54, %v6200_v33 }
 0x4b3   : > { %7663 = vrot.lane.b32.xlu0 %v17773_v42, %s21586_s25  ;;  %6088 = vmatprep.mubr.bf16.mxu0 %v21694_v2 }
 0x4b4   : > { %7673 = vrot.lane.b32.xlu1 %v18133_v41, %s21586_s25  ;;  %v18145_v13 = vpop.permute.xlu0 %6368  ;;  %6141 = vmatprep.mubr.bf16.mxu1 %v21694_v2 }
 0x4b5   : > { %6124 = vmatpush1.bf16.msra.mxu1 %v6038_v36  ;;  %v18148_v52 = vpop.permute.xlu1 %6370 }
 0x4b6   : > { %v6383_v4 = vsel %vm1819_vm14, %v18145_v13, %v18148_v52 }
 0x4b7   : > { %14804 = vmatmul.mubr.msk.bf16.vlgmr.msra.gmra.mxu0 %vm826_vm8, %v15472_v56  ;;  %7671 = vrot.lane.b32.xlu0 %v17801_v46, %s21586_s25 }
 0x4b8   : > { %14806 = vmatmul.mubr.msk.bf16.vlgmr.msra.gmra.mxu1 %vm826_vm8, %v15472_v56  ;;  %7675 = vrot.lane.b32.xlu1 %v18150_v24, %s21586_s25  ;;  %v6204_v43 = vpop.permute.xlu0 %6203  ;;  %v15478_v56 = vld [vmem:[%s21536_s3 + $0x70] sm:$0xff]  }
 0x4b9   : > { %v6206_v17 = vpop.permute.xlu1 %6205  ;;  %6098 = vmatprep.mubr.bf16.mxu0 %v21694_v2  ;;  %6151 = vmatprep.mubr.bf16.mxu1 %v21694_v2 }
 0x4ba   : > { %v6213_v38 = vsel %vm1645_vm13, %v6204_v43, %v6206_v17 }
 0x4bb   : > { %7669 = vrot.lane.b32.xlu0 %v17799_v27, %s21586_s25  ;;  %6241 = vmatprep.subr.bf16.mxu0 %v6213_v38 }
 0x4bc   : > { %7665 = vrot.lane.b32.xlu1 %v18160_v16, %s21586_s25  ;;  %v6202_v57 = vpop.permute.xlu0 %6201 }
 0x4bd   : > { %v6212_v6 = vsel %vm1645_vm13, %v6202_v57, %v6204_v43  ;;  %v6208_v8 = vpop.permute.xlu1 %6207 }
 0x4be   : > { %6294 = vmatprep.subr.bf16.mxu1 %v6208_v8  ;;  %6242 = vmatpush1.bf16.msra.mxu0 %v6212_v6  ;;  %v6214_v59 = vsel %vm1645_vm13, %v6206_v17, %v6208_v8  ;;  %v15479_v17 = vld [vmem:[%s21536_s3 + $0x78] sm:$0xff]  }
 0x4bf   : > { %14805 = vmatmul.mubr.msk.bf16.gmra.mxu0 %vm826_vm8, %v15473_v20  ;;  %7661 = vrot.lane.b32.xlu0 %v17771_v63, %s21586_s25 }
 0x4c0   : > { %14807 = vmatmul.mubr.msk.bf16.gmra.mxu1 %vm826_vm8, %v15473_v20  ;;  %7667 = vrot.lane.b32.xlu1 %v18171_v18, %s21586_s25  ;;  %v6367_v34 = vpop.permute.xlu0 %6366  ;;  %s21702_s25 = smov 89  }
 0x4c1   : > { %6243 = vmatprep.subr.bf16.mxu0 %v6210_v26  ;;  %6295 = vmatpush1.bf16.msra.mxu1 %v6214_v59  ;;  %v6373_v15 = vpop.permute.xlu1 %6372  ;;  %v6382_v39 = vsel %vm1819_vm14, %v6367_v34, %v18145_v13 }
 0x4c2   : > { %6296 = vmatprep.subr.bf16.mxu1 %v6200_v33  ;;  %6244 = vmatpush1.bf16.msra.mxu0 %v6209_v11  ;;  %v6384_v54 = vsel %vm1819_vm14, %v18148_v52, %v6373_v15  ;;  %v15480_v11 = vld [vmem:[%s21536_s3 + $0x80] sm:$0xff]  }
 0x4c3   : > { %7836 = vrot.lane.b32.xlu0 %v17773_v42, %s21584_s22  ;;  %6261 = vmatprep.mubr.bf16.mxu0 %v21694_v2 }
 0x4c4   : > { %7846 = vrot.lane.b32.xlu1 %v18133_v41, %s21584_s22  ;;  %v18195_v35 = vpop.permute.xlu0 %6541  ;;  %6314 = vmatprep.mubr.bf16.mxu1 %v21694_v2 }
 0x4c5   : > { %6297 = vmatpush1.bf16.msra.mxu1 %v6211_v58  ;;  %v18198_v29 = vpop.permute.xlu1 %6543 }
 0x4c6   : > { %v6556_v0 = vsel %vm1993_vm15, %v18195_v35, %v18198_v29 }
 0x4c7   : > { %14814 = vmatmul.mubr.msk.bf16.vlgmr.msra.gmra.mxu0 %vm826_vm8, %v15474_v51  ;;  %7844 = vrot.lane.b32.xlu0 %v17801_v46, %s21584_s22 }
 0x4c8   : > { %14816 = vmatmul.mubr.msk.bf16.vlgmr.msra.gmra.mxu1 %vm826_vm8, %v15474_v51  ;;  %7848 = vrot.lane.b32.xlu1 %v18150_v24, %s21584_s22  ;;  %v6377_v28 = vpop.permute.xlu0 %6376 }
 0x4c9   : > { %v6379_v14 = vpop.permute.xlu1 %6378  ;;  %6271 = vmatprep.mubr.bf16.mxu0 %v21694_v2  ;;  %6324 = vmatprep.mubr.bf16.mxu1 %v21694_v2 }
 0x4ca   : > { %v6386_v53 = vsel %vm1819_vm14, %v6377_v28, %v6379_v14 }
 0x4cb   : > { %7842 = vrot.lane.b32.xlu0 %v17799_v27, %s21584_s22  ;;  %6414 = vmatprep.subr.bf16.mxu0 %v6386_v53 }
 0x4cc   : > { %7838 = vrot.lane.b32.xlu1 %v18160_v16, %s21584_s22  ;;  %v6375_v45 = vpop.permute.xlu0 %6374 }
 0x4cd   : > { %v6385_v61 = vsel %vm1819_vm14, %v6375_v45, %v6377_v28  ;;  %v6381_v10 = vpop.permute.xlu1 %6380 }
 0x4ce   : > { %6467 = vmatprep.subr.bf16.mxu1 %v6381_v10  ;;  %6415 = vmatpush1.bf16.msra.mxu0 %v6385_v61  ;;  %v6387_v12 = vsel %vm1819_vm14, %v6379_v14, %v6381_v10  ;;  %v15481_v14 = vld [vmem:[%s21536_s3 + $0x88] sm:$0xff]  }
 0x4cf   : > { %14815 = vmatmul.mubr.msk.bf16.gmra.mxu0 %vm826_vm8, %v15475_v55  ;;  %7834 = vrot.lane.b32.xlu0 %v17771_v63, %s21584_s22 }
 0x4d0   : > { %14817 = vmatmul.mubr.msk.bf16.gmra.mxu1 %vm826_vm8, %v15475_v55  ;;  %7840 = vrot.lane.b32.xlu1 %v18171_v18, %s21584_s22  ;;  %v6540_v21 = vpop.permute.xlu0 %6539  ;;  %s21700_s22 = smov 90  }
 0x4d1   : > { %6416 = vmatprep.subr.bf16.mxu0 %v6383_v4  ;;  %6468 = vmatpush1.bf16.msra.mxu1 %v6387_v12  ;;  %v6546_v37 = vpop.permute.xlu1 %6545  ;;  %v6555_v3 = vsel %vm1993_vm15, %v6540_v21, %v18195_v35 }
 0x4d2   : > { %6469 = vmatprep.subr.bf16.mxu1 %v6373_v15  ;;  %6417 = vmatpush1.bf16.msra.mxu0 %v6382_v39  ;;  %v6557_v36 = vsel %vm1993_vm15, %v18198_v29, %v6546_v37  ;;  %v15482_v39 = vld [vmem:[%s21536_s3 + $0x90] sm:$0xff]  }
 0x4d3   : > { %8009 = vrot.lane.b32.xlu0 %v17773_v42, %s21695_s18  ;;  %6434 = vmatprep.mubr.bf16.mxu0 %v21694_v2 }
 0x4d4   : > { %8019 = vrot.lane.b32.xlu1 %v18133_v41, %s21695_s18  ;;  %v18239_v23 = vpop.permute.xlu0 %6714  ;;  %6487 = vmatprep.mubr.bf16.mxu1 %v21694_v2 }
 0x4d5   : > { %6470 = vmatpush1.bf16.msra.mxu1 %v6384_v54  ;;  %v18242_v32 = vpop.permute.xlu1 %6716 }
 0x4d6   : > { %v6729_v8 = vsel %vm2167_vm0, %v18239_v23, %v18242_v32 }
 0x4d7   : > { %14824 = vmatmul.mubr.msk.bf16.vlgmr.msra.gmra.mxu0 %vm826_vm8, %v15476_v50  ;;  %8017 = vrot.lane.b32.xlu0 %v17801_v46, %s21695_s18 }
 0x4d8   : > { %14826 = vmatmul.mubr.msk.bf16.vlgmr.msra.gmra.mxu1 %vm826_vm8, %v15476_v50  ;;  %8021 = vrot.lane.b32.xlu1 %v18150_v24, %s21695_s18  ;;  %v6550_v47 = vpop.permute.xlu0 %6549 }
 0x4d9   : > { %v6552_v60 = vpop.permute.xlu1 %6551  ;;  %6444 = vmatprep.mubr.bf16.mxu0 %v21694_v2  ;;  %6497 = vmatprep.mubr.bf16.mxu1 %v21694_v2 }
 0x4da   : > { %v6559_v48 = vsel %vm1993_vm15, %v6550_v47, %v6552_v60 }
 0x4db   : > { %8015 = vrot.lane.b32.xlu0 %v17799_v27, %s21695_s18  ;;  %6587 = vmatprep.subr.bf16.mxu0 %v6559_v48 }
 0x4dc   : > { %8011 = vrot.lane.b32.xlu1 %v18160_v16, %s21695_s18  ;;  %v6548_v9 = vpop.permute.xlu0 %6547 }
 0x4dd   : > { %v6558_v22 = vsel %vm1993_vm15, %v6548_v9, %v6550_v47  ;;  %v6554_v30 = vpop.permute.xlu1 %6553 }
 0x4de   : > { %6640 = vmatprep.subr.bf16.mxu1 %v6554_v30  ;;  %6588 = vmatpush1.bf16.msra.mxu0 %v6558_v22  ;;  %v6560_v7 = vsel %vm1993_vm15, %v6552_v60, %v6554_v30 }
 0x4df   : > { %14825 = vmatmul.mubr.msk.bf16.gmra.mxu0 %vm826_vm8, %v15477_v19  ;;  %8007 = vrot.lane.b32.xlu0 %v17771_v63, %s21695_s18 }
 0x4e0   : > { %14827 = vmatmul.mubr.msk.bf16.gmra.mxu1 %vm826_vm8, %v15477_v19  ;;  %8013 = vrot.lane.b32.xlu1 %v18171_v18, %s21695_s18  ;;  %v6713_v49 = vpop.permute.xlu0 %6712  ;;  %v15483_v19 = vld [vmem:[%s21536_s3 + $0x98] sm:$0xff]  }
 0x4e1   : > { %6589 = vmatprep.subr.bf16.mxu0 %v6556_v0  ;;  %6641 = vmatpush1.bf16.msra.mxu1 %v6560_v7  ;;  %v6719_v33 = vpop.permute.xlu1 %6718  ;;  %v6728_v59 = vsel %vm2167_vm0, %v6713_v49, %v18239_v23 }
 0x4e2   : > { %6642 = vmatprep.subr.bf16.mxu1 %v6546_v37  ;;  %6590 = vmatpush1.bf16.msra.mxu0 %v6555_v3  ;;  %v6730_v15 = vsel %vm2167_vm0, %v18242_v32, %v6719_v33 }
 0x4e3   : > { %8182 = vrot.lane.b32.xlu0 %v17773_v42, %s21696_s21  ;;  %6607 = vmatprep.mubr.bf16.mxu0 %v21694_v2 }
 0x4e4   : > { %8192 = vrot.lane.b32.xlu1 %v18133_v41, %s21696_s21  ;;  %v18283_v13 = vpop.permute.xlu0 %6887  ;;  %6660 = vmatprep.mubr.bf16.mxu1 %v21694_v2 }
 0x4e5   : > { %6643 = vmatpush1.bf16.msra.mxu1 %v6557_v36  ;;  %v18286_v52 = vpop.permute.xlu1 %6889  ;;  %v15484_v36 = vld [vmem:[%s21536_s3 + $0xa0] sm:$0xff]  }
 0x4e6   : > { %v6902_v45 = vsel %vm21592_vm1, %v18283_v13, %v18286_v52 }
 0x4e7   : > { %14834 = vmatmul.mubr.msk.bf16.vlgmr.msra.gmra.mxu0 %vm826_vm8, %v15478_v56  ;;  %8190 = vrot.lane.b32.xlu0 %v17801_v46, %s21696_s21 }
 0x4e8   : > { %14836 = vmatmul.mubr.msk.bf16.vlgmr.msra.gmra.mxu1 %vm826_vm8, %v15478_v56  ;;  %8194 = vrot.lane.b32.xlu1 %v18150_v24, %s21696_s21  ;;  %v6723_v5 = vpop.permute.xlu0 %6722 }
 0x4e9   : > { %v6725_v43 = vpop.permute.xlu1 %6724  ;;  %6617 = vmatprep.mubr.bf16.mxu0 %v21694_v2  ;;  %6670 = vmatprep.mubr.bf16.mxu1 %v21694_v2 }
 0x4ea   : > { %v6732_v44 = vsel %vm2167_vm0, %v6723_v5, %v6725_v43 }
 0x4eb   : > { %8188 = vrot.lane.b32.xlu0 %v17799_v27, %s21696_s21  ;;  %6760 = vmatprep.subr.bf16.mxu0 %v6732_v44 }
 0x4ec   : > { %8184 = vrot.lane.b32.xlu1 %v18160_v16, %s21696_s21  ;;  %v6721_v38 = vpop.permute.xlu0 %6720 }
 0x4ed   : > { %v6731_v20 = vsel %vm2167_vm0, %v6721_v38, %v6723_v5  ;;  %v6727_v57 = vpop.permute.xlu1 %6726 }
 0x4ee   : > { %6813 = vmatprep.subr.bf16.mxu1 %v6727_v57  ;;  %6761 = vmatpush1.bf16.msra.mxu0 %v6731_v20  ;;  %v6733_v6 = vsel %vm2167_vm0, %v6725_v43, %v6727_v57  ;;  %v15485_v20 = vld [vmem:[%s21536_s3 + $0xa8] sm:$0xff]  }
 0x4ef   : > { %14835 = vmatmul.mubr.msk.bf16.gmra.mxu0 %vm826_vm8, %v15479_v17  ;;  %8180 = vrot.lane.b32.xlu0 %v17771_v63, %s21696_s21 }
 0x4f0   : > { %14837 = vmatmul.mubr.msk.bf16.gmra.mxu1 %vm826_vm8, %v15479_v17  ;;  %8186 = vrot.lane.b32.xlu1 %v18171_v18, %s21696_s21 }
 0x4f1   : > { %6762 = vmatprep.subr.bf16.mxu0 %v6729_v8  ;;  %6814 = vmatpush1.bf16.msra.mxu1 %v6733_v6  ;;  %v6886_v26 = vpop.permute.xlu0 %6885 }
 0x4f2   : > { %6815 = vmatprep.subr.bf16.mxu1 %v6719_v33  ;;  %v6892_v34 = vpop.permute.xlu1 %6891  ;;  %6763 = vmatpush1.bf16.msra.mxu0 %v6728_v59  ;;  %v6901_v12 = vsel %vm21592_vm1, %v6886_v26, %v18283_v13 }
 0x4f3   : > { %8355 = vrot.lane.b32.xlu0 %v17773_v42, %s21697_s15  ;;  %6780 = vmatprep.mubr.bf16.mxu0 %v21694_v2  ;;  %v6903_v37 = vsel %vm21592_vm1, %v18286_v52, %v6892_v34 }
 0x4f4   : > { %8365 = vrot.lane.b32.xlu1 %v18133_v41, %s21697_s15  ;;  %6833 = vmatprep.mubr.bf16.mxu1 %v21694_v2 }
 0x4f5   : > { %6816 = vmatpush1.bf16.msra.mxu1 %v6730_v15  ;;  %v6896_v51 = vpop.permute.xlu0 %6895 }
 0x4f6   : > { %v7131_v58 = vpop.permute.xlu1 %7130 }
 0x4f7   : > { %14844 = vmatmul.mubr.msk.bf16.vlgmr.msra.gmra.mxu0 %vm826_vm8, %v15480_v11  ;;  %8363 = vrot.lane.b32.xlu0 %v17801_v46, %s21697_s15 }
 0x4f8   : > { %14846 = vmatmul.mubr.msk.bf16.vlgmr.msra.gmra.mxu1 %vm826_vm8, %v15480_v11  ;;  %8367 = vrot.lane.b32.xlu1 %v18150_v24, %s21697_s15 }
 0x4f9   : > { %v6894_v35 = vpop.permute.xlu0 %6893  ;;  %6790 = vmatprep.mubr.bf16.mxu0 %v21694_v2  ;;  %6843 = vmatprep.mubr.bf16.mxu1 %v21694_v2 }
 0x4fa   : > { %v6898_v29 = vpop.permute.xlu1 %6897  ;;  %v6904_v53 = vsel %vm21592_vm1, %v6894_v35, %v6896_v51 }
 0x4fb   : > { %8361 = vrot.lane.b32.xlu0 %v17799_v27, %s21697_s15  ;;  %v6905_v28 = vsel %vm21592_vm1, %v6896_v51, %v6898_v29 }
 0x4fc   : > { %8357 = vrot.lane.b32.xlu1 %v18160_v16, %s21697_s15  ;;  %6933 = vmatprep.subr.bf16.mxu0 %v6905_v28 }
 0x4fd   : > { %6934 = vmatpush1.bf16.msra.mxu0 %v6904_v53  ;;  %v7117_v55 = vpop.permute.xlu0 %7116  ;;  %v15487_v53 = vld [vmem:[%s21536_s3 + $0xb8] sm:$0xff]  }
 0x4fe   : > { %v6900_v61 = vpop.permute.xlu1 %6899  ;;  %6935 = vmatprep.subr.bf16.mxu0 %v6902_v45 }
 0x4ff   : > { %14845 = vmatmul.mubr.msk.bf16.gmra.mxu0 %vm826_vm8, %v15481_v14  ;;  %6986 = vmatprep.subr.bf16.mxu1 %v6900_v61  ;;  %v6906_v10 = vsel %vm21592_vm1, %v6898_v29, %v6900_v61 }
 0x500   : > { %14847 = vmatmul.mubr.msk.bf16.gmra.mxu1 %vm826_vm8, %v15481_v14  ;;  %8353 = vrot.lane.b32.xlu0 %v17771_v63, %s21697_s15 }
 0x501   : > { %8359 = vrot.lane.b32.xlu1 %v18171_v18, %s21697_s15  ;;  %6987 = vmatpush1.bf16.msra.mxu1 %v6906_v10  ;;  %v7121_v4 = vpop.permute.xlu0 %7120 }
 0x502   : > { %6936 = vmatpush1.bf16.msra.mxu0 %v6901_v12  ;;  %6988 = vmatprep.subr.bf16.mxu1 %v6892_v34  ;;  %v7115_v21 = vpop.permute.xlu1 %7114 }
 0x503   : > { %6953 = vmatprep.mubr.bf16.mxu0 %v21694_v2  ;;  %7006 = vmatprep.mubr.bf16.mxu1 %v21694_v2  ;;  %v7133_v0 = vsel %vm21591_vm2, %v7115_v21, %v7117_v55 }
 0x504   : > { %8528 = vrot.lane.b32.xlu0 %v17773_v42, %s21698_s24 }
 0x505   : > { %8538 = vrot.lane.b32.xlu1 %v18133_v41, %s21698_s24  ;;  %6989 = vmatpush1.bf16.msra.mxu1 %v6903_v37  ;;  %v7125_v50 = vpop.permute.xlu0 %7124 }
 0x506   : > { %v7119_v54 = vpop.permute.xlu1 %7118 }
 0x507   : > { %14854 = vmatmul.mubr.msk.bf16.vlgmr.msra.gmra.mxu0 %vm826_vm8, %v15482_v39  ;;  %v7135_v9 = vsel %vm21591_vm2, %v7119_v54, %v7121_v4  ;;  %v7134_v49 = vsel %vm21591_vm2, %v7117_v55, %v7119_v54  ;;  %v15488_v4 = vld [vmem:[%s21536_s3 + $0xc0] sm:$0xff]  }
 0x508   : > { %14856 = vmatmul.mubr.msk.bf16.vlgmr.msra.gmra.mxu1 %vm826_vm8, %v15482_v39  ;;  %8536 = vrot.lane.b32.xlu0 %v17801_v46, %s21698_s24 }
 0x509   : > { %8540 = vrot.lane.b32.xlu1 %v18150_v24, %s21698_s24  ;;  %v7129_v23 = vpop.permute.xlu0 %7128  ;;  %6963 = vmatprep.mubr.bf16.mxu0 %v21694_v2 }
 0x50a   : > { %v7127_v32 = vpop.permute.xlu1 %7126  ;;  %v7139_v47 = vsel %vm21591_vm2, %v7129_v23, %v7131_v58  ;;  %7016 = vmatprep.mubr.bf16.mxu1 %v21694_v2  ;;  %v15486_v58 = vld [vmem:[%s21536_s3 + $0xb0] sm:$0xff]  }
 0x50b   : > { %7219 = vmatprep.subr.bf16.mxu1 %v7139_v47  ;;  %v7137_v60 = vsel %vm21591_vm2, %v7125_v50, %v7127_v32  ;;  %v7138_v48 = vsel %vm21591_vm2, %v7127_v32, %v7129_v23 }
 0x50c   : > { %8534 = vrot.lane.b32.xlu0 %v17799_v27, %s21698_s24  ;;  %7166 = vmatprep.subr.bf16.mxu0 %v7137_v60 }
 0x50d   : > { %8530 = vrot.lane.b32.xlu1 %v18160_v16, %s21698_s24  ;;  %7220 = vmatpush1.bf16.msra.mxu1 %v7138_v48  ;;  %v7123_v22 = vpop.permute.xlu0 %7122 }
 0x50e   : > { %7221 = vmatprep.subr.bf16.mxu1 %v7135_v9  ;;  %v7136_v30 = vsel %vm21591_vm2, %v7123_v22, %v7125_v50  ;;  %v7113_v7 = vpop.permute.xlu1 %7112 }
 0x50f   : > { %14855 = vmatmul.mubr.msk.bf16.gmra.mxu0 %vm826_vm8, %v15483_v19  ;;  %v7132_v56 = vsel %vm21591_vm2, %v7113_v7, %v7115_v21 }
 0x510   : > { %14857 = vmatmul.mubr.msk.bf16.gmra.mxu1 %vm826_vm8, %v15483_v19  ;;  %8526 = vrot.lane.b32.xlu0 %v17771_v63, %s21698_s24 }
 0x511   : > { %7167 = vmatpush1.bf16.msra.mxu0 %v7136_v30  ;;  %8532 = vrot.lane.b32.xlu1 %v18171_v18, %s21698_s24  ;;  %v7296_v3 = vpop.permute.xlu0 %7295 }
 0x512   : > { %7168 = vmatprep.subr.bf16.mxu0 %v7133_v0  ;;  %7222 = vmatpush1.bf16.msra.mxu1 %v7134_v49  ;;  %v7310_v33 = vpop.permute.xlu1 %7309  ;;  %v15489_v49 = vld [vmem:[%s21536_s3 + $0xc8] sm:$0xff]  }
 0x513   : > { %7186 = vmatprep.mubr.bf16.mxu0 %v21694_v2  ;;  %7239 = vmatprep.mubr.bf16.mxu1 %v21694_v2 }
 0x514   : > { %8701 = vrot.lane.b32.xlu0 %v17773_v42, %s21699_s23 }
 0x515   : > { %7169 = vmatpush1.bf16.msra.mxu0 %v7132_v56  ;;  %8711 = vrot.lane.b32.xlu1 %v18133_v41, %s21699_s23  ;;  %v7304_v13 = vpop.permute.xlu0 %7303 }
 0x516   : > { %v7294_v52 = vpop.permute.xlu1 %7293 }
 0x517   : > { %v7312_v59 = vsel %vm21588_vm3, %v7294_v52, %v7296_v3 }
 0x518   : > { %14874 = vmatmul.mubr.msk.bf16.vlgmr.msra.gmra.mxu0 %vm826_vm8, %v15484_v36  ;;  %8709 = vrot.lane.b32.xlu0 %v17801_v46, %s21699_s23 }
 0x519   : > { %14876 = vmatmul.mubr.msk.bf16.vlgmr.msra.gmra.mxu1 %vm826_vm8, %v15484_v36  ;;  %8713 = vrot.lane.b32.xlu1 %v18150_v24, %s21699_s23  ;;  %v7308_v5 = vpop.permute.xlu0 %7307 }
 0x51a   : > { %v7306_v43 = vpop.permute.xlu1 %7305  ;;  %v7318_v44 = vsel %vm21588_vm3, %v7308_v5, %v7310_v33  ;;  %7196 = vmatprep.mubr.bf16.mxu0 %v21694_v2  ;;  %7249 = vmatprep.mubr.bf16.mxu1 %v21694_v2 }
 0x51b   : > { %7398 = vmatprep.subr.bf16.mxu1 %v7318_v44  ;;  %v7316_v17 = vsel %vm21588_vm3, %v7304_v13, %v7306_v43  ;;  %v7317_v38 = vsel %vm21588_vm3, %v7306_v43, %v7308_v5 }
 0x51c   : > { %8707 = vrot.lane.b32.xlu0 %v17799_v27, %s21699_s23  ;;  %7345 = vmatprep.subr.bf16.mxu0 %v7316_v17 }
 0x51d   : > { %8703 = vrot.lane.b32.xlu1 %v18160_v16, %s21699_s23  ;;  %7399 = vmatpush1.bf16.msra.mxu1 %v7317_v38  ;;  %v7302_v57 = vpop.permute.xlu0 %7301 }
 0x51e   : > { %v7315_v6 = vsel %vm21588_vm3, %v7302_v57, %v7304_v13  ;;  %v7298_v8 = vpop.permute.xlu1 %7297 }
 0x51f   : > { %7346 = vmatpush1.bf16.msra.mxu0 %v7315_v6  ;;  %v7313_v51 = vsel %vm21588_vm3, %v7296_v3, %v7298_v8  ;;  %v15490_v6 = vld [vmem:[%s21536_s3 + $0xd0] sm:$0xff]  }
 0x520   : > { %14875 = vmatmul.mubr.msk.bf16.gmra.mxu0 %vm826_vm8, %v15485_v20  ;;  %8699 = vrot.lane.b32.xlu0 %v17771_v63, %s21699_s23 }
 0x521   : > { %14877 = vmatmul.mubr.msk.bf16.gmra.mxu1 %vm826_vm8, %v15485_v20  ;;  %8705 = vrot.lane.b32.xlu1 %v18171_v18, %s21699_s23  ;;  %v7300_v26 = vpop.permute.xlu0 %7299 }
 0x522   : > { %7347 = vmatprep.subr.bf16.mxu0 %v7312_v59  ;;  %v7292_v34 = vpop.permute.xlu1 %7291  ;;  %v7314_v11 = vsel %vm21588_vm3, %v7298_v8, %v7300_v26  ;;  %7365 = vmatprep.mubr.bf16.mxu0 %v21694_v2 }
 0x523   : > { %v7311_v15 = vsel %vm21588_vm3, %v7292_v34, %v7294_v52  ;;  %7400 = vmatprep.subr.bf16.mxu1 %v7314_v11  ;;  %7418 = vmatprep.mubr.bf16.mxu1 %v21694_v2  ;;  %vm21701_vm3 = vcmask 1039360  }
 0x524   : > { %8874 = vrot.lane.b32.xlu0 %v17773_v42, %s21700_s22  ;;  %7348 = vmatpush1.bf16.msra.mxu0 %v7311_v15  ;;  %vm21703_vm2 = vmmov %vm21701_vm3 }
 0x525   : > { %8884 = vrot.lane.b32.xlu1 %v18133_v41, %s21700_s22  ;;  %7401 = vmatpush1.bf16.msra.mxu1 %v7313_v51  ;;  %v7664_v35 = vpop.permute.xlu0 %7663  ;;  %vm21705_vm1 = vmmov %vm21703_vm2 }
 0x526   : > { %7536 = vmatprep.subr.bf16.mxu0 %v17801_v46  ;;  %7589 = vmatprep.subr.bf16.mxu1 %v18150_v24  ;;  %v7674_v29 = vpop.permute.xlu1 %7673 }
 0x528   : > { %8882 = vrot.lane.b32.xlu0 %v17801_v46, %s21700_s22  ;;  %14884 = vmatmul.mubr.msk.bf16.vlgmr.msra.gmra.mxu0 %vm826_vm8, %v15486_v58 }
 0x529   : > { %14886 = vmatmul.mubr.msk.bf16.vlgmr.msra.gmra.mxu1 %vm826_vm8, %v15486_v58  ;;  %8886 = vrot.lane.b32.xlu1 %v18150_v24, %s21700_s22  ;;  %v7672_v28 = vpop.permute.xlu0 %7671 }
 0x52a   : > { %7537 = vmatpush1.bf16.msra.mxu0 %v17799_v27  ;;  %7590 = vmatpush1.bf16.msra.mxu1 %v18133_v41  ;;  %v7676_v14 = vpop.permute.xlu1 %7675  ;;  %v7681_v45 = vsel %vm21701_vm3, %v7672_v28, %v7674_v29 }
 0x52b   : > { %7538 = vmatprep.subr.bf16.mxu0 %v17773_v42  ;;  %7591 = vmatprep.subr.bf16.mxu1 %v18171_v18  ;;  %v7682_v32 = vsel %vm21703_vm2, %v7674_v29, %v7676_v14 }
 0x52c   : > { %8880 = vrot.lane.b32.xlu0 %v17799_v27, %s21700_s22  ;;  %7375 = vmatprep.mubr.bf16.mxu0 %v21694_v2 }
 0x52d   : > { %8876 = vrot.lane.b32.xlu1 %v18160_v16, %s21700_s22  ;;  %v7670_v55 = vpop.permute.xlu0 %7669  ;;  %7428 = vmatprep.mubr.bf16.mxu1 %v21694_v2 }
 0x52e   : > { %7539 = vmatpush1.bf16.msra.mxu0 %v17771_v63  ;;  %7592 = vmatpush1.bf16.msra.mxu1 %v18160_v16  ;;  %v7666_v61 = vpop.permute.xlu1 %7665  ;;  %v7680_v54 = vsel %vm21701_vm3, %v7670_v55, %v7672_v28  ;;  %vm21704_vm3 = vmmov %vm21703_vm2  ;;  %vm21706_vm2 = vcmask 1031168  }
 0x52f   : > { %7709 = vmatprep.subr.bf16.mxu0 %v7681_v45  ;;  %7762 = vmatprep.subr.bf16.mxu1 %v7676_v14  ;;  %v7678_v48 = vsel %vm21704_vm3, %v7664_v35, %v7666_v61  ;;  %vm21707_vm3 = vmmov %vm21705_vm1 }
 0x530   : > { %8872 = vrot.lane.b32.xlu0 %v17771_v63, %s21700_s22  ;;  %14885 = vmatmul.mubr.msk.bf16.gmra.mxu0 %vm826_vm8, %v15487_v53 }
 0x531   : > { %14887 = vmatmul.mubr.msk.bf16.gmra.mxu1 %vm826_vm8, %v15487_v53  ;;  %8878 = vrot.lane.b32.xlu1 %v18171_v18, %s21700_s22  ;;  %v7662_v10 = vpop.permute.xlu0 %7661 }
 0x532   : > { %v7668_v12 = vpop.permute.xlu1 %7667  ;;  %7556 = vmatprep.mubr.bf16.mxu0 %v21694_v2  ;;  %7609 = vmatprep.mubr.bf16.mxu1 %v21694_v2  ;;  %v7677_v30 = vsel %vm21705_vm1, %v7662_v10, %v7664_v35  ;;  %vm21709_vm1 = vmmov %vm21706_vm2 }
 0x533   : > { %v7679_v3 = vsel %vm21707_vm3, %v7666_v61, %v7668_v12  ;;  %vm21711_vm3 = vmmov %vm21709_vm1 }
 0x534   : > { %9047 = vrot.lane.b32.xlu0 %v17773_v42, %s21702_s25 }
 0x535   : > { %9057 = vrot.lane.b32.xlu1 %v18133_v41, %s21702_s25  ;;  %v18483_v21 = vpop.permute.xlu0 %7836 }
 0x536   : > { %v18485_v39 = vpop.permute.xlu1 %7846  ;;  %v5435_v37 = vpop.f32.mrf.mxu0 }
 0x537   : > { %v5488_v50 = vpop.f32.mrf.mxu1 }
 0x538   : > { %9055 = vrot.lane.b32.xlu0 %v17801_v46, %s21702_s25  ;;  %14902 = vmatmul.mubr.msk.bf16.vlgmr.msra.gmra.mxu0 %vm826_vm8, %v15488_v4  ;;  %v18491_v23 = vpop.f32.mrf.mxu0 }
 0x539   : > { %14904 = vmatmul.mubr.msk.bf16.vlgmr.msra.gmra.mxu1 %vm826_vm8, %v15488_v4  ;;  %7710 = vmatpush1.bf16.msra.mxu0 %v7680_v54  ;;  %v18495_v47 = vpop.f32.mrf.mxu1  ;;  %v7845_v60 = vpop.permute.xlu0 %7844 }
 0x53a   : > { %7763 = vmatpush1.bf16.msra.mxu1 %v7682_v32  ;;  %9059 = vrot.lane.b32.xlu1 %v18150_v24, %s21702_s25  ;;  %v7849_v19 = vpop.permute.xlu1 %7848  ;;  %v18500_v9 = vpop.f32.mrf.mxu0  ;;  %v7854_v0 = vsel %vm21706_vm2, %v7845_v60, %v18485_v39  ;;  %vm21710_vm2 = vmmov %vm21709_vm1 }
 0x53b   : > { %7711 = vmatprep.subr.bf16.mxu0 %v7678_v48  ;;  %7764 = vmatprep.subr.bf16.mxu1 %v7668_v12  ;;  %v18502_v22 = vpop.f32.mrf.mxu1  ;;  %v7855_v35 = vsel %vm21710_vm2, %v18485_v39, %v7849_v19  ;;  %vm21712_vm2 = vcmask 900096  }
 0x53c   : > { %9053 = vrot.lane.b32.xlu0 %v17799_v27, %s21702_s25  ;;  %v18507_v7 = vpop.f32.mrf.mxu0  ;;  %7566 = vmatprep.mubr.bf16.mxu0 %v21694_v2 }
 0x53d   : > { %7712 = vmatpush1.bf16.msra.mxu0 %v7677_v30  ;;  %v18516_v33 = vpop.f32.mrf.mxu1  ;;  %v7843_v56 = vpop.permute.xlu0 %7842  ;;  %7619 = vmatprep.mubr.bf16.mxu1 %v21694_v2 }
 0x53e   : > { %7765 = vmatpush1.bf16.msra.mxu1 %v7679_v3  ;;  %9049 = vrot.lane.b32.xlu1 %v18160_v16, %s21702_s25  ;;  %v7839_v36 = vpop.permute.xlu1 %7838  ;;  %v18521_v13 = vpop.f32.mrf.mxu0  ;;  %v7853_v11 = vsel %vm21709_vm1, %v7843_v56, %v7845_v60 }
 0x53f   : > { %7882 = vmatprep.subr.bf16.mxu0 %v7854_v0  ;;  %7935 = vmatprep.subr.bf16.mxu1 %v7849_v19  ;;  %v18523_v52 = vpop.f32.mrf.mxu1  ;;  %v7851_v53 = vsel %vm21711_vm3, %v18483_v21, %v7839_v36  ;;  %vm21713_vm3 = vmmov %vm21709_vm1 }
 0x540   : > { %9045 = vrot.lane.b32.xlu0 %v17771_v63, %s21702_s25  ;;  %14903 = vmatmul.mubr.msk.bf16.gmra.mxu0 %vm826_vm8, %v15489_v49  ;;  %v18528_v5 = vpop.f32.mrf.mxu0 }
 0x541   : > { %14905 = vmatmul.mubr.msk.bf16.gmra.mxu1 %vm826_vm8, %v15489_v49  ;;  %v18531_v43 = vpop.f32.mrf.mxu1  ;;  %v7835_v44 = vpop.permute.xlu0 %7834  ;;  %7729 = vmatprep.mubr.bf16.mxu0 %v21694_v2 }
 0x542   : > { %9051 = vrot.lane.b32.xlu1 %v18171_v18, %s21702_s25  ;;  %v7841_v17 = vpop.permute.xlu1 %7840  ;;  %v18536_v38 = vpop.f32.mrf.mxu0  ;;  %7782 = vmatprep.mubr.bf16.mxu1 %v21694_v2  ;;  %v7850_v12 = vsel %vm21709_vm1, %v7835_v44, %v18483_v21  ;;  %vm21715_vm1 = vmmov %vm21712_vm2 }
 0x543   : > { %v18539_v20 = vpop.f32.mrf.mxu1  ;;  %v7852_v21 = vsel %vm21713_vm3, %v7839_v36, %v7841_v17  ;;  %vm21717_vm3 = vmmov %vm21715_vm1 }
 0x544   : > { %9220 = vrot.lane.b32.xlu0 %v17773_v42, %s21708_s19  ;;  %v18543_v57 = vpop.f32.mrf.mxu0 }
 0x545   : > { %v18548_v8 = vpop.f32.mrf.mxu1  ;;  %v18550_v59 = vpop.permute.xlu0 %8009 }
 0x546   : > { %9230 = vrot.lane.b32.xlu1 %v18133_v41, %s21708_s19  ;;  %v18554_v26 = vpop.permute.xlu1 %8019 }
 0x547   : > { %v5587_v34 = vpop.f32.mrf.mxu0 }
 0x548   : > { %v18557_v15 = vadd.f32 %v5587_v34, %v5435_v37  ;;  %v5640_v51 = vpop.f32.mrf.mxu1  ;;  %9228 = vrot.lane.b32.xlu0 %v17801_v46, %s21708_s19  ;;  %14912 = vmatmul.mubr.msk.bf16.vlgmr.msra.gmra.mxu0 %vm826_vm8, %v15490_v6 }
 0x549   : > { %v18562_v58 = vadd.f32 %v5640_v51, %v5488_v50  ;;  %14914 = vmatmul.mubr.msk.bf16.vlgmr.msra.gmra.mxu1 %vm826_vm8, %v15490_v6  ;;  %7883 = vmatpush1.bf16.msra.mxu0 %v7853_v11  ;;  %v5589_v29 = vpop.f32.mrf.mxu0  ;;  %v18567_v28 = vpop.permute.xlu0 %8017  ;;  %v15491_v50 = vld [vmem:[%s21536_s3 + $0xd8] sm:$0xff]  }
 0x54a   : > { %7936 = vmatpush1.bf16.msra.mxu1 %v7855_v35  ;;  %9232 = vrot.lane.b32.xlu1 %v18150_v24, %s21708_s19  ;;  %v18572_v14 = vadd.f32 %v5589_v29, %v18491_v23  ;;  %v5642_v55 = vpop.f32.mrf.mxu1  ;;  %v18576_v45 = vpop.permute.xlu1 %8021  ;;  %v8027_v37 = vsel %vm21712_vm2, %v18567_v28, %v18554_v26  ;;  %vm21716_vm2 = vmmov %vm21715_vm1 }
 0x54b   : > { %7884 = vmatprep.subr.bf16.mxu0 %v7851_v53  ;;  %7937 = vmatprep.subr.bf16.mxu1 %v7841_v17  ;;  %v18579_v61 = vadd.f32 %v5642_v55, %v18495_v47  ;;  %v5591_v10 = vpop.f32.mrf.mxu0 }
 0x54c   : > { %v18584_v4 = vadd.f32 %v5591_v10, %v18500_v9  ;;  %v5644_v39 = vpop.f32.mrf.mxu1  ;;  %9226 = vrot.lane.b32.xlu0 %v17799_v27, %s21708_s19  ;;  %7739 = vmatprep.mubr.bf16.mxu0 %v21694_v2 }
 0x54d   : > { %v18596_v54 = vadd.f32 %v5644_v39, %v18502_v22  ;;  %7885 = vmatpush1.bf16.msra.mxu0 %v7850_v12  ;;  %v5593_v23 = vpop.f32.mrf.mxu0  ;;  %v8016_v32 = vpop.permute.xlu0 %8015  ;;  %7792 = vmatprep.mubr.bf16.mxu1 %v21694_v2 }
 0x54e   : > { %7938 = vmatpush1.bf16.msra.mxu1 %v7852_v21  ;;  %9222 = vrot.lane.b32.xlu1 %v18160_v16, %s21708_s19  ;;  %v18603_v47 = vadd.f32 %v5593_v23, %v18507_v7  ;;  %v5646_v60 = vpop.f32.mrf.mxu1  ;;  %v18605_v48 = vpop.permute.xlu1 %8011 }
 0x54f   : > { %8055 = vmatprep.subr.bf16.mxu0 %v8027_v37  ;;  %8108 = vmatprep.subr.bf16.mxu1 %v18576_v45  ;;  %v18609_v19 = vadd.f32 %v5646_v60, %v18516_v33  ;;  %v5597_v9 = vpop.f32.mrf.mxu0 }
 0x550   : > { %v18612_v22 = vadd.f32 %v5597_v9, %v18521_v13  ;;  %v5650_v30 = vpop.f32.mrf.mxu1  ;;  %9218 = vrot.lane.b32.xlu0 %v17771_v63, %s21708_s19  ;;  %14913 = vmatmul.mubr.msk.bf16.gmra.mxu0 %vm826_vm8, %v15491_v50 }
 0x551   : > { %v18618_v7 = vadd.f32 %v5650_v30, %v18523_v52  ;;  %14915 = vmatmul.mubr.msk.bf16.gmra.mxu1 %vm826_vm8, %v15491_v50  ;;  %v5599_v0 = vpop.f32.mrf.mxu0  ;;  %v8008_v49 = vpop.permute.xlu0 %8007  ;;  %7902 = vmatprep.mubr.bf16.mxu0 %v21694_v2 }
 0x552   : > { %9224 = vrot.lane.b32.xlu1 %v18171_v18, %s21708_s19  ;;  %v18625_v3 = vadd.f32 %v5599_v0, %v18528_v5  ;;  %v5652_v33 = vpop.f32.mrf.mxu1  ;;  %v8014_v56 = vpop.permute.xlu1 %8013  ;;  %7955 = vmatprep.mubr.bf16.mxu1 %v21694_v2  ;;  %v15492_v5 = vld [vmem:[%s21536_s3 + $0xe0] sm:$0xff]   ;;  %v8023_v39 = vsel %vm21715_vm1, %v8008_v49, %v18550_v59 }
 0x553   : > { %v18629_v36 = vadd.f32 %v5652_v33, %v18531_v43  ;;  %v5601_v13 = vpop.f32.mrf.mxu0 }
 0x554   : > { %v18632_v52 = vadd.f32 %v5601_v13, %v18536_v38  ;;  %v5654_v44 = vpop.f32.mrf.mxu1  ;;  %9393 = vrot.lane.b32.xlu0 %v17773_v42, %s21714_s20 }
 0x555   : > { %v18640_v17 = vadd.f32 %v5654_v44, %v18539_v20  ;;  %v5603_v6 = vpop.f32.mrf.mxu0  ;;  %v18642_v34 = vpop.permute.xlu0 %8182  ;;  %v8026_v20 = vsel %vm21715_vm1, %v8016_v32, %v18567_v28 }
 0x556   : > { %9403 = vrot.lane.b32.xlu1 %v18133_v41, %s21714_s20  ;;  %v18647_v43 = vadd.f32 %v5603_v6, %v18543_v57  ;;  %v5656_v38 = vpop.f32.mrf.mxu1  ;;  %v18649_v11 = vpop.permute.xlu1 %8192 }
 0x557   : > { %v18652_v51 = vadd.f32 %v5656_v38, %v18548_v8  ;;  %v5744_v35 = vpop.f32.mrf.mxu0  ;;  %v8028_v8 = vsel %vm21716_vm2, %v18554_v26, %v18576_v45  ;;  %vm21718_vm2 = vcmask 891904  }
 0x558   : > { %v18657_v29 = vadd.f32 %v5744_v35, %v18557_v15  ;;  %v5797_v53 = vpop.f32.mrf.mxu1  ;;  %9401 = vrot.lane.b32.xlu0 %v17801_v46, %s21714_s20  ;;  %14922 = vmatmul.mubr.msk.bf16.vlgmr.msra.gmra.mxu0 %vm826_vm8, %v15492_v5 }
 0x559   : > { %v18663_v57 = vadd.f32 %v5797_v53, %v18562_v58  ;;  %14924 = vmatmul.mubr.msk.bf16.vlgmr.msra.gmra.mxu1 %vm826_vm8, %v15492_v5  ;;  %8056 = vmatpush1.bf16.msra.mxu0 %v8026_v20  ;;  %v5746_v28 = vpop.f32.mrf.mxu0  ;;  %v18669_v55 = vpop.permute.xlu0 %8190  ;;  %v8024_v58 = vsel %vm21717_vm3, %v18550_v59, %v18605_v48  ;;  %vm21719_vm3 = vmmov %vm21715_vm1 }
 0x55a   : > { %8109 = vmatpush1.bf16.msra.mxu1 %v8028_v8  ;;  %9405 = vrot.lane.b32.xlu1 %v18150_v24, %s21714_s20  ;;  %v18674_v15 = vadd.f32 %v5746_v28, %v18572_v14  ;;  %v5799_v10 = vpop.f32.mrf.mxu1  ;;  %v18679_v12 = vpop.permute.xlu1 %8194  ;;  %v8200_v50 = vsel %vm21718_vm2, %v18669_v55, %v18649_v11  ;;  %v8025_v59 = vsel %vm21719_vm3, %v18605_v48, %v8014_v56  ;;  %vm21721_vm1 = vmmov %vm21718_vm2 }
 0x55b   : > { %8057 = vmatprep.subr.bf16.mxu0 %v8024_v58  ;;  %8110 = vmatprep.subr.bf16.mxu1 %v8014_v56  ;;  %v18682_v26 = vadd.f32 %v5799_v10, %v18579_v61  ;;  %v5748_v45 = vpop.f32.mrf.mxu0  ;;  %v15493_v61 = vld [vmem:[%s21536_s3 + $0xe8] sm:$0xff]   ;;  %vm21722_vm2 = vmmov %vm21721_vm1 }
 0x55c   : > { %v18687_v37 = vadd.f32 %v5748_v45, %v18584_v4  ;;  %v5801_v14 = vpop.f32.mrf.mxu1  ;;  %9399 = vrot.lane.b32.xlu0 %v17799_v27, %s21714_s20  ;;  %7912 = vmatprep.mubr.bf16.mxu0 %v21694_v2  ;;  %vm21723_vm3 = vmmov %vm21721_vm1 }
 0x55d   : > { %v18699_v21 = vadd.f32 %v5801_v14, %v18596_v54  ;;  %8058 = vmatpush1.bf16.msra.mxu0 %v8023_v39  ;;  %v5750_v4 = vpop.f32.mrf.mxu0  ;;  %v8189_v23 = vpop.permute.xlu0 %8188  ;;  %7965 = vmatprep.mubr.bf16.mxu1 %v21694_v2 }
 0x55e   : > { %8111 = vmatpush1.bf16.msra.mxu1 %v8025_v59  ;;  %9395 = vrot.lane.b32.xlu1 %v18160_v16, %s21714_s20  ;;  %v18707_v32 = vadd.f32 %v5750_v4, %v18603_v47  ;;  %v5803_v60 = vpop.f32.mrf.mxu1  ;;  %v18709_v9 = vpop.permute.xlu1 %8184 }
 0x55f   : > { %8228 = vmatprep.subr.bf16.mxu0 %v8200_v50  ;;  %8281 = vmatprep.subr.bf16.mxu1 %v18679_v12  ;;  %v18713_v54 = vadd.f32 %v5803_v60, %v18609_v19  ;;  %v5754_v48 = vpop.f32.mrf.mxu0  ;;  %v15028_v60 = vld [vmem:[%s21538_s5 + $0x50] sm:$0xff] }
 0x560   : > { %v18716_v30 = vadd.f32 %v5754_v48, %v18612_v22  ;;  %v5807_v0 = vpop.f32.mrf.mxu1  ;;  %9391 = vrot.lane.b32.xlu0 %v17771_v63, %s21714_s20  ;;  %14923 = vmatmul.mubr.msk.bf16.gmra.mxu0 %vm826_vm8, %v15493_v61 }
 0x561   : > { %v18722_v47 = vadd.f32 %v5807_v0, %v18618_v7  ;;  %14925 = vmatmul.mubr.msk.bf16.gmra.mxu1 %vm826_vm8, %v15493_v61  ;;  %v5756_v49 = vpop.f32.mrf.mxu0  ;;  %v8181_v33 = vpop.permute.xlu0 %8180  ;;  %8075 = vmatprep.mubr.bf16.mxu0 %v21694_v2 }
 0x562   : > { %9397 = vrot.lane.b32.xlu1 %v18171_v18, %s21714_s20  ;;  %v18729_v19 = vadd.f32 %v5756_v49, %v18625_v3  ;;  %v5809_v22 = vpop.f32.mrf.mxu1  ;;  %v8187_v56 = vpop.permute.xlu1 %8186  ;;  %8128 = vmatprep.mubr.bf16.mxu1 %v21694_v2  ;;  %v15494_v3 = vld [vmem:[%s21536_s3 + $0xf0] sm:$0xff]  }
 0x563   : > { %v18733_v13 = vadd.f32 %v5809_v22, %v18629_v36  ;;  %v5758_v7 = vpop.f32.mrf.mxu0 }
 0x564   : > { %v18736_v44 = vadd.f32 %v5758_v7, %v18632_v52  ;;  %v5811_v5 = vpop.f32.mrf.mxu1  ;;  %9566 = vrot.lane.b32.xlu0 %v17773_v42, %s21720_s17 }
 0x565   : > { %v18744_v6 = vadd.f32 %v5811_v5, %v18640_v17  ;;  %v5760_v38 = vpop.f32.mrf.mxu0  ;;  %v18746_v35 = vpop.permute.xlu0 %8355  ;;  %v8199_v17 = vsel %vm21721_vm1, %v8189_v23, %v18669_v55 }
 0x566   : > { %9576 = vrot.lane.b32.xlu1 %v18133_v41, %s21720_s17  ;;  %v18751_v36 = vadd.f32 %v5760_v38, %v18647_v43  ;;  %v5813_v52 = vpop.f32.mrf.mxu1  ;;  %v18753_v20 = vpop.permute.xlu1 %8365  ;;  %v8201_v43 = vsel %vm21722_vm2, %v18649_v11, %v18679_v12  ;;  %v8196_v12 = vsel %vm21721_vm1, %v8181_v33, %v18642_v34  ;;  %vm21724_vm2 = vcmask 883712   ;;  %v15496_v33 = vld [vmem:[%s21536_s3 + $0x100] sm:$0xff]  }
 0x567   : > { %v18756_v42 = vadd.f32 %v5813_v52, %v18652_v51  ;;  %v5917_v53 = vpop.f32.mrf.mxu0 }
 0x568   : > { %v18761_v8 = vadd.f32 %v5917_v53, %v18657_v29  ;;  %v5970_v28 = vpop.f32.mrf.mxu1  ;;  %9574 = vrot.lane.b32.xlu0 %v17801_v46, %s21720_s17  ;;  %14932 = vmatmul.mubr.msk.bf16.vlgmr.msra.gmra.mxu0 %vm826_vm8, %v15494_v3  ;;  %v8197_v29 = vsel %vm21723_vm3, %v18642_v34, %v18709_v9  ;;  %vm21725_vm3 = vmmov %vm21721_vm1 }
 0x569   : > { %v18767_v41 = vadd.f32 %v5970_v28, %v18663_v57  ;;  %14934 = vmatmul.mubr.msk.bf16.vlgmr.msra.gmra.mxu1 %vm826_vm8, %v15494_v3  ;;  %8229 = vmatpush1.bf16.msra.mxu0 %v8199_v17  ;;  %v5919_v51 = vpop.f32.mrf.mxu0  ;;  %v18773_v55 = vpop.permute.xlu0 %8363  ;;  %v8198_v34 = vsel %vm21725_vm3, %v18709_v9, %v8187_v56  ;;  %vm21726_vm1 = vmmov %vm21724_vm2 }
 0x56a   : > { %8282 = vmatpush1.bf16.msra.mxu1 %v8201_v43  ;;  %9578 = vrot.lane.b32.xlu1 %v18150_v24, %s21720_s17  ;;  %v18778_v46 = vadd.f32 %v5919_v51, %v18674_v15  ;;  %v5972_v57 = vpop.f32.mrf.mxu1  ;;  %v18783_v58 = vpop.permute.xlu1 %8367  ;;  %v8373_v45 = vsel %vm21724_vm2, %v18773_v55, %v18753_v20  ;;  %vm21727_vm2 = vmmov %vm21726_vm1 }
 0x56b   : > { %8230 = vmatprep.subr.bf16.mxu0 %v8197_v29  ;;  %8283 = vmatprep.subr.bf16.mxu1 %v8187_v56  ;;  %v18786_v11 = vadd.f32 %v5972_v57, %v18682_v26  ;;  %v5921_v10 = vpop.f32.mrf.mxu0  ;;  %v15495_v26 = vld [vmem:[%s21536_s3 + $0xf8] sm:$0xff]   ;;  %v15026_v56 = vld [vmem:[%s21538_s5 + $0x40] sm:$0xff]  ;;  %v8374_v17 = vsel %vm21727_vm2, %v18753_v20, %v18783_v58  ;;  %vm21728_vm3 = vmmov %vm21726_vm1 }
 0x56c   : > { %v18791_v24 = vadd.f32 %v5921_v10, %v18687_v37  ;;  %v5974_v15 = vpop.f32.mrf.mxu1  ;;  %9572 = vrot.lane.b32.xlu0 %v17799_v27, %s21720_s17  ;;  %8085 = vmatprep.mubr.bf16.mxu0 %v21694_v2 }
 0x56d   : > { %v18803_v39 = vadd.f32 %v5974_v15, %v18699_v21  ;;  %8231 = vmatpush1.bf16.msra.mxu0 %v8196_v12  ;;  %v5923_v37 = vpop.f32.mrf.mxu0  ;;  %v8362_v14 = vpop.permute.xlu0 %8361  ;;  %8138 = vmatprep.mubr.bf16.mxu1 %v21694_v2 }
 0x56e   : > { %8284 = vmatpush1.bf16.msra.mxu1 %v8198_v34  ;;  %9568 = vrot.lane.b32.xlu1 %v18160_v16, %s21720_s17  ;;  %v18811_v27 = vadd.f32 %v5923_v37, %v18707_v32  ;;  %v5976_v50 = vpop.f32.mrf.mxu1  ;;  %v18813_v61 = vpop.permute.xlu1 %8357  ;;  %v8372_v52 = vsel %vm21726_vm1, %v8362_v14, %v18773_v55  ;;  %vm21729_vm1 = vcmask 875520  }
 0x56f   : > { %8401 = vmatprep.subr.bf16.mxu0 %v8373_v45  ;;  %8454 = vmatprep.subr.bf16.mxu1 %v18783_v58  ;;  %v18817_v21 = vadd.f32 %v5976_v50, %v18713_v54  ;;  %v5927_v59 = vpop.f32.mrf.mxu0  ;;  %v8370_v43 = vsel %vm21728_vm3, %v18746_v35, %v18813_v61  ;;  %vm21730_vm3 = vmmov %vm21727_vm2 }
 0x570   : > { %v18820_v4 = vadd.f32 %v5927_v59, %v18716_v30  ;;  %v5980_v23 = vpop.f32.mrf.mxu1  ;;  %9564 = vrot.lane.b32.xlu0 %v17771_v63, %s21720_s17  ;;  %14933 = vmatmul.mubr.msk.bf16.gmra.mxu0 %vm826_vm8, %v15495_v26 }
 0x571   : > { %v18826_v16 = vadd.f32 %v5980_v23, %v18722_v47  ;;  %14935 = vmatmul.mubr.msk.bf16.gmra.mxu1 %vm826_vm8, %v15495_v26  ;;  %v5929_v32 = vpop.f32.mrf.mxu0  ;;  %8248 = vmatprep.mubr.bf16.mxu0 %v21694_v2  ;;  %v15029_v47 = vld [vmem:[%s21538_s5 + $0x58] sm:$0xff] }
 0x572   : > { %9570 = vrot.lane.b32.xlu1 %v18171_v18, %s21720_s17  ;;  %v18836_v9 = vadd.f32 %v5929_v32, %v18729_v19  ;;  %v5982_v63 = vpop.f32.mrf.mxu1  ;;  %v8354_v54 = vpop.permute.xlu0 %8353  ;;  %8301 = vmatprep.mubr.bf16.mxu1 %v21694_v2 }
 0x573   : > { %v18840_v48 = vadd.f32 %v5982_v63, %v18733_v13  ;;  %v8360_v30 = vpop.permute.xlu1 %8359  ;;  %v5931_v0 = vpop.f32.mrf.mxu0 }
 0x574   : > { %v18846_v49 = vadd.f32 %v5931_v0, %v18736_v44  ;;  %v5984_v18 = vpop.f32.mrf.mxu1  ;;  %9739 = vperm.xlu0 %15376, %v15028_v60   ;;  %v8371_v15 = vsel %vm21730_vm3, %v18813_v61, %v8360_v30  ;;  %vm21732_vm3 = vmmov %vm21729_vm1 }
 0x575   : > { %v18852_v19 = vadd.f32 %v5984_v18, %v18744_v6  ;;  %v5933_v22 = vpop.f32.mrf.mxu0  ;;  %v15027_v6 = vld [vmem:[%s21538_s5 + $0x48] sm:$0xff] }
 0x576   : > { %9744 = vperm.xlu1 %15377, %v15029_v47   ;;  %v18858_v13 = vadd.f32 %v5933_v22, %v18751_v36  ;;  %v5986_v7 = vpop.f32.mrf.mxu1  ;;  %v18860_v44 = vpop.permute.xlu0 %8528 }
 0x577   : > { %v18863_v5 = vadd.f32 %v5986_v7, %v18756_v42  ;;  %v18865_v3 = vpop.permute.xlu1 %8538  ;;  %v6090_v38 = vpop.f32.mrf.mxu0 }
 0x578   : > { %v18873_v53 = vadd.f32 %v6090_v38, %v18761_v8  ;;  %v6143_v36 = vpop.f32.mrf.mxu1  ;;  %9729 = vperm.xlu0 %15376, %v15026_v56   ;;  %14942 = vmatmul.mubr.msk.bf16.vlgmr.msra.gmra.mxu0 %vm826_vm8, %v15496_v33 }
 0x579   : > { %v18877_v42 = vadd.f32 %v6143_v36, %v18767_v41  ;;  %14944 = vmatmul.mubr.msk.bf16.vlgmr.msra.gmra.mxu1 %vm826_vm8, %v15496_v33  ;;  %8402 = vmatpush1.bf16.msra.mxu0 %v8372_v52  ;;  %v6092_v28 = vpop.f32.mrf.mxu0 }
 0x57a   : > { %8455 = vmatpush1.bf16.msra.mxu1 %v8374_v17  ;;  %9734 = vperm.xlu1 %15377, %v15027_v6   ;;  %v18884_v8 = vadd.f32 %v6092_v28, %v18778_v46  ;;  %v6145_v51 = vpop.f32.mrf.mxu1  ;;  %v8537_v41 = vpop.permute.xlu0 %8536  ;;  %v8369_v46 = vsel %vm21727_vm2, %v8354_v54, %v18746_v35  ;;  %v15498_v54 = vld [vmem:[%s21536_s3 + $0x110] sm:$0xff]   ;;  %vm21731_vm2 = vmmov %vm21729_vm1 }
 0x57b   : > { %8403 = vmatprep.subr.bf16.mxu0 %v8370_v43  ;;  %8456 = vmatprep.subr.bf16.mxu1 %v8360_v30  ;;  %v18890_v55 = vadd.f32 %v6145_v51, %v18786_v11  ;;  %v8541_v29 = vpop.permute.xlu1 %8540  ;;  %v6094_v20 = vpop.f32.mrf.mxu0  ;;  %v8546_v57 = vsel %vm21729_vm1, %v8537_v41, %v18865_v3  ;;  %v15497_v11 = vld [vmem:[%s21536_s3 + $0x108] sm:$0xff]   ;;  %v15499_v51 = vld [vmem:[%s21536_s3 + $0x118] sm:$0xff]  }
 0x57c   : > { %v18897_v58 = vadd.f32 %v6094_v20, %v18791_v24  ;;  %v6147_v10 = vpop.f32.mrf.mxu1  ;;  %8258 = vmatprep.mubr.bf16.mxu0 %v21694_v2  ;;  %8311 = vmatprep.mubr.bf16.mxu1 %v21694_v2  ;;  %v8547_v7 = vsel %vm21731_vm2, %v18865_v3, %v8541_v29 }
 0x57d   : > { %v18905_v12 = vadd.f32 %v6147_v10, %v18803_v39  ;;  %8404 = vmatpush1.bf16.msra.mxu0 %v8369_v46  ;;  %v6096_v35 = vpop.f32.mrf.mxu0 }
 0x57e   : > { %8457 = vmatpush1.bf16.msra.mxu1 %v8371_v15  ;;  %v18910_v24 = vadd.f32 %v6096_v35, %v18811_v27  ;;  %8574 = vmatprep.subr.bf16.mxu0 %v8546_v57  ;;  %v6149_v45 = vpop.f32.mrf.mxu1  ;;  %v8535_v26 = vpop.permute.xlu0 %8534 }
 0x57f   : > { %8627 = vmatprep.subr.bf16.mxu1 %v8541_v29  ;;  %v18913_v34 = vadd.f32 %v6149_v45, %v18817_v21  ;;  %v8531_v37 = vpop.permute.xlu1 %8530  ;;  %v6100_v14 = vpop.f32.mrf.mxu0  ;;  %v8545_v22 = vsel %vm21729_vm1, %v8535_v26, %v8537_v41  ;;  %vm21733_vm1 = vcmask 867328  }
 0x580   : > { %v18916_v39 = vadd.f32 %v6100_v14, %v18820_v4  ;;  %v6153_v50 = vpop.f32.mrf.mxu1  ;;  %14943 = vmatmul.mubr.msk.bf16.gmra.mxu0 %vm826_vm8, %v15497_v11  ;;  %v8543_v38 = vsel %vm21732_vm3, %v18860_v44, %v8531_v37  ;;  %vm21734_vm3 = vmmov %vm21731_vm2 }
 0x581   : > { %v18920_v61 = vadd.f32 %v6153_v50, %v18826_v16  ;;  %14945 = vmatmul.mubr.msk.bf16.gmra.mxu1 %vm826_vm8, %v15497_v11  ;;  %v6102_v27 = vpop.f32.mrf.mxu0  ;;  %8421 = vmatprep.mubr.bf16.mxu0 %v21694_v2 }
 0x582   : > { %v18925_v59 = vadd.f32 %v6102_v27, %v18836_v9  ;;  %v6155_v21 = vpop.f32.mrf.mxu1  ;;  %v8527_v23 = vpop.permute.xlu0 %8526  ;;  %8474 = vmatprep.mubr.bf16.mxu1 %v21694_v2 }
 0x583   : > { %v18929_v4 = vadd.f32 %v6155_v21, %v18840_v48  ;;  %v8533_v32 = vpop.permute.xlu1 %8532  ;;  %v6104_v60 = vpop.f32.mrf.mxu0  ;;  %v8542_v28 = vsel %vm21731_vm2, %v8527_v23, %v18860_v44  ;;  %vm21735_vm2 = vmmov %vm21733_vm1 }
 0x584   : > { %v18932_v16 = vadd.f32 %v6104_v60, %v18846_v49  ;;  %v6157_v63 = vpop.f32.mrf.mxu1 }
 0x585   : > { %v18938_v9 = vadd.f32 %v6157_v63, %v18852_v19  ;;  %v6106_v30 = vpop.f32.mrf.mxu0 }
 0x586   : > { %v18941_v0 = vadd.f32 %v6106_v30, %v18858_v13  ;;  %v6159_v47 = vpop.f32.mrf.mxu1  ;;  %v18943_v48 = vpop.permute.xlu0 %8701 }
 0x587   : > { %v18946_v18 = vadd.f32 %v6159_v47, %v18863_v5  ;;  %v18948_v49 = vpop.permute.xlu1 %8711  ;;  %v6263_v33 = vpop.f32.mrf.mxu0 }
 0x588   : > { %v18952_v56 = vadd.f32 %v6263_v33, %v18873_v53  ;;  %v6316_v19 = vpop.f32.mrf.mxu1  ;;  %14952 = vmatmul.mubr.msk.bf16.vlgmr.msra.gmra.mxu0 %vm826_vm8, %v15498_v54 }
 0x589   : > { %v18956_v13 = vadd.f32 %v6316_v19, %v18877_v42  ;;  %14954 = vmatmul.mubr.msk.bf16.vlgmr.msra.gmra.mxu1 %vm826_vm8, %v15498_v54  ;;  %8575 = vmatpush1.bf16.msra.mxu0 %v8545_v22  ;;  %v6265_v5 = vpop.f32.mrf.mxu0 }
 0x58a   : > { %8628 = vmatpush1.bf16.msra.mxu1 %v8547_v7  ;;  %v18964_v6 = vadd.f32 %v6265_v5, %v18884_v8  ;;  %8576 = vmatprep.subr.bf16.mxu0 %v8543_v38  ;;  %v6318_v52 = vpop.f32.mrf.mxu1  ;;  %v8710_v53 = vpop.permute.xlu0 %8709 }
 0x58b   : > { %8629 = vmatprep.subr.bf16.mxu1 %v8533_v32  ;;  %v18967_v36 = vadd.f32 %v6318_v52, %v18890_v55  ;;  %v8714_v42 = vpop.permute.xlu1 %8713  ;;  %v6267_v17 = vpop.f32.mrf.mxu0  ;;  %v8719_v3 = vsel %vm21733_vm1, %v8710_v53, %v18948_v49  ;;  %8431 = vmatprep.mubr.bf16.mxu0 %v21694_v2  ;;  %v8544_v55 = vsel %vm21734_vm3, %v8531_v37, %v8533_v32  ;;  %vm21736_vm3 = vmmov %vm21733_vm1  ;;  %v15501_v52 = vld [vmem:[%s21536_s3 + $0x128] sm:$0xff]  }
 0x58c   : > { %v18975_v8 = vadd.f32 %v6267_v17, %v18897_v58  ;;  %v6320_v43 = vpop.f32.mrf.mxu1  ;;  %8484 = vmatprep.mubr.bf16.mxu1 %v21694_v2 }
 0x58d   : > { %v18982_v41 = vadd.f32 %v6320_v43, %v18905_v12  ;;  %8577 = vmatpush1.bf16.msra.mxu0 %v8542_v28  ;;  %v6269_v29 = vpop.f32.mrf.mxu0 }
 0x58e   : > { %8630 = vmatpush1.bf16.msra.mxu1 %v8544_v55  ;;  %v18986_v44 = vadd.f32 %v6269_v29, %v18910_v24  ;;  %8747 = vmatprep.subr.bf16.mxu0 %v8719_v3  ;;  %v6322_v20 = vpop.f32.mrf.mxu1  ;;  %v8708_v57 = vpop.permute.xlu0 %8707 }
 0x58f   : > { %8800 = vmatprep.subr.bf16.mxu1 %v8714_v42  ;;  %v18989_v46 = vadd.f32 %v6322_v20, %v18913_v34  ;;  %v8704_v58 = vpop.permute.xlu1 %8703  ;;  %v6273_v10 = vpop.f32.mrf.mxu0  ;;  %v8718_v63 = vsel %vm21733_vm1, %v8708_v57, %v8710_v53  ;;  %vm21737_vm1 = vcmask 736256  }
 0x590   : > { %v18992_v11 = vadd.f32 %v6273_v10, %v18916_v39  ;;  %v6326_v12 = vpop.f32.mrf.mxu1  ;;  %14953 = vmatmul.mubr.msk.bf16.gmra.mxu0 %vm826_vm8, %v15499_v51 }
 0x591   : > { %v18996_v15 = vadd.f32 %v6326_v12, %v18920_v61  ;;  %14955 = vmatmul.mubr.msk.bf16.gmra.mxu1 %vm826_vm8, %v15499_v51  ;;  %v6275_v35 = vpop.f32.mrf.mxu0  ;;  %8594 = vmatprep.mubr.bf16.mxu0 %v21694_v2  ;;  %v15500_v61 = vld [vmem:[%s21536_s3 + $0x120] sm:$0xff]  }
 0x592   : > { %v19001_v24 = vadd.f32 %v6275_v35, %v18925_v59  ;;  %v6328_v45 = vpop.f32.mrf.mxu1  ;;  %v8700_v26 = vpop.permute.xlu0 %8699  ;;  %8647 = vmatprep.mubr.bf16.mxu1 %v21694_v2 }
 0x593   : > { %v19005_v34 = vadd.f32 %v6328_v45, %v18929_v4  ;;  %v8706_v37 = vpop.permute.xlu1 %8705  ;;  %v6277_v14 = vpop.f32.mrf.mxu0  ;;  %v8715_v5 = vsel %vm21735_vm2, %v8700_v26, %v18943_v48 }
 0x594   : > { %v19008_v39 = vadd.f32 %v6277_v14, %v18932_v16  ;;  %v6330_v50 = vpop.f32.mrf.mxu1 }
 0x595   : > { %v19014_v27 = vadd.f32 %v6330_v50, %v18938_v9  ;;  %v6279_v59 = vpop.f32.mrf.mxu0 }
 0x596   : > { %v19017_v21 = vadd.f32 %v6279_v59, %v18941_v0  ;;  %v6332_v23 = vpop.f32.mrf.mxu1  ;;  %v19019_v4 = vpop.permute.xlu0 %8874  ;;  %v8720_v0 = vsel %vm21735_vm2, %v18948_v49, %v8714_v42 }
 0x597   : > { %v19022_v32 = vadd.f32 %v6332_v23, %v18946_v18  ;;  %v19024_v60 = vpop.permute.xlu1 %8884  ;;  %v6436_v16 = vpop.f32.mrf.mxu0  ;;  %v8716_v18 = vsel %vm21736_vm3, %v18943_v48, %v8704_v58  ;;  %vm21738_vm3 = vmmov %vm21735_vm2 }
 0x598   : > { %v19028_v54 = vadd.f32 %v6436_v16, %v18952_v56  ;;  %v6489_v9 = vpop.f32.mrf.mxu1  ;;  %14962 = vmatmul.mubr.msk.bf16.vlgmr.msra.gmra.mxu0 %vm826_vm8, %v15500_v61  ;;  %vm21739_vm2 = vmmov %vm21737_vm1 }
 0x599   : > { %v19032_v30 = vadd.f32 %v6489_v9, %v18956_v13  ;;  %14964 = vmatmul.mubr.msk.bf16.vlgmr.msra.gmra.mxu1 %vm826_vm8, %v15500_v61  ;;  %8748 = vmatpush1.bf16.msra.mxu0 %v8718_v63  ;;  %v6438_v47 = vpop.f32.mrf.mxu0 }
 0x59a   : > { %8801 = vmatpush1.bf16.msra.mxu1 %v8720_v0  ;;  %v19040_v33 = vadd.f32 %v6438_v47, %v18964_v6  ;;  %8749 = vmatprep.subr.bf16.mxu0 %v8716_v18  ;;  %v6491_v22 = vpop.f32.mrf.mxu1  ;;  %v8883_v56 = vpop.permute.xlu0 %8882 }
 0x59b   : > { %8802 = vmatprep.subr.bf16.mxu1 %v8706_v37  ;;  %v19043_v19 = vadd.f32 %v6491_v22, %v18967_v36  ;;  %v8887_v13 = vpop.permute.xlu1 %8886  ;;  %v6440_v7 = vpop.f32.mrf.mxu0  ;;  %v8892_v49 = vsel %vm21737_vm1, %v8883_v56, %v19024_v60  ;;  %8604 = vmatprep.mubr.bf16.mxu0 %v21694_v2  ;;  %v8717_v36 = vsel %vm21738_vm3, %v8704_v58, %v8706_v37  ;;  %vm21740_vm3 = vmmov %vm21737_vm1  ;;  %v15503_v22 = vld [vmem:[%s21536_s3 + $0x138] sm:$0xff]  }
 0x59c   : > { %v19051_v38 = vadd.f32 %v6440_v7, %v18975_v8  ;;  %v6493_v6 = vpop.f32.mrf.mxu1  ;;  %8657 = vmatprep.mubr.bf16.mxu1 %v21694_v2 }
 0x59d   : > { %v19058_v53 = vadd.f32 %v6493_v6, %v18982_v41  ;;  %8750 = vmatpush1.bf16.msra.mxu0 %v8715_v5  ;;  %v6442_v42 = vpop.f32.mrf.mxu0 }
 0x59e   : > { %8803 = vmatpush1.bf16.msra.mxu1 %v8717_v36  ;;  %v19062_v48 = vadd.f32 %v6442_v42, %v18986_v44  ;;  %8920 = vmatprep.subr.bf16.mxu0 %v8892_v49  ;;  %v6495_v17 = vpop.f32.mrf.mxu1  ;;  %v8881_v3 = vpop.permute.xlu0 %8880 }
 0x59f   : > { %8973 = vmatprep.subr.bf16.mxu1 %v8887_v13  ;;  %v19065_v28 = vadd.f32 %v6495_v17, %v18989_v46  ;;  %v8877_v8 = vpop.permute.xlu1 %8876  ;;  %v6446_v43 = vpop.f32.mrf.mxu0  ;;  %v8891_v50 = vsel %vm21737_vm1, %v8881_v3, %v8883_v56  ;;  %vm21741_vm1 = vcmask 728064  }
 0x5a0   : > { %v19068_v51 = vadd.f32 %v6446_v43, %v18992_v11  ;;  %v6499_v41 = vpop.f32.mrf.mxu1  ;;  %14963 = vmatmul.mubr.msk.bf16.gmra.mxu0 %vm826_vm8, %v15501_v52 }
 0x5a1   : > { %v19072_v55 = vadd.f32 %v6499_v41, %v18996_v15  ;;  %14965 = vmatmul.mubr.msk.bf16.gmra.mxu1 %vm826_vm8, %v15501_v52  ;;  %v6448_v29 = vpop.f32.mrf.mxu0  ;;  %8767 = vmatprep.mubr.bf16.mxu0 %v21694_v2  ;;  %v15502_v15 = vld [vmem:[%s21536_s3 + $0x130] sm:$0xff]  }
 0x5a2   : > { %v19077_v44 = vadd.f32 %v6448_v29, %v19001_v24  ;;  %v6501_v20 = vpop.f32.mrf.mxu1  ;;  %v8873_v57 = vpop.permute.xlu0 %8872  ;;  %8820 = vmatprep.mubr.bf16.mxu1 %v21694_v2 }
 0x5a3   : > { %v19081_v46 = vadd.f32 %v6501_v20, %v19005_v34  ;;  %v8879_v58 = vpop.permute.xlu1 %8878  ;;  %v6450_v10 = vpop.f32.mrf.mxu0 }
 0x5a4   : > { %v19084_v11 = vadd.f32 %v6450_v10, %v19008_v39  ;;  %v6503_v12 = vpop.f32.mrf.mxu1 }
 0x5a5   : > { %v19090_v35 = vadd.f32 %v6503_v12, %v19014_v27  ;;  %v6452_v24 = vpop.f32.mrf.mxu0 }
 0x5a6   : > { %v19093_v45 = vadd.f32 %v6452_v24, %v19017_v21  ;;  %v6505_v26 = vpop.f32.mrf.mxu1  ;;  %v19095_v34 = vpop.permute.xlu0 %9047  ;;  %v8893_v21 = vsel %vm21739_vm2, %v19024_v60, %v8887_v13  ;;  %v8888_v60 = vsel %vm21739_vm2, %v8873_v57, %v19019_v4 }
 0x5a7   : > { %v19098_v37 = vadd.f32 %v6505_v26, %v19022_v32  ;;  %v19100_v14 = vpop.permute.xlu1 %9057  ;;  %v6609_v39 = vpop.f32.mrf.mxu0  ;;  %v8889_v32 = vsel %vm21740_vm3, %v19019_v4, %v8877_v8  ;;  %vm21742_vm3 = vmmov %vm21739_vm2 }
 0x5a8   : > { %v19104_v61 = vadd.f32 %v6609_v39, %v19028_v54  ;;  %v6662_v27 = vpop.f32.mrf.mxu1  ;;  %14972 = vmatmul.mubr.msk.bf16.vlgmr.msra.gmra.mxu0 %vm826_vm8, %v15502_v15  ;;  %vm21743_vm2 = vmmov %vm21741_vm1 }
 0x5a9   : > { %v19108_v59 = vadd.f32 %v6662_v27, %v19032_v30  ;;  %14974 = vmatmul.mubr.msk.bf16.vlgmr.msra.gmra.mxu1 %vm826_vm8, %v15502_v15  ;;  %8921 = vmatpush1.bf16.msra.mxu0 %v8891_v50  ;;  %v6611_v23 = vpop.f32.mrf.mxu0 }
 0x5aa   : > { %8974 = vmatpush1.bf16.msra.mxu1 %v8893_v21  ;;  %v19116_v16 = vadd.f32 %v6611_v23, %v19040_v33  ;;  %8922 = vmatprep.subr.bf16.mxu0 %v8889_v32  ;;  %v6664_v63 = vpop.f32.mrf.mxu1  ;;  %v9056_v54 = vpop.permute.xlu0 %9055 }
 0x5ab   : > { %8975 = vmatprep.subr.bf16.mxu1 %v8879_v58  ;;  %v19119_v9 = vadd.f32 %v6664_v63, %v19043_v19  ;;  %v6613_v30 = vpop.f32.mrf.mxu0  ;;  %v9065_v0 = vsel %vm21741_vm1, %v9056_v54, %v19100_v14  ;;  %8777 = vmatprep.mubr.bf16.mxu0 %v21694_v2  ;;  %v8890_v19 = vsel %vm21742_vm3, %v8877_v8, %v8879_v58  ;;  %vm21744_vm3 = vmmov %vm21741_vm1  ;;  %v15505_v63 = vld [vmem:[%s21536_s3 + $0x148] sm:$0xff]  }
 0x5ac   : > { %v9060_v47 = vpop.permute.xlu1 %9059  ;;  %v19127_v18 = vadd.f32 %v6613_v30, %v19051_v38  ;;  %v6666_v33 = vpop.f32.mrf.mxu1  ;;  %8830 = vmatprep.mubr.bf16.mxu1 %v21694_v2 }
 0x5ad   : > { %v19134_v56 = vadd.f32 %v6666_v33, %v19058_v53  ;;  %8923 = vmatpush1.bf16.msra.mxu0 %v8888_v60  ;;  %v6615_v13 = vpop.f32.mrf.mxu0 }
 0x5ae   : > { %8976 = vmatpush1.bf16.msra.mxu1 %v8890_v19  ;;  %v19138_v4 = vadd.f32 %v6615_v13, %v19062_v48  ;;  %9093 = vmatprep.subr.bf16.mxu0 %v9065_v0  ;;  %v6668_v7 = vpop.f32.mrf.mxu1  ;;  %v9054_v49 = vpop.permute.xlu0 %9053 }
 0x5af   : > { %9146 = vmatprep.subr.bf16.mxu1 %v9060_v47  ;;  %v19141_v5 = vadd.f32 %v6668_v7, %v19065_v28  ;;  %v6619_v38 = vpop.f32.mrf.mxu0 }
 0x5b0   : > { %v9050_v6 = vpop.permute.xlu1 %9049  ;;  %v19144_v52 = vadd.f32 %v6619_v38, %v19068_v51  ;;  %v6672_v53 = vpop.f32.mrf.mxu1  ;;  %14973 = vmatmul.mubr.msk.bf16.gmra.mxu0 %vm826_vm8, %v15503_v22 }
 0x5b1   : > { %v19148_v36 = vadd.f32 %v6672_v53, %v19072_v55  ;;  %14975 = vmatmul.mubr.msk.bf16.gmra.mxu1 %vm826_vm8, %v15503_v22  ;;  %v6621_v42 = vpop.f32.mrf.mxu0  ;;  %8940 = vmatprep.mubr.bf16.mxu0 %v21694_v2  ;;  %v15504_v55 = vld [vmem:[%s21536_s3 + $0x140] sm:$0xff]  }
 0x5b2   : > { %v19153_v48 = vadd.f32 %v6621_v42, %v19077_v44  ;;  %v6674_v17 = vpop.f32.mrf.mxu1  ;;  %v9046_v3 = vpop.permute.xlu0 %9045  ;;  %8993 = vmatprep.mubr.bf16.mxu1 %v21694_v2 }
 0x5b3   : > { %v19157_v28 = vadd.f32 %v6674_v17, %v19081_v46  ;;  %v6623_v8 = vpop.f32.mrf.mxu0 }
 0x5b4   : > { %v9052_v43 = vpop.permute.xlu1 %9051  ;;  %v19160_v51 = vadd.f32 %v6623_v8, %v19084_v11  ;;  %v6676_v41 = vpop.f32.mrf.mxu1  ;;  %v9064_v11 = vsel %vm21741_vm1, %v9054_v49, %v9056_v54  ;;  %vm21745_vm1 = vcmask 719872  }
 0x5b5   : > { %v19166_v29 = vadd.f32 %v6676_v41, %v19090_v35  ;;  %v6625_v44 = vpop.f32.mrf.mxu0 }
 0x5b6   : > { %v19169_v20 = vadd.f32 %v6625_v44, %v19093_v45  ;;  %v6678_v57 = vpop.f32.mrf.mxu1  ;;  %v19171_v46 = vpop.permute.xlu0 %9220  ;;  %v9066_v45 = vsel %vm21743_vm2, %v19100_v14, %v9060_v47  ;;  %v9061_v14 = vsel %vm21743_vm2, %v9046_v3, %v19095_v34 }
 0x5b7   : > { %v19174_v58 = vadd.f32 %v6678_v57, %v19098_v37  ;;  %v6782_v10 = vpop.f32.mrf.mxu0  ;;  %v9062_v37 = vsel %vm21744_vm3, %v19095_v34, %v9050_v6  ;;  %vm21746_vm3 = vmmov %vm21743_vm2 }
 0x5b8   : > { %v19177_v12 = vpop.permute.xlu1 %9230  ;;  %v19180_v15 = vadd.f32 %v6782_v10, %v19104_v61  ;;  %v6835_v35 = vpop.f32.mrf.mxu1  ;;  %14982 = vmatmul.mubr.msk.bf16.vlgmr.msra.gmra.mxu0 %vm826_vm8, %v15504_v55  ;;  %vm21747_vm2 = vmmov %vm21745_vm1 }
 0x5b9   : > { %v19184_v24 = vadd.f32 %v6835_v35, %v19108_v59  ;;  %14984 = vmatmul.mubr.msk.bf16.vlgmr.msra.gmra.mxu1 %vm826_vm8, %v15504_v55  ;;  %9094 = vmatpush1.bf16.msra.mxu0 %v9064_v11  ;;  %v6784_v26 = vpop.f32.mrf.mxu0 }
 0x5ba   : > { %9147 = vmatpush1.bf16.msra.mxu1 %v9066_v45  ;;  %v19192_v39 = vadd.f32 %v6784_v26, %v19116_v16  ;;  %9095 = vmatprep.subr.bf16.mxu0 %v9062_v37  ;;  %v6837_v50 = vpop.f32.mrf.mxu1  ;;  %v9229_v61 = vpop.permute.xlu0 %9228 }
 0x5bb   : > { %9148 = vmatprep.subr.bf16.mxu1 %v9052_v43  ;;  %v19195_v27 = vadd.f32 %v6837_v50, %v19119_v9  ;;  %v6786_v59 = vpop.f32.mrf.mxu0  ;;  %v9238_v21 = vsel %vm21745_vm1, %v9229_v61, %v19177_v12  ;;  %8950 = vmatprep.mubr.bf16.mxu0 %v21694_v2  ;;  %v9063_v9 = vsel %vm21746_vm3, %v9050_v6, %v9052_v43  ;;  %vm21748_vm3 = vmmov %vm21745_vm1  ;;  %v15507_v50 = vld [vmem:[%s21536_s3 + $0x158] sm:$0xff]  }
 0x5bc   : > { %v9233_v23 = vpop.permute.xlu1 %9232  ;;  %v19203_v32 = vadd.f32 %v6786_v59, %v19127_v18  ;;  %v6839_v16 = vpop.f32.mrf.mxu1  ;;  %9003 = vmatprep.mubr.bf16.mxu1 %v21694_v2 }
 0x5bd   : > { %v19210_v54 = vadd.f32 %v6839_v16, %v19134_v56  ;;  %9096 = vmatpush1.bf16.msra.mxu0 %v9061_v14  ;;  %v6788_v30 = vpop.f32.mrf.mxu0 }
 0x5be   : > { %9149 = vmatpush1.bf16.msra.mxu1 %v9063_v9  ;;  %v19214_v34 = vadd.f32 %v6788_v30, %v19138_v4  ;;  %9266 = vmatprep.subr.bf16.mxu0 %v9238_v21  ;;  %v6841_v0 = vpop.f32.mrf.mxu1  ;;  %v9227_v60 = vpop.permute.xlu0 %9226 }
 0x5bf   : > { %9319 = vmatprep.subr.bf16.mxu1 %v9233_v23  ;;  %v19217_v47 = vadd.f32 %v6841_v0, %v19141_v5  ;;  %v6792_v18 = vpop.f32.mrf.mxu0 }
 0x5c0   : > { %v9223_v33 = vpop.permute.xlu1 %9222  ;;  %v19220_v22 = vadd.f32 %v6792_v18, %v19144_v52  ;;  %v6845_v56 = vpop.f32.mrf.mxu1  ;;  %14983 = vmatmul.mubr.msk.bf16.gmra.mxu0 %vm826_vm8, %v15505_v63 }
 0x5c1   : > { %v19224_v19 = vadd.f32 %v6845_v56, %v19148_v36  ;;  %14985 = vmatmul.mubr.msk.bf16.gmra.mxu1 %vm826_vm8, %v15505_v63  ;;  %v6794_v13 = vpop.f32.mrf.mxu0  ;;  %9113 = vmatprep.mubr.bf16.mxu0 %v21694_v2  ;;  %v15506_v36 = vld [vmem:[%s21536_s3 + $0x150] sm:$0xff]  }
 0x5c2   : > { %v19229_v4 = vadd.f32 %v6794_v13, %v19153_v48  ;;  %v6847_v7 = vpop.f32.mrf.mxu1  ;;  %v9219_v49 = vpop.permute.xlu0 %9218  ;;  %9166 = vmatprep.mubr.bf16.mxu1 %v21694_v2 }
 0x5c3   : > { %v19233_v5 = vadd.f32 %v6847_v7, %v19157_v28  ;;  %v6796_v38 = vpop.f32.mrf.mxu0 }
 0x5c4   : > { %v9225_v6 = vpop.permute.xlu1 %9224  ;;  %v19236_v52 = vadd.f32 %v6796_v38, %v19160_v51  ;;  %v6849_v53 = vpop.f32.mrf.mxu1  ;;  %v9237_v51 = vsel %vm21745_vm1, %v9227_v60, %v9229_v61 }
 0x5c5   : > { %v19242_v42 = vadd.f32 %v6849_v53, %v19166_v29  ;;  %v6798_v48 = vpop.f32.mrf.mxu0 }
 0x5c6   : > { %v19245_v17 = vadd.f32 %v6798_v48, %v19169_v20  ;;  %v6851_v3 = vpop.f32.mrf.mxu1  ;;  %v19247_v28 = vpop.permute.xlu0 %9393  ;;  %v9239_v20 = vsel %vm21747_vm2, %v19177_v12, %v9233_v23  ;;  %v9234_v12 = vsel %vm21745_vm1, %v9219_v49, %v19171_v46  ;;  %vm21749_vm2 = vmmov %vm21745_vm1 }
 0x5c7   : > { %v19250_v8 = vadd.f32 %v6851_v3, %v19174_v58  ;;  %v6955_v43 = vpop.f32.mrf.mxu0  ;;  %v9235_v58 = vsel %vm21748_vm3, %v19171_v46, %v9223_v33 }
 0x5c8   : > { %v19253_v41 = vpop.permute.xlu1 %9403  ;;  %v19256_v55 = vadd.f32 %v6955_v43, %v19180_v15  ;;  %v7008_v29 = vpop.f32.mrf.mxu1  ;;  %14992 = vmatmul.mubr.msk.bf16.vlgmr.msra.gmra.mxu0 %vm826_vm8, %v15506_v36 }
 0x5c9   : > { %v19260_v44 = vadd.f32 %v7008_v29, %v19184_v24  ;;  %14994 = vmatmul.mubr.msk.bf16.vlgmr.msra.gmra.mxu1 %vm826_vm8, %v15506_v36  ;;  %9267 = vmatpush1.bf16.msra.mxu0 %v9237_v51  ;;  %v6957_v57 = vpop.f32.mrf.mxu0 }
 0x5ca   : > { %9320 = vmatpush1.bf16.msra.mxu1 %v9239_v20  ;;  %v19268_v10 = vadd.f32 %v6957_v57, %v19192_v39  ;;  %9268 = vmatprep.subr.bf16.mxu0 %v9235_v58  ;;  %v7010_v11 = vpop.f32.mrf.mxu1  ;;  %v9402_v15 = vpop.permute.xlu0 %9401  ;;  %v15509_v58 = vld [vmem:[%s21536_s3 + $0x168] sm:$0xff]  }
 0x5cb   : > { %9321 = vmatprep.subr.bf16.mxu1 %v9225_v6  ;;  %v19271_v35 = vadd.f32 %v7010_v11, %v19195_v27  ;;  %v6959_v24 = vpop.f32.mrf.mxu0  ;;  %v9411_v45 = vsel %vm4860_vm4, %v9402_v15, %v19253_v41  ;;  %9123 = vmatprep.mubr.bf16.mxu0 %v21694_v2  ;;  %v9236_v27 = vsel %vm21749_vm2, %v9223_v33, %v9225_v6 }
 0x5cc   : > { %v9406_v26 = vpop.permute.xlu1 %9405  ;;  %v19279_v37 = vadd.f32 %v6959_v24, %v19203_v32  ;;  %v7012_v39 = vpop.f32.mrf.mxu1  ;;  %9176 = vmatprep.mubr.bf16.mxu1 %v21694_v2 }
 0x5cd   : > { %v19286_v61 = vadd.f32 %v7012_v39, %v19210_v54  ;;  %9269 = vmatpush1.bf16.msra.mxu0 %v9234_v12  ;;  %v6961_v59 = vpop.f32.mrf.mxu0 }
 0x5ce   : > { %9322 = vmatpush1.bf16.msra.mxu1 %v9236_v27  ;;  %v19290_v46 = vadd.f32 %v6961_v59, %v19214_v34  ;;  %9439 = vmatprep.subr.bf16.mxu0 %v9411_v45  ;;  %v7014_v21 = vpop.f32.mrf.mxu1  ;;  %v9400_v14 = vpop.permute.xlu0 %9399 }
 0x5cf   : > { %9492 = vmatprep.subr.bf16.mxu1 %v9406_v26  ;;  %v19293_v23 = vadd.f32 %v7014_v21, %v19217_v47  ;;  %v6965_v32 = vpop.f32.mrf.mxu0  ;;  %v9410_v6 = vsel %vm4860_vm4, %v9400_v14, %v9402_v15 }
 0x5d0   : > { %v9396_v16 = vpop.permute.xlu1 %9395  ;;  %v19296_v63 = vadd.f32 %v6965_v32, %v19220_v22  ;;  %v7018_v54 = vpop.f32.mrf.mxu1  ;;  %14993 = vmatmul.mubr.msk.bf16.gmra.mxu0 %vm826_vm8, %v15507_v50  ;;  %v15510_v32 = vld [vmem:[%s21536_s3 + $0x170] sm:$0xff]  }
 0x5d1   : > { %v19300_v9 = vadd.f32 %v7018_v54, %v19224_v19  ;;  %14995 = vmatmul.mubr.msk.bf16.gmra.mxu1 %vm826_vm8, %v15507_v50  ;;  %v6967_v30 = vpop.f32.mrf.mxu0  ;;  %9286 = vmatprep.mubr.bf16.mxu0 %v21694_v2  ;;  %v15508_v19 = vld [vmem:[%s21536_s3 + $0x160] sm:$0xff]  }
 0x5d2   : > { %v19305_v34 = vadd.f32 %v6967_v30, %v19229_v4  ;;  %v7020_v0 = vpop.f32.mrf.mxu1  ;;  %v9392_v60 = vpop.permute.xlu0 %9391  ;;  %9339 = vmatprep.mubr.bf16.mxu1 %v21694_v2 }
 0x5d3   : > { %v19309_v47 = vadd.f32 %v7020_v0, %v19233_v5  ;;  %v6969_v18 = vpop.f32.mrf.mxu0 }
 0x5d4   : > { %v9398_v33 = vpop.permute.xlu1 %9397  ;;  %v19312_v22 = vadd.f32 %v6969_v18, %v19236_v52  ;;  %v7022_v56 = vpop.f32.mrf.mxu1 }
 0x5d5   : > { %v7041_v13 = vadd.f32 %v7022_v56, %v19242_v42  ;;  %v6971_v4 = vpop.f32.mrf.mxu0  ;;  %v9412_v42 = vsel %vm4860_vm4, %v19253_v41, %v9406_v26  ;;  %v9407_v41 = vsel %vm4860_vm4, %v9392_v60, %v19247_v28  ;;  %v9409_v15 = vsel %vm4860_vm4, %v9396_v16, %v9398_v33 }
 0x5d6   : > { %v7040_v7 = vadd.f32 %v6971_v4, %v19245_v17  ;;  %v7024_v49 = vpop.f32.mrf.mxu1  ;;  %v19319_v38 = vpop.permute.xlu0 %9566  ;;  %v9408_v17 = vsel %vm4860_vm4, %v19247_v28, %v9396_v16 }
 0x5d7   : > { %v19322_v5 = vadd.f32 %v7024_v49, %v19250_v8 }
 0x5d8   : > { %v19325_v52 = vpop.permute.xlu1 %9576  ;;  %v7188_v53 = vpop.f32.mrf.mxu0  ;;  %15002 = vmatmul.mubr.msk.bf16.vlgmr.msra.gmra.mxu0 %vm826_vm8, %v15508_v19 }
 0x5d9   : > { %v7260_v36 = vadd.f32 %v7188_v53, %v19256_v55  ;;  %v7241_v48 = vpop.f32.mrf.mxu1  ;;  %15004 = vmatmul.mubr.msk.bf16.vlgmr.msra.gmra.mxu1 %vm826_vm8, %v15508_v19  ;;  %9440 = vmatpush1.bf16.msra.mxu0 %v9410_v6 }
 0x5da   : > { %v7262_v3 = vadd.f32 %v7241_v48, %v19260_v44  ;;  %9493 = vmatpush1.bf16.msra.mxu1 %v9412_v42  ;;  %v7190_v8 = vpop.f32.mrf.mxu0  ;;  %9441 = vmatprep.subr.bf16.mxu0 %v9408_v17  ;;  %v9575_v43 = vpop.permute.xlu0 %9574 }
 0x5db   : > { %v7261_v51 = vadd.f32 %v7190_v8, %v19268_v10  ;;  %9494 = vmatprep.subr.bf16.mxu1 %v9398_v33  ;;  %v7243_v55 = vpop.f32.mrf.mxu1  ;;  %v9584_v29 = vsel %vm5034_vm5, %v9575_v43, %v19325_v52  ;;  %9296 = vmatprep.mubr.bf16.mxu0 %v21694_v2 }
 0x5dc   : > { %v7263_v20 = vadd.f32 %v7243_v55, %v19271_v35  ;;  %v9579_v57 = vpop.permute.xlu1 %9578  ;;  %v7192_v44 = vpop.f32.mrf.mxu0  ;;  %9349 = vmatprep.mubr.bf16.mxu1 %v21694_v2 }
 0x5dd   : > { %v7264_v10 = vadd.f32 %v7192_v44, %v19279_v37  ;;  %v7245_v11 = vpop.f32.mrf.mxu1  ;;  %9442 = vmatpush1.bf16.msra.mxu0 %v9407_v41 }
 0x5de   : > { %v7266_v24 = vadd.f32 %v7245_v11, %v19286_v61  ;;  %9495 = vmatpush1.bf16.msra.mxu1 %v9409_v15  ;;  %v7194_v28 = vpop.f32.mrf.mxu0  ;;  %9612 = vmatprep.subr.bf16.mxu0 %v9584_v29  ;;  %v9573_v27 = vpop.permute.xlu0 %9572 }
 0x5df   : > { %v19350_v35 = vadd.f32 %v7194_v28, %v19290_v46  ;;  %9665 = vmatprep.subr.bf16.mxu1 %v9579_v57  ;;  %v7247_v45 = vpop.f32.mrf.mxu1  ;;  %v9583_v60 = vsel %vm5034_vm5, %v9573_v27, %v9575_v43 }
 0x5e0   : > { %v19353_v12 = vadd.f32 %v7247_v45, %v19293_v23  ;;  %v7198_v26 = vpop.f32.mrf.mxu0  ;;  %15003 = vmatmul.mubr.msk.bf16.gmra.mxu0 %vm826_vm8, %v15509_v58  ;;  %v9569_v21 = vpop.permute.xlu1 %9568 }
 0x5e1   : > { %v7268_v37 = vadd.f32 %v7198_v26, %v19296_v63  ;;  %v7251_v39 = vpop.f32.mrf.mxu1  ;;  %15005 = vmatmul.mubr.msk.bf16.gmra.mxu1 %vm826_vm8, %v15509_v58  ;;  %9459 = vmatprep.mubr.bf16.mxu0 %v21694_v2  ;;  %v9581_v19 = vsel %vm5034_vm5, %v19319_v38, %v9569_v21 }
 0x5e2   : > { %v7270_v50 = vadd.f32 %v7251_v39, %v19300_v9  ;;  %v7200_v61 = vpop.f32.mrf.mxu0  ;;  %9512 = vmatprep.mubr.bf16.mxu1 %v21694_v2 }
 0x5e3   : > { %v7269_v59 = vadd.f32 %v7200_v61, %v19305_v34  ;;  %v7253_v46 = vpop.f32.mrf.mxu1 }
 0x5e4   : > { %v7271_v14 = vadd.f32 %v7253_v46, %v19309_v47  ;;  %v7202_v23 = vpop.f32.mrf.mxu0  ;;  %v9565_v47 = vpop.permute.xlu0 %9564 }
 0x5e5   : > { %v7272_v16 = vadd.f32 %v7202_v23, %v19312_v22  ;;  %v7255_v63 = vpop.f32.mrf.mxu1  ;;  %v9585_v22 = vsel %vm5034_vm5, %v19325_v52, %v9579_v57  ;;  %v9580_v6 = vsel %vm5034_vm5, %v9565_v47, %v19319_v38  ;;  %v15511_v52 = vld [vmem:[%s21536_s3 + $0x178] sm:$0xff]  }
 0x5e6   : > { %v7274_v54 = vadd.f32 %v7255_v63, %v7041_v13  ;;  %v7204_v9 = vpop.f32.mrf.mxu0  ;;  %v9571_v13 = vpop.permute.xlu1 %9570 }
 0x5e7   : > { %v19367_v30 = vadd.f32 %v7204_v9, %v7040_v7  ;;  %v7257_v0 = vpop.f32.mrf.mxu1  ;;  %v9582_v17 = vsel %vm5034_vm5, %v9569_v21, %v9571_v13 }
 0x5e8   : > { %v19371_v34 = vadd.f32 %v7257_v0, %v19322_v5  ;;  %v7367_v18 = vpop.f32.mrf.mxu0  ;;  %15012 = vmatmul.mubr.msk.bf16.vlgmr.msra.gmra.mxu0 %vm826_vm8, %v15510_v32 }
 0x5e9   : > { %v7439_v33 = vadd.f32 %v7367_v18, %v7260_v36  ;;  %v7420_v56 = vpop.f32.mrf.mxu1  ;;  %15014 = vmatmul.mubr.msk.bf16.vlgmr.msra.gmra.mxu1 %vm826_vm8, %v15510_v32  ;;  %9613 = vmatpush1.bf16.msra.mxu0 %v9583_v60 }
 0x5ea   : > { %v7441_v4 = vadd.f32 %v7420_v56, %v7262_v3  ;;  %9666 = vmatpush1.bf16.msra.mxu1 %v9585_v22  ;;  %9614 = vmatprep.subr.bf16.mxu0 %v9581_v19  ;;  %v7369_v7 = vpop.f32.mrf.mxu0 }
 0x5eb   : > { %9667 = vmatprep.subr.bf16.mxu1 %v9571_v13  ;;  %v7440_v49 = vadd.f32 %v7369_v7, %v7261_v51  ;;  %v7422_v5 = vpop.f32.mrf.mxu1  ;;  %9469 = vmatprep.mubr.bf16.mxu0 %v21694_v2 }
 0x5ec   : > { %v7442_v53 = vadd.f32 %v7422_v5, %v7263_v20  ;;  %v7371_v36 = vpop.f32.mrf.mxu0  ;;  %9522 = vmatprep.mubr.bf16.mxu1 %v21694_v2 }
 0x5ed   : > { %v7443_v48 = vadd.f32 %v7371_v36, %v7264_v10  ;;  %v7424_v42 = vpop.f32.mrf.mxu1  ;;  %9615 = vmatpush1.bf16.msra.mxu0 %v9580_v6  ;;  %v15512_v10 = vld [vmem:[%s21536_s3 + $0x180] sm:$0xff]  }
 0x5ee   : > { %v7445_v3 = vadd.f32 %v7424_v42, %v7266_v24  ;;  %9668 = vmatpush1.bf16.msra.mxu1 %v9582_v17  ;;  %v19387_v8 = vpop.f32.mrf.mxu0 }
 0x5ef   : > { %v19389_v43 = vpop.f32.mrf.mxu1 }
 0x5f0   : > { %v7377_v38 = vpop.f32.mrf.mxu0  ;;  %15013 = vmatmul.mubr.msk.bf16.gmra.mxu0 %vm826_vm8, %v15511_v52 }
 0x5f1   : > { %v7447_v51 = vadd.f32 %v7377_v38, %v7268_v37  ;;  %v7430_v55 = vpop.f32.mrf.mxu1  ;;  %15015 = vmatmul.mubr.msk.bf16.gmra.mxu1 %vm826_vm8, %v15511_v52  ;;  %9632 = vmatprep.mubr.bf16.mxu0 %v21694_v2 }
 0x5f2   : > { %v7449_v29 = vadd.f32 %v7430_v55, %v7270_v50  ;;  %v7379_v41 = vpop.f32.mrf.mxu0  ;;  %9685 = vmatprep.mubr.bf16.mxu1 %v21694_v2 }
 0x5f3   : > { %v7448_v20 = vadd.f32 %v7379_v41, %v7269_v59  ;;  %v7432_v57 = vpop.f32.mrf.mxu1 }
 0x5f4   : > { %v7450_v44 = vadd.f32 %v7432_v57, %v7271_v14  ;;  %v7381_v58 = vpop.f32.mrf.mxu0  ;;  %v15513_v14 = vld [vmem:[%s21536_s3 + $0x188] sm:$0xff]  }
 0x5f5   : > { %v7451_v11 = vadd.f32 %v7381_v58, %v7272_v16  ;;  %v7434_v15 = vpop.f32.mrf.mxu1 }
 0x5f6   : > { %v7453_v24 = vadd.f32 %v7434_v15, %v7274_v54  ;;  %v19398_v28 = vpop.f32.mrf.mxu0 }
 0x5f7   : > { %v19400_v45 = vpop.f32.mrf.mxu1 }
 0x5f8   : > { %v7558_v26 = vpop.f32.mrf.mxu0  ;;  %15022 = vmatmul.mubr.msk.bf16.vlgmr.msra.gmra.mxu0 %vm826_vm8, %v15512_v10 }
 0x5f9   : > { %v7630_v37 = vadd.f32 %v7558_v26, %v7439_v33  ;;  %v7611_v39 = vpop.f32.mrf.mxu1  ;;  %15024 = vmatmul.mubr.msk.bf16.vlgmr.msra.gmra.mxu1 %vm826_vm8, %v15512_v10  ;;  %9642 = vmatprep.mubr.bf16.mxu0 %v21694_v2 }
 0x5fa   : > { %v7632_v50 = vadd.f32 %v7611_v39, %v7441_v4  ;;  %v7560_v61 = vpop.f32.mrf.mxu0  ;;  %9695 = vmatprep.mubr.bf16.mxu1 %v21694_v2 }
 0x5fb   : > { %v7631_v27 = vadd.f32 %v7560_v61, %v7440_v49  ;;  %v7613_v59 = vpop.f32.mrf.mxu1 }
 0x5fc   : > { %v7633_v46 = vadd.f32 %v7613_v59, %v7442_v53  ;;  %v7562_v21 = vpop.f32.mrf.mxu0 }
 0x5fd   : > { %v7634_v23 = vadd.f32 %v7562_v21, %v7443_v48  ;;  %v7615_v32 = vpop.f32.mrf.mxu1 }
 0x5fe   : > { %v7636_v16 = vadd.f32 %v7615_v32, %v7445_v3  ;;  %v19409_v63 = vpop.f32.mrf.mxu0 }
 0x5ff   : > { %v19411_v54 = vpop.f32.mrf.mxu1 }
 0x600   : > { %v7568_v9 = vpop.f32.mrf.mxu0  ;;  %15023 = vmatmul.mubr.msk.bf16.gmra.mxu0 %vm826_vm8, %v15513_v14 }
 0x601   : > { %v7638_v0 = vadd.f32 %v7568_v9, %v7447_v51  ;;  %v7621_v60 = vpop.f32.mrf.mxu1  ;;  %15025 = vmatmul.mubr.msk.bf16.gmra.mxu1 %vm826_vm8, %v15513_v14  ;;  %9978 = vmatprep.mubr.bf16.mxu0 %v21694_v2 }
 0x602   : > { %v7640_v18 = vadd.f32 %v7621_v60, %v7449_v29  ;;  %v7570_v47 = vpop.f32.mrf.mxu0  ;;  %10031 = vmatprep.mubr.bf16.mxu1 %v21694_v2 }
 0x603   : > { %v7639_v33 = vadd.f32 %v7570_v47, %v7448_v20  ;;  %v7623_v56 = vpop.f32.mrf.mxu1 }
 0x604   : > { %v7641_v22 = vadd.f32 %v7623_v56, %v7450_v44  ;;  %v7572_v19 = vpop.f32.mrf.mxu0 }
 0x605   : > { %v7642_v13 = vadd.f32 %v7572_v19, %v7451_v11  ;;  %v7625_v4 = vpop.f32.mrf.mxu1 }
 0x606   : > { %v7644_v7 = vadd.f32 %v7625_v4, %v7453_v24  ;;  %v19417_v49 = vpop.f32.mrf.mxu0 }
 0x607   : > { %v19419_v5 = vpop.f32.mrf.mxu1 }
 0x608   : > { %v7731_v6 = vpop.f32.mrf.mxu0 }
 0x609   : > { %v7803_v53 = vadd.f32 %v7731_v6, %v7630_v37  ;;  %v7784_v36 = vpop.f32.mrf.mxu1 }
 0x60a   : > { %v7805_v52 = vadd.f32 %v7784_v36, %v7632_v50  ;;  %v7733_v48 = vpop.f32.mrf.mxu0 }
 0x60b   : > { %v7804_v42 = vadd.f32 %v7733_v48, %v7631_v27  ;;  %v7786_v17 = vpop.f32.mrf.mxu1 }
 0x60c   : > { %v7806_v3 = vadd.f32 %v7786_v17, %v7633_v46  ;;  %v7735_v38 = vpop.f32.mrf.mxu0 }
 0x60d   : > { %v7807_v51 = vadd.f32 %v7735_v38, %v7634_v23  ;;  %v7788_v55 = vpop.f32.mrf.mxu1 }
 0x60e   : > { %v7809_v29 = vadd.f32 %v7788_v55, %v7636_v16  ;;  %v19421_v41 = vpop.f32.mrf.mxu0 }
 0x60f   : > { %v19423_v20 = vpop.f32.mrf.mxu1 }
 0x610   : > { %v7741_v57 = vpop.f32.mrf.mxu0 }
 0x611   : > { %v7811_v44 = vadd.f32 %v7741_v57, %v7638_v0  ;;  %v7794_v58 = vpop.f32.mrf.mxu1 }
 0x612   : > { %v7813_v10 = vadd.f32 %v7794_v58, %v7640_v18  ;;  %v7743_v11 = vpop.f32.mrf.mxu0 }
 0x613   : > { %v7812_v15 = vadd.f32 %v7743_v11, %v7639_v33  ;;  %v7796_v24 = vpop.f32.mrf.mxu1 }
 0x614   : > { %v7814_v26 = vadd.f32 %v7796_v24, %v7641_v22  ;;  %v7745_v37 = vpop.f32.mrf.mxu0 }
 0x615   : > { %v7815_v39 = vadd.f32 %v7745_v37, %v7642_v13  ;;  %v7798_v50 = vpop.f32.mrf.mxu1 }
 0x616   : > { %v7817_v61 = vadd.f32 %v7798_v50, %v7644_v7  ;;  %v19425_v27 = vpop.f32.mrf.mxu0 }
 0x617   : > { %v19427_v59 = vpop.f32.mrf.mxu1 }
 0x618   : > { %v7904_v46 = vpop.f32.mrf.mxu0 }
 0x619   : > { %v7976_v21 = vadd.f32 %v7904_v46, %v7803_v53  ;;  %v7957_v14 = vpop.f32.mrf.mxu1 }
 0x61a   : > { %v7978_v23 = vadd.f32 %v7957_v14, %v7805_v52  ;;  %v7906_v32 = vpop.f32.mrf.mxu0 }
 0x61b   : > { %v7977_v16 = vadd.f32 %v7906_v32, %v7804_v42  ;;  %v7959_v9 = vpop.f32.mrf.mxu1 }
 0x61c   : > { %v7979_v0 = vadd.f32 %v7959_v9, %v7806_v3  ;;  %v7908_v60 = vpop.f32.mrf.mxu0 }
 0x61d   : > { %v7980_v18 = vadd.f32 %v7908_v60, %v7807_v51  ;;  %v7961_v47 = vpop.f32.mrf.mxu1 }
 0x61e   : > { %v7982_v33 = vadd.f32 %v7961_v47, %v7809_v29  ;;  %v19429_v56 = vpop.f32.mrf.mxu0 }
 0x61f   : > { %v19431_v22 = vpop.f32.mrf.mxu1 }
 0x620   : > { %v7914_v19 = vpop.f32.mrf.mxu0 }
 0x621   : > { %v7984_v13 = vadd.f32 %v7914_v19, %v7811_v44  ;;  %v7967_v4 = vpop.f32.mrf.mxu1 }
 0x622   : > { %v7986_v7 = vadd.f32 %v7967_v4, %v7813_v10  ;;  %v7916_v6 = vpop.f32.mrf.mxu0 }
 0x623   : > { %v7985_v53 = vadd.f32 %v7916_v6, %v7812_v15  ;;  %v7969_v36 = vpop.f32.mrf.mxu1 }
 0x624   : > { %v7987_v52 = vadd.f32 %v7969_v36, %v7814_v26  ;;  %v7918_v48 = vpop.f32.mrf.mxu0 }
 0x625   : > { %v7988_v42 = vadd.f32 %v7918_v48, %v7815_v39  ;;  %v7971_v17 = vpop.f32.mrf.mxu1 }
 0x626   : > { %v7990_v3 = vadd.f32 %v7971_v17, %v7817_v61  ;;  %v19433_v38 = vpop.f32.mrf.mxu0 }
 0x627   : > { %v19435_v51 = vpop.f32.mrf.mxu1 }
 0x628   : > { %v8077_v55 = vpop.f32.mrf.mxu0 }
 0x629   : > { %v8149_v29 = vadd.f32 %v8077_v55, %v7976_v21  ;;  %v8130_v57 = vpop.f32.mrf.mxu1 }
 0x62a   : > { %v8151_v58 = vadd.f32 %v8130_v57, %v7978_v23  ;;  %v8079_v11 = vpop.f32.mrf.mxu0 }
 0x62b   : > { %v8150_v44 = vadd.f32 %v8079_v11, %v7977_v16  ;;  %v8132_v24 = vpop.f32.mrf.mxu1 }
 0x62c   : > { %v8152_v10 = vadd.f32 %v8132_v24, %v7979_v0  ;;  %v8081_v37 = vpop.f32.mrf.mxu0 }
 0x62d   : > { %v8153_v15 = vadd.f32 %v8081_v37, %v7980_v18  ;;  %v8134_v50 = vpop.f32.mrf.mxu1 }
 0x62e   : > { %v8155_v26 = vadd.f32 %v8134_v50, %v7982_v33  ;;  %v19437_v46 = vpop.f32.mrf.mxu0 }
 0x62f   : > { %v19439_v39 = vpop.f32.mrf.mxu1 }
 0x630   : > { %v8087_v61 = vpop.f32.mrf.mxu0 }
 0x631   : > { %v8157_v14 = vadd.f32 %v8087_v61, %v7984_v13  ;;  %v8140_v32 = vpop.f32.mrf.mxu1 }
 0x632   : > { %v8159_v9 = vadd.f32 %v8140_v32, %v7986_v7  ;;  %v8089_v60 = vpop.f32.mrf.mxu0 }
 0x633   : > { %v8158_v21 = vadd.f32 %v8089_v60, %v7985_v53  ;;  %v8142_v47 = vpop.f32.mrf.mxu1 }
 0x634   : > { %v8160_v23 = vadd.f32 %v8142_v47, %v7987_v52  ;;  %v8091_v19 = vpop.f32.mrf.mxu0 }
 0x635   : > { %v8161_v16 = vadd.f32 %v8091_v19, %v7988_v42  ;;  %v8144_v4 = vpop.f32.mrf.mxu1 }
 0x636   : > { %v8163_v0 = vadd.f32 %v8144_v4, %v7990_v3  ;;  %v19441_v6 = vpop.f32.mrf.mxu0 }
 0x637   : > { %v19443_v18 = vpop.f32.mrf.mxu1 }
 0x638   : > { %v8250_v33 = vpop.f32.mrf.mxu0 }
 0x639   : > { %v8322_v36 = vadd.f32 %v8250_v33, %v8149_v29  ;;  %v8303_v48 = vpop.f32.mrf.mxu1 }
 0x63a   : > { %v8324_v17 = vadd.f32 %v8303_v48, %v8151_v58  ;;  %v8252_v55 = vpop.f32.mrf.mxu0 }
 0x63b   : > { %v8323_v13 = vadd.f32 %v8252_v55, %v8150_v44  ;;  %v8305_v57 = vpop.f32.mrf.mxu1 }
 0x63c   : > { %v8325_v7 = vadd.f32 %v8305_v57, %v8152_v10  ;;  %v8254_v11 = vpop.f32.mrf.mxu0 }
 0x63d   : > { %v8326_v53 = vadd.f32 %v8254_v11, %v8153_v15  ;;  %v8307_v24 = vpop.f32.mrf.mxu1 }
 0x63e   : > { %v8328_v52 = vadd.f32 %v8307_v24, %v8155_v26  ;;  %v19445_v37 = vpop.f32.mrf.mxu0 }
 0x63f   : > { %v19447_v42 = vpop.f32.mrf.mxu1 }
 0x640   : > { %v8260_v3 = vpop.f32.mrf.mxu0 }
 0x641   : > { %v8330_v50 = vadd.f32 %v8260_v3, %v8157_v14  ;;  %v8313_v61 = vpop.f32.mrf.mxu1 }
 0x642   : > { %v8332_v32 = vadd.f32 %v8313_v61, %v8159_v9  ;;  %v8262_v60 = vpop.f32.mrf.mxu0 }
 0x643   : > { %v8331_v29 = vadd.f32 %v8262_v60, %v8158_v21  ;;  %v8315_v47 = vpop.f32.mrf.mxu1 }
 0x644   : > { %v8333_v58 = vadd.f32 %v8315_v47, %v8160_v23  ;;  %v8264_v19 = vpop.f32.mrf.mxu0 }
 0x645   : > { %v8334_v44 = vadd.f32 %v8264_v19, %v8161_v16  ;;  %v8317_v4 = vpop.f32.mrf.mxu1 }
 0x646   : > { %v8336_v10 = vadd.f32 %v8317_v4, %v8163_v0  ;;  %v19449_v33 = vpop.f32.mrf.mxu0 }
 0x647   : > { %v19451_v15 = vpop.f32.mrf.mxu1 }
 0x648   : > { %v8423_v26 = vpop.f32.mrf.mxu0 }
 0x649   : > { %v8495_v48 = vadd.f32 %v8423_v26, %v8322_v36  ;;  %v8476_v55 = vpop.f32.mrf.mxu1 }
 0x64a   : > { %v8497_v57 = vadd.f32 %v8476_v55, %v8324_v17  ;;  %v8425_v11 = vpop.f32.mrf.mxu0 }
 0x64b   : > { %v8496_v14 = vadd.f32 %v8425_v11, %v8323_v13  ;;  %v8478_v24 = vpop.f32.mrf.mxu1 }
 0x64c   : > { %v8498_v9 = vadd.f32 %v8478_v24, %v8325_v7  ;;  %v8427_v3 = vpop.f32.mrf.mxu0 }
 0x64d   : > { %v8499_v21 = vadd.f32 %v8427_v3, %v8326_v53  ;;  %v8480_v61 = vpop.f32.mrf.mxu1 }
 0x64e   : > { %v8501_v23 = vadd.f32 %v8480_v61, %v8328_v52  ;;  %v19453_v60 = vpop.f32.mrf.mxu0 }
 0x64f   : > { %v19455_v16 = vpop.f32.mrf.mxu1 }
 0x650   : > { %v8433_v0 = vpop.f32.mrf.mxu0 }
 0x651   : > { %v8503_v47 = vadd.f32 %v8433_v0, %v8330_v50  ;;  %v8486_v19 = vpop.f32.mrf.mxu1 }
 0x652   : > { %v8505_v4 = vadd.f32 %v8486_v19, %v8332_v32  ;;  %v8435_v2 = vpop.f32.mrf.mxu0 }
 0x653   : > { %v8504_v36 = vadd.f32 %v8435_v2, %v8331_v29  ;;  %v8488_v26 = vpop.f32.mrf.mxu1 }
 0x654   : > { %v8506_v17 = vadd.f32 %v8488_v26, %v8333_v58  ;;  %v8437_v55 = vpop.f32.mrf.mxu0 }
 0x655   : > { %v8507_v13 = vadd.f32 %v8437_v55, %v8334_v44  ;;  %v8490_v11 = vpop.f32.mrf.mxu1 }
 0x656   : > { %v8509_v7 = vadd.f32 %v8490_v11, %v8336_v10  ;;  %v19457_v24 = vpop.f32.mrf.mxu0 }
 0x657   : > { %v19459_v53 = vpop.f32.mrf.mxu1 }
 0x658   : > { %v8596_v52 = vpop.f32.mrf.mxu0 }
 0x659   : > { %v8668_v3 = vadd.f32 %v8596_v52, %v8495_v48  ;;  %v8649_v61 = vpop.f32.mrf.mxu1 }
 0x65a   : > { %v8670_v40 = vadd.f32 %v8649_v61, %v8497_v57  ;;  %v8598_v1 = vpop.f32.mrf.mxu0 }
 0x65b   : > { %v8669_v50 = vadd.f32 %v8598_v1, %v8496_v14  ;;  %v8651_v0 = vpop.f32.mrf.mxu1 }
 0x65c   : > { %v8671_v32 = vadd.f32 %v8651_v0, %v8498_v9  ;;  %v8600_v19 = vpop.f32.mrf.mxu0 }
 0x65d   : > { %v8672_v2 = vadd.f32 %v8600_v19, %v8499_v21  ;;  %v8653_v29 = vpop.f32.mrf.mxu1 }
 0x65e   : > { %v8674_v58 = vadd.f32 %v8653_v29, %v8501_v23  ;;  %v19461_v26 = vpop.f32.mrf.mxu0 }
 0x65f   : > { %v19463_v44 = vpop.f32.mrf.mxu1 }
 0x660   : > { %v8606_v10 = vpop.f32.mrf.mxu0 }
 0x661   : > { %v8676_v55 = vadd.f32 %v8606_v10, %v8503_v47  ;;  %v8659_v11 = vpop.f32.mrf.mxu1 }
 0x662   : > { %v8678_v31 = vadd.f32 %v8659_v11, %v8505_v4  ;;  %v8608_v62 = vpop.f32.mrf.mxu0 }
 0x663   : > { %v8677_v48 = vadd.f32 %v8608_v62, %v8504_v36  ;;  %v8661_v52 = vpop.f32.mrf.mxu1 }
 0x664   : > { %v8679_v57 = vadd.f32 %v8661_v52, %v8506_v17  ;;  %v8610_v61 = vpop.f32.mrf.mxu0 }
 0x665   : > { %v8680_v1 = vadd.f32 %v8610_v61, %v8507_v13  ;;  %v8663_v14 = vpop.f32.mrf.mxu1 }
 0x666   : > { %v8682_v9 = vadd.f32 %v8663_v14, %v8509_v7  ;;  %v19465_v0 = vpop.f32.mrf.mxu0 }
 0x667   : > { %v19467_v21 = vpop.f32.mrf.mxu1 }
 0x668   : > { %v8769_v23 = vpop.f32.mrf.mxu0 }
 0x669   : > { %v19469_v19 = vadd.f32 %v8769_v23, %v8668_v3  ;;  %v8822_v29 = vpop.f32.mrf.mxu1 }
 0x66a   : > { %v19471_v25 = vadd.f32 %v8822_v29, %v8670_v40  ;;  %v8771_v47 = vpop.f32.mrf.mxu0 }
 0x66b   : > { %v19473_v4 = vadd.f32 %v8771_v47, %v8669_v50  ;;  %v8824_v62 = vpop.f32.mrf.mxu1 }
 0x66c   : > { %v19475_v36 = vadd.f32 %v8824_v62, %v8671_v32  ;;  %v8773_v17 = vpop.f32.mrf.mxu0 }
 0x66d   : > { %v19477_v13 = vadd.f32 %v8773_v17, %v8672_v2  ;;  %v8826_v7 = vpop.f32.mrf.mxu1 }
 0x66e   : > { %v19479_v10 = vadd.f32 %v8826_v7, %v8674_v58  ;;  %v19481_v11 = vpop.f32.mrf.mxu0 }
 0x66f   : > { %v19483_v52 = vpop.f32.mrf.mxu1 }
 0x670   : > { %v8779_v3 = vpop.f32.mrf.mxu0 }
 0x671   : > { %v19485_v61 = vadd.f32 %v8779_v3, %v8676_v55  ;;  %v8832_v40 = vpop.f32.mrf.mxu1 }
 0x672   : > { %v19487_v14 = vadd.f32 %v8832_v40, %v8678_v31  ;;  %v8781_v50 = vpop.f32.mrf.mxu0 }
 0x673   : > { %21750 = vst [vmem:[#allocation15_spill] sm:$0xff] %v19485_v61  ;;  %v19489_v23 = vadd.f32 %v8781_v50, %v8677_v48  ;;  %v8834_v32 = vpop.f32.mrf.mxu1 }
 0x674   : > { %21751 = vst [vmem:[#allocation9_spill] sm:$0xff] %v19487_v14  ;;  %v19491_v29 = vadd.f32 %v8834_v32, %v8679_v57  ;;  %v8783_v2 = vpop.f32.mrf.mxu0 }
 0x675   : > { %21752 = vst [vmem:[#allocation16_spill] sm:$0xff] %v19489_v23  ;;  %v19493_v47 = vadd.f32 %v8783_v2, %v8680_v1  ;;  %v8836_v58 = vpop.f32.mrf.mxu1 }
 0x676   : > { %21753 = vst [vmem:[#allocation10_spill] sm:$0xff] %v19491_v29  ;;  %v19495_v62 = vadd.f32 %v8836_v58, %v8682_v9  ;;  %v19497_v17 = vpop.f32.mrf.mxu0 }
 0x677   : > { %21754 = vst [vmem:[#allocation17_spill] sm:$0xff] %v19493_v47  ;;  %v19499_v7 = vpop.f32.mrf.mxu1 }
 0x678   : > { %21755 = vst [vmem:[#allocation11_spill] sm:$0xff] %v19495_v62  ;;  %v19501_v55 = vpop.f32.mrf.mxu0 }
 0x679   : > { %v19503_v31 = vpop.f32.mrf.mxu1 }
 0x67a   : > { %v19505_v3 = vpop.f32.mrf.mxu0 }
 0x67b   : > { %v19507_v48 = vpop.f32.mrf.mxu1 }
 0x67c   : > { %v19509_v57 = vpop.f32.mrf.mxu0 }
 0x67d   : > { %v19511_v40 = vpop.f32.mrf.mxu1 }
 0x67e   : > { %v19513_v1 = vpop.f32.mrf.mxu0 }
 0x67f   : > { %v19515_v9 = vpop.f32.mrf.mxu1 }
 0x680   : > { %21756 = vst [vmem:[#allocation18_spill] sm:$0xff] %v19515_v9  ;;  %v19517_v50 = vpop.f32.mrf.mxu0 }
 0x681   : > { %21757 = vst [vmem:[#allocation12_spill] sm:$0xff] %v19517_v50  ;;  %v19519_v32 = vpop.f32.mrf.mxu1 }
 0x682   : > { %21758 = vst [vmem:[#allocation19_spill] sm:$0xff] %v19519_v32  ;;  %v19521_v2 = vpop.f32.mrf.mxu0 }
 0x683   : > { %21759 = vst [vmem:[#allocation13_spill] sm:$0xff] %v19521_v2  ;;  %v19523_v58 = vpop.f32.mrf.mxu1 }
 0x684   : > { %21760 = vst [vmem:[#allocation20_spill] sm:$0xff] %v19523_v58  ;;  %v19525_v62 = vpop.f32.mrf.mxu0 }
 0x685   : > { %21761 = vst [vmem:[#allocation14_spill] sm:$0xff] %v19525_v62  ;;  %v19527_v47 = vpop.f32.mrf.mxu1 }
 0x686   : > { %21762 = vst [vmem:[#allocation21_spill] sm:$0xff] %v19527_v47  ;;  %v19529_v29 = vpop.f32.mrf.mxu0 }
 0x687   : > { %21763 = vst [vmem:[#allocation22_spill] sm:$0xff] %v19529_v29  ;;  %v19531_v23 = vpop.f32.mrf.mxu1 }
 0x688   : > { %21764 = vst [vmem:[#allocation23_spill] sm:$0xff] %v19531_v23  ;;  %v19533_v14 = vpop.f32.mrf.mxu0 }
 0x689   : > { %21765 = vst [vmem:[#allocation24_spill] sm:$0xff] %v19533_v14  ;;  %v19535_v61 = vpop.f32.mrf.mxu1 }
 0x68a   : > { %21766 = vst [vmem:[#allocation25_spill] sm:$0xff] %v19535_v61  ;;  %v19537_v9 = vpop.f32.mrf.mxu0 }
 0x68b   : > { %21767 = vst [vmem:[#allocation26_spill] sm:$0xff] %v19537_v9  ;;  %v19539_v50 = vpop.f32.mrf.mxu1 }
 0x68c   : > { %21768 = vst [vmem:[#allocation27_spill] sm:$0xff] %v19539_v50  ;;  %v19541_v32 = vpop.f32.mrf.mxu0 }
 0x68d   : > { %21769 = vst [vmem:[#allocation28_spill] sm:$0xff] %v19541_v32  ;;  %v19543_v2 = vpop.f32.mrf.mxu1 }
 0x68e   : > { %21770 = vst [vmem:[#allocation29_spill] sm:$0xff] %v19543_v2  ;;  %v19545_v58 = vpop.f32.mrf.mxu0 }
 0x68f   : > { %21771 = vst [vmem:[#allocation30_spill] sm:$0xff] %v19545_v58  ;;  %v19547_v62 = vpop.f32.mrf.mxu1 }
 0x690   : > { %21772 = vst [vmem:[#allocation31_spill] sm:$0xff] %v19547_v62  ;;  %v19549_v47 = vpop.f32.mrf.mxu0 }
 0x691   : > { %v19551_v29 = vpop.f32.mrf.mxu1 }
 0x692   : > { %21773 = vst [vmem:[#allocation32_spill] sm:$0xff] %v19551_v29  ;;  %v19553_v23 = vpop.f32.mrf.mxu0  ;;  %v7444_v29 = vadd.f32 %v19387_v8, %v19350_v35 }
 0x693   : > { %21774 = vst [vmem:[#allocation33_spill] sm:$0xff] %v19553_v23  ;;  %v19555_v14 = vpop.f32.mrf.mxu1 }
 0x694   : > { %21775 = vst [vmem:[#allocation34_spill] sm:$0xff] %v19555_v14  ;;  %v19557_v61 = vpop.f32.mrf.mxu0  ;;  %v7446_v14 = vadd.f32 %v19389_v43, %v19353_v12 }
 0x695   : > { %v19559_v9 = vpop.f32.mrf.mxu1 }
 0x696   : > { %21776 = vst [vmem:[#allocation35_spill] sm:$0xff] %v19559_v9  ;;  %v19561_v50 = vpop.f32.mrf.mxu0  ;;  %v7452_v9 = vadd.f32 %v19398_v28, %v19367_v30 }
 0x697   : > { %21777 = vst [vmem:[#allocation36_spill] sm:$0xff] %v19561_v50  ;;  %v19563_v32 = vpop.f32.mrf.mxu1 }
 0x698   : > { %21778 = vst [vmem:[#allocation37_spill] sm:$0xff] %v19563_v32  ;;  %v19565_v2 = vpop.f32.mrf.mxu0  ;;  %v7454_v32 = vadd.f32 %v19400_v45, %v19371_v34  ;;  %v7643_v35 = vadd.f32 %v19417_v49, %v7452_v9 }
 0x699   : > { %21779 = vst [vmem:[#allocation38_spill] sm:$0xff] %v19565_v2  ;;  %v19567_v58 = vpop.f32.mrf.mxu1 }
 0x69a   : > { %21780 = vst [vmem:[#allocation39_spill] sm:$0xff] %v19567_v58  ;;  %v19569_v62 = vpop.f32.mrf.mxu0  ;;  %v7635_v58 = vadd.f32 %v19409_v63, %v7444_v29  ;;  %v7645_v12 = vadd.f32 %v19419_v5, %v7454_v32  ;;  %v7816_v34 = vadd.f32 %v19425_v27, %v7643_v35 }
 0x69b   : > { %21781 = vst [vmem:[#allocation40_spill] sm:$0xff] %v19569_v62  ;;  %v19575_v23 = vpop.f32.mrf.mxu1  ;;  %v7637_v62 = vadd.f32 %v19411_v54, %v7446_v14 }
 0x69c   : > { %v19581_v50 = vpop.f32.mrf.mxu0  ;;  %v7808_v43 = vadd.f32 %v19421_v41, %v7635_v58  ;;  %v7818_v45 = vadd.f32 %v19427_v59, %v7645_v12  ;;  %v7989_v5 = vadd.f32 %v19433_v38, %v7816_v34 }
 0x69d   : > { %v19585_v2 = vpop.f32.mrf.mxu1  ;;  %v7810_v30 = vadd.f32 %v19423_v20, %v7637_v62 }
 0x69e   : > { %v19589_v8 = vpop.f32.mrf.mxu0  ;;  %v7981_v54 = vadd.f32 %v19429_v56, %v7808_v43  ;;  %v7991_v41 = vadd.f32 %v19435_v51, %v7818_v45  ;;  %v8162_v59 = vadd.f32 %v19441_v6, %v7989_v5  ;;  %v21785_v5 = vld [vmem:[#allocation9_spill] sm:$0xff] }
 0x69f   : > { %v19593_v28 = vpop.f32.mrf.mxu1  ;;  %v7983_v49 = vadd.f32 %v19431_v22, %v7810_v30 }
 0x6a0   : > { %v19597_v63 = vpop.f32.mrf.mxu0  ;;  %v8154_v20 = vadd.f32 %v19437_v46, %v7981_v54  ;;  %v8164_v56 = vadd.f32 %v19443_v18, %v7991_v41  ;;  %v8335_v51 = vadd.f32 %v19449_v33, %v8162_v59  ;;  %v21784_v54 = vld [vmem:[#allocation12_spill] sm:$0xff] }
 0x6a1   : > { %v19601_v14 = vpop.f32.mrf.mxu1  ;;  %v8156_v27 = vadd.f32 %v19439_v39, %v7983_v49 }
 0x6a2   : > { %v19605_v29 = vpop.f32.mrf.mxu0  ;;  %v8327_v22 = vadd.f32 %v19445_v37, %v8154_v20  ;;  %v8337_v46 = vadd.f32 %v19451_v15, %v8164_v56  ;;  %v8508_v18 = vadd.f32 %v19457_v24, %v8335_v51  ;;  %v21793_v56 = vld [vmem:[#allocation11_spill] sm:$0xff]  ;;  %v21795_v51 = vld [vmem:[#allocation22_spill] sm:$0xff] }
 0x6a3   : > { %v19609_v62 = vpop.f32.mrf.mxu1  ;;  %v8329_v38 = vadd.f32 %v19447_v42, %v8156_v27 }
 0x6a4   : > { %v19613_v9 = vpop.f32.mrf.mxu0  ;;  %v8500_v39 = vadd.f32 %v19453_v60, %v8327_v22  ;;  %v8510_v37 = vadd.f32 %v19459_v53, %v8337_v46  ;;  %v8681_v15 = vadd.f32 %v19465_v0, %v8508_v18  ;;  %v9016_v0 = vadd.f32 %v19503_v31, %v19471_v25  ;;  %v21783_v31 = vld [vmem:[#allocation15_spill] sm:$0xff]  ;;  %v21797_v18 = vld [vmem:[#allocation24_spill] sm:$0xff] }
 0x6a5   : > { %v19617_v32 = vpop.f32.mrf.mxu1  ;;  %v8502_v6 = vadd.f32 %v19455_v16, %v8329_v38  ;;  %v9022_v49 = vadd.f32 %v21784_v54, %v21783_v31  ;;  %v21801_v31 = vld [vmem:[#allocation28_spill] sm:$0xff] }
 0x6a6   : > { %v19621_v58 = vpop.f32.mrf.mxu0  ;;  %v8673_v42 = vadd.f32 %v19461_v26, %v8500_v39  ;;  %v8683_v60 = vadd.f32 %v19467_v21, %v8510_v37  ;;  %v8854_v53 = vadd.f32 %v19497_v17, %v8681_v15  ;;  %v9015_v21 = vadd.f32 %v19505_v3, %v19473_v4  ;;  %v21786_v4 = vld [vmem:[#allocation19_spill] sm:$0xff] }
 0x6a7   : > { %v19625_v35 = vpop.f32.mrf.mxu1  ;;  %v8675_v33 = vadd.f32 %v19463_v44, %v8502_v6  ;;  %v9014_v44 = vadd.f32 %v19501_v55, %v19469_v19  ;;  %v9020_v17 = vadd.f32 %v19511_v40, %v19479_v10  ;;  %v21782_v55 = vld [vmem:[#allocation18_spill] sm:$0xff]  ;;  %v9024_v3 = vadd.f32 %v21786_v4, %v21785_v5  ;;  %v21791_v10 = vld [vmem:[#allocation17_spill] sm:$0xff]  ;;  %v21796_v39 = vld [vmem:[#allocation23_spill] sm:$0xff] }
 0x6a8   : > { %v19629_v12 = vpop.f32.mrf.mxu0  ;;  %v8846_v16 = vadd.f32 %v19481_v11, %v8673_v42  ;;  %v8856_v26 = vadd.f32 %v19499_v7, %v8683_v60  ;;  %v9017_v11 = vadd.f32 %v19507_v48, %v19475_v36  ;;  %v21787_v36 = vld [vmem:[#allocation16_spill] sm:$0xff]  ;;  %v21788_v48 = vld [vmem:[#allocation13_spill] sm:$0xff]  ;;  %v21792_v40 = vld [vmem:[#allocation14_spill] sm:$0xff]  ;;  %v9027_v46 = vadd.f32 %v21795_v51, %v8854_v53 }
 0x6a9   : > { %v19633_v43 = vpop.f32.mrf.mxu1  ;;  %v8848_v24 = vadd.f32 %v19483_v52, %v8675_v33  ;;  %v9018_v52 = vadd.f32 %v19509_v57, %v19477_v13  ;;  %v9023_v20 = vadd.f32 %v21788_v48, %v21787_v36  ;;  %v21789_v13 = vld [vmem:[#allocation10_spill] sm:$0xff]  ;;  %v21790_v57 = vld [vmem:[#allocation20_spill] sm:$0xff]  ;;  %v9026_v59 = vadd.f32 %v21792_v40, %v21791_v10  ;;  %v21798_v42 = vld [vmem:[#allocation25_spill] sm:$0xff] }
 0x6aa   : > { %v19637_v30 = vpop.f32.mrf.mxu0  ;;  %v9019_v19 = vadd.f32 %v19513_v1, %v8846_v16  ;;  %v9025_v27 = vadd.f32 %v21790_v57, %v21789_v13  ;;  %v21794_v1 = vld [vmem:[#allocation21_spill] sm:$0xff]  ;;  %v9029_v6 = vadd.f32 %v21796_v39, %v8856_v26  ;;  %v9187_v37 = vadd.f32 %v21797_v18, %v9014_v44  ;;  %v21799_v60 = vld [vmem:[#allocation26_spill] sm:$0xff]  ;;  %v21804_v57 = vld [vmem:[#allocation31_spill] sm:$0xff] }
 0x6ab   : > { %v19641_v34 = vpop.f32.mrf.mxu1  ;;  %v9021_v25 = vadd.f32 %v21782_v55, %v8848_v24  ;;  %v9028_v22 = vadd.f32 %v21794_v1, %v21793_v56  ;;  %v9189_v33 = vadd.f32 %v21798_v42, %v9016_v0  ;;  %v9188_v16 = vadd.f32 %v21799_v60, %v9015_v21  ;;  %v21800_v24 = vld [vmem:[#allocation27_spill] sm:$0xff]  ;;  %v21802_v5 = vld [vmem:[#allocation29_spill] sm:$0xff]  ;;  %v21803_v48 = vld [vmem:[#allocation30_spill] sm:$0xff] }
 0x6ac   : > { %v19649_v45 = vpop.f32.mrf.mxu0  ;;  %v9190_v55 = vadd.f32 %v21800_v24, %v9017_v11  ;;  %v9191_v54 = vadd.f32 %v21801_v31, %v9018_v52  ;;  %v9193_v4 = vadd.f32 %v21802_v5, %v9020_v17  ;;  %v9192_v13 = vadd.f32 %v21803_v48, %v9019_v19  ;;  %v21805_v10 = vld [vmem:[#allocation32_spill] sm:$0xff]  ;;  %v21806_v0 = vld [vmem:[#allocation33_spill] sm:$0xff]  ;;  %v21807_v1 = vld [vmem:[#allocation34_spill] sm:$0xff]  ;;  %v19691_v17 = vpop.permute.xlu0 %9739 }
 0x6ad   : > { %v19659_v7 = vpop.f32.mrf.mxu1  ;;  %v9194_v53 = vadd.f32 %v21804_v57, %v9021_v25  ;;  %v9195_v26 = vadd.f32 %v19549_v47, %v9022_v49  ;;  %v9197_v44 = vadd.f32 %v21805_v10, %v9024_v3  ;;  %v9196_v56 = vadd.f32 %v21806_v0, %v9023_v20  ;;  %v21808_v51 = vld [vmem:[#allocation35_spill] sm:$0xff]  ;;  %v21809_v18 = vld [vmem:[#allocation36_spill] sm:$0xff]  ;;  %v21810_v42 = vld [vmem:[#allocation37_spill] sm:$0xff] }
 0x6ae   : > { %v9467_v41 = vpop.f32.mrf.mxu0  ;;  %v9198_v21 = vadd.f32 %v21807_v1, %v9025_v27  ;;  %v9199_v11 = vadd.f32 %v19557_v61, %v9026_v59  ;;  %v9201_v52 = vadd.f32 %v21808_v51, %v9028_v22  ;;  %v9200_v19 = vadd.f32 %v21809_v18, %v9027_v46  ;;  %v21811_v60 = vld [vmem:[#allocation38_spill] sm:$0xff]  ;;  %v21812_v49 = vld [vmem:[#allocation39_spill] sm:$0xff]  ;;  %v21813_v31 = vld [vmem:[#allocation40_spill] sm:$0xff] }
 0x6af   : > { %v9520_v38 = vpop.f32.mrf.mxu1  ;;  %v9202_v25 = vadd.f32 %v21810_v42, %v9029_v6  ;;  %v9360_v47 = vadd.f32 %v21811_v60, %v9187_v37  ;;  %v9362_v3 = vadd.f32 %v21812_v49, %v9189_v33  ;;  %v9361_v20 = vadd.f32 %v21813_v31, %v9188_v16  ;;  %v21815_v49 = vld [vmem:[#allocation4_spill] sm:$0xff] }
 0x6b0   : > { %v9471_v15 = vpop.f32.mrf.mxu0  ;;  %v9363_v27 = vadd.f32 %v19575_v23, %v9190_v55  ;;  %v9364_v61 = vadd.f32 %v19581_v50, %v9191_v54  ;;  %v9366_v59 = vadd.f32 %v19585_v2, %v9193_v4  ;;  %v9365_v5 = vadd.f32 %v19589_v8, %v9192_v13  ;;  %v19713_v55 = vpop.permute.xlu1 %9744 }
 0x6b1   : > { %v9524_v36 = vpop.f32.mrf.mxu1  ;;  %v9367_v46 = vadd.f32 %v19593_v28, %v9194_v53  ;;  %v9368_v6 = vadd.f32 %v19597_v63, %v9195_v26  ;;  %v9370_v37 = vadd.f32 %v19601_v14, %v9197_v44  ;;  %v9369_v33 = vadd.f32 %v19605_v29, %v9196_v56  ;;  %v9730_v13 = vpop.permute.xlu0 %9729 }
 0x6b2   : > { %v9473_v40 = vpop.f32.mrf.mxu0  ;;  %v9371_v16 = vadd.f32 %v19609_v62, %v9198_v21  ;;  %v9372_v23 = vadd.f32 %v19613_v9, %v9199_v11  ;;  %v9533_v50 = vadd.f32 %v19629_v12, %v9360_v47  ;;  %v9374_v8 = vadd.f32 %v19617_v32, %v9201_v52 }
 0x6b3   : > { %v9526_v39 = vpop.f32.mrf.mxu1  ;;  %v9373_v28 = vadd.f32 %v19621_v58, %v9200_v19  ;;  %v19718_v63 = vadd.f32 %v19625_v35, %v9202_v25  ;;  %v9535_v14 = vadd.f32 %v19633_v43, %v9362_v3  ;;  %v9534_v62 = vadd.f32 %v19637_v30, %v9361_v20 }
 0x6b4   : > { %v9475_v24 = vpop.f32.mrf.mxu0  ;;  %v9536_v9 = vadd.f32 %v19641_v34, %v9363_v27  ;;  %v9537_v12 = vadd.f32 %v19649_v45, %v9364_v61  ;;  %v9539_v57 = vadd.f32 %v19659_v7, %v9366_v59  ;;  %v9538_v32 = vadd.f32 %v9467_v41, %v9365_v5  ;;  %v9735_v7 = vpop.permute.xlu1 %9734  ;;  %v21816_v61 = vld [vmem:[#allocation6_spill] sm:$0xff] }
 0x6b5   : > { %v9528_v22 = vpop.f32.mrf.mxu1  ;;  %v9540_v53 = vadd.f32 %v9520_v38, %v9367_v46  ;;  %v9541_v35 = vadd.f32 %v9471_v15, %v9368_v6  ;;  %v9543_v10 = vadd.f32 %v9524_v36, %v9370_v37  ;;  %v9542_v56 = vadd.f32 %v9473_v40, %v9369_v33  ;;  %v21814_v36 = vld [vmem:[#allocation5_spill] sm:$0xff]  ;;  %v21817_v37 = vld [vmem:[#allocation7_spill] sm:$0xff] }
 0x6b6   : > { %v19705_v48 = vpop.f32.mrf.mxu0  ;;  %v9544_v30 = vadd.f32 %v9526_v39, %v9371_v16  ;;  %v9545_v45 = vadd.f32 %v9475_v24, %v9372_v23  ;;  %v9547_v41 = vadd.f32 %v9528_v22, %v9374_v8 }
 0x6b7   : > { %v19711_v2 = vpop.f32.mrf.mxu1 }
 0x6b8   : > { %v9634_v29 = vpop.f32.mrf.mxu0 }
 0x6b9   : > { %v9706_v54 = vadd.f32 %v9634_v29, %v9533_v50  ;;  %v9687_v4 = vpop.f32.mrf.mxu1 }
 0x6ba   : > { %v9708_v58 = vadd.f32 %v9687_v4, %v9535_v14  ;;  %v9636_v26 = vpop.f32.mrf.mxu0  ;;  %v9546_v14 = vadd.f32 %v19705_v48, %v9373_v28 }
 0x6bb   : > { %v9747_v44 = vadd.f32 %v9730_v13, %v9706_v54  ;;  %v9707_v43 = vadd.f32 %v9636_v26, %v9534_v62  ;;  %v9689_v0 = vpop.f32.mrf.mxu1 }
 0x6bc   : > { %v9749_v1 = vadd.f32 %v9730_v13, %v9708_v58  ;;  %v9709_v34 = vadd.f32 %v9689_v0, %v9536_v9  ;;  %v9638_v21 = vpop.f32.mrf.mxu0 }
 0x6bd   : > { %v9763_v11 = vmax.f32 %v9747_v44, 0.0  ;;  %v9748_v51 = vadd.f32 %v9730_v13, %v9707_v43  ;;  %v9710_v52 = vadd.f32 %v9638_v21, %v9537_v12  ;;  %v9691_v18 = vpop.f32.mrf.mxu1 }
 0x6be   : > { %v9765_v38 = vmax.f32 %v9749_v1, 0.0  ;;  %v9750_v19 = vadd.f32 %v9730_v13, %v9709_v34  ;;  %v9712_v42 = vadd.f32 %v9691_v18, %v9539_v57  ;;  %v9640_v15 = vpop.f32.mrf.mxu0 }
 0x6bf   : > { %v9779_v25 = vmul.f32 %v9763_v11, %v21814_v36  ;;  %v9764_v60 = vmax.f32 %v9748_v51, 0.0  ;;  %v9751_v47 = vadd.f32 %v9735_v7, %v9710_v52  ;;  %v9711_v40 = vadd.f32 %v9640_v15, %v9538_v32  ;;  %v9693_v39 = vpop.f32.mrf.mxu1 }
 0x6c0   : > { %v9781_v3 = vmul.f32 %v9765_v38, %v21815_v49  ;;  %v9766_v31 = vmax.f32 %v9750_v19, 0.0  ;;  %v9753_v24 = vadd.f32 %v9735_v7, %v9712_v42  ;;  %v9713_v20 = vadd.f32 %v9693_v39, %v9540_v53  ;;  %v9644_v27 = vpop.f32.mrf.mxu0 }
 0x6c1   : > { %v9780_v59 = vmul.f32 %v9764_v60, %v21816_v61  ;;  %v9767_v5 = vmax.f32 %v9751_v47, 0.0  ;;  %v9752_v22 = vadd.f32 %v9735_v7, %v9711_v40  ;;  %v9714_v46 = vadd.f32 %v9644_v27, %v9541_v35  ;;  %v9697_v6 = vpop.f32.mrf.mxu1 }
 0x6c2   : > { %v9782_v33 = vmul.f32 %v9766_v31, %v21817_v37  ;;  %v9769_v16 = vmax.f32 %v9753_v24, 0.0  ;;  %v9754_v23 = vadd.f32 %v9735_v7, %v9713_v20  ;;  %v9716_v50 = vadd.f32 %v9697_v6, %v9543_v10  ;;  %v9646_v8 = vpop.f32.mrf.mxu0 }
 0x6c3   : > { %v15333_v29 = vpack.c.bf16 %v9780_v59, %v9779_v25  ;;  %v9768_v62 = vmax.f32 %v9752_v22, 0.0  ;;  %v9755_v9 = vadd.f32 %v19691_v17, %v9714_v46  ;;  %v9699_v12 = vpop.f32.mrf.mxu1  ;;  %v9783_v4 = vmul.f32 %v9767_v5, %v21814_v36 }
 0x6c4   : > { %v15334_v54 = vpack.c.bf16 %v9782_v33, %v9781_v3  ;;  %v9770_v13 = vmax.f32 %v9754_v23, 0.0  ;;  %v9757_v57 = vadd.f32 %v19691_v17, %v9716_v50  ;;  %v9648_v32 = vpop.f32.mrf.mxu0  ;;  %v9785_v53 = vmul.f32 %v9769_v16, %v21815_v49  ;;  %v19776_v50 = vld [vmem:[#allocation2] ss:$20 sps:$4 sm:$0xff]  }
 0x6c5   : > { %9843 = vst [vmem:[#allocation2 + $0x4] sm:$0xff] %v15333_v29  ;;  %v9784_v58 = vmul.f32 %v9768_v62, %v21816_v61  ;;  %v9715_v26 = vadd.f32 %v9646_v8, %v9542_v56  ;;  %v9717_v35 = vadd.f32 %v9699_v12, %v9544_v30  ;;  %v9701_v48 = vpop.f32.mrf.mxu1  ;;  %v9771_v44 = vmax.f32 %v9755_v9, 0.0  ;;  %v19796_v62 = vld [vmem:[#allocation2 + $0x28] ss:$20 sps:$4 sm:$0xff]  }
 0x6c6   : > { %9844 = vst.msk [vmem:[#allocation2 + $0xc] sm:$0xff] %vm15774_vm6, %v15334_v54  ;;  %v9786_v10 = vmul.f32 %v9770_v13, %v21817_v37  ;;  %v9718_v43 = vadd.f32 %v9648_v32, %v9545_v45  ;;  %v9720_v0 = vadd.f32 %v9701_v48, %v9547_v41  ;;  %v9773_v34 = vmax.f32 %v9757_v57, 0.0  ;;  %v9650_v51 = vpop.f32.mrf.mxu0 }
 0x6c7   : > { %v15335_v1 = vpack.c.bf16 %v9784_v58, %v9783_v4  ;;  %v9756_v21 = vadd.f32 %v19691_v17, %v9715_v26  ;;  %v9758_v11 = vadd.f32 %v19691_v17, %v9717_v35  ;;  %v9703_v52 = vpop.f32.mrf.mxu1  ;;  %v9548_v56 = vadd.f32 %v19711_v2, %v19718_v63 }
 0x6c8   : > { %v15336_v30 = vpack.c.bf16 %v9786_v10, %v9785_v53  ;;  %v9759_v18 = vadd.f32 %v19713_v55, %v9718_v43  ;;  %v9761_v7 = vadd.f32 %v19713_v55, %v9720_v0  ;;  %v19744_v38 = vpack.c.bf16 %v9783_v4, %v9779_v25 }
 0x6c9   : > { %9845 = vst [vmem:[#allocation2 + $0x18] sm:$0xff] %v15335_v1  ;;  %v19746_v45 = vpack.c.bf16 %v9784_v58, %v9780_v59  ;;  %v9772_v41 = vmax.f32 %v9756_v21, 0.0  ;;  %v9774_v19 = vmax.f32 %v9758_v11, 0.0  ;;  %v9719_v17 = vadd.f32 %v9650_v51, %v9546_v14 }
 0x6ca   : > { %9846 = vst.msk [vmem:[#allocation2 + $0x20] sm:$0xff] %vm15774_vm6, %v15336_v30  ;;  %v9721_v42 = vadd.f32 %v9703_v52, %v9548_v56  ;;  %v9787_v15 = vmul.f32 %v9771_v44, %v21814_v36  ;;  %v9789_v2 = vmul.f32 %v9773_v34, %v21815_v49  ;;  %v9775_v47 = vmax.f32 %v9759_v18, 0.0  ;;  %v15526_v34 = vld [vmem:[%s21537_s4 + $0x10] sm:$0xff]  }
 0x6cb   : > { %v9788_v63 = vmul.f32 %v9772_v41, %v21816_v61  ;;  %v9790_v60 = vmul.f32 %v9774_v19, %v21817_v37  ;;  %v9777_v25 = vmax.f32 %v9761_v7, 0.0  ;;  %v9760_v40 = vadd.f32 %v19713_v55, %v9719_v17  ;;  %v15527_v7 = vld [vmem:[%s21537_s4 + $0x18] sm:$0xff]  }
 0x6cc   : > { %v9762_v39 = vadd.f32 %v19713_v55, %v9721_v42  ;;  %v9791_v27 = vmul.f32 %v9775_v47, %v21814_v36  ;;  %v21825_v56 = vmov 0  }
 0x6cd   : > { %v15337_v3 = vpack.c.bf16 %v9788_v63, %v9787_v15  ;;  %v15338_v31 = vpack.c.bf16 %v9790_v60, %v9789_v2  ;;  %v9776_v24 = vmax.f32 %v9760_v40, 0.0  ;;  %v9793_v59 = vmul.f32 %v9777_v25, %v21815_v49  ;;  %v15529_v25 = vld [vmem:[%s21537_s4] sm:$0xff]  }
 0x6ce   : > { %v9778_v20 = vmax.f32 %v9762_v39, 0.0  ;;  %v19770_v16 = vpack.c.bf16 %v9791_v27, %v9787_v15 }
 0x6cf   : > { %9847 = vst [vmem:[#allocation2 + $0x2c] sm:$0xff] %v15337_v3  ;;  %9848 = vst.msk [vmem:[#allocation2 + $0x34] sm:$0xff] %vm15774_vm6, %v15338_v31  ;;  %v9792_v5 = vmul.f32 %v9776_v24, %v21816_v61 }
 0x6d0   : > { %v9794_v22 = vmul.f32 %v9778_v20, %v21817_v37  ;;  %v19762_v46 = vld [vmem:[#allocation2 + $0x4] ss:$20 sps:$4 sm:$0xff]   ;;  %v19764_v6 = vld [vmem:[#allocation2 + $0x8] ss:$20 sps:$4 sm:$0xff]  }
 0x6d1   : > { %v15339_v55 = vpack.c.bf16 %v9792_v5, %v9791_v27  ;;  %9912 = vrot.lane.b32.xlu0 %v19762_v46, %s15600_s26  ;;  %9914 = vrot.lane.b32.xlu1 %v19764_v6, %s15600_s26  ;;  %v19772_v23 = vpack.c.bf16 %v9792_v5, %v9788_v63  ;;  %v19778_v8 = vld [vmem:[#allocation2 + $0xc] ss:$20 sps:$4 sm:$0xff]  }
 0x6d2   : > { %v15340_v33 = vpack.c.bf16 %v9794_v22, %v9793_v59  ;;  %v15530_v27 = vld [vmem:[%s21537_s4 + $0x8] sm:$0xff]  }
 0x6d3   : > { %9849 = vst [vmem:[#allocation2 + $0x40] sm:$0xff] %v15339_v55 }
 0x6d4   : > { %9850 = vst.msk [vmem:[#allocation2 + $0x48] sm:$0xff] %vm15774_vm6, %v15340_v33  ;;  %v20008_v33 = vld [vmem:[#allocation2 + $0x10] ss:$20 sps:$4 sm:$0xff]   ;;  %vm21830_vm6 = vcmask 146432  }
 0x6d5   : > { %9910 = vrot.lane.b32.xlu0 %v19776_v50, %s15600_s26  ;;  %9916 = vrot.lane.b32.xlu1 %v19778_v8, %s15600_s26 }
 0x6d9   : > { %10064 = vrot.lane.b32.xlu0 %v19762_v46, %s15601_s29  ;;  %10066 = vrot.lane.b32.xlu1 %v19764_v6, %s15601_s29 }
 0x6da   : > { %v19788_v14 = vld [vmem:[#allocation2 + $0x2c] ss:$20 sps:$4 sm:$0xff]   ;;  %v19790_v29 = vld [vmem:[#allocation2 + $0x30] ss:$20 sps:$4 sm:$0xff]  }
 0x6db   : > { %v19798_v9 = vld [vmem:[#allocation2 + $0x34] ss:$20 sps:$4 sm:$0xff]   ;;  %v19968_v60 = vld [vmem:[#allocation2 + $0x38] ss:$20 sps:$4 sm:$0xff]  }
 0x6dd   : > { %9920 = vrot.lane.b32.xlu0 %v19788_v14, %s15600_s26  ;;  %9922 = vrot.lane.b32.xlu1 %v19790_v29, %s15600_s26 }
 0x6e1   : > { %9918 = vrot.lane.b32.xlu0 %v19796_v62, %s15600_s26  ;;  %9924 = vrot.lane.b32.xlu1 %v19798_v9, %s15600_s26  ;;  %s21819_s26 = smov 38  }
 0x6e5   : > { %10062 = vrot.lane.b32.xlu0 %v19776_v50, %s15601_s29  ;;  %10068 = vrot.lane.b32.xlu1 %v19778_v8, %s15601_s29 }
 0x6e9   : > { %10221 = vrot.lane.b32.xlu0 %v19762_v46, %s15602_s30  ;;  %10223 = vrot.lane.b32.xlu1 %v19764_v6, %s15602_s30 }
 0x6ed   : > { %10072 = vrot.lane.b32.xlu0 %v19788_v14, %s15601_s29  ;;  %10074 = vrot.lane.b32.xlu1 %v19790_v29, %s15601_s29 }
 0x6f1   : > { %10070 = vrot.lane.b32.xlu0 %v19796_v62, %s15601_s29  ;;  %10076 = vrot.lane.b32.xlu1 %v19798_v9, %s15601_s29  ;;  %s21820_s29 = smov 22  }
 0x6f5   : > { %10219 = vrot.lane.b32.xlu0 %v19776_v50, %s15602_s30  ;;  %10225 = vrot.lane.b32.xlu1 %v19778_v8, %s15602_s30 }
 0x6f9   : > { %10394 = vrot.lane.b32.xlu0 %v19762_v46, %s15603_s9  ;;  %10396 = vrot.lane.b32.xlu1 %v19764_v6, %s15603_s9 }
 0x6fd   : > { %10229 = vrot.lane.b32.xlu0 %v19788_v14, %s15602_s30  ;;  %10231 = vrot.lane.b32.xlu1 %v19790_v29, %s15602_s30 }
 0x701   : > { %10227 = vrot.lane.b32.xlu0 %v19796_v62, %s15602_s30  ;;  %10233 = vrot.lane.b32.xlu1 %v19798_v9, %s15602_s30  ;;  %s21821_s30 = smov 21  }
 0x705   : > { %10392 = vrot.lane.b32.xlu0 %v19776_v50, %s15603_s9  ;;  %10398 = vrot.lane.b32.xlu1 %v19778_v8, %s15603_s9 }
 0x709   : > { %10567 = vrot.lane.b32.xlu0 %v19762_v46, %s21819_s26  ;;  %10569 = vrot.lane.b32.xlu1 %v19764_v6, %s21819_s26 }
 0x70d   : > { %10402 = vrot.lane.b32.xlu0 %v19788_v14, %s15603_s9  ;;  %10404 = vrot.lane.b32.xlu1 %v19790_v29, %s15603_s9 }
 0x711   : > { %10400 = vrot.lane.b32.xlu0 %v19796_v62, %s15603_s9  ;;  %10406 = vrot.lane.b32.xlu1 %v19798_v9, %s15603_s9  ;;  %s21822_s9 = smov 20  }
 0x715   : > { %10565 = vrot.lane.b32.xlu0 %v19776_v50, %s21819_s26  ;;  %10571 = vrot.lane.b32.xlu1 %v19778_v8, %s21819_s26 }
 0x719   : > { %10740 = vrot.lane.b32.xlu0 %v19762_v46, %s21820_s29  ;;  %10742 = vrot.lane.b32.xlu1 %v19764_v6, %s21820_s29 }
 0x71d   : > { %10575 = vrot.lane.b32.xlu0 %v19788_v14, %s21819_s26  ;;  %10577 = vrot.lane.b32.xlu1 %v19790_v29, %s21819_s26 }
 0x721   : > { %10573 = vrot.lane.b32.xlu0 %v19796_v62, %s21819_s26  ;;  %10579 = vrot.lane.b32.xlu1 %v19798_v9, %s21819_s26  ;;  %s21826_s26 = smov 2  }
 0x725   : > { %10738 = vrot.lane.b32.xlu0 %v19776_v50, %s21820_s29  ;;  %10744 = vrot.lane.b32.xlu1 %v19778_v8, %s21820_s29 }
 0x729   : > { %10913 = vrot.lane.b32.xlu0 %v19762_v46, %s21821_s30  ;;  %10915 = vrot.lane.b32.xlu1 %v19764_v6, %s21821_s30 }
 0x72d   : > { %10748 = vrot.lane.b32.xlu0 %v19788_v14, %s21820_s29  ;;  %10750 = vrot.lane.b32.xlu1 %v19790_v29, %s21820_s29 }
 0x731   : > { %10746 = vrot.lane.b32.xlu0 %v19796_v62, %s21820_s29  ;;  %10752 = vrot.lane.b32.xlu1 %v19798_v9, %s21820_s29 }
 0x735   : > { %10911 = vrot.lane.b32.xlu0 %v19776_v50, %s21821_s30  ;;  %10917 = vrot.lane.b32.xlu1 %v19778_v8, %s21821_s30 }
 0x739   : > { %11086 = vrot.lane.b32.xlu0 %v19762_v46, %s21822_s9  ;;  %11088 = vrot.lane.b32.xlu1 %v19764_v6, %s21822_s9 }
 0x73d   : > { %10921 = vrot.lane.b32.xlu0 %v19788_v14, %s21821_s30  ;;  %10923 = vrot.lane.b32.xlu1 %v19790_v29, %s21821_s30 }
 0x741   : > { %10919 = vrot.lane.b32.xlu0 %v19796_v62, %s21821_s30  ;;  %10925 = vrot.lane.b32.xlu1 %v19798_v9, %s21821_s30 }
 0x743   : > { %v9913_v12 = vpop.permute.xlu0 %9912  ;;  %v9915_v54 = vpop.permute.xlu1 %9914 }
 0x744   : > { %v9927_v44 = vsel %vm811_vm7, %v9913_v12, %v9915_v54 }
 0x745   : > { %11084 = vrot.lane.b32.xlu0 %v19776_v50, %s21822_s9  ;;  %11090 = vrot.lane.b32.xlu1 %v19778_v8, %s21822_s9 }
 0x747   : > { %v9911_v4 = vpop.permute.xlu0 %9910  ;;  %v9917_v13 = vpop.permute.xlu1 %9916 }
 0x748   : > { %v9928_v1 = vsel %vm811_vm7, %v9915_v54, %v9917_v13  ;;  %v9926_v21 = vsel %vm811_vm7, %v9911_v4, %v9913_v12 }
 0x749   : > { %11259 = vrot.lane.b32.xlu0 %v19762_v46, %s21823_s12  ;;  %11261 = vrot.lane.b32.xlu1 %v19764_v6, %s21823_s12 }
 0x74b   : > { %v19908_v57 = vpop.permute.xlu0 %10064  ;;  %v19910_v32 = vpop.permute.xlu1 %10066 }
 0x74c   : > { %v10079_v2 = vsel %vm965_vm9, %v19908_v57, %v19910_v32 }
 0x74d   : > { %11094 = vrot.lane.b32.xlu0 %v19788_v14, %s21822_s9  ;;  %11096 = vrot.lane.b32.xlu1 %v19790_v29, %s21822_s9 }
 0x74f   : > { %v9921_v53 = vpop.permute.xlu0 %9920  ;;  %v9923_v58 = vpop.permute.xlu1 %9922 }
 0x750   : > { %v9930_v26 = vsel %vm811_vm7, %v9921_v53, %v9923_v58 }
 0x751   : > { %11092 = vrot.lane.b32.xlu0 %v19796_v62, %s21822_s9  ;;  %11098 = vrot.lane.b32.xlu1 %v19798_v9, %s21822_s9 }
 0x752   : > { %9958 = vmatprep.subr.bf16.mxu0 %v9930_v26 }
 0x753   : > { %v9919_v35 = vpop.permute.xlu0 %9918  ;;  %v9925_v48 = vpop.permute.xlu1 %9924 }
 0x754   : > { %v9929_v28 = vsel %vm811_vm7, %v9919_v35, %v9921_v53  ;;  %10011 = vmatprep.subr.bf16.mxu1 %v9925_v48  ;;  %v9931_v10 = vsel %vm811_vm7, %v9923_v58, %v9925_v48  ;;  %vm21831_vm7 = vmmov %vm21830_vm6 }
 0x755   : > { %11257 = vrot.lane.b32.xlu0 %v19776_v50, %s21823_s12  ;;  %11263 = vrot.lane.b32.xlu1 %v19778_v8, %s21823_s12 }
 0x756   : > { %10012 = vmatpush1.bf16.msra.mxu1 %v9931_v10  ;;  %9959 = vmatpush1.bf16.msra.mxu0 %v9929_v28  ;;  %v15533_v28 = vld [vmem:[%s21537_s4 + $0x28] sm:$0xff]  }
 0x757   : > { %10013 = vmatprep.subr.bf16.mxu1 %v9917_v13  ;;  %v10063_v43 = vpop.permute.xlu0 %10062  ;;  %9960 = vmatprep.subr.bf16.mxu0 %v9927_v44  ;;  %v10069_v0 = vpop.permute.xlu1 %10068 }
 0x758   : > { %v10080_v47 = vsel %vm965_vm9, %v19910_v32, %v10069_v0  ;;  %v10078_v40 = vsel %vm965_vm9, %v10063_v43, %v19908_v57  ;;  %v15532_v32 = vld [vmem:[%s21537_s4 + $0x20] sm:$0xff]  }
 0x759   : > { %11432 = vrot.lane.b32.xlu0 %v19762_v46, %s21824_s13  ;;  %11434 = vrot.lane.b32.xlu1 %v19764_v6, %s21824_s13 }
 0x75a   : > { %10014 = vmatpush1.bf16.msra.mxu1 %v9928_v1  ;;  %9961 = vmatpush1.bf16.msra.mxu0 %v9926_v21 }
 0x75b   : > { %v19937_v11 = vpop.permute.xlu0 %10221  ;;  %v19939_v51 = vpop.permute.xlu1 %10223 }
 0x75c   : > { %v10236_v12 = vsel %vm1123_vm10, %v19937_v11, %v19939_v51 }
 0x75d   : > { %15054 = vmatmul.mubr.msk.bf16.vlgmr.msra.gmra.mxu1 %vm826_vm8, %v15526_v34  ;;  %11267 = vrot.lane.b32.xlu0 %v19788_v14, %s21823_s12 }
 0x75e   : > { %15052 = vmatmul.mubr.msk.bf16.vlgmr.msra.gmra.mxu0 %vm826_vm8, %v15526_v34  ;;  %11269 = vrot.lane.b32.xlu1 %v19790_v29, %s21823_s12 }
 0x75f   : > { %v10073_v52 = vpop.permute.xlu0 %10072  ;;  %10041 = vmatprep.mubr.bf16.mxu1 %v21825_v56  ;;  %9988 = vmatprep.mubr.bf16.mxu0 %v21825_v56  ;;  %v10075_v30 = vpop.permute.xlu1 %10074 }
 0x760   : > { %v10082_v18 = vsel %vm965_vm9, %v10073_v52, %v10075_v30 }
 0x761   : > { %11265 = vrot.lane.b32.xlu0 %v19796_v62, %s21823_s12  ;;  %10110 = vmatprep.subr.bf16.mxu0 %v10082_v18 }
 0x762   : > { %11271 = vrot.lane.b32.xlu1 %v19798_v9, %s21823_s12  ;;  %s21828_s12 = smov 127  }
 0x763   : > { %v10071_v41 = vpop.permute.xlu0 %10070  ;;  %v10077_v19 = vpop.permute.xlu1 %10076 }
 0x764   : > { %v10081_v17 = vsel %vm965_vm9, %v10071_v41, %v10073_v52  ;;  %10163 = vmatprep.subr.bf16.mxu1 %v10077_v19  ;;  %v10083_v42 = vsel %vm965_vm9, %v10075_v30, %v10077_v19  ;;  %v15534_v52 = vld [vmem:[%s21537_s4 + $0x30] sm:$0xff]   ;;  %v12012_v19 = vld [vmem:[#allocation2 + $0x48] sm:$0xff]  ;;  %vm21832_vm9 = vmmov %vm21830_vm6 }
 0x765   : > { %15055 = vmatmul.mubr.msk.bf16.gmra.mxu1 %vm826_vm8, %v15527_v7  ;;  %11430 = vrot.lane.b32.xlu0 %v19776_v50, %s21824_s13 }
 0x766   : > { %15053 = vmatmul.mubr.msk.bf16.gmra.mxu0 %vm826_vm8, %v15527_v7  ;;  %11436 = vrot.lane.b32.xlu1 %v19778_v8, %s21824_s13 }
 0x767   : > { %10164 = vmatpush1.bf16.msra.mxu1 %v10083_v42  ;;  %v10220_v15 = vpop.permute.xlu0 %10219  ;;  %10111 = vmatpush1.bf16.msra.mxu0 %v10081_v17  ;;  %v10226_v63 = vpop.permute.xlu1 %10225 }
 0x768   : > { %10165 = vmatprep.subr.bf16.mxu1 %v10069_v0  ;;  %10112 = vmatprep.subr.bf16.mxu0 %v10079_v2  ;;  %v10235_v4 = vsel %vm1123_vm10, %v10220_v15, %v19937_v11  ;;  %v10237_v57 = vsel %vm1123_vm10, %v19939_v51, %v10226_v63 }
 0x769   : > { %10183 = vmatprep.mubr.bf16.mxu1 %v21825_v56  ;;  %10130 = vmatprep.mubr.bf16.mxu0 %v21825_v56 }
 0x76a   : > { %11675 = vrot.lane.b32.xlu1 %v19968_v60, %s21826_s26  ;;  %11440 = vrot.lane.b32.xlu0 %v19788_v14, %s21824_s13 }
 0x76b   : > { %10166 = vmatpush1.bf16.msra.mxu1 %v10080_v47  ;;  %v19983_v39 = vpop.permute.xlu0 %10394  ;;  %10113 = vmatpush1.bf16.msra.mxu0 %v10078_v40  ;;  %v19985_v3 = vpop.permute.xlu1 %10396 }
 0x76c   : > { %v10409_v1 = vsel %vm1297_vm11, %v19983_v39, %v19985_v3 }
 0x76e   : > { %15060 = vmatmul.mubr.msk.bf16.vlgmr.msra.gmra.mxu1 %vm826_vm8, %v15529_v25  ;;  %11442 = vrot.lane.b32.xlu1 %v19790_v29, %s21824_s13 }
 0x76f   : > { %15058 = vmatmul.mubr.msk.bf16.vlgmr.msra.gmra.mxu0 %vm826_vm8, %v15529_v25  ;;  %11438 = vrot.lane.b32.xlu0 %v19796_v62, %s21824_s13  ;;  %v10230_v31 = vpop.permute.xlu0 %10229  ;;  %v10232_v24 = vpop.permute.xlu1 %10231 }
 0x770   : > { %10193 = vmatprep.mubr.bf16.mxu1 %v21825_v56  ;;  %10140 = vmatprep.mubr.bf16.mxu0 %v21825_v56  ;;  %v10239_v20 = vsel %vm1123_vm10, %v10230_v31, %v10232_v24 }
 0x771   : > { %10267 = vmatprep.subr.bf16.mxu0 %v10239_v20 }
 0x772   : > { %11444 = vrot.lane.b32.xlu1 %v19798_v9, %s21824_s13 }
 0x773   : > { %11661 = vrot.lane.b32.xlu0 %v19764_v6, %s21826_s26  ;;  %v10228_v59 = vpop.permute.xlu0 %10227  ;;  %v10234_v5 = vpop.permute.xlu1 %10233 }
 0x774   : > { %v10238_v22 = vsel %vm1123_vm10, %v10228_v59, %v10230_v31  ;;  %10320 = vmatprep.subr.bf16.mxu1 %v10234_v5  ;;  %v10240_v55 = vsel %vm1123_vm10, %v10232_v24, %v10234_v5  ;;  %v15537_v59 = vld [vmem:[%s21537_s4 + $0x48] sm:$0xff]   ;;  %vm21833_vm10 = vmmov %vm21830_vm6 }
 0x775   : > { %10268 = vmatpush1.bf16.msra.mxu0 %v10238_v22  ;;  %10321 = vmatpush1.bf16.msra.mxu1 %v10240_v55 }
 0x776   : > { %15061 = vmatmul.mubr.msk.bf16.gmra.mxu1 %vm826_vm8, %v15530_v27  ;;  %11659 = vrot.lane.b32.xlu1 %v19762_v46, %s21826_s26 }
 0x777   : > { %15059 = vmatmul.mubr.msk.bf16.gmra.mxu0 %vm826_vm8, %v15530_v27  ;;  %v10393_v54 = vpop.permute.xlu0 %10392  ;;  %11665 = vrot.lane.b32.xlu0 %v20008_v33, %s21826_s26  ;;  %v10399_v13 = vpop.permute.xlu1 %10398 }
 0x778   : > { %10269 = vmatprep.subr.bf16.mxu0 %v10236_v12  ;;  %10322 = vmatprep.subr.bf16.mxu1 %v10226_v63  ;;  %v10408_v21 = vsel %vm1297_vm11, %v10393_v54, %v19983_v39  ;;  %v10410_v51 = vsel %vm1297_vm11, %v19985_v3, %v10399_v13  ;;  %v12008_v39 = vld [vmem:[#allocation2 + $0x20] sm:$0xff]  ;;  %v12006_v3 = vld [vmem:[#allocation2 + $0xc] sm:$0xff] }
 0x779   : > { %10270 = vmatpush1.bf16.msra.mxu0 %v10235_v4  ;;  %10340 = vmatprep.mubr.bf16.mxu1 %v21825_v56  ;;  %v20130_v24 = vcombine.low %v12006_v3, %v12008_v39  ;;  %v20141_v22 = vcombine.high %v12006_v3, %v12008_v39 }
 0x77a   : > { %11663 = vrot.lane.b32.xlu1 %v19778_v8, %s21826_s26  ;;  %10323 = vmatpush1.bf16.msra.mxu1 %v10237_v57 }
 0x77b   : > { %10287 = vmatprep.mubr.bf16.mxu0 %v21825_v56  ;;  %v20027_v53 = vpop.permute.xlu0 %10567  ;;  %11669 = vrot.lane.b32.xlu0 %v19788_v14, %s21826_s26  ;;  %v20031_v58 = vpop.permute.xlu1 %10569 }
 0x77e   : > { %15070 = vmatmul.mubr.msk.bf16.vlgmr.msra.gmra.mxu1 %vm826_vm8, %v15532_v32  ;;  %11671 = vrot.lane.b32.xlu1 %v19790_v29, %s21826_s26 }
 0x77f   : > { %15068 = vmatmul.mubr.msk.bf16.vlgmr.msra.gmra.mxu0 %vm826_vm8, %v15532_v32  ;;  %v10403_v26 = vpop.permute.xlu0 %10402  ;;  %10350 = vmatprep.mubr.bf16.mxu1 %v21825_v56  ;;  %v10405_v35 = vpop.permute.xlu1 %10404 }
 0x780   : > { %11673 = vrot.lane.b32.xlu0 %v19798_v9, %s21826_s26  ;;  %10297 = vmatprep.mubr.bf16.mxu0 %v21825_v56  ;;  %v10412_v48 = vsel %vm1297_vm11, %v10403_v26, %v10405_v35 }
 0x781   : > { %10440 = vmatprep.subr.bf16.mxu0 %v10412_v48 }
 0x782   : > { %11657 = vrot.lane.b32.xlu1 %v19776_v50, %s21826_s26 }
 0x783   : > { %v10401_v10 = vpop.permute.xlu0 %10400  ;;  %v10407_v44 = vpop.permute.xlu1 %10406 }
 0x784   : > { %11667 = vrot.lane.b32.xlu0 %v19796_v62, %s21826_s26  ;;  %v10411_v43 = vsel %vm1297_vm11, %v10401_v10, %v10403_v26  ;;  %10493 = vmatprep.subr.bf16.mxu1 %v10407_v44  ;;  %v10413_v0 = vsel %vm1297_vm11, %v10405_v35, %v10407_v44  ;;  %v15539_v10 = vld [vmem:[%s21537_s4 + $0x58] sm:$0xff]   ;;  %vm21834_vm11 = vmmov %vm21830_vm6 }
 0x785   : > { %10441 = vmatpush1.bf16.msra.mxu0 %v10411_v43  ;;  %10494 = vmatpush1.bf16.msra.mxu1 %v10413_v0 }
 0x786   : > { %15071 = vmatmul.mubr.msk.bf16.gmra.mxu1 %vm826_vm8, %v15533_v28  ;;  %11854 = vrot.lane.b32.xlu1 %v19968_v60, %s21827_s16  ;;  %v15536_v60 = vld [vmem:[%s21537_s4 + $0x40] sm:$0xff]  }
 0x787   : > { %15069 = vmatmul.mubr.msk.bf16.gmra.mxu0 %vm826_vm8, %v15533_v28  ;;  %v10566_v34 = vpop.permute.xlu0 %10565  ;;  %10442 = vmatprep.subr.bf16.mxu0 %v10409_v1  ;;  %v10572_v11 = vpop.permute.xlu1 %10571 }
 0x788   : > { %11840 = vrot.lane.b32.xlu0 %v19764_v6, %s21827_s16  ;;  %10495 = vmatprep.subr.bf16.mxu1 %v10399_v13  ;;  %v10581_v2 = vsel %vm1471_vm12, %v10566_v34, %v20027_v53 }
 0x789   : > { %10443 = vmatpush1.bf16.msra.mxu0 %v10408_v21  ;;  %10513 = vmatprep.mubr.bf16.mxu1 %v21825_v56 }
 0x78a   : > { %11838 = vrot.lane.b32.xlu1 %v19762_v46, %s21827_s16  ;;  %10496 = vmatpush1.bf16.msra.mxu1 %v10410_v51 }
 0x78b   : > { %10460 = vmatprep.mubr.bf16.mxu0 %v21825_v56  ;;  %v20071_v6 = vpop.permute.xlu0 %10740  ;;  %v20075_v30 = vpop.permute.xlu1 %10742 }
 0x78c   : > { %11848 = vrot.lane.b32.xlu0 %v19788_v14, %s21827_s16  ;;  %v10755_v54 = vsel %vm1645_vm13, %v20071_v6, %v20075_v30 }
 0x78e   : > { %15080 = vmatmul.mubr.msk.bf16.vlgmr.msra.gmra.mxu1 %vm826_vm8, %v15534_v52  ;;  %11850 = vrot.lane.b32.xlu1 %v19790_v29, %s21827_s16  ;;  %v15535_v29 = vld [vmem:[%s21537_s4 + $0x38] sm:$0xff]  }
 0x78f   : > { %15078 = vmatmul.mubr.msk.bf16.vlgmr.msra.gmra.mxu0 %vm826_vm8, %v15534_v52  ;;  %v10576_v46 = vpop.permute.xlu0 %10575  ;;  %10523 = vmatprep.mubr.bf16.mxu1 %v21825_v56  ;;  %v10578_v18 = vpop.permute.xlu1 %10577 }
 0x790   : > { %11852 = vrot.lane.b32.xlu0 %v19798_v9, %s21827_s16  ;;  %10470 = vmatprep.mubr.bf16.mxu0 %v21825_v56  ;;  %v10585_v14 = vsel %vm1471_vm12, %v10576_v46, %v10578_v18 }
 0x791   : > { %10613 = vmatprep.subr.bf16.mxu0 %v10585_v14 }
 0x792   : > { %11842 = vrot.lane.b32.xlu1 %v19778_v8, %s21827_s16  ;;  %v12010_v8 = vld [vmem:[#allocation2 + $0x34] sm:$0xff] }
 0x793   : > { %v10574_v7 = vpop.permute.xlu0 %10573  ;;  %v10580_v41 = vpop.permute.xlu1 %10579  ;;  %v20102_v15 = vcombine.low %v12010_v8, %v12012_v19  ;;  %v20119_v25 = vcombine.high %v12010_v8, %v12012_v19 }
 0x794   : > { %11846 = vrot.lane.b32.xlu0 %v19796_v62, %s21827_s16  ;;  %v10584_v9 = vsel %vm1471_vm12, %v10574_v7, %v10576_v46  ;;  %10666 = vmatprep.subr.bf16.mxu1 %v10580_v41  ;;  %v10586_v17 = vsel %vm1471_vm12, %v10578_v18, %v10580_v41  ;;  %v10582_v62 = vsel %vm1471_vm12, %v20027_v53, %v20031_v58  ;;  %v15538_v53 = vld [vmem:[%s21537_s4 + $0x50] sm:$0xff]   ;;  %v15541_v7 = vld [vmem:[%s21537_s4 + $0x68] sm:$0xff]  }
 0x795   : > { %10614 = vmatpush1.bf16.msra.mxu0 %v10584_v9  ;;  %10667 = vmatpush1.bf16.msra.mxu1 %v10586_v17 }
 0x796   : > { %15081 = vmatmul.mubr.msk.bf16.gmra.mxu1 %vm826_vm8, %v15535_v29  ;;  %11836 = vrot.lane.b32.xlu1 %v19776_v50, %s21827_s16  ;;  %v10583_v50 = vsel %vm1471_vm12, %v20031_v58, %v10572_v11  ;;  %vm21835_vm12 = vmmov %vm21830_vm6 }
 0x797   : > { %15079 = vmatmul.mubr.msk.bf16.gmra.mxu0 %vm826_vm8, %v15535_v29  ;;  %v10739_v42 = vpop.permute.xlu0 %10738  ;;  %10615 = vmatprep.subr.bf16.mxu0 %v10582_v62  ;;  %v10745_v63 = vpop.permute.xlu1 %10744 }
 0x798   : > { %11844 = vrot.lane.b32.xlu0 %v20008_v33, %s21827_s16  ;;  %10668 = vmatprep.subr.bf16.mxu1 %v10572_v11  ;;  %v10754_v13 = vsel %vm1645_vm13, %v10739_v42, %v20071_v6  ;;  %s21829_s16 = smov 126   ;;  %v10756_v32 = vsel %vm1645_vm13, %v20075_v30, %v10745_v63  ;;  %v15540_v6 = vld [vmem:[%s21537_s4 + $0x60] sm:$0xff]  }
 0x799   : > { %10616 = vmatpush1.bf16.msra.mxu0 %v10581_v2  ;;  %10686 = vmatprep.mubr.bf16.mxu1 %v21825_v56 }
 0x79a   : > { %12218 = vrot.lane.b32.xlu1 %v20102_v15, %s21828_s12  ;;  %10669 = vmatpush1.bf16.msra.mxu1 %v10583_v50  ;;  %v15542_v50 = vld [vmem:[%s21537_s4 + $0x70] sm:$0xff]  }
 0x79b   : > { %10633 = vmatprep.mubr.bf16.mxu0 %v21825_v56  ;;  %v20117_v47 = vpop.permute.xlu0 %10913  ;;  %v20123_v40 = vpop.permute.xlu1 %10915 }
 0x79c   : > { %12208 = vrot.lane.b32.xlu0 %v19746_v45, %s21828_s12  ;;  %v10928_v34 = vsel %vm1819_vm14, %v20117_v47, %v20123_v40 }
 0x79e   : > { %15090 = vmatmul.mubr.msk.bf16.vlgmr.msra.gmra.mxu1 %vm826_vm8, %v15536_v60  ;;  %12220 = vrot.lane.b32.xlu1 %v20119_v25, %s21828_s12 }
 0x79f   : > { %15088 = vmatmul.mubr.msk.bf16.vlgmr.msra.gmra.mxu0 %vm826_vm8, %v15536_v60  ;;  %v10749_v31 = vpop.permute.xlu0 %10748  ;;  %10696 = vmatprep.mubr.bf16.mxu1 %v21825_v56  ;;  %v10751_v20 = vpop.permute.xlu1 %10750 }
 0x7a0   : > { %12216 = vrot.lane.b32.xlu0 %v19772_v23, %s21828_s12  ;;  %10643 = vmatprep.mubr.bf16.mxu0 %v21825_v56  ;;  %v10758_v27 = vsel %vm1645_vm13, %v10749_v31, %v10751_v20 }
 0x7a1   : > { %10786 = vmatprep.subr.bf16.mxu0 %v10758_v27 }
 0x7a2   : > { %12210 = vrot.lane.b32.xlu1 %v20130_v24, %s21828_s12 }
 0x7a3   : > { %v10747_v5 = vpop.permute.xlu0 %10746  ;;  %v10753_v55 = vpop.permute.xlu1 %10752 }
 0x7a4   : > { %12214 = vrot.lane.b32.xlu0 %v19770_v16, %s21828_s12  ;;  %v10757_v33 = vsel %vm1645_vm13, %v10747_v5, %v10749_v31  ;;  %10839 = vmatprep.subr.bf16.mxu1 %v10753_v55  ;;  %v10759_v12 = vsel %vm1645_vm13, %v10751_v20, %v10753_v55  ;;  %v15543_v31 = vld [vmem:[%s21537_s4 + $0x78] sm:$0xff]   ;;  %vm21836_vm13 = vcmask 15360  }
 0x7a5   : > { %10787 = vmatpush1.bf16.msra.mxu0 %v10757_v33  ;;  %10840 = vmatpush1.bf16.msra.mxu1 %v10759_v12 }
 0x7a6   : > { %15091 = vmatmul.mubr.msk.bf16.gmra.mxu1 %vm826_vm8, %v15537_v59  ;;  %12212 = vrot.lane.b32.xlu1 %v20141_v22, %s21828_s12 }
 0x7a7   : > { %15089 = vmatmul.mubr.msk.bf16.gmra.mxu0 %vm826_vm8, %v15537_v59  ;;  %v10912_v4 = vpop.permute.xlu0 %10911  ;;  %10788 = vmatprep.subr.bf16.mxu0 %v10755_v54  ;;  %v10918_v57 = vpop.permute.xlu1 %10917 }
 0x7a8   : > { %12206 = vrot.lane.b32.xlu0 %v19744_v38, %s21828_s12  ;;  %10841 = vmatprep.subr.bf16.mxu1 %v10745_v63  ;;  %v10927_v11 = vsel %vm1819_vm14, %v10912_v4, %v20117_v47  ;;  %v10929_v52 = vsel %vm1819_vm14, %v20123_v40, %v10918_v57 }
 0x7a9   : > { %10789 = vmatpush1.bf16.msra.mxu0 %v10754_v13  ;;  %10859 = vmatprep.mubr.bf16.mxu1 %v21825_v56  ;;  %v15544_v13 = vld [vmem:[%s21537_s4 + $0x80] sm:$0xff]  }
 0x7aa   : > { %12391 = vrot.lane.b32.xlu1 %v20102_v15, %s21829_s16  ;;  %10842 = vmatpush1.bf16.msra.mxu1 %v10756_v32 }
 0x7ab   : > { %10806 = vmatprep.mubr.bf16.mxu0 %v21825_v56  ;;  %v20167_v58 = vpop.permute.xlu0 %11086  ;;  %v20171_v26 = vpop.permute.xlu1 %11088 }
 0x7ac   : > { %12381 = vrot.lane.b32.xlu0 %v19746_v45, %s21829_s16  ;;  %v11101_v8 = vsel %vm1993_vm15, %v20167_v58, %v20171_v26 }
 0x7ae   : > { %15100 = vmatmul.mubr.msk.bf16.vlgmr.msra.gmra.mxu1 %vm826_vm8, %v15538_v53  ;;  %12393 = vrot.lane.b32.xlu1 %v20119_v25, %s21829_s16 }
 0x7af   : > { %15098 = vmatmul.mubr.msk.bf16.vlgmr.msra.gmra.mxu0 %vm826_vm8, %v15538_v53  ;;  %v10922_v35 = vpop.permute.xlu0 %10921  ;;  %10869 = vmatprep.mubr.bf16.mxu1 %v21825_v56  ;;  %v10924_v48 = vpop.permute.xlu1 %10923 }
 0x7b0   : > { %12389 = vrot.lane.b32.xlu0 %v19772_v23, %s21829_s16  ;;  %10816 = vmatprep.mubr.bf16.mxu0 %v21825_v56  ;;  %v10931_v28 = vsel %vm1819_vm14, %v10922_v35, %v10924_v48 }
 0x7b1   : > { %10959 = vmatprep.subr.bf16.mxu0 %v10931_v28 }
 0x7b2   : > { %12383 = vrot.lane.b32.xlu1 %v20130_v24, %s21829_s16 }
 0x7b3   : > { %v10920_v44 = vpop.permute.xlu0 %10919  ;;  %v10926_v43 = vpop.permute.xlu1 %10925 }
 0x7b4   : > { %12387 = vrot.lane.b32.xlu0 %v19770_v16, %s21829_s16  ;;  %v10930_v0 = vsel %vm1819_vm14, %v10920_v44, %v10922_v35  ;;  %11012 = vmatprep.subr.bf16.mxu1 %v10926_v43  ;;  %v10932_v1 = vsel %vm1819_vm14, %v10924_v48, %v10926_v43  ;;  %v15545_v48 = vld [vmem:[%s21537_s4 + $0x88] sm:$0xff]   ;;  %vm21837_vm14 = vmmov %vm21836_vm13 }
 0x7b5   : > { %10960 = vmatpush1.bf16.msra.mxu0 %v10930_v0  ;;  %11013 = vmatpush1.bf16.msra.mxu1 %v10932_v1 }
 0x7b6   : > { %15101 = vmatmul.mubr.msk.bf16.gmra.mxu1 %vm826_vm8, %v15539_v10  ;;  %12385 = vrot.lane.b32.xlu1 %v20141_v22, %s21829_s16 }
 0x7b7   : > { %15099 = vmatmul.mubr.msk.bf16.gmra.mxu0 %vm826_vm8, %v15539_v10  ;;  %v11085_v21 = vpop.permute.xlu0 %11084  ;;  %10961 = vmatprep.subr.bf16.mxu0 %v10928_v34  ;;  %v11091_v51 = vpop.permute.xlu1 %11090 }
 0x7b8   : > { %12379 = vrot.lane.b32.xlu0 %v19744_v38, %s21829_s16  ;;  %11014 = vmatprep.subr.bf16.mxu1 %v10918_v57  ;;  %v11100_v42 = vsel %vm1993_vm15, %v11085_v21, %v20167_v58  ;;  %v11102_v63 = vsel %vm1993_vm15, %v20171_v26, %v11091_v51 }
 0x7b9   : > { %10962 = vmatpush1.bf16.msra.mxu0 %v10927_v11  ;;  %11032 = vmatprep.mubr.bf16.mxu1 %v21825_v56  ;;  %v15546_v11 = vld [vmem:[%s21537_s4 + $0x90] sm:$0xff]  }
 0x7ba   : > { %12564 = vrot.lane.b32.xlu1 %v20102_v15, %s21695_s18  ;;  %11015 = vmatpush1.bf16.msra.mxu1 %v10929_v52 }
 0x7bb   : > { %10979 = vmatprep.mubr.bf16.mxu0 %v21825_v56  ;;  %v20211_v30 = vpop.permute.xlu0 %11259  ;;  %v20215_v46 = vpop.permute.xlu1 %11261 }
 0x7bc   : > { %12554 = vrot.lane.b32.xlu0 %v19746_v45, %s21695_s18  ;;  %v11274_v55 = vsel %vm2167_vm0, %v20211_v30, %v20215_v46 }
 0x7be   : > { %15110 = vmatmul.mubr.msk.bf16.vlgmr.msra.gmra.mxu1 %vm826_vm8, %v15540_v6  ;;  %12566 = vrot.lane.b32.xlu1 %v20119_v25, %s21695_s18 }
 0x7bf   : > { %15108 = vmatmul.mubr.msk.bf16.vlgmr.msra.gmra.mxu0 %vm826_vm8, %v15540_v6  ;;  %v11095_v18 = vpop.permute.xlu0 %11094  ;;  %11042 = vmatprep.mubr.bf16.mxu1 %v21825_v56  ;;  %v11097_v14 = vpop.permute.xlu1 %11096 }
 0x7c0   : > { %12562 = vrot.lane.b32.xlu0 %v19772_v23, %s21695_s18  ;;  %10989 = vmatprep.mubr.bf16.mxu0 %v21825_v56  ;;  %v11104_v29 = vsel %vm1993_vm15, %v11095_v18, %v11097_v14 }
 0x7c1   : > { %11132 = vmatprep.subr.bf16.mxu0 %v11104_v29 }
 0x7c2   : > { %12556 = vrot.lane.b32.xlu1 %v20130_v24, %s21695_s18 }
 0x7c3   : > { %v11093_v41 = vpop.permute.xlu0 %11092  ;;  %v11099_v9 = vpop.permute.xlu1 %11098 }
 0x7c4   : > { %12560 = vrot.lane.b32.xlu0 %v19770_v16, %s21695_s18  ;;  %v11103_v19 = vsel %vm1993_vm15, %v11093_v41, %v11095_v18  ;;  %11185 = vmatprep.subr.bf16.mxu1 %v11099_v9  ;;  %v11105_v17 = vsel %vm1993_vm15, %v11097_v14, %v11099_v9  ;;  %v15547_v18 = vld [vmem:[%s21537_s4 + $0x98] sm:$0xff]   ;;  %vm21838_vm15 = vmmov %vm21836_vm13 }
 0x7c5   : > { %11133 = vmatpush1.bf16.msra.mxu0 %v11103_v19  ;;  %11186 = vmatpush1.bf16.msra.mxu1 %v11105_v17 }
 0x7c6   : > { %15111 = vmatmul.mubr.msk.bf16.gmra.mxu1 %vm826_vm8, %v15541_v7  ;;  %12558 = vrot.lane.b32.xlu1 %v20141_v22, %s21695_s18 }
 0x7c7   : > { %15109 = vmatmul.mubr.msk.bf16.gmra.mxu0 %vm826_vm8, %v15541_v7  ;;  %v11258_v62 = vpop.permute.xlu0 %11257  ;;  %11134 = vmatprep.subr.bf16.mxu0 %v11101_v8  ;;  %v11264_v2 = vpop.permute.xlu1 %11263 }
 0x7c8   : > { %12552 = vrot.lane.b32.xlu0 %v19744_v38, %s21695_s18  ;;  %11187 = vmatprep.subr.bf16.mxu1 %v11091_v51  ;;  %v11273_v33 = vsel %vm2167_vm0, %v11258_v62, %v20211_v30  ;;  %v11275_v4 = vsel %vm2167_vm0, %v20215_v46, %v11264_v2 }
 0x7c9   : > { %11135 = vmatpush1.bf16.msra.mxu0 %v11100_v42  ;;  %11205 = vmatprep.mubr.bf16.mxu1 %v21825_v56 }
 0x7ca   : > { %12737 = vrot.lane.b32.xlu1 %v20102_v15, %s21696_s21  ;;  %11188 = vmatpush1.bf16.msra.mxu1 %v11102_v63 }
 0x7cb   : > { %11152 = vmatprep.mubr.bf16.mxu0 %v21825_v56  ;;  %v20255_v60 = vpop.permute.xlu0 %11432  ;;  %v20259_v47 = vpop.permute.xlu1 %11434 }
 0x7cc   : > { %12727 = vrot.lane.b32.xlu0 %v19746_v45, %s21696_s21  ;;  %v11447_v28 = vsel %vm21832_vm9, %v20255_v60, %v20259_v47 }
 0x7ce   : > { %15120 = vmatmul.mubr.msk.bf16.vlgmr.msra.gmra.mxu1 %vm826_vm8, %v15542_v50  ;;  %12739 = vrot.lane.b32.xlu1 %v20119_v25, %s21696_s21 }
 0x7cf   : > { %15118 = vmatmul.mubr.msk.bf16.vlgmr.msra.gmra.mxu0 %vm826_vm8, %v15542_v50  ;;  %v11268_v40 = vpop.permute.xlu0 %11267  ;;  %11215 = vmatprep.mubr.bf16.mxu1 %v21825_v56 }
 0x7d0   : > { %12735 = vrot.lane.b32.xlu0 %v19772_v23, %s21696_s21  ;;  %v11270_v39 = vpop.permute.xlu1 %11269  ;;  %11162 = vmatprep.mubr.bf16.mxu0 %v21825_v56 }
 0x7d1   : > { %v11277_v3 = vsel %vm2167_vm0, %v11268_v40, %v11270_v39 }
 0x7d2   : > { %12729 = vrot.lane.b32.xlu1 %v20130_v24, %s21696_s21  ;;  %11305 = vmatprep.subr.bf16.mxu0 %v11277_v3  ;;  %v15549_v3 = vld [vmem:[%s21537_s4 + $0xa8] sm:$0xff]  }
 0x7d3   : > { %v11266_v20 = vpop.permute.xlu0 %11265 }
 0x7d4   : > { %12733 = vrot.lane.b32.xlu0 %v19770_v16, %s21696_s21  ;;  %v11272_v27 = vpop.permute.xlu1 %11271  ;;  %v11276_v59 = vsel %vm2167_vm0, %v11266_v20, %v11268_v40 }
 0x7d5   : > { %11358 = vmatprep.subr.bf16.mxu1 %v11272_v27  ;;  %v11278_v5 = vsel %vm2167_vm0, %v11270_v39, %v11272_v27  ;;  %11306 = vmatpush1.bf16.msra.mxu0 %v11276_v59  ;;  %vm21839_vm0 = vmmov %vm21836_vm13 }
 0x7d6   : > { %15121 = vmatmul.mubr.msk.bf16.gmra.mxu1 %vm826_vm8, %v15543_v31  ;;  %12731 = vrot.lane.b32.xlu1 %v20141_v22, %s21696_s21  ;;  %vm21840_vm3 = vmmov %vm21839_vm0 }
 0x7d7   : > { %15119 = vmatmul.mubr.msk.bf16.gmra.mxu0 %vm826_vm8, %v15543_v31  ;;  %11359 = vmatpush1.bf16.msra.mxu1 %v11278_v5  ;;  %v11431_v54 = vpop.permute.xlu0 %11430  ;;  %vm21841_vm1 = vmmov %vm21839_vm0 }
 0x7d8   : > { %12725 = vrot.lane.b32.xlu0 %v19744_v38, %s21696_s21  ;;  %11307 = vmatprep.subr.bf16.mxu0 %v11274_v55  ;;  %v11437_v12 = vpop.permute.xlu1 %11436  ;;  %v11446_v0 = vsel %vm21834_vm11, %v11431_v54, %v20255_v60  ;;  %vm21842_vm2 = vmmov %vm21839_vm0 }
 0x7d9   : > { %11360 = vmatprep.subr.bf16.mxu1 %v11264_v2  ;;  %11308 = vmatpush1.bf16.msra.mxu0 %v11273_v33  ;;  %v11448_v21 = vsel %vm21835_vm12, %v20259_v47, %v11437_v12  ;;  %v15548_v2 = vld [vmem:[%s21537_s4 + $0xa0] sm:$0xff]  }
 0x7da   : > { %12910 = vrot.lane.b32.xlu1 %v20102_v15, %s21697_s15  ;;  %11378 = vmatprep.mubr.bf16.mxu1 %v21825_v56 }
 0x7db   : > { %11361 = vmatpush1.bf16.msra.mxu1 %v11275_v4  ;;  %11325 = vmatprep.mubr.bf16.mxu0 %v21825_v56 }
 0x7dc   : > { %12900 = vrot.lane.b32.xlu0 %v19746_v45, %s21697_s15  ;;  %v11676_v57 = vpop.permute.xlu1 %11675  ;;  %v11441_v32 = vpop.permute.xlu0 %11440 }
 0x7de   : > { %15130 = vmatmul.mubr.msk.bf16.vlgmr.msra.gmra.mxu1 %vm826_vm8, %v15544_v13  ;;  %12912 = vrot.lane.b32.xlu1 %v20119_v25, %s21697_s15 }
 0x7df   : > { %15128 = vmatmul.mubr.msk.bf16.vlgmr.msra.gmra.mxu0 %vm826_vm8, %v15544_v13  ;;  %11388 = vmatprep.mubr.bf16.mxu1 %v21825_v56  ;;  %v15550_v13 = vld [vmem:[%s21537_s4 + $0xb0] sm:$0xff]  }
 0x7e0   : > { %12908 = vrot.lane.b32.xlu0 %v19772_v23, %s21697_s15  ;;  %v11443_v53 = vpop.permute.xlu1 %11442  ;;  %11335 = vmatprep.mubr.bf16.mxu0 %v21825_v56 }
 0x7e1   : > { %v11439_v58 = vpop.permute.xlu0 %11438  ;;  %v11450_v26 = vsel %vm21830_vm6, %v11441_v32, %v11443_v53  ;;  %vm21843_vm6 = vmmov %vm21839_vm0 }
 0x7e2   : > { %v11449_v35 = vsel %vm21831_vm7, %v11439_v58, %v11441_v32  ;;  %12902 = vrot.lane.b32.xlu1 %v20130_v24, %s21697_s15  ;;  %11478 = vmatprep.subr.bf16.mxu0 %v11450_v26  ;;  %vm21844_vm7 = vcmask 7168  }
 0x7e3   : > { %11479 = vmatpush1.bf16.msra.mxu0 %v11449_v35  ;;  %vm21845_vm9 = vmmov %vm21844_vm7 }
 0x7e4   : > { %12906 = vrot.lane.b32.xlu0 %v19770_v16, %s21697_s15  ;;  %v11445_v10 = vpop.permute.xlu1 %11444  ;;  %11480 = vmatprep.subr.bf16.mxu0 %v11447_v28  ;;  %vm21847_vm11 = vmmov %vm21844_vm7 }
 0x7e5   : > { %v11662_v44 = vpop.permute.xlu0 %11661  ;;  %11531 = vmatprep.subr.bf16.mxu1 %v11445_v10  ;;  %v11451_v43 = vsel %vm21833_vm10, %v11443_v53, %v11445_v10  ;;  %vm21846_vm10 = vmmov %vm21844_vm7 }
 0x7e6   : > { %15131 = vmatmul.mubr.msk.bf16.gmra.mxu1 %vm826_vm8, %v15545_v48  ;;  %12904 = vrot.lane.b32.xlu1 %v20141_v22, %s21697_s15  ;;  %vm21848_vm12 = vmmov %vm21844_vm7 }
 0x7e7   : > { %15129 = vmatmul.mubr.msk.bf16.gmra.mxu0 %vm826_vm8, %v15545_v48  ;;  %11532 = vmatpush1.bf16.msra.mxu1 %v11451_v43  ;;  %v15551_v48 = vld [vmem:[%s21537_s4 + $0xb8] sm:$0xff]  }
 0x7e8   : > { %12898 = vrot.lane.b32.xlu0 %v19744_v38, %s21697_s15  ;;  %11481 = vmatpush1.bf16.msra.mxu0 %v11446_v0  ;;  %v11660_v1 = vpop.permute.xlu1 %11659  ;;  %v15552_v0 = vld [vmem:[%s21537_s4 + $0xc0] sm:$0xff]  }
 0x7e9   : > { %11533 = vmatprep.subr.bf16.mxu1 %v11437_v12  ;;  %11551 = vmatprep.mubr.bf16.mxu1 %v21825_v56  ;;  %v11666_v34 = vpop.permute.xlu0 %11665  ;;  %v11678_v17 = vsel %vm21841_vm1, %v11660_v1, %v11662_v44 }
 0x7ea   : > { %13083 = vrot.lane.b32.xlu1 %v20102_v15, %s21698_s24  ;;  %11498 = vmatprep.mubr.bf16.mxu0 %v21825_v56 }
 0x7eb   : > { %11534 = vmatpush1.bf16.msra.mxu1 %v11448_v21 }
 0x7ec   : > { %13073 = vrot.lane.b32.xlu0 %v19746_v45, %s21698_s24  ;;  %v11664_v51 = vpop.permute.xlu1 %11663 }
 0x7ed   : > { %v11670_v52 = vpop.permute.xlu0 %11669  ;;  %v11680_v41 = vsel %vm21839_vm0, %v11664_v51, %v11666_v34  ;;  %v11679_v8 = vsel %vm21842_vm2, %v11662_v44, %v11664_v51  ;;  %vm21852_vm0 = vcmask 1039360  }
 0x7ee   : > { %15140 = vmatmul.mubr.msk.bf16.vlgmr.msra.gmra.mxu1 %vm826_vm8, %v15546_v11  ;;  %13085 = vrot.lane.b32.xlu1 %v20119_v25, %s21698_s24  ;;  %vm21854_vm1 = vmmov %vm21852_vm0 }
 0x7ef   : > { %15138 = vmatmul.mubr.msk.bf16.vlgmr.msra.gmra.mxu0 %vm826_vm8, %v15546_v11  ;;  %11561 = vmatprep.mubr.bf16.mxu1 %v21825_v56  ;;  %vm21855_vm2 = vmmov %vm21852_vm0 }
 0x7f0   : > { %13081 = vrot.lane.b32.xlu0 %v19772_v23, %s21698_s24  ;;  %v11672_v6 = vpop.permute.xlu1 %11671  ;;  %11508 = vmatprep.mubr.bf16.mxu0 %v21825_v56 }
 0x7f1   : > { %v11682_v30 = vsel %vm21836_vm13, %v11670_v52, %v11672_v6  ;;  %vm21849_vm13 = vmmov %vm21844_vm7 }
 0x7f2   : > { %v11674_v46 = vpop.permute.xlu0 %11673  ;;  %13075 = vrot.lane.b32.xlu1 %v20130_v24, %s21698_s24  ;;  %11711 = vmatprep.subr.bf16.mxu0 %v11682_v30 }
 0x7f3   : > { %v11684_v14 = vsel %vm21837_vm14, %v11674_v46, %v11676_v57  ;;  %v11683_v29 = vsel %vm21838_vm15, %v11672_v6, %v11674_v46  ;;  %vm21850_vm14 = vmmov %vm21844_vm7 }
 0x7f4   : > { %13079 = vrot.lane.b32.xlu0 %v19770_v16, %s21698_s24  ;;  %11764 = vmatprep.subr.bf16.mxu1 %v11684_v14  ;;  %v11658_v7 = vpop.permute.xlu1 %11657  ;;  %vm21851_vm15 = vmmov %vm21844_vm7 }
 0x7f5   : > { %11765 = vmatpush1.bf16.msra.mxu1 %v11683_v29  ;;  %v11677_v63 = vsel %vm21843_vm6, %v11658_v7, %v11660_v1  ;;  %vm21856_vm6 = vmmov %vm21852_vm0 }
 0x7f6   : > { %11766 = vmatprep.subr.bf16.mxu1 %v11680_v41  ;;  %v11668_v9 = vpop.permute.xlu0 %11667  ;;  %15141 = vmatmul.mubr.msk.bf16.gmra.mxu1 %vm826_vm8, %v15547_v18 }
 0x7f7   : > { %v11681_v19 = vsel %vm21840_vm3, %v11668_v9, %v11670_v52  ;;  %15139 = vmatmul.mubr.msk.bf16.gmra.mxu0 %vm826_vm8, %v15547_v18  ;;  %13077 = vrot.lane.b32.xlu1 %v20141_v22, %s21698_s24  ;;  %vm21853_vm3 = vmmov %vm21852_vm0 }
 0x7f8   : > { %13071 = vrot.lane.b32.xlu0 %v19744_v38, %s21698_s24  ;;  %11712 = vmatpush1.bf16.msra.mxu0 %v11681_v19  ;;  %v11855_v62 = vpop.permute.xlu1 %11854 }
 0x7f9   : > { %11713 = vmatprep.subr.bf16.mxu0 %v11678_v17  ;;  %11767 = vmatpush1.bf16.msra.mxu1 %v11679_v8  ;;  %v15553_v17 = vld [vmem:[%s21537_s4 + $0xc8] sm:$0xff]  }
 0x7fa   : > { %v11841_v42 = vpop.permute.xlu0 %11840  ;;  %11784 = vmatprep.mubr.bf16.mxu1 %v21825_v56  ;;  %11731 = vmatprep.mubr.bf16.mxu0 %v21825_v56 }
 0x7fb   : > { %13256 = vrot.lane.b32.xlu1 %v20102_v15, %s21699_s23 }
 0x7fc   : > { %13246 = vrot.lane.b32.xlu0 %v19746_v45, %s21699_s23  ;;  %11714 = vmatpush1.bf16.msra.mxu0 %v11677_v63  ;;  %v11839_v50 = vpop.permute.xlu1 %11838 }
 0x7fd   : > { %v11857_v55 = vsel %vm21848_vm12, %v11839_v50, %v11841_v42 }
 0x7fe   : > { %v11849_v60 = vpop.permute.xlu0 %11848  ;;  %15160 = vmatmul.mubr.msk.bf16.vlgmr.msra.gmra.mxu1 %vm826_vm8, %v15548_v2 }
 0x7ff   : > { %15158 = vmatmul.mubr.msk.bf16.vlgmr.msra.gmra.mxu0 %vm826_vm8, %v15548_v2  ;;  %13258 = vrot.lane.b32.xlu1 %v20119_v25, %s21699_s23 }
 0x800   : > { %13254 = vrot.lane.b32.xlu0 %v19772_v23, %s21699_s23  ;;  %v11851_v47 = vpop.permute.xlu1 %11850  ;;  %11741 = vmatprep.mubr.bf16.mxu0 %v21825_v56 }
 0x801   : > { %v11861_v40 = vsel %vm21844_vm7, %v11849_v60, %v11851_v47  ;;  %11794 = vmatprep.mubr.bf16.mxu1 %v21825_v56  ;;  %vm21857_vm7 = vcmask 1031168  }
 0x802   : > { %v11853_v39 = vpop.permute.xlu0 %11852  ;;  %11890 = vmatprep.subr.bf16.mxu0 %v11861_v40  ;;  %vm21861_vm12 = vmmov %vm21857_vm7 }
 0x803   : > { %13248 = vrot.lane.b32.xlu1 %v20130_v24, %s21699_s23  ;;  %v11863_v31 = vsel %vm21845_vm9, %v11853_v39, %v11855_v62  ;;  %v11862_v20 = vsel %vm21846_vm10, %v11851_v47, %v11853_v39  ;;  %vm21858_vm9 = vmmov %vm21852_vm0 }
 0x804   : > { %13252 = vrot.lane.b32.xlu0 %v19770_v16, %s21699_s23  ;;  %11943 = vmatprep.subr.bf16.mxu1 %v11863_v31  ;;  %v11843_v27 = vpop.permute.xlu1 %11842  ;;  %vm21859_vm10 = vmmov %vm21857_vm7 }
 0x805   : > { %11944 = vmatpush1.bf16.msra.mxu1 %v11862_v20  ;;  %v11858_v32 = vsel %vm21851_vm15, %v11841_v42, %v11843_v27  ;;  %vm21864_vm15 = vmmov %vm21857_vm7 }
 0x806   : > { %v11847_v59 = vpop.permute.xlu0 %11846  ;;  %15161 = vmatmul.mubr.msk.bf16.gmra.mxu1 %vm826_vm8, %v15549_v3 }
 0x807   : > { %v11860_v5 = vsel %vm21847_vm11, %v11847_v59, %v11849_v60  ;;  %15159 = vmatmul.mubr.msk.bf16.gmra.mxu0 %vm826_vm8, %v15549_v3  ;;  %13250 = vrot.lane.b32.xlu1 %v20141_v22, %s21699_s23  ;;  %vm21860_vm11 = vmmov %vm21857_vm7 }
 0x808   : > { %13244 = vrot.lane.b32.xlu0 %v19744_v38, %s21699_s23  ;;  %11891 = vmatpush1.bf16.msra.mxu0 %v11860_v5  ;;  %v11837_v33 = vpop.permute.xlu1 %11836 }
 0x809   : > { %11892 = vmatprep.subr.bf16.mxu0 %v11857_v55  ;;  %v11856_v12 = vsel %vm21849_vm13, %v11837_v33, %v11839_v50  ;;  %11910 = vmatprep.mubr.bf16.mxu0 %v21825_v56  ;;  %vm21862_vm13 = vmmov %vm21857_vm7 }
 0x80a   : > { %v11845_v54 = vpop.permute.xlu0 %11844  ;;  %11963 = vmatprep.mubr.bf16.mxu1 %v21825_v56 }
 0x80b   : > { %13429 = vrot.lane.b32.xlu1 %v20102_v15, %s21700_s22  ;;  %v11859_v4 = vsel %vm21850_vm14, %v11843_v27, %v11845_v54  ;;  %v15554_v27 = vld [vmem:[%s21537_s4 + $0xd0] sm:$0xff]   ;;  %vm21863_vm14 = vcmask 900096  }
 0x80c   : > { %13419 = vrot.lane.b32.xlu0 %v19746_v45, %s21700_s22  ;;  %11893 = vmatpush1.bf16.msra.mxu0 %v11856_v12  ;;  %v12219_v57 = vpop.permute.xlu1 %12218 }
 0x80d   : > { %11945 = vmatprep.subr.bf16.mxu1 %v11859_v4  ;;  %12081 = vmatprep.subr.bf16.mxu0 %v19772_v23 }
 0x80e   : > { %11946 = vmatpush1.bf16.msra.mxu1 %v11858_v32  ;;  %v12209_v53 = vpop.permute.xlu0 %12208 }
 0x80f   : > { %12134 = vmatprep.subr.bf16.mxu1 %v20119_v25  ;;  %15168 = vmatmul.mubr.msk.bf16.vlgmr.msra.gmra.mxu0 %vm826_vm8, %v15550_v13 }
 0x810   : > { %13431 = vrot.lane.b32.xlu1 %v20119_v25, %s21700_s22  ;;  %13427 = vrot.lane.b32.xlu0 %v19772_v23, %s21700_s22  ;;  %v12221_v58 = vpop.permute.xlu1 %12220 }
 0x811   : > { %15170 = vmatmul.mubr.msk.bf16.vlgmr.msra.gmra.mxu1 %vm826_vm8, %v15550_v13  ;;  %12082 = vmatpush1.bf16.msra.mxu0 %v19770_v16  ;;  %v12227_v46 = vsel %vm21854_vm1, %v12219_v57, %v12221_v58 }
 0x812   : > { %12083 = vmatprep.subr.bf16.mxu0 %v19746_v45  ;;  %12135 = vmatpush1.bf16.msra.mxu1 %v20102_v15  ;;  %v12217_v26 = vpop.permute.xlu0 %12216 }
 0x813   : > { %12136 = vmatprep.subr.bf16.mxu1 %v20141_v22  ;;  %v12226_v35 = vsel %vm21852_vm0, %v12217_v26, %v12219_v57  ;;  %11920 = vmatprep.mubr.bf16.mxu0 %v21825_v56  ;;  %vm21865_vm0 = vmmov %vm21863_vm14 }
 0x814   : > { %13421 = vrot.lane.b32.xlu1 %v20130_v24, %s21700_s22  ;;  %13425 = vrot.lane.b32.xlu0 %v19770_v16, %s21700_s22  ;;  %v12211_v28 = vpop.permute.xlu1 %12210  ;;  %vm21867_vm1 = vmmov %vm21865_vm0 }
 0x815   : > { %12084 = vmatpush1.bf16.msra.mxu0 %v19744_v38  ;;  %11973 = vmatprep.mubr.bf16.mxu1 %v21825_v56  ;;  %v12223_v18 = vsel %vm21855_vm2, %v12209_v53, %v12211_v28  ;;  %vm21868_vm2 = vmmov %vm21865_vm0 }
 0x816   : > { %12137 = vmatpush1.bf16.msra.mxu1 %v20130_v24  ;;  %12254 = vmatprep.subr.bf16.mxu0 %v12226_v35  ;;  %v12215_v10 = vpop.permute.xlu0 %12214 }
 0x817   : > { %12307 = vmatprep.subr.bf16.mxu1 %v12221_v58  ;;  %15169 = vmatmul.mubr.msk.bf16.gmra.mxu0 %vm826_vm8, %v15551_v48  ;;  %v12225_v51 = vsel %vm21853_vm3, %v12215_v10, %v12217_v26  ;;  %vm21866_vm3 = vmmov %vm21865_vm0 }
 0x818   : > { %13423 = vrot.lane.b32.xlu1 %v20141_v22, %s21700_s22  ;;  %13417 = vrot.lane.b32.xlu0 %v19744_v38, %s21700_s22  ;;  %v12213_v44 = vpop.permute.xlu1 %12212 }
 0x819   : > { %15171 = vmatmul.mubr.msk.bf16.gmra.mxu1 %vm826_vm8, %v15551_v48  ;;  %12101 = vmatprep.mubr.bf16.mxu0 %v21825_v56  ;;  %v12224_v42 = vsel %vm21858_vm9, %v12211_v28, %v12213_v44 }
 0x81a   : > { %v12207_v43 = vpop.permute.xlu0 %12206  ;;  %12154 = vmatprep.mubr.bf16.mxu1 %v21825_v56 }
 0x81b   : > { %v12222_v41 = vsel %vm21856_vm6, %v12207_v43, %v12209_v53  ;;  %vm21869_vm6 = vcmask 891904  }
 0x81c   : > { %13602 = vrot.lane.b32.xlu1 %v20102_v15, %s21702_s25  ;;  %13592 = vrot.lane.b32.xlu0 %v19746_v45, %s21702_s25  ;;  %v20456_v1 = vpop.permute.xlu1 %12391  ;;  %vm21871_vm9 = vmmov %vm21869_vm6 }
 0x81d   : > { %v10033_v34 = vpop.f32.mrf.mxu1 }
 0x81e   : > { %v20458_v21 = vpop.permute.xlu0 %12381  ;;  %v9980_v11 = vpop.f32.mrf.mxu0 }
 0x81f   : > { %15186 = vmatmul.mubr.msk.bf16.vlgmr.msra.gmra.mxu0 %vm826_vm8, %v15552_v0  ;;  %v20462_v52 = vpop.f32.mrf.mxu1 }
 0x820   : > { %12255 = vmatpush1.bf16.msra.mxu0 %v12225_v51  ;;  %13604 = vrot.lane.b32.xlu1 %v20119_v25, %s21702_s25  ;;  %v20466_v6 = vpop.f32.mrf.mxu0  ;;  %v12394_v30 = vpop.permute.xlu1 %12393 }
 0x821   : > { %13600 = vrot.lane.b32.xlu0 %v19772_v23, %s21702_s25  ;;  %15188 = vmatmul.mubr.msk.bf16.vlgmr.msra.gmra.mxu1 %vm826_vm8, %v15552_v0  ;;  %v20473_v14 = vpop.f32.mrf.mxu1  ;;  %v12400_v53 = vsel %vm21860_vm11, %v20456_v1, %v12394_v30  ;;  %vm21873_vm11 = vmmov %vm21869_vm6 }
 0x822   : > { %12256 = vmatprep.subr.bf16.mxu0 %v12223_v18  ;;  %12308 = vmatpush1.bf16.msra.mxu1 %v12227_v46  ;;  %v12390_v29 = vpop.permute.xlu0 %12389  ;;  %v20475_v7 = vpop.f32.mrf.mxu0 }
 0x823   : > { %12309 = vmatprep.subr.bf16.mxu1 %v12213_v44  ;;  %v12399_v9 = vsel %vm21857_vm7, %v12390_v29, %v20456_v1  ;;  %v20480_v19 = vpop.f32.mrf.mxu1  ;;  %12111 = vmatprep.mubr.bf16.mxu0 %v21825_v56  ;;  %vm21870_vm7 = vmmov %vm21865_vm0 }
 0x824   : > { %12257 = vmatpush1.bf16.msra.mxu0 %v12222_v41  ;;  %13594 = vrot.lane.b32.xlu1 %v20130_v24, %s21702_s25  ;;  %v20488_v8 = vpop.f32.mrf.mxu0  ;;  %v20490_v62 = vpop.permute.xlu1 %12383 }
 0x825   : > { %13598 = vrot.lane.b32.xlu0 %v19770_v16, %s21702_s25  ;;  %12427 = vmatprep.subr.bf16.mxu0 %v12399_v9  ;;  %v20495_v2 = vpop.f32.mrf.mxu1  ;;  %v12396_v58 = vsel %vm21861_vm12, %v20458_v21, %v20490_v62  ;;  %vm21874_vm12 = vmmov %vm21869_vm6 }
 0x826   : > { %12310 = vmatpush1.bf16.msra.mxu1 %v12224_v42  ;;  %v12388_v63 = vpop.permute.xlu0 %12387  ;;  %v20497_v50 = vpop.f32.mrf.mxu0  ;;  %12164 = vmatprep.mubr.bf16.mxu1 %v21825_v56 }
 0x827   : > { %12480 = vmatprep.subr.bf16.mxu1 %v12394_v30  ;;  %15187 = vmatmul.mubr.msk.bf16.gmra.mxu0 %vm826_vm8, %v15553_v17  ;;  %v20501_v60 = vpop.f32.mrf.mxu1  ;;  %v12398_v12 = vsel %vm21859_vm10, %v12388_v63, %v12390_v29  ;;  %vm21872_vm10 = vmmov %vm21869_vm6 }
 0x828   : > { %13596 = vrot.lane.b32.xlu1 %v20141_v22, %s21702_s25  ;;  %v20505_v47 = vpop.f32.mrf.mxu0  ;;  %v12386_v40 = vpop.permute.xlu1 %12385  ;;  %12274 = vmatprep.mubr.bf16.mxu0 %v21825_v56 }
 0x829   : > { %13590 = vrot.lane.b32.xlu0 %v19744_v38, %s21702_s25  ;;  %15189 = vmatmul.mubr.msk.bf16.gmra.mxu1 %vm826_vm8, %v15553_v17  ;;  %v20511_v39 = vpop.f32.mrf.mxu1 }
 0x82a   : > { %v12380_v3 = vpop.permute.xlu0 %12379  ;;  %v20513_v31 = vpop.f32.mrf.mxu0  ;;  %12327 = vmatprep.mubr.bf16.mxu1 %v21825_v56 }
 0x82b   : > { %v20516_v20 = vpop.f32.mrf.mxu1  ;;  %v12395_v44 = vsel %vm21862_vm13, %v12380_v3, %v20458_v21  ;;  %vm21875_vm13 = vcmask 883712  }
 0x82c   : > { %13775 = vrot.lane.b32.xlu1 %v20102_v15, %s21708_s19  ;;  %v20523_v59 = vpop.f32.mrf.mxu0  ;;  %v20525_v5 = vpop.permute.xlu1 %12564 }
 0x82d   : > { %13765 = vrot.lane.b32.xlu0 %v19746_v45, %s21708_s19 }
 0x82e   : > { %v20529_v55 = vpop.permute.xlu0 %12554  ;;  %v10185_v33 = vpop.f32.mrf.mxu1 }
 0x82f   : > { %v10132_v54 = vpop.f32.mrf.mxu0  ;;  %v20532_v4 = vadd.f32 %v10185_v33, %v10033_v34  ;;  %15196 = vmatmul.mubr.msk.bf16.vlgmr.msra.gmra.mxu0 %vm826_vm8, %v15554_v27  ;;  %v15555_v34 = vld [vmem:[%s21537_s4 + $0xd8] sm:$0xff]  }
 0x830   : > { %v20535_v13 = vadd.f32 %v10132_v54, %v9980_v11  ;;  %12428 = vmatpush1.bf16.msra.mxu0 %v12398_v12  ;;  %13777 = vrot.lane.b32.xlu1 %v20119_v25, %s21708_s19  ;;  %v10187_v57 = vpop.f32.mrf.mxu1  ;;  %v20539_v32 = vpop.permute.xlu1 %12566 }
 0x831   : > { %13773 = vrot.lane.b32.xlu0 %v19772_v23, %s21708_s19  ;;  %15198 = vmatmul.mubr.msk.bf16.vlgmr.msra.gmra.mxu1 %vm826_vm8, %v15554_v27  ;;  %v10134_v26 = vpop.f32.mrf.mxu0  ;;  %v20550_v35 = vadd.f32 %v10187_v57, %v20462_v52  ;;  %v12397_v52 = vsel %vm21864_vm15, %v20490_v62, %v12386_v40  ;;  %vm21877_vm15 = vmmov %vm21875_vm13 }
 0x832   : > { %12429 = vmatprep.subr.bf16.mxu0 %v12396_v58  ;;  %12481 = vmatpush1.bf16.msra.mxu1 %v12400_v53  ;;  %v20553_v48 = vadd.f32 %v10134_v26, %v20466_v6  ;;  %v12563_v28 = vpop.permute.xlu0 %12562  ;;  %v10189_v10 = vpop.f32.mrf.mxu1  ;;  %v12573_v26 = vsel %vm21866_vm3, %v20525_v5, %v20539_v32 }
 0x833   : > { %12482 = vmatprep.subr.bf16.mxu1 %v12386_v40  ;;  %v10136_v43 = vpop.f32.mrf.mxu0  ;;  %v20558_v0 = vadd.f32 %v10189_v10, %v20473_v14  ;;  %v12572_v1 = vsel %vm21863_vm14, %v12563_v28, %v20525_v5  ;;  %12284 = vmatprep.mubr.bf16.mxu0 %v21825_v56  ;;  %v15556_v40 = vld [vmem:[%s21537_s4 + $0xe0] sm:$0xff]   ;;  %vm21876_vm14 = vmmov %vm21869_vm6 }
 0x834   : > { %v20567_v11 = vadd.f32 %v10136_v43, %v20475_v7  ;;  %12430 = vmatpush1.bf16.msra.mxu0 %v12395_v44  ;;  %13767 = vrot.lane.b32.xlu1 %v20130_v24, %s21708_s19  ;;  %v10191_v21 = vpop.f32.mrf.mxu1  ;;  %v20571_v51 = vpop.permute.xlu1 %12556 }
 0x835   : > { %13771 = vrot.lane.b32.xlu0 %v19770_v16, %s21708_s19  ;;  %12600 = vmatprep.subr.bf16.mxu0 %v12572_v1  ;;  %v10138_v6 = vpop.f32.mrf.mxu0  ;;  %v20578_v30 = vadd.f32 %v10191_v21, %v20480_v19 }
 0x836   : > { %12483 = vmatpush1.bf16.msra.mxu1 %v12397_v52  ;;  %v20581_v46 = vadd.f32 %v10138_v6, %v20488_v8  ;;  %v12561_v18 = vpop.permute.xlu0 %12560  ;;  %v10195_v14 = vpop.f32.mrf.mxu1  ;;  %12337 = vmatprep.mubr.bf16.mxu1 %v21825_v56 }
 0x837   : > { %12653 = vmatprep.subr.bf16.mxu1 %v20539_v32  ;;  %v10142_v29 = vpop.f32.mrf.mxu0  ;;  %v20586_v7 = vadd.f32 %v10195_v14, %v20495_v2  ;;  %15197 = vmatmul.mubr.msk.bf16.gmra.mxu0 %vm826_vm8, %v15555_v34  ;;  %v12571_v54 = vsel %vm21865_vm0, %v12561_v18, %v12563_v28  ;;  %vm21878_vm0 = vmmov %vm21875_vm13 }
 0x838   : > { %v20590_v41 = vadd.f32 %v10142_v29, %v20497_v50  ;;  %13769 = vrot.lane.b32.xlu1 %v20141_v22, %s21708_s19  ;;  %v10197_v9 = vpop.f32.mrf.mxu1  ;;  %v12559_v19 = vpop.permute.xlu1 %12558  ;;  %12447 = vmatprep.mubr.bf16.mxu0 %v21825_v56  ;;  %vm21879_vm3 = vmmov %vm21878_vm0 }
 0x839   : > { %13763 = vrot.lane.b32.xlu0 %v19744_v38, %s21708_s19  ;;  %15199 = vmatmul.mubr.msk.bf16.gmra.mxu1 %vm826_vm8, %v15555_v34  ;;  %v10144_v17 = vpop.f32.mrf.mxu0  ;;  %v20599_v8 = vadd.f32 %v10197_v9, %v20501_v60 }
 0x83a   : > { %v20602_v62 = vadd.f32 %v10144_v17, %v20505_v47  ;;  %v12553_v42 = vpop.permute.xlu0 %12552  ;;  %v10199_v2 = vpop.f32.mrf.mxu1  ;;  %12500 = vmatprep.mubr.bf16.mxu1 %v21825_v56 }
 0x83b   : > { %v10146_v63 = vpop.f32.mrf.mxu0  ;;  %v20606_v50 = vadd.f32 %v10199_v2, %v20511_v39  ;;  %v12568_v32 = vsel %vm21868_vm2, %v12553_v42, %v20529_v55  ;;  %vm21881_vm2 = vcmask 875520  }
 0x83c   : > { %v20612_v3 = vadd.f32 %v10146_v63, %v20513_v31  ;;  %13948 = vrot.lane.b32.xlu1 %v20102_v15, %s21714_s20  ;;  %v10201_v60 = vpop.f32.mrf.mxu1  ;;  %v20616_v47 = vpop.permute.xlu1 %12737 }
 0x83d   : > { %13938 = vrot.lane.b32.xlu0 %v19746_v45, %s21714_s20  ;;  %v10148_v27 = vpop.f32.mrf.mxu0  ;;  %v20621_v39 = vadd.f32 %v10201_v60, %v20516_v20 }
 0x83e   : > { %v20624_v33 = vadd.f32 %v10148_v27, %v20523_v59  ;;  %v20626_v12 = vpop.permute.xlu0 %12727  ;;  %v10342_v31 = vpop.f32.mrf.mxu1 }
 0x83f   : > { %v10289_v57 = vpop.f32.mrf.mxu0  ;;  %v20630_v53 = vadd.f32 %v10342_v31, %v20532_v4  ;;  %15206 = vmatmul.mubr.msk.bf16.vlgmr.msra.gmra.mxu0 %vm826_vm8, %v15556_v40  ;;  %v12569_v4 = vsel %vm21867_vm1, %v20529_v55, %v20571_v51  ;;  %vm21880_vm1 = vmmov %vm21878_vm0 }
 0x840   : > { %v20634_v58 = vadd.f32 %v10289_v57, %v20535_v13  ;;  %12601 = vmatpush1.bf16.msra.mxu0 %v12571_v54  ;;  %13950 = vrot.lane.b32.xlu1 %v20119_v25, %s21714_s20  ;;  %v10344_v20 = vpop.f32.mrf.mxu1  ;;  %v20638_v59 = vpop.permute.xlu1 %12739 }
 0x841   : > { %13946 = vrot.lane.b32.xlu0 %v19772_v23, %s21714_s20  ;;  %15208 = vmatmul.mubr.msk.bf16.vlgmr.msra.gmra.mxu1 %vm826_vm8, %v15556_v40  ;;  %v10291_v13 = vpop.f32.mrf.mxu0  ;;  %v20650_v28 = vadd.f32 %v10344_v20, %v20550_v35  ;;  %v15557_v35 = vld [vmem:[%s21537_s4 + $0xe8] sm:$0xff]   ;;  %v15558_v40 = vld [vmem:[%s21537_s4 + $0xf0] sm:$0xff]  }
 0x842   : > { %12602 = vmatprep.subr.bf16.mxu0 %v12569_v4  ;;  %12654 = vmatpush1.bf16.msra.mxu1 %v12573_v26  ;;  %v20653_v10 = vadd.f32 %v10291_v13, %v20553_v48  ;;  %v12736_v44 = vpop.permute.xlu0 %12735  ;;  %v10346_v5 = vpop.f32.mrf.mxu1  ;;  %v12746_v26 = vsel %vm21872_vm10, %v20616_v47, %v20638_v59  ;;  %vm21885_vm10 = vmmov %vm21881_vm2 }
 0x843   : > { %12655 = vmatprep.subr.bf16.mxu1 %v12559_v19  ;;  %v10293_v43 = vpop.f32.mrf.mxu0  ;;  %v20658_v1 = vadd.f32 %v10346_v5, %v20558_v0  ;;  %v12745_v34 = vsel %vm21869_vm6, %v12736_v44, %v20616_v47  ;;  %12457 = vmatprep.mubr.bf16.mxu0 %v21825_v56  ;;  %v12570_v0 = vsel %vm21870_vm7, %v20571_v51, %v12559_v19  ;;  %vm21882_vm6 = vmmov %vm21878_vm0 }
 0x844   : > { %v20667_v48 = vadd.f32 %v10293_v43, %v20567_v11  ;;  %12603 = vmatpush1.bf16.msra.mxu0 %v12568_v32  ;;  %13940 = vrot.lane.b32.xlu1 %v20130_v24, %s21714_s20  ;;  %v10348_v55 = vpop.f32.mrf.mxu1  ;;  %v20671_v21 = vpop.permute.xlu1 %12729  ;;  %vm21883_vm7 = vmmov %vm21881_vm2 }
 0x845   : > { %13944 = vrot.lane.b32.xlu0 %v19770_v16, %s21714_s20  ;;  %12773 = vmatprep.subr.bf16.mxu0 %v12745_v34  ;;  %v10295_v52 = vpop.f32.mrf.mxu0  ;;  %v20678_v6 = vadd.f32 %v10348_v55, %v20578_v30 }
 0x846   : > { %12656 = vmatpush1.bf16.msra.mxu1 %v12570_v0  ;;  %v20681_v11 = vadd.f32 %v10295_v52, %v20581_v46  ;;  %v12734_v18 = vpop.permute.xlu0 %12733  ;;  %v10352_v14 = vpop.f32.mrf.mxu1  ;;  %12510 = vmatprep.mubr.bf16.mxu1 %v21825_v56 }
 0x847   : > { %12826 = vmatprep.subr.bf16.mxu1 %v20638_v59  ;;  %v10299_v29 = vpop.f32.mrf.mxu0  ;;  %v20686_v51 = vadd.f32 %v10352_v14, %v20586_v7  ;;  %15207 = vmatmul.mubr.msk.bf16.gmra.mxu0 %vm826_vm8, %v15557_v35  ;;  %v12744_v57 = vsel %vm21871_vm9, %v12734_v18, %v12736_v44  ;;  %v15311_v18 = vld [vmem:[%s21538_s5 + $0x68] sm:$0xff]  ;;  %vm21884_vm9 = vmmov %vm21881_vm2 }
 0x848   : > { %v20690_v9 = vadd.f32 %v10299_v29, %v20590_v41  ;;  %13942 = vrot.lane.b32.xlu1 %v20141_v22, %s21714_s20  ;;  %v10354_v30 = vpop.f32.mrf.mxu1  ;;  %v12732_v46 = vpop.permute.xlu1 %12731  ;;  %12620 = vmatprep.mubr.bf16.mxu0 %v21825_v56 }
 0x849   : > { %13936 = vrot.lane.b32.xlu0 %v19744_v38, %s21714_s20  ;;  %15209 = vmatmul.mubr.msk.bf16.gmra.mxu1 %vm826_vm8, %v15557_v35  ;;  %v10301_v19 = vpop.f32.mrf.mxu0  ;;  %v20699_v7 = vadd.f32 %v10354_v30, %v20599_v8  ;;  %v12743_v43 = vsel %vm21876_vm14, %v20671_v21, %v12732_v46  ;;  %v15560_v30 = vld [vmem:[%s21537_s4 + $0x100] sm:$0xff]  }
 0x84a   : > { %v20702_v17 = vadd.f32 %v10301_v19, %v20602_v62  ;;  %v12726_v41 = vpop.permute.xlu0 %12725  ;;  %v10356_v42 = vpop.f32.mrf.mxu1  ;;  %12673 = vmatprep.mubr.bf16.mxu1 %v21825_v56 }
 0x84b   : > { %v10303_v2 = vpop.f32.mrf.mxu0  ;;  %v20706_v63 = vadd.f32 %v10356_v42, %v20606_v50  ;;  %v15313_v42 = vld [vmem:[%s21538_s5 + $0x78] sm:$0xff] }
 0x84c   : > { %v20712_v60 = vadd.f32 %v10303_v2, %v20612_v3  ;;  %14121 = vrot.lane.b32.xlu1 %v20102_v15, %s21720_s17  ;;  %v10358_v8 = vpop.f32.mrf.mxu1  ;;  %v20716_v62 = vpop.permute.xlu1 %12910 }
 0x84d   : > { %14111 = vrot.lane.b32.xlu0 %v19746_v45, %s21720_s17  ;;  %v10305_v27 = vpop.f32.mrf.mxu0  ;;  %v20721_v50 = vadd.f32 %v10358_v8, %v20621_v39 }
 0x84e   : > { %v20724_v31 = vadd.f32 %v10305_v27, %v20624_v33  ;;  %v20726_v54 = vpop.permute.xlu0 %12900  ;;  %v10515_v3 = vpop.f32.mrf.mxu1 }
 0x84f   : > { %v10462_v20 = vpop.f32.mrf.mxu0  ;;  %v20730_v15 = vadd.f32 %v10515_v3, %v20630_v53  ;;  %15216 = vmatmul.mubr.msk.bf16.vlgmr.msra.gmra.mxu0 %vm826_vm8, %v15558_v40  ;;  %v12742_v53 = vsel %vm21873_vm11, %v20626_v12, %v20671_v21  ;;  %vm21886_vm11 = vmmov %vm21881_vm2 }
 0x850   : > { %v20734_v45 = vadd.f32 %v10462_v20, %v20634_v58  ;;  %12774 = vmatpush1.bf16.msra.mxu0 %v12744_v57  ;;  %14123 = vrot.lane.b32.xlu1 %v20119_v25, %s21720_s17  ;;  %v10517_v39 = vpop.f32.mrf.mxu1  ;;  %v20738_v33 = vpop.permute.xlu1 %12912 }
 0x851   : > { %14119 = vrot.lane.b32.xlu0 %v19772_v23, %s21720_s17  ;;  %15218 = vmatmul.mubr.msk.bf16.vlgmr.msra.gmra.mxu1 %vm826_vm8, %v15558_v40  ;;  %v10464_v58 = vpop.f32.mrf.mxu0  ;;  %v20750_v4 = vadd.f32 %v10517_v39, %v20650_v28  ;;  %v12741_v23 = vsel %vm21874_vm12, %v12726_v41, %v20626_v12  ;;  %v15559_v28 = vld [vmem:[%s21537_s4 + $0xf8] sm:$0xff]   ;;  %v12919_v20 = vsel %vm21878_vm0, %v20716_v62, %v20738_v33  ;;  %vm21887_vm12 = vcmask 867328  }
 0x852   : > { %12775 = vmatprep.subr.bf16.mxu0 %v12742_v53  ;;  %12827 = vmatpush1.bf16.msra.mxu1 %v12746_v26  ;;  %v20753_v25 = vadd.f32 %v10464_v58, %v20653_v10  ;;  %v12909_v13 = vpop.permute.xlu0 %12908  ;;  %v10519_v47 = vpop.f32.mrf.mxu1  ;;  %vm21889_vm14 = vmmov %vm21887_vm12 }
 0x853   : > { %12828 = vmatprep.subr.bf16.mxu1 %v12732_v46  ;;  %v10466_v59 = vpop.f32.mrf.mxu0  ;;  %v20758_v44 = vadd.f32 %v10519_v47, %v20658_v1  ;;  %v12918_v5 = vsel %vm21875_vm13, %v12909_v13, %v20716_v62  ;;  %12630 = vmatprep.mubr.bf16.mxu0 %v21825_v56  ;;  %vm21888_vm13 = vmmov %vm21881_vm2 }
 0x854   : > { %v20767_v10 = vadd.f32 %v10466_v59, %v20667_v48  ;;  %12776 = vmatpush1.bf16.msra.mxu0 %v12741_v23  ;;  %14113 = vrot.lane.b32.xlu1 %v20130_v24, %s21720_s17  ;;  %v10521_v12 = vpop.f32.mrf.mxu1  ;;  %v20771_v32 = vpop.permute.xlu1 %12902  ;;  %vm21891_vm0 = vmmov %vm21887_vm12 }
 0x855   : > { %14117 = vrot.lane.b32.xlu0 %v19770_v16, %s21720_s17  ;;  %12946 = vmatprep.subr.bf16.mxu0 %v12918_v5  ;;  %v10468_v1 = vpop.f32.mrf.mxu0  ;;  %v20778_v34 = vadd.f32 %v10521_v12, %v20678_v6 }
 0x856   : > { %12829 = vmatpush1.bf16.msra.mxu1 %v12743_v43  ;;  %v20781_v35 = vadd.f32 %v10468_v1, %v20681_v11  ;;  %v12907_v48 = vpop.permute.xlu0 %12906  ;;  %v10525_v24 = vpop.f32.mrf.mxu1  ;;  %12683 = vmatprep.mubr.bf16.mxu1 %v21825_v56 }
 0x857   : > { %12999 = vmatprep.subr.bf16.mxu1 %v20738_v33  ;;  %v10472_v55 = vpop.f32.mrf.mxu0  ;;  %v20786_v21 = vadd.f32 %v10525_v24, %v20686_v51  ;;  %15217 = vmatmul.mubr.msk.bf16.gmra.mxu0 %vm826_vm8, %v15559_v28  ;;  %v15310_v51 = vld [vmem:[%s21538_s5 + $0x60] sm:$0xff]  ;;  %v12917_v8 = vsel %vm21877_vm15, %v12907_v48, %v12909_v13  ;;  %vm21890_vm15 = vmmov %vm21887_vm12 }
 0x858   : > { %v20790_v16 = vadd.f32 %v10472_v55, %v20690_v9  ;;  %14115 = vrot.lane.b32.xlu1 %v20141_v22, %s21720_s17  ;;  %v10527_v0 = vpop.f32.mrf.mxu1  ;;  %v12905_v52 = vpop.permute.xlu1 %12904  ;;  %12793 = vmatprep.mubr.bf16.mxu0 %v21825_v56 }
 0x859   : > { %14109 = vrot.lane.b32.xlu0 %v19744_v38, %s21720_s17  ;;  %15219 = vmatmul.mubr.msk.bf16.gmra.mxu1 %vm826_vm8, %v15559_v28  ;;  %v10474_v6 = vpop.f32.mrf.mxu0  ;;  %v20799_v11 = vadd.f32 %v10527_v0, %v20699_v7  ;;  %v12916_v59 = vsel %vm21882_vm6, %v20771_v32, %v12905_v52  ;;  %s15316_s17 = sshll.u32 %s21947_s28, 7 }
 0x85a   : > { %v20805_v14 = vadd.f32 %v10474_v6, %v20702_v17  ;;  %v12899_v22 = vpop.permute.xlu0 %12898  ;;  %v10529_v29 = vpop.f32.mrf.mxu1  ;;  %12846 = vmatprep.mubr.bf16.mxu1 %v21825_v56  ;;  %v15562_v6 = vld [vmem:[%s21537_s4 + $0x110] sm:$0xff]   ;;  %s21444_s25 = scalar_lea.vmem %s21541_s8, %s15316_s17 }
 0x85b   : > { %v10476_v38 = vpop.f32.mrf.mxu0  ;;  %v20812_v9 = vadd.f32 %v10529_v29, %v20706_v63  ;;  %v12914_v62 = vsel %vm21880_vm1, %v12899_v22, %v20726_v54  ;;  %vm21893_vm1 = vcmask 736256  }
 0x85c   : > { %v20818_v46 = vadd.f32 %v10476_v38, %v20712_v60  ;;  %14279 = vperm.xlu1 %15377, %v15311_v18   ;;  %v10531_v19 = vpop.f32.mrf.mxu1  ;;  %v20820_v7 = vpop.permute.xlu1 %13083  ;;  %v15312_v60 = vld [vmem:[%s21538_s5 + $0x70] sm:$0xff]  ;;  %vm21895_vm6 = vmmov %vm21893_vm1 }
 0x85d   : > { %14274 = vperm.xlu0 %15376, %v15310_v51   ;;  %v10478_v17 = vpop.f32.mrf.mxu0  ;;  %v20823_v41 = vadd.f32 %v10531_v19, %v20721_v50 }
 0x85e   : > { %v20829_v2 = vadd.f32 %v10478_v17, %v20724_v31  ;;  %v20831_v63 = vpop.permute.xlu0 %13073  ;;  %v10688_v40 = vpop.f32.mrf.mxu1 }
 0x85f   : > { %v10635_v27 = vpop.f32.mrf.mxu0  ;;  %v20838_v50 = vadd.f32 %v10688_v40, %v20730_v15  ;;  %15226 = vmatmul.mubr.msk.bf16.vlgmr.msra.gmra.mxu0 %vm826_vm8, %v15560_v30  ;;  %v12915_v15 = vsel %vm21879_vm3, %v20726_v54, %v20771_v32  ;;  %vm21892_vm3 = vmmov %vm21891_vm0 }
 0x860   : > { %v20842_v3 = vadd.f32 %v10635_v27, %v20734_v45  ;;  %12947 = vmatpush1.bf16.msra.mxu0 %v12917_v8  ;;  %14289 = vperm.xlu1 %15377, %v15313_v42   ;;  %v10690_v31 = vpop.f32.mrf.mxu1  ;;  %v20844_v57 = vpop.permute.xlu1 %13085 }
 0x861   : > { %15228 = vmatmul.mubr.msk.bf16.vlgmr.msra.gmra.mxu1 %vm826_vm8, %v15560_v30  ;;  %14284 = vperm.xlu0 %15376, %v15312_v60   ;;  %v10637_v39 = vpop.f32.mrf.mxu0  ;;  %v20854_v45 = vadd.f32 %v10690_v31, %v20750_v4  ;;  %v15561_v4 = vld [vmem:[%s21537_s4 + $0x108] sm:$0xff]  }
 0x862   : > { %13000 = vmatpush1.bf16.msra.mxu1 %v12919_v20  ;;  %12948 = vmatprep.subr.bf16.mxu0 %v12915_v15  ;;  %v20857_v26 = vadd.f32 %v10637_v39, %v20753_v25  ;;  %v13082_v53 = vpop.permute.xlu0 %13081  ;;  %v10692_v58 = vpop.f32.mrf.mxu1  ;;  %v15563_v15 = vld [vmem:[%s21537_s4 + $0x118] sm:$0xff]  }
 0x863   : > { %13001 = vmatprep.subr.bf16.mxu1 %v12905_v52  ;;  %v10639_v33 = vpop.f32.mrf.mxu0  ;;  %v20862_v13 = vadd.f32 %v10692_v58, %v20758_v44  ;;  %v13091_v47 = vsel %vm21881_vm2, %v13082_v53, %v20820_v7  ;;  %12803 = vmatprep.mubr.bf16.mxu0 %v21825_v56  ;;  %vm21894_vm2 = vmmov %vm21891_vm0 }
 0x864   : > { %v20871_v25 = vadd.f32 %v10639_v33, %v20767_v10  ;;  %12949 = vmatpush1.bf16.msra.mxu0 %v12914_v62  ;;  %v10694_v23 = vpop.f32.mrf.mxu1  ;;  %v20873_v54 = vpop.permute.xlu1 %13075  ;;  %12856 = vmatprep.mubr.bf16.mxu1 %v21825_v56 }
 0x865   : > { %13119 = vmatprep.subr.bf16.mxu0 %v13091_v47  ;;  %v10641_v44 = vpop.f32.mrf.mxu0  ;;  %v20879_v5 = vadd.f32 %v10694_v23, %v20778_v34 }
 0x866   : > { %13002 = vmatpush1.bf16.msra.mxu1 %v12916_v59  ;;  %v20882_v28 = vadd.f32 %v10641_v44, %v20781_v35  ;;  %v13080_v10 = vpop.permute.xlu0 %13079  ;;  %v10698_v12 = vpop.f32.mrf.mxu1 }
 0x867   : > { %13172 = vmatprep.subr.bf16.mxu1 %v20844_v57  ;;  %v10645_v43 = vpop.f32.mrf.mxu0  ;;  %v20886_v1 = vadd.f32 %v10698_v12, %v20786_v21  ;;  %15227 = vmatmul.mubr.msk.bf16.gmra.mxu0 %vm826_vm8, %v15561_v4  ;;  %v13090_v30 = vsel %vm21883_vm7, %v13080_v10, %v13082_v53  ;;  %vm21896_vm7 = vmmov %vm21893_vm1 }
 0x868   : > { %v20890_v32 = vadd.f32 %v10645_v43, %v20790_v16  ;;  %v10700_v48 = vpop.f32.mrf.mxu1  ;;  %12966 = vmatprep.mubr.bf16.mxu0 %v21825_v56 }
 0x869   : > { %15229 = vmatmul.mubr.msk.bf16.gmra.mxu1 %vm826_vm8, %v15561_v4  ;;  %v10647_v34 = vpop.f32.mrf.mxu0  ;;  %v20895_v35 = vadd.f32 %v10700_v48, %v20799_v11  ;;  %v13078_v24 = vpop.permute.xlu1 %13077 }
 0x86a   : > { %v20898_v55 = vadd.f32 %v10647_v34, %v20805_v14  ;;  %v13072_v21 = vpop.permute.xlu0 %13071  ;;  %v10702_v0 = vpop.f32.mrf.mxu1  ;;  %13019 = vmatprep.mubr.bf16.mxu1 %v21825_v56 }
 0x86b   : > { %v10649_v52 = vpop.f32.mrf.mxu0  ;;  %v20902_v16 = vadd.f32 %v10702_v0, %v20812_v9  ;;  %v13087_v31 = vsel %vm21886_vm11, %v13072_v21, %v20831_v63  ;;  %vm21899_vm11 = vcmask 728064  }
 0x86c   : > { %v20908_v18 = vadd.f32 %v10649_v52, %v20818_v46  ;;  %v10704_v11 = vpop.f32.mrf.mxu1 }
 0x86d   : > { %v10651_v22 = vpop.f32.mrf.mxu0  ;;  %v20911_v14 = vadd.f32 %v10704_v11, %v20823_v41  ;;  %v20913_v29 = vpop.permute.xlu1 %13256  ;;  %v13088_v41 = vsel %vm21884_vm9, %v20831_v63, %v20873_v54  ;;  %v13089_v63 = vsel %vm21888_vm13, %v20873_v54, %v13078_v24  ;;  %vm21897_vm9 = vmmov %vm21893_vm1 }
 0x86e   : > { %v20916_v51 = vadd.f32 %v10651_v22, %v20829_v2  ;;  %v20918_v38 = vpop.permute.xlu0 %13246  ;;  %v10861_v9 = vpop.f32.mrf.mxu1  ;;  %v13092_v2 = vsel %vm21885_vm10, %v20820_v7, %v20844_v57  ;;  %vm21898_vm10 = vmmov %vm21893_vm1 }
 0x86f   : > { %v10808_v19 = vpop.f32.mrf.mxu0  ;;  %v20922_v17 = vadd.f32 %v10861_v9, %v20838_v50  ;;  %15236 = vmatmul.mubr.msk.bf16.vlgmr.msra.gmra.mxu0 %vm826_vm8, %v15562_v6  ;;  %vm21901_vm13 = vmmov %vm21899_vm11 }
 0x870   : > { %v20926_v46 = vadd.f32 %v10808_v19, %v20842_v3  ;;  %13120 = vmatpush1.bf16.msra.mxu0 %v13090_v30  ;;  %v10863_v42 = vpop.f32.mrf.mxu1  ;;  %12976 = vmatprep.mubr.bf16.mxu0 %v21825_v56 }
 0x871   : > { %15238 = vmatmul.mubr.msk.bf16.vlgmr.msra.gmra.mxu1 %vm826_vm8, %v15562_v6  ;;  %13121 = vmatprep.subr.bf16.mxu0 %v13088_v41  ;;  %v10810_v40 = vpop.f32.mrf.mxu0  ;;  %v20937_v60 = vadd.f32 %v10863_v42, %v20854_v45  ;;  %v13259_v8 = vpop.permute.xlu1 %13258 }
 0x872   : > { %13173 = vmatpush1.bf16.msra.mxu1 %v13092_v2  ;;  %v20940_v27 = vadd.f32 %v10810_v40, %v20857_v26  ;;  %v13255_v50 = vpop.permute.xlu0 %13254  ;;  %v10865_v3 = vpop.f32.mrf.mxu1  ;;  %13029 = vmatprep.mubr.bf16.mxu1 %v21825_v56  ;;  %v15565_v2 = vld [vmem:[%s21537_s4 + $0x128] sm:$0xff]  }
 0x873   : > { %13174 = vmatprep.subr.bf16.mxu1 %v13078_v24  ;;  %v10812_v7 = vpop.f32.mrf.mxu0  ;;  %v20946_v57 = vadd.f32 %v10865_v3, %v20862_v13  ;;  %v13264_v20 = vsel %vm21887_vm12, %v13255_v50, %v20913_v29  ;;  %vm21900_vm12 = vmmov %vm21893_vm1 }
 0x874   : > { %v20954_v39 = vadd.f32 %v10812_v7, %v20871_v25  ;;  %13122 = vmatpush1.bf16.msra.mxu0 %v13087_v31  ;;  %v10867_v45 = vpop.f32.mrf.mxu1 }
 0x875   : > { %13292 = vmatprep.subr.bf16.mxu0 %v13264_v20  ;;  %v10814_v26 = vpop.f32.mrf.mxu0  ;;  %v20959_v53 = vadd.f32 %v10867_v45, %v20879_v5  ;;  %v13249_v58 = vpop.permute.xlu1 %13248 }
 0x876   : > { %13175 = vmatpush1.bf16.msra.mxu1 %v13089_v63  ;;  %v10885_v62 = vadd.f32 %v10814_v26, %v20882_v28  ;;  %v13253_v33 = vpop.permute.xlu0 %13252  ;;  %v10871_v13 = vpop.f32.mrf.mxu1  ;;  %v13261_v11 = vsel %vm21890_vm15, %v20918_v38, %v13249_v58  ;;  %vm21903_vm15 = vmmov %vm21899_vm11 }
 0x877   : > { %13345 = vmatprep.subr.bf16.mxu1 %v13259_v8  ;;  %v10818_v47 = vpop.f32.mrf.mxu0  ;;  %v20963_v4 = vadd.f32 %v10871_v13, %v20886_v1  ;;  %15237 = vmatmul.mubr.msk.bf16.gmra.mxu0 %vm826_vm8, %v15563_v15  ;;  %v15564_v1 = vld [vmem:[%s21537_s4 + $0x120] sm:$0xff]   ;;  %v13263_v52 = vsel %vm21889_vm14, %v13253_v33, %v13255_v50  ;;  %vm21902_vm14 = vmmov %vm21899_vm11 }
 0x878   : > { %v20967_v25 = vadd.f32 %v10818_v47, %v20890_v32  ;;  %v10873_v23 = vpop.f32.mrf.mxu1  ;;  %13139 = vmatprep.mubr.bf16.mxu0 %v21825_v56  ;;  %v15566_v47 = vld [vmem:[%s21537_s4 + $0x130] sm:$0xff]  }
 0x879   : > { %15239 = vmatmul.mubr.msk.bf16.gmra.mxu1 %vm826_vm8, %v15563_v15  ;;  %v10820_v54 = vpop.f32.mrf.mxu0  ;;  %v20972_v59 = vadd.f32 %v10873_v23, %v20895_v35  ;;  %v13251_v44 = vpop.permute.xlu1 %13250 }
 0x87a   : > { %v10889_v5 = vadd.f32 %v10820_v54, %v20898_v55  ;;  %v13245_v28 = vpop.permute.xlu0 %13244  ;;  %v10875_v10 = vpop.f32.mrf.mxu1  ;;  %13192 = vmatprep.mubr.bf16.mxu1 %v21825_v56 }
 0x87b   : > { %v10822_v12 = vpop.f32.mrf.mxu0  ;;  %v20977_v43 = vadd.f32 %v10875_v10, %v20902_v16 }
 0x87c   : > { %v20983_v32 = vadd.f32 %v10822_v12, %v20908_v18  ;;  %v10877_v48 = vpop.f32.mrf.mxu1 }
 0x87d   : > { %v10824_v34 = vpop.f32.mrf.mxu0  ;;  %v20986_v35 = vadd.f32 %v10877_v48, %v20911_v14  ;;  %v20988_v24 = vpop.permute.xlu1 %13429  ;;  %v13265_v14 = vsel %vm21891_vm0, %v20913_v29, %v13259_v8  ;;  %v13262_v8 = vsel %vm21894_vm2, %v13249_v58, %v13251_v44  ;;  %vm21904_vm0 = vmmov %vm21899_vm11 }
 0x87e   : > { %v10893_v55 = vadd.f32 %v10824_v34, %v20916_v51  ;;  %v20991_v21 = vpop.permute.xlu0 %13419  ;;  %v11034_v0 = vpop.f32.mrf.mxu1 }
 0x87f   : > { %v10981_v16 = vpop.f32.mrf.mxu0  ;;  %v20995_v6 = vadd.f32 %v11034_v0, %v20922_v17  ;;  %15246 = vmatmul.mubr.msk.bf16.vlgmr.msra.gmra.mxu0 %vm826_vm8, %v15564_v1 }
 0x880   : > { %v20999_v18 = vadd.f32 %v10981_v16, %v20926_v46  ;;  %13293 = vmatpush1.bf16.msra.mxu0 %v13263_v52  ;;  %v11036_v22 = vpop.f32.mrf.mxu1  ;;  %13149 = vmatprep.mubr.bf16.mxu0 %v21825_v56  ;;  %v13260_v46 = vsel %vm21892_vm3, %v13245_v28, %v20918_v38  ;;  %vm21905_vm3 = vcmask 719872  }
 0x881   : > { %15248 = vmatmul.mubr.msk.bf16.vlgmr.msra.gmra.mxu1 %vm826_vm8, %v15564_v1  ;;  %13294 = vmatprep.subr.bf16.mxu0 %v13261_v11  ;;  %v10983_v51 = vpop.f32.mrf.mxu0  ;;  %v21008_v9 = vadd.f32 %v11036_v22, %v20937_v60  ;;  %v15567_v11 = vld [vmem:[%s21537_s4 + $0x138] sm:$0xff]   ;;  %vm21907_vm2 = vmmov %vm21905_vm3 }
 0x882   : > { %13346 = vmatpush1.bf16.msra.mxu1 %v13265_v14  ;;  %v21011_v30 = vadd.f32 %v10983_v51, %v20940_v27  ;;  %v13432_v19 = vpop.permute.xlu1 %13431  ;;  %v13428_v17 = vpop.permute.xlu0 %13427  ;;  %13202 = vmatprep.mubr.bf16.mxu1 %v21825_v56 }
 0x883   : > { %13347 = vmatprep.subr.bf16.mxu1 %v13251_v44  ;;  %v10985_v29 = vpop.f32.mrf.mxu0  ;;  %v11038_v41 = vpop.f32.mrf.mxu1  ;;  %v13437_v42 = vsel %vm21893_vm1, %v13428_v17, %v20988_v24  ;;  %v13438_v34 = vsel %vm21897_vm9, %v20988_v24, %v13432_v19  ;;  %vm21906_vm1 = vmmov %vm21904_vm0 }
 0x884   : > { %v11057_v40 = vadd.f32 %v10985_v29, %v20954_v39  ;;  %v21023_v60 = vadd.f32 %v11038_v41, %v20946_v57  ;;  %13295 = vmatpush1.bf16.msra.mxu0 %v13260_v46  ;;  %vm21910_vm9 = vmmov %vm21907_vm2 }
 0x885   : > { %13465 = vmatprep.subr.bf16.mxu0 %v13437_v42  ;;  %v10987_v38 = vpop.f32.mrf.mxu0  ;;  %v11040_v27 = vpop.f32.mrf.mxu1 }
 0x886   : > { %13348 = vmatpush1.bf16.msra.mxu1 %v13262_v8  ;;  %v21026_v50 = vadd.f32 %v10987_v38, %v10885_v62  ;;  %v21029_v3 = vadd.f32 %v11040_v27, %v20959_v53  ;;  %v13422_v31 = vpop.permute.xlu1 %13421  ;;  %v13426_v7 = vpop.permute.xlu0 %13425 }
 0x887   : > { %13518 = vmatprep.subr.bf16.mxu1 %v13432_v19  ;;  %v10991_v20 = vpop.f32.mrf.mxu0  ;;  %v11044_v15 = vpop.f32.mrf.mxu1  ;;  %15247 = vmatmul.mubr.msk.bf16.gmra.mxu0 %vm826_vm8, %v15565_v2  ;;  %v13436_v10 = vsel %vm21895_vm6, %v13426_v7, %v13428_v17  ;;  %v13434_v48 = vsel %vm21896_vm7, %v20991_v21, %v13422_v31  ;;  %vm21908_vm6 = vmmov %vm21907_vm2 }
 0x888   : > { %v21033_v57 = vadd.f32 %v10991_v20, %v20967_v25  ;;  %v21036_v39 = vadd.f32 %v11044_v15, %v20963_v4  ;;  %13312 = vmatprep.mubr.bf16.mxu0 %v21825_v56  ;;  %v15568_v20 = vld [vmem:[%s21537_s4 + $0x140] sm:$0xff]   ;;  %vm21909_vm7 = vmmov %vm21907_vm2 }
 0x889   : > { %15249 = vmatmul.mubr.msk.bf16.gmra.mxu1 %vm826_vm8, %v15565_v2  ;;  %v10993_v45 = vpop.f32.mrf.mxu0  ;;  %v11046_v63 = vpop.f32.mrf.mxu1 }
 0x88a   : > { %v21040_v26 = vadd.f32 %v10993_v45, %v10889_v5  ;;  %v21043_v53 = vadd.f32 %v11046_v63, %v20972_v59  ;;  %v13424_v58 = vpop.permute.xlu1 %13423  ;;  %v13418_v62 = vpop.permute.xlu0 %13417  ;;  %13365 = vmatprep.mubr.bf16.mxu1 %v21825_v56 }
 0x88b   : > { %v10995_v33 = vpop.f32.mrf.mxu0  ;;  %v11048_v13 = vpop.f32.mrf.mxu1 }
 0x88c   : > { %v21050_v4 = vadd.f32 %v10995_v33, %v20983_v32  ;;  %v21053_v25 = vadd.f32 %v11048_v13, %v20977_v43 }
 0x88d   : > { %v10997_v23 = vpop.f32.mrf.mxu0  ;;  %v11050_v54 = vpop.f32.mrf.mxu1 }
 0x88e   : > { %v21055_v59 = vadd.f32 %v10997_v23, %v10893_v55  ;;  %v21058_v44 = vadd.f32 %v11050_v54, %v20986_v35  ;;  %v21060_v5 = vpop.permute.xlu1 %13602  ;;  %v21062_v28 = vpop.permute.xlu0 %13592 }
 0x88f   : > { %v11154_v12 = vpop.f32.mrf.mxu0  ;;  %v11207_v1 = vpop.f32.mrf.mxu1  ;;  %15256 = vmatmul.mubr.msk.bf16.vlgmr.msra.gmra.mxu0 %vm826_vm8, %v15566_v47 }
 0x890   : > { %v21067_v43 = vadd.f32 %v11154_v12, %v20999_v18  ;;  %v21070_v32 = vadd.f32 %v11207_v1, %v20995_v6  ;;  %13466 = vmatpush1.bf16.msra.mxu0 %v13436_v10  ;;  %13322 = vmatprep.mubr.bf16.mxu0 %v21825_v56  ;;  %v13433_v6 = vsel %vm21898_vm10, %v13418_v62, %v20991_v21  ;;  %vm21911_vm10 = vmmov %vm21907_vm2 }
 0x891   : > { %15258 = vmatmul.mubr.msk.bf16.vlgmr.msra.gmra.mxu1 %vm826_vm8, %v15566_v47  ;;  %13467 = vmatprep.subr.bf16.mxu0 %v13434_v48  ;;  %v11156_v35 = vpop.f32.mrf.mxu0  ;;  %v11209_v55 = vpop.f32.mrf.mxu1  ;;  %v15569_v48 = vld [vmem:[%s21537_s4 + $0x148] sm:$0xff]  }
 0x892   : > { %13519 = vmatpush1.bf16.msra.mxu1 %v13438_v34  ;;  %v21079_v0 = vadd.f32 %v11156_v35, %v21011_v30  ;;  %v21082_v52 = vadd.f32 %v11209_v55, %v21008_v9  ;;  %v13605_v16 = vpop.permute.xlu1 %13604  ;;  %13375 = vmatprep.mubr.bf16.mxu1 %v21825_v56  ;;  %v13435_v9 = vsel %vm21900_vm12, %v13422_v31, %v13424_v58 }
 0x893   : > { %13520 = vmatprep.subr.bf16.mxu1 %v13424_v58  ;;  %v13601_v24 = vpop.permute.xlu0 %13600  ;;  %v11158_v18 = vpop.f32.mrf.mxu0  ;;  %v13611_v23 = vsel %vm21903_vm15, %v21060_v5, %v13605_v16 }
 0x894   : > { %v21090_v22 = vadd.f32 %v11158_v18, %v11057_v40  ;;  %v11211_v14 = vpop.f32.mrf.mxu1  ;;  %13468 = vmatpush1.bf16.msra.mxu0 %v13433_v6  ;;  %v13610_v51 = vsel %vm21899_vm11, %v13601_v24, %v21060_v5 }
 0x895   : > { %v21096_v30 = vadd.f32 %v11211_v14, %v21023_v60  ;;  %13638 = vmatprep.subr.bf16.mxu0 %v13610_v51  ;;  %v11160_v21 = vpop.f32.mrf.mxu0 }
 0x896   : > { %13521 = vmatpush1.bf16.msra.mxu1 %v13435_v9  ;;  %v21099_v19 = vadd.f32 %v11160_v21, %v21026_v50  ;;  %v11213_v17 = vpop.f32.mrf.mxu1  ;;  %v13595_v46 = vpop.permute.xlu1 %13594 }
 0x897   : > { %v21102_v29 = vadd.f32 %v11213_v17, %v21029_v3  ;;  %13691 = vmatprep.subr.bf16.mxu1 %v13605_v16  ;;  %v13599_v41 = vpop.permute.xlu0 %13598  ;;  %v11164_v42 = vpop.f32.mrf.mxu0  ;;  %15257 = vmatmul.mubr.msk.bf16.gmra.mxu0 %vm826_vm8, %v15567_v11 }
 0x898   : > { %v21106_v2 = vadd.f32 %v11164_v42, %v21033_v57  ;;  %v11217_v40 = vpop.f32.mrf.mxu1  ;;  %13485 = vmatprep.mubr.bf16.mxu0 %v21825_v56  ;;  %v13609_v58 = vsel %vm21901_vm13, %v13599_v41, %v13601_v24  ;;  %v15570_v42 = vld [vmem:[%s21537_s4 + $0x150] sm:$0xff]  }
 0x899   : > { %v21110_v60 = vadd.f32 %v11217_v40, %v21036_v39  ;;  %15259 = vmatmul.mubr.msk.bf16.gmra.mxu1 %vm826_vm8, %v15567_v11  ;;  %v11166_v8 = vpop.f32.mrf.mxu0 }
 0x89a   : > { %v21114_v38 = vadd.f32 %v11166_v8, %v21040_v26  ;;  %v11219_v27 = vpop.f32.mrf.mxu1  ;;  %v13597_v50 = vpop.permute.xlu1 %13596  ;;  %13538 = vmatprep.mubr.bf16.mxu1 %v21825_v56 }
 0x89b   : > { %v21118_v3 = vadd.f32 %v11219_v27, %v21043_v53  ;;  %v13591_v31 = vpop.permute.xlu0 %13590  ;;  %v11168_v7 = vpop.f32.mrf.mxu0 }
 0x89c   : > { %v21124_v15 = vadd.f32 %v11168_v7, %v21050_v4  ;;  %v11221_v57 = vpop.f32.mrf.mxu1  ;;  %v13606_v1 = vsel %vm21904_vm0, %v13591_v31, %v21062_v28 }
 0x89d   : > { %v21127_v39 = vadd.f32 %v11221_v57, %v21053_v25  ;;  %v11170_v45 = vpop.f32.mrf.mxu0  ;;  %v13607_v25 = vsel %vm21902_vm14, %v21062_v28, %v13595_v46  ;;  %v13608_v28 = vsel %vm21906_vm1, %v13595_v46, %v13597_v50 }
 0x89e   : > { %v21130_v63 = vadd.f32 %v11170_v45, %v21055_v59  ;;  %v11223_v26 = vpop.f32.mrf.mxu1  ;;  %v21132_v53 = vpop.permute.xlu1 %13775 }
 0x89f   : > { %v21136_v62 = vadd.f32 %v11223_v26, %v21058_v44  ;;  %v21138_v33 = vpop.permute.xlu0 %13765  ;;  %v11327_v13 = vpop.f32.mrf.mxu0  ;;  %15266 = vmatmul.mubr.msk.bf16.vlgmr.msra.gmra.mxu0 %vm826_vm8, %v15568_v20 }
 0x8a0   : > { %v21142_v47 = vadd.f32 %v11327_v13, %v21067_v43  ;;  %v11380_v4 = vpop.f32.mrf.mxu1  ;;  %13639 = vmatpush1.bf16.msra.mxu0 %v13609_v58  ;;  %13495 = vmatprep.mubr.bf16.mxu0 %v21825_v56 }
 0x8a1   : > { %v21150_v54 = vadd.f32 %v11380_v4, %v21070_v32  ;;  %15268 = vmatmul.mubr.msk.bf16.vlgmr.msra.gmra.mxu1 %vm826_vm8, %v15568_v20  ;;  %13640 = vmatprep.subr.bf16.mxu0 %v13607_v25  ;;  %v11329_v59 = vpop.f32.mrf.mxu0 }
 0x8a2   : > { %13692 = vmatpush1.bf16.msra.mxu1 %v13611_v23  ;;  %v21154_v44 = vadd.f32 %v11329_v59, %v21079_v0  ;;  %v11382_v10 = vpop.f32.mrf.mxu1  ;;  %v13778_v12 = vpop.permute.xlu1 %13777  ;;  %13548 = vmatprep.mubr.bf16.mxu1 %v21825_v56  ;;  %v15571_v23 = vld [vmem:[%s21537_s4 + $0x158] sm:$0xff]  }
 0x8a3   : > { %v21160_v5 = vadd.f32 %v11382_v10, %v21082_v52  ;;  %13693 = vmatprep.subr.bf16.mxu1 %v13597_v50  ;;  %v13774_v43 = vpop.permute.xlu0 %13773  ;;  %v11331_v32 = vpop.f32.mrf.mxu0  ;;  %v13784_v45 = vsel %vm21909_vm7, %v21132_v53, %v13778_v12 }
 0x8a4   : > { %v21166_v34 = vadd.f32 %v11331_v32, %v21090_v22  ;;  %v11384_v35 = vpop.f32.mrf.mxu1  ;;  %13641 = vmatpush1.bf16.msra.mxu0 %v13606_v1  ;;  %v13783_v55 = vsel %vm21905_vm3, %v13774_v43, %v21132_v53 }
 0x8a5   : > { %v21172_v0 = vadd.f32 %v11384_v35, %v21096_v30  ;;  %13811 = vmatprep.subr.bf16.mxu0 %v13783_v55  ;;  %v11333_v52 = vpop.f32.mrf.mxu0 }
 0x8a6   : > { %13694 = vmatpush1.bf16.msra.mxu1 %v13608_v28  ;;  %v21175_v16 = vadd.f32 %v11333_v52, %v21099_v19  ;;  %v11386_v6 = vpop.f32.mrf.mxu1  ;;  %v13768_v24 = vpop.permute.xlu1 %13767 }
 0x8a7   : > { %v21178_v18 = vadd.f32 %v11386_v6, %v21102_v29  ;;  %13864 = vmatprep.subr.bf16.mxu1 %v13778_v12  ;;  %v13772_v11 = vpop.permute.xlu0 %13771  ;;  %v11337_v22 = vpop.f32.mrf.mxu0  ;;  %15267 = vmatmul.mubr.msk.bf16.gmra.mxu0 %vm826_vm8, %v15569_v48 }
 0x8a8   : > { %v21182_v14 = vadd.f32 %v11337_v22, %v21106_v2  ;;  %v11390_v51 = vpop.f32.mrf.mxu1  ;;  %13658 = vmatprep.mubr.bf16.mxu0 %v21825_v56  ;;  %v15572_v22 = vld [vmem:[%s21537_s4 + $0x160] sm:$0xff]  }
 0x8a9   : > { %v21186_v9 = vadd.f32 %v11390_v51, %v21110_v60  ;;  %15269 = vmatmul.mubr.msk.bf16.gmra.mxu1 %vm826_vm8, %v15569_v48  ;;  %v11339_v30 = vpop.f32.mrf.mxu0 }
 0x8aa   : > { %v21190_v21 = vadd.f32 %v11339_v30, %v21114_v38  ;;  %v11392_v19 = vpop.f32.mrf.mxu1  ;;  %v13770_v17 = vpop.permute.xlu1 %13769  ;;  %13711 = vmatprep.mubr.bf16.mxu1 %v21825_v56 }
 0x8ab   : > { %v21194_v46 = vadd.f32 %v11392_v19, %v21118_v3  ;;  %v13764_v29 = vpop.permute.xlu0 %13763  ;;  %v11341_v41 = vpop.f32.mrf.mxu0  ;;  %v13782_v3 = vsel %vm21907_vm2, %v13772_v11, %v13774_v43 }
 0x8ac   : > { %v21200_v2 = vadd.f32 %v11341_v41, %v21124_v15  ;;  %v11394_v40 = vpop.f32.mrf.mxu1 }
 0x8ad   : > { %v21203_v60 = vadd.f32 %v11394_v40, %v21127_v39  ;;  %v11343_v8 = vpop.f32.mrf.mxu0  ;;  %v13780_v39 = vsel %vm21908_vm6, %v21138_v33, %v13768_v24 }
 0x8ae   : > { %v21206_v38 = vadd.f32 %v11343_v8, %v21130_v63  ;;  %v11396_v27 = vpop.f32.mrf.mxu1  ;;  %v21208_v50 = vpop.permute.xlu1 %13948 }
 0x8af   : > { %v21212_v31 = vadd.f32 %v11396_v27, %v21136_v62  ;;  %v21214_v7 = vpop.permute.xlu0 %13938  ;;  %v11500_v20 = vpop.f32.mrf.mxu0  ;;  %15276 = vmatmul.mubr.msk.bf16.vlgmr.msra.gmra.mxu0 %vm826_vm8, %v15570_v42 }
 0x8b0   : > { %v21218_v15 = vadd.f32 %v11500_v20, %v21142_v47  ;;  %v11553_v57 = vpop.f32.mrf.mxu1  ;;  %13812 = vmatpush1.bf16.msra.mxu0 %v13782_v3  ;;  %13668 = vmatprep.mubr.bf16.mxu0 %v21825_v56  ;;  %v13779_v47 = vsel %vm21910_vm9, %v13764_v29, %v21138_v33  ;;  %v13781_v33 = vsel %vm21911_vm10, %v13768_v24, %v13770_v17 }
 0x8b1   : > { %v21226_v63 = vadd.f32 %v11553_v57, %v21150_v54  ;;  %15278 = vmatmul.mubr.msk.bf16.vlgmr.msra.gmra.mxu1 %vm826_vm8, %v15570_v42  ;;  %13813 = vmatprep.subr.bf16.mxu0 %v13780_v39  ;;  %v11502_v26 = vpop.f32.mrf.mxu0  ;;  %v15573_v39 = vld [vmem:[%s21537_s4 + $0x168] sm:$0xff]  }
 0x8b2   : > { %13865 = vmatpush1.bf16.msra.mxu1 %v13784_v45  ;;  %v21230_v58 = vadd.f32 %v11502_v26, %v21154_v44  ;;  %v11555_v62 = vpop.f32.mrf.mxu1  ;;  %v13951_v13 = vpop.permute.xlu1 %13950  ;;  %13721 = vmatprep.mubr.bf16.mxu1 %v21825_v56 }
 0x8b3   : > { %v21236_v53 = vadd.f32 %v11555_v62, %v21160_v5  ;;  %13866 = vmatprep.subr.bf16.mxu1 %v13770_v17  ;;  %v13947_v4 = vpop.permute.xlu0 %13946  ;;  %v11504_v25 = vpop.f32.mrf.mxu0  ;;  %v13957_v8 = vsel %vm4860_vm4, %v21208_v50, %v13951_v13 }
 0x8b4   : > { %v21242_v54 = vadd.f32 %v11504_v25, %v21166_v34  ;;  %v11557_v59 = vpop.f32.mrf.mxu1  ;;  %13814 = vmatpush1.bf16.msra.mxu0 %v13779_v47  ;;  %v13956_v44 = vsel %vm4860_vm4, %v13947_v4, %v21208_v50 }
 0x8b5   : > { %v21248_v10 = vadd.f32 %v11557_v59, %v21172_v0  ;;  %13984 = vmatprep.subr.bf16.mxu0 %v13956_v44  ;;  %v11506_v12 = vpop.f32.mrf.mxu0 }
 0x8b6   : > { %13867 = vmatpush1.bf16.msra.mxu1 %v13781_v33  ;;  %v21251_v1 = vadd.f32 %v11506_v12, %v21175_v16  ;;  %v11559_v5 = vpop.f32.mrf.mxu1  ;;  %v13941_v43 = vpop.permute.xlu1 %13940 }
 0x8b7   : > { %v21254_v32 = vadd.f32 %v11559_v5, %v21178_v18  ;;  %14037 = vmatprep.subr.bf16.mxu1 %v13951_v13  ;;  %v13945_v48 = vpop.permute.xlu0 %13944  ;;  %v11510_v34 = vpop.f32.mrf.mxu0  ;;  %15277 = vmatmul.mubr.msk.bf16.gmra.mxu0 %vm826_vm8, %v15571_v23 }
 0x8b8   : > { %v11580_v35 = vadd.f32 %v11510_v34, %v21182_v14  ;;  %v11563_v55 = vpop.f32.mrf.mxu1  ;;  %13831 = vmatprep.mubr.bf16.mxu0 %v21825_v56  ;;  %v13955_v17 = vsel %vm4860_vm4, %v13945_v48, %v13947_v4 }
 0x8b9   : > { %v11582_v28 = vadd.f32 %v11563_v55, %v21186_v9  ;;  %15279 = vmatmul.mubr.msk.bf16.gmra.mxu1 %vm826_vm8, %v15571_v23  ;;  %v11512_v0 = vpop.f32.mrf.mxu0 }
 0x8ba   : > { %v21262_v52 = vadd.f32 %v11512_v0, %v21190_v21  ;;  %v11565_v16 = vpop.f32.mrf.mxu1  ;;  %v13943_v6 = vpop.permute.xlu1 %13942  ;;  %13884 = vmatprep.mubr.bf16.mxu1 %v21825_v56 }
 0x8bb   : > { %v11583_v24 = vadd.f32 %v11565_v16, %v21194_v46  ;;  %v13937_v18 = vpop.permute.xlu0 %13936  ;;  %v11514_v11 = vpop.f32.mrf.mxu0 }
 0x8bc   : > { %v11584_v14 = vadd.f32 %v11514_v11, %v21200_v2  ;;  %v11567_v51 = vpop.f32.mrf.mxu1  ;;  %v13952_v20 = vsel %vm4860_vm4, %v13937_v18, %v21214_v7 }
 0x8bd   : > { %v11586_v9 = vadd.f32 %v11567_v51, %v21203_v60  ;;  %v11516_v30 = vpop.f32.mrf.mxu0  ;;  %v13953_v60 = vsel %vm4860_vm4, %v21214_v7, %v13941_v43 }
 0x8be   : > { %v11585_v21 = vadd.f32 %v11516_v30, %v21206_v38  ;;  %v11569_v19 = vpop.f32.mrf.mxu1  ;;  %v21279_v42 = vpop.permute.xlu1 %14121 }
 0x8bf   : > { %v21274_v29 = vadd.f32 %v11569_v19, %v21212_v31  ;;  %v21276_v46 = vpop.permute.xlu0 %14111  ;;  %v11733_v41 = vpop.f32.mrf.mxu0  ;;  %15286 = vmatmul.mubr.msk.bf16.vlgmr.msra.gmra.mxu0 %vm826_vm8, %v15572_v22 }
 0x8c0   : > { %v11805_v2 = vadd.f32 %v11733_v41, %v21218_v15  ;;  %v11786_v40 = vpop.f32.mrf.mxu1  ;;  %13985 = vmatpush1.bf16.msra.mxu0 %v13955_v17  ;;  %13841 = vmatprep.mubr.bf16.mxu0 %v21825_v56  ;;  %v15575_v41 = vld [vmem:[%s21537_s4 + $0x178] sm:$0xff]  }
 0x8c1   : > { %v21288_v38 = vadd.f32 %v11786_v40, %v21226_v63  ;;  %15288 = vmatmul.mubr.msk.bf16.vlgmr.msra.gmra.mxu1 %vm826_vm8, %v15572_v22  ;;  %13986 = vmatprep.subr.bf16.mxu0 %v13953_v60  ;;  %v11735_v27 = vpop.f32.mrf.mxu0 }
 0x8c2   : > { %14038 = vmatpush1.bf16.msra.mxu1 %v13957_v8  ;;  %v11806_v3 = vadd.f32 %v11735_v27, %v21230_v58  ;;  %v11788_v31 = vpop.f32.mrf.mxu1  ;;  %13894 = vmatprep.mubr.bf16.mxu1 %v21825_v56  ;;  %v13954_v58 = vsel %vm4860_vm4, %v13941_v43, %v13943_v6  ;;  %v14124_v13 = vpop.permute.xlu1 %14123  ;;  %v15574_v43 = vld [vmem:[%s21537_s4 + $0x170] sm:$0xff]  }
 0x8c3   : > { %v21296_v15 = vadd.f32 %v11788_v31, %v21236_v53  ;;  %14039 = vmatprep.subr.bf16.mxu1 %v13943_v6  ;;  %v14120_v50 = vpop.permute.xlu0 %14119  ;;  %v11737_v57 = vpop.f32.mrf.mxu0  ;;  %v14130_v22 = vsel %vm5034_vm5, %v21279_v42, %v14124_v13 }
 0x8c4   : > { %v11809_v45 = vadd.f32 %v11737_v57, %v21242_v54  ;;  %v11790_v63 = vpop.f32.mrf.mxu1  ;;  %13987 = vmatpush1.bf16.msra.mxu0 %v13952_v20  ;;  %v14129_v26 = vsel %vm5034_vm5, %v14120_v50, %v21279_v42 }
 0x8c5   : > { %v11811_v7 = vadd.f32 %v11790_v63, %v21248_v10  ;;  %14157 = vmatprep.subr.bf16.mxu0 %v14129_v26  ;;  %v11739_v62 = vpop.f32.mrf.mxu0  ;;  %v15576_v63 = vld [vmem:[%s21537_s4 + $0x180] sm:$0xff]  }
 0x8c6   : > { %14040 = vmatpush1.bf16.msra.mxu1 %v13954_v58  ;;  %v11810_v47 = vadd.f32 %v11739_v62, %v21251_v1  ;;  %v11792_v53 = vpop.f32.mrf.mxu1 }
 0x8c7   : > { %v11812_v4 = vadd.f32 %v11792_v53, %v21254_v32  ;;  %14210 = vmatprep.subr.bf16.mxu1 %v14124_v13  ;;  %v11743_v25 = vpop.f32.mrf.mxu0  ;;  %15287 = vmatmul.mubr.msk.bf16.gmra.mxu0 %vm826_vm8, %v15573_v39  ;;  %v14118_v33 = vpop.permute.xlu0 %14117 }
 0x8c8   : > { %v11813_v23 = vadd.f32 %v11743_v25, %v11580_v35  ;;  %v11796_v54 = vpop.f32.mrf.mxu1  ;;  %14004 = vmatprep.mubr.bf16.mxu0 %v21825_v56  ;;  %v14114_v32 = vpop.permute.xlu1 %14113  ;;  %v14128_v16 = vsel %vm5034_vm5, %v14118_v33, %v14120_v50 }
 0x8c9   : > { %v11815_v59 = vadd.f32 %v11796_v54, %v11582_v28  ;;  %15289 = vmatmul.mubr.msk.bf16.gmra.mxu1 %vm826_vm8, %v15573_v39  ;;  %v11745_v44 = vpop.f32.mrf.mxu0  ;;  %v14126_v11 = vsel %vm5034_vm5, %v21276_v46, %v14114_v32 }
 0x8ca   : > { %v11814_v10 = vadd.f32 %v11745_v44, %v21262_v52  ;;  %v11798_v12 = vpop.f32.mrf.mxu1  ;;  %14057 = vmatprep.mubr.bf16.mxu1 %v21825_v56 }
 0x8cb   : > { %v11816_v1 = vadd.f32 %v11798_v12, %v11583_v24  ;;  %v11747_v5 = vpop.f32.mrf.mxu0  ;;  %v14110_v24 = vpop.permute.xlu0 %14109 }
 0x8cc   : > { %v11817_v48 = vadd.f32 %v11747_v5, %v11584_v14  ;;  %v11800_v34 = vpop.f32.mrf.mxu1  ;;  %v14125_v19 = vsel %vm5034_vm5, %v14110_v24, %v21276_v46 }
 0x8cd   : > { %v11819_v35 = vadd.f32 %v11800_v34, %v11586_v9  ;;  %v11749_v55 = vpop.f32.mrf.mxu0  ;;  %v14116_v9 = vpop.permute.xlu1 %14115 }
 0x8ce   : > { %v11818_v28 = vadd.f32 %v11749_v55, %v11585_v21  ;;  %v11802_v0 = vpop.f32.mrf.mxu1  ;;  %v14127_v40 = vsel %vm5034_vm5, %v14114_v32, %v14116_v9 }
 0x8cf   : > { %v11820_v52 = vadd.f32 %v11802_v0, %v21274_v29  ;;  %v11912_v6 = vpop.f32.mrf.mxu0  ;;  %15296 = vmatmul.mubr.msk.bf16.vlgmr.msra.gmra.mxu0 %vm826_vm8, %v15574_v43 }
 0x8d0   : > { %v11984_v18 = vadd.f32 %v11912_v6, %v11805_v2  ;;  %14158 = vmatpush1.bf16.msra.mxu0 %v14128_v16  ;;  %14014 = vmatprep.mubr.bf16.mxu0 %v21825_v56 }
 0x8d1   : > { %v11965_v14 = vpop.f32.mrf.mxu1  ;;  %15298 = vmatmul.mubr.msk.bf16.vlgmr.msra.gmra.mxu1 %vm826_vm8, %v15574_v43  ;;  %14159 = vmatprep.subr.bf16.mxu0 %v14126_v11  ;;  %v11914_v51 = vpop.f32.mrf.mxu0 }
 0x8d2   : > { %v11986_v30 = vadd.f32 %v11965_v14, %v21288_v38  ;;  %14211 = vmatpush1.bf16.msra.mxu1 %v14130_v22  ;;  %v11985_v21 = vadd.f32 %v11914_v51, %v11806_v3  ;;  %14067 = vmatprep.mubr.bf16.mxu1 %v21825_v56 }
 0x8d3   : > { %14212 = vmatprep.subr.bf16.mxu1 %v14116_v9  ;;  %v11967_v17 = vpop.f32.mrf.mxu1  ;;  %v11916_v29 = vpop.f32.mrf.mxu0 }
 0x8d4   : > { %v11987_v42 = vadd.f32 %v11967_v17, %v21296_v15  ;;  %v11988_v2 = vadd.f32 %v11916_v29, %v11809_v45  ;;  %14160 = vmatpush1.bf16.msra.mxu0 %v14125_v19 }
 0x8d5   : > { %v11969_v60 = vpop.f32.mrf.mxu1  ;;  %v11918_v8 = vpop.f32.mrf.mxu0 }
 0x8d6   : > { %v11990_v38 = vadd.f32 %v11969_v60, %v11811_v7  ;;  %14213 = vmatpush1.bf16.msra.mxu1 %v14127_v40  ;;  %v11989_v27 = vadd.f32 %v11918_v8, %v11810_v47 }
 0x8d7   : > { %v11971_v3 = vpop.f32.mrf.mxu1  ;;  %15297 = vmatmul.mubr.msk.bf16.gmra.mxu0 %vm826_vm8, %v15575_v41  ;;  %v11922_v31 = vpop.f32.mrf.mxu0 }
 0x8d8   : > { %v11991_v46 = vadd.f32 %v11971_v3, %v11812_v4  ;;  %14177 = vmatprep.mubr.bf16.mxu0 %v21825_v56  ;;  %v11992_v20 = vadd.f32 %v11922_v31, %v11813_v23 }
 0x8d9   : > { %v11975_v50 = vpop.f32.mrf.mxu1  ;;  %15299 = vmatmul.mubr.msk.bf16.gmra.mxu1 %vm826_vm8, %v15575_v41  ;;  %v11924_v57 = vpop.f32.mrf.mxu0 }
 0x8da   : > { %v11994_v15 = vadd.f32 %v11975_v50, %v11815_v59  ;;  %14230 = vmatprep.mubr.bf16.mxu1 %v21825_v56  ;;  %v11993_v39 = vadd.f32 %v11924_v57, %v11814_v10 }
 0x8db   : > { %v11977_v45 = vpop.f32.mrf.mxu1  ;;  %v11926_v58 = vpop.f32.mrf.mxu0 }
 0x8dc   : > { %v11995_v26 = vadd.f32 %v11977_v45, %v11816_v1  ;;  %v11996_v7 = vadd.f32 %v11926_v58, %v11817_v48  ;;  %v15577_v1 = vld [vmem:[%s21537_s4 + $0x188] sm:$0xff]  }
 0x8dd   : > { %v11979_v62 = vpop.f32.mrf.mxu1  ;;  %v11928_v47 = vpop.f32.mrf.mxu0 }
 0x8de   : > { %v11998_v13 = vadd.f32 %v11979_v62, %v11819_v35  ;;  %v11997_v53 = vadd.f32 %v11928_v47, %v11818_v28 }
 0x8df   : > { %v11981_v4 = vpop.f32.mrf.mxu1  ;;  %15306 = vmatmul.mubr.msk.bf16.vlgmr.msra.gmra.mxu0 %vm826_vm8, %v15576_v63  ;;  %v12103_v23 = vpop.f32.mrf.mxu0 }
 0x8e0   : > { %v11999_v25 = vadd.f32 %v11981_v4, %v11820_v52  ;;  %14187 = vmatprep.mubr.bf16.mxu0 %v21825_v56  ;;  %v12175_v54 = vadd.f32 %v12103_v23, %v11984_v18 }
 0x8e1   : > { %v12156_v59 = vpop.f32.mrf.mxu1  ;;  %15308 = vmatmul.mubr.msk.bf16.vlgmr.msra.gmra.mxu1 %vm826_vm8, %v15576_v63  ;;  %v12105_v33 = vpop.f32.mrf.mxu0 }
 0x8e2   : > { %v12177_v44 = vadd.f32 %v12156_v59, %v11986_v30  ;;  %14240 = vmatprep.mubr.bf16.mxu1 %v21825_v56  ;;  %v12176_v10 = vadd.f32 %v12105_v33, %v11985_v21 }
 0x8e3   : > { %v12158_v12 = vpop.f32.mrf.mxu1  ;;  %v12107_v43 = vpop.f32.mrf.mxu0 }
 0x8e4   : > { %v12178_v5 = vadd.f32 %v12158_v12, %v11987_v42  ;;  %v12179_v32 = vadd.f32 %v12107_v43, %v11988_v2 }
 0x8e5   : > { %v12160_v48 = vpop.f32.mrf.mxu1  ;;  %v12109_v35 = vpop.f32.mrf.mxu0 }
 0x8e6   : > { %v12181_v34 = vadd.f32 %v12160_v48, %v11990_v38  ;;  %v12180_v55 = vadd.f32 %v12109_v35, %v11989_v27 }
 0x8e7   : > { %v12162_v28 = vpop.f32.mrf.mxu1  ;;  %15307 = vmatmul.mubr.msk.bf16.gmra.mxu0 %vm826_vm8, %v15577_v1  ;;  %v12113_v16 = vpop.f32.mrf.mxu0 }
 0x8e8   : > { %v12182_v0 = vadd.f32 %v12162_v28, %v11991_v46  ;;  %v12183_v52 = vadd.f32 %v12113_v16, %v11992_v20 }
 0x8e9   : > { %v12166_v56 = vpop.f32.mrf.mxu1  ;;  %15309 = vmatmul.mubr.msk.bf16.gmra.mxu1 %vm826_vm8, %v15577_v1  ;;  %v12115_v24 = vpop.f32.mrf.mxu0  ;;  %vm14359_vm8 = vcmask 130048  }
 0x8ea   : > { %v12185_v6 = vadd.f32 %v12166_v56, %v11994_v15  ;;  %v12184_v18 = vadd.f32 %v12115_v24, %v11993_v39 }
 0x8eb   : > { %v12168_v11 = vpop.f32.mrf.mxu1  ;;  %v12117_v14 = vpop.f32.mrf.mxu0 }
 0x8ec   : > { %v12186_v22 = vadd.f32 %v12168_v11, %v11995_v26  ;;  %v12187_v51 = vadd.f32 %v12117_v14, %v11996_v7 }
 0x8ed   : > { %v12170_v9 = vpop.f32.mrf.mxu1  ;;  %v12119_v21 = vpop.f32.mrf.mxu0 }
 0x8ee   : > { %v12189_v30 = vadd.f32 %v12170_v9, %v11998_v13  ;;  %v12188_v19 = vadd.f32 %v12119_v21, %v11997_v53 }
 0x8ef   : > { %v12172_v17 = vpop.f32.mrf.mxu1  ;;  %v12276_v41 = vpop.f32.mrf.mxu0 }
 0x8f0   : > { %v12190_v29 = vadd.f32 %v12172_v17, %v11999_v25  ;;  %v12348_v42 = vadd.f32 %v12276_v41, %v12175_v54 }
 0x8f1   : > { %v12329_v2 = vpop.f32.mrf.mxu1  ;;  %v12278_v60 = vpop.f32.mrf.mxu0 }
 0x8f2   : > { %v12350_v40 = vadd.f32 %v12329_v2, %v12177_v44  ;;  %v12349_v8 = vadd.f32 %v12278_v60, %v12176_v10 }
 0x8f3   : > { %v12331_v38 = vpop.f32.mrf.mxu1  ;;  %v12280_v3 = vpop.f32.mrf.mxu0 }
 0x8f4   : > { %v12351_v27 = vadd.f32 %v12331_v38, %v12178_v5  ;;  %v12352_v46 = vadd.f32 %v12280_v3, %v12179_v32 }
 0x8f5   : > { %v12333_v31 = vpop.f32.mrf.mxu1  ;;  %v12282_v50 = vpop.f32.mrf.mxu0 }
 0x8f6   : > { %v12354_v20 = vadd.f32 %v12333_v31, %v12181_v34  ;;  %v12353_v15 = vadd.f32 %v12282_v50, %v12180_v55 }
 0x8f7   : > { %v12335_v57 = vpop.f32.mrf.mxu1  ;;  %v12286_v45 = vpop.f32.mrf.mxu0 }
 0x8f8   : > { %v12355_v39 = vadd.f32 %v12335_v57, %v12182_v0  ;;  %v12356_v63 = vadd.f32 %v12286_v45, %v12183_v52 }
 0x8f9   : > { %v12339_v26 = vpop.f32.mrf.mxu1  ;;  %v12288_v7 = vpop.f32.mrf.mxu0 }
 0x8fa   : > { %v12358_v58 = vadd.f32 %v12339_v26, %v12185_v6  ;;  %v12357_v62 = vadd.f32 %v12288_v7, %v12184_v18 }
 0x8fb   : > { %v12341_v13 = vpop.f32.mrf.mxu1  ;;  %v12290_v53 = vpop.f32.mrf.mxu0 }
 0x8fc   : > { %v12359_v47 = vadd.f32 %v12341_v13, %v12186_v22  ;;  %v12360_v4 = vadd.f32 %v12290_v53, %v12187_v51 }
 0x8fd   : > { %v12343_v25 = vpop.f32.mrf.mxu1  ;;  %v12292_v54 = vpop.f32.mrf.mxu0 }
 0x8fe   : > { %v12362_v23 = vadd.f32 %v12343_v25, %v12189_v30  ;;  %v12361_v59 = vadd.f32 %v12292_v54, %v12188_v19 }
 0x8ff   : > { %v12345_v44 = vpop.f32.mrf.mxu1  ;;  %v12449_v10 = vpop.f32.mrf.mxu0 }
 0x900   : > { %v12363_v33 = vadd.f32 %v12345_v44, %v12190_v29  ;;  %v12521_v12 = vadd.f32 %v12449_v10, %v12348_v42 }
 0x901   : > { %v12502_v1 = vpop.f32.mrf.mxu1  ;;  %v12451_v43 = vpop.f32.mrf.mxu0 }
 0x902   : > { %v12523_v5 = vadd.f32 %v12502_v1, %v12350_v40  ;;  %v12522_v32 = vadd.f32 %v12451_v43, %v12349_v8 }
 0x903   : > { %v12504_v48 = vpop.f32.mrf.mxu1  ;;  %v12453_v35 = vpop.f32.mrf.mxu0 }
 0x904   : > { %v12524_v34 = vadd.f32 %v12504_v48, %v12351_v27  ;;  %v12525_v55 = vadd.f32 %v12453_v35, %v12352_v46 }
 0x905   : > { %v12506_v28 = vpop.f32.mrf.mxu1  ;;  %v12455_v16 = vpop.f32.mrf.mxu0 }
 0x906   : > { %v12527_v0 = vadd.f32 %v12506_v28, %v12354_v20  ;;  %v12526_v52 = vadd.f32 %v12455_v16, %v12353_v15 }
 0x907   : > { %v12508_v56 = vpop.f32.mrf.mxu1  ;;  %v12459_v24 = vpop.f32.mrf.mxu0 }
 0x908   : > { %v12528_v6 = vadd.f32 %v12508_v56, %v12355_v39  ;;  %v12529_v18 = vadd.f32 %v12459_v24, %v12356_v63 }
 0x909   : > { %v12512_v11 = vpop.f32.mrf.mxu1  ;;  %v12461_v14 = vpop.f32.mrf.mxu0 }
 0x90a   : > { %v12531_v22 = vadd.f32 %v12512_v11, %v12358_v58  ;;  %v12530_v51 = vadd.f32 %v12461_v14, %v12357_v62 }
 0x90b   : > { %v12514_v9 = vpop.f32.mrf.mxu1  ;;  %v12463_v21 = vpop.f32.mrf.mxu0 }
 0x90c   : > { %v12532_v30 = vadd.f32 %v12514_v9, %v12359_v47  ;;  %v12533_v19 = vadd.f32 %v12463_v21, %v12360_v4 }
 0x90d   : > { %v12516_v17 = vpop.f32.mrf.mxu1  ;;  %v12465_v41 = vpop.f32.mrf.mxu0 }
 0x90e   : > { %v12535_v29 = vadd.f32 %v12516_v17, %v12362_v23  ;;  %v12534_v42 = vadd.f32 %v12465_v41, %v12361_v59 }
 0x90f   : > { %v12518_v2 = vpop.f32.mrf.mxu1  ;;  %v12622_v60 = vpop.f32.mrf.mxu0 }
 0x910   : > { %v12536_v40 = vadd.f32 %v12518_v2, %v12363_v33  ;;  %v12694_v8 = vadd.f32 %v12622_v60, %v12521_v12 }
 0x911   : > { %v12675_v38 = vpop.f32.mrf.mxu1  ;;  %v12624_v3 = vpop.f32.mrf.mxu0 }
 0x912   : > { %v12696_v27 = vadd.f32 %v12675_v38, %v12523_v5  ;;  %v12695_v46 = vadd.f32 %v12624_v3, %v12522_v32 }
 0x913   : > { %v12677_v31 = vpop.f32.mrf.mxu1  ;;  %v12626_v50 = vpop.f32.mrf.mxu0 }
 0x914   : > { %v12697_v20 = vadd.f32 %v12677_v31, %v12524_v34  ;;  %v12698_v15 = vadd.f32 %v12626_v50, %v12525_v55 }
 0x915   : > { %v12679_v57 = vpop.f32.mrf.mxu1  ;;  %v12628_v45 = vpop.f32.mrf.mxu0 }
 0x916   : > { %v12700_v39 = vadd.f32 %v12679_v57, %v12527_v0  ;;  %v12699_v63 = vadd.f32 %v12628_v45, %v12526_v52 }
 0x917   : > { %v12681_v26 = vpop.f32.mrf.mxu1  ;;  %v12632_v7 = vpop.f32.mrf.mxu0 }
 0x918   : > { %v12701_v58 = vadd.f32 %v12681_v26, %v12528_v6  ;;  %v12702_v62 = vadd.f32 %v12632_v7, %v12529_v18 }
 0x919   : > { %v12685_v13 = vpop.f32.mrf.mxu1  ;;  %v12634_v53 = vpop.f32.mrf.mxu0 }
 0x91a   : > { %v12704_v47 = vadd.f32 %v12685_v13, %v12531_v22  ;;  %v12703_v4 = vadd.f32 %v12634_v53, %v12530_v51 }
 0x91b   : > { %v12687_v25 = vpop.f32.mrf.mxu1  ;;  %v12636_v54 = vpop.f32.mrf.mxu0 }
 0x91c   : > { %v12705_v23 = vadd.f32 %v12687_v25, %v12532_v30  ;;  %v12706_v59 = vadd.f32 %v12636_v54, %v12533_v19 }
 0x91d   : > { %v12689_v44 = vpop.f32.mrf.mxu1  ;;  %v12638_v10 = vpop.f32.mrf.mxu0 }
 0x91e   : > { %v12708_v33 = vadd.f32 %v12689_v44, %v12535_v29  ;;  %v12707_v12 = vadd.f32 %v12638_v10, %v12534_v42 }
 0x91f   : > { %v12691_v1 = vpop.f32.mrf.mxu1  ;;  %v12795_v43 = vpop.f32.mrf.mxu0 }
 0x920   : > { %v12709_v5 = vadd.f32 %v12691_v1, %v12536_v40  ;;  %v12867_v32 = vadd.f32 %v12795_v43, %v12694_v8 }
 0x921   : > { %v12848_v48 = vpop.f32.mrf.mxu1  ;;  %v12797_v35 = vpop.f32.mrf.mxu0 }
 0x922   : > { %v12869_v34 = vadd.f32 %v12848_v48, %v12696_v27  ;;  %v12868_v55 = vadd.f32 %v12797_v35, %v12695_v46 }
 0x923   : > { %v12850_v28 = vpop.f32.mrf.mxu1  ;;  %v12799_v16 = vpop.f32.mrf.mxu0 }
 0x924   : > { %v12870_v0 = vadd.f32 %v12850_v28, %v12697_v20  ;;  %v12871_v52 = vadd.f32 %v12799_v16, %v12698_v15 }
 0x925   : > { %v12852_v56 = vpop.f32.mrf.mxu1  ;;  %v12801_v24 = vpop.f32.mrf.mxu0 }
 0x926   : > { %v12873_v6 = vadd.f32 %v12852_v56, %v12700_v39  ;;  %v12872_v18 = vadd.f32 %v12801_v24, %v12699_v63 }
 0x927   : > { %v12854_v11 = vpop.f32.mrf.mxu1  ;;  %v12805_v14 = vpop.f32.mrf.mxu0 }
 0x928   : > { %v12874_v22 = vadd.f32 %v12854_v11, %v12701_v58  ;;  %v12875_v51 = vadd.f32 %v12805_v14, %v12702_v62 }
 0x929   : > { %v12858_v9 = vpop.f32.mrf.mxu1  ;;  %v12807_v21 = vpop.f32.mrf.mxu0 }
 0x92a   : > { %v12877_v30 = vadd.f32 %v12858_v9, %v12704_v47  ;;  %v12876_v19 = vadd.f32 %v12807_v21, %v12703_v4 }
 0x92b   : > { %v12860_v17 = vpop.f32.mrf.mxu1  ;;  %v12809_v41 = vpop.f32.mrf.mxu0 }
 0x92c   : > { %v12878_v29 = vadd.f32 %v12860_v17, %v12705_v23  ;;  %v12879_v42 = vadd.f32 %v12809_v41, %v12706_v59 }
 0x92d   : > { %v12862_v2 = vpop.f32.mrf.mxu1  ;;  %v12811_v60 = vpop.f32.mrf.mxu0 }
 0x92e   : > { %v12881_v40 = vadd.f32 %v12862_v2, %v12708_v33  ;;  %v12880_v8 = vadd.f32 %v12811_v60, %v12707_v12 }
 0x92f   : > { %v12864_v38 = vpop.f32.mrf.mxu1  ;;  %v12968_v3 = vpop.f32.mrf.mxu0 }
 0x930   : > { %v12882_v27 = vadd.f32 %v12864_v38, %v12709_v5  ;;  %v13040_v46 = vadd.f32 %v12968_v3, %v12867_v32 }
 0x931   : > { %v13021_v31 = vpop.f32.mrf.mxu1  ;;  %v12970_v50 = vpop.f32.mrf.mxu0 }
 0x932   : > { %v13042_v20 = vadd.f32 %v13021_v31, %v12869_v34  ;;  %v13041_v15 = vadd.f32 %v12970_v50, %v12868_v55 }
 0x933   : > { %v13023_v57 = vpop.f32.mrf.mxu1  ;;  %v12972_v45 = vpop.f32.mrf.mxu0 }
 0x934   : > { %v13043_v39 = vadd.f32 %v13023_v57, %v12870_v0  ;;  %v13044_v63 = vadd.f32 %v12972_v45, %v12871_v52 }
 0x935   : > { %v13025_v26 = vpop.f32.mrf.mxu1  ;;  %v12974_v7 = vpop.f32.mrf.mxu0 }
 0x936   : > { %v13046_v58 = vadd.f32 %v13025_v26, %v12873_v6  ;;  %v13045_v62 = vadd.f32 %v12974_v7, %v12872_v18 }
 0x937   : > { %v13027_v13 = vpop.f32.mrf.mxu1  ;;  %v12978_v53 = vpop.f32.mrf.mxu0 }
 0x938   : > { %v13047_v47 = vadd.f32 %v13027_v13, %v12874_v22  ;;  %v13048_v4 = vadd.f32 %v12978_v53, %v12875_v51 }
 0x939   : > { %v13031_v25 = vpop.f32.mrf.mxu1  ;;  %v12980_v54 = vpop.f32.mrf.mxu0 }
 0x93a   : > { %v13050_v23 = vadd.f32 %v13031_v25, %v12877_v30  ;;  %v13049_v59 = vadd.f32 %v12980_v54, %v12876_v19 }
 0x93b   : > { %v13033_v44 = vpop.f32.mrf.mxu1  ;;  %v12982_v10 = vpop.f32.mrf.mxu0 }
 0x93c   : > { %v13051_v33 = vadd.f32 %v13033_v44, %v12878_v29  ;;  %v13052_v12 = vadd.f32 %v12982_v10, %v12879_v42 }
 0x93d   : > { %v13035_v1 = vpop.f32.mrf.mxu1  ;;  %v12984_v43 = vpop.f32.mrf.mxu0 }
 0x93e   : > { %v13054_v5 = vadd.f32 %v13035_v1, %v12881_v40  ;;  %v13053_v32 = vadd.f32 %v12984_v43, %v12880_v8 }
 0x93f   : > { %v13037_v48 = vpop.f32.mrf.mxu1  ;;  %v13141_v35 = vpop.f32.mrf.mxu0 }
 0x940   : > { %v13055_v34 = vadd.f32 %v13037_v48, %v12882_v27  ;;  %v13213_v55 = vadd.f32 %v13141_v35, %v13040_v46 }
 0x941   : > { %v13194_v28 = vpop.f32.mrf.mxu1  ;;  %v13143_v16 = vpop.f32.mrf.mxu0 }
 0x942   : > { %v13215_v0 = vadd.f32 %v13194_v28, %v13042_v20  ;;  %v13214_v52 = vadd.f32 %v13143_v16, %v13041_v15 }
 0x943   : > { %v13196_v56 = vpop.f32.mrf.mxu1  ;;  %v13145_v24 = vpop.f32.mrf.mxu0 }
 0x944   : > { %v13216_v6 = vadd.f32 %v13196_v56, %v13043_v39  ;;  %v13217_v18 = vadd.f32 %v13145_v24, %v13044_v63 }
 0x945   : > { %v13198_v11 = vpop.f32.mrf.mxu1  ;;  %v13147_v14 = vpop.f32.mrf.mxu0 }
 0x946   : > { %v13219_v22 = vadd.f32 %v13198_v11, %v13046_v58  ;;  %v13218_v51 = vadd.f32 %v13147_v14, %v13045_v62 }
 0x947   : > { %v13200_v9 = vpop.f32.mrf.mxu1  ;;  %v13151_v21 = vpop.f32.mrf.mxu0 }
 0x948   : > { %v13220_v30 = vadd.f32 %v13200_v9, %v13047_v47  ;;  %v13221_v19 = vadd.f32 %v13151_v21, %v13048_v4 }
 0x949   : > { %v13204_v17 = vpop.f32.mrf.mxu1  ;;  %v13153_v41 = vpop.f32.mrf.mxu0 }
 0x94a   : > { %v13223_v29 = vadd.f32 %v13204_v17, %v13050_v23  ;;  %v13222_v42 = vadd.f32 %v13153_v41, %v13049_v59 }
 0x94b   : > { %v13206_v2 = vpop.f32.mrf.mxu1  ;;  %v13155_v60 = vpop.f32.mrf.mxu0 }
 0x94c   : > { %v13224_v40 = vadd.f32 %v13206_v2, %v13051_v33  ;;  %v13225_v8 = vadd.f32 %v13155_v60, %v13052_v12 }
 0x94d   : > { %v13208_v38 = vpop.f32.mrf.mxu1  ;;  %v13157_v3 = vpop.f32.mrf.mxu0 }
 0x94e   : > { %v13227_v27 = vadd.f32 %v13208_v38, %v13054_v5  ;;  %v13226_v46 = vadd.f32 %v13157_v3, %v13053_v32 }
 0x94f   : > { %v13210_v31 = vpop.f32.mrf.mxu1  ;;  %v13314_v50 = vpop.f32.mrf.mxu0 }
 0x950   : > { %v13228_v20 = vadd.f32 %v13210_v31, %v13055_v34  ;;  %v21350_v15 = vadd.f32 %v13314_v50, %v13213_v55 }
 0x951   : > { %v13367_v57 = vpop.f32.mrf.mxu1  ;;  %v13316_v45 = vpop.f32.mrf.mxu0 }
 0x952   : > { %v21352_v39 = vadd.f32 %v13367_v57, %v13215_v0  ;;  %v21354_v63 = vadd.f32 %v13316_v45, %v13214_v52 }
 0x953   : > { %v13369_v26 = vpop.f32.mrf.mxu1  ;;  %v13318_v7 = vpop.f32.mrf.mxu0 }
 0x954   : > { %v21356_v58 = vadd.f32 %v13369_v26, %v13216_v6  ;;  %v21358_v62 = vadd.f32 %v13318_v7, %v13217_v18 }
 0x955   : > { %v13371_v13 = vpop.f32.mrf.mxu1  ;;  %v13320_v53 = vpop.f32.mrf.mxu0 }
 0x956   : > { %v21360_v47 = vadd.f32 %v13371_v13, %v13219_v22  ;;  %v21362_v4 = vadd.f32 %v13320_v53, %v13218_v51 }
 0x957   : > { %v13373_v25 = vpop.f32.mrf.mxu1  ;;  %v13324_v54 = vpop.f32.mrf.mxu0 }
 0x958   : > { %v21364_v23 = vadd.f32 %v13373_v25, %v13220_v30  ;;  %v21366_v59 = vadd.f32 %v13324_v54, %v13221_v19 }
 0x959   : > { %v13377_v44 = vpop.f32.mrf.mxu1  ;;  %v13326_v10 = vpop.f32.mrf.mxu0 }
 0x95a   : > { %21912 = vst [vmem:[#allocation18_spill] sm:$0xff] %v21366_v59  ;;  %v21368_v33 = vadd.f32 %v13377_v44, %v13223_v29  ;;  %v21370_v12 = vadd.f32 %v13326_v10, %v13222_v42 }
 0x95b   : > { %v13379_v1 = vpop.f32.mrf.mxu1  ;;  %v13328_v43 = vpop.f32.mrf.mxu0 }
 0x95c   : > { %21913 = vst [vmem:[#allocation15_spill] sm:$0xff] %v21368_v33  ;;  %21914 = vst [vmem:[#allocation12_spill] sm:$0xff] %v21370_v12  ;;  %v21372_v5 = vadd.f32 %v13379_v1, %v13224_v40  ;;  %v21374_v32 = vadd.f32 %v13328_v43, %v13225_v8 }
 0x95d   : > { %v13381_v48 = vpop.f32.mrf.mxu1  ;;  %v13330_v35 = vpop.f32.mrf.mxu0 }
 0x95e   : > { %21915 = vst [vmem:[#allocation9_spill] sm:$0xff] %v21372_v5  ;;  %21916 = vst [vmem:[#allocation19_spill] sm:$0xff] %v21374_v32  ;;  %v21376_v34 = vadd.f32 %v13381_v48, %v13227_v27  ;;  %v21378_v55 = vadd.f32 %v13330_v35, %v13226_v46 }
 0x95f   : > { %v13383_v28 = vpop.f32.mrf.mxu1  ;;  %v13487_v16 = vpop.f32.mrf.mxu0 }
 0x960   : > { %21917 = vst [vmem:[#allocation16_spill] sm:$0xff] %v21376_v34  ;;  %21918 = vst [vmem:[#allocation13_spill] sm:$0xff] %v21378_v55  ;;  %v21380_v0 = vadd.f32 %v13383_v28, %v13228_v20  ;;  %v13559_v5 = vadd.f32 %v13487_v16, %v21350_v15 }
 0x961   : > { %v13540_v52 = vpop.f32.mrf.mxu1  ;;  %v13489_v56 = vpop.f32.mrf.mxu0 }
 0x962   : > { %21919 = vst [vmem:[#allocation10_spill] sm:$0xff] %v21380_v0  ;;  %v13561_v12 = vadd.f32 %v13540_v52, %v21352_v39  ;;  %v13560_v33 = vadd.f32 %v13489_v56, %v21354_v63 }
 0x963   : > { %v13542_v6 = vpop.f32.mrf.mxu1  ;;  %v13491_v24 = vpop.f32.mrf.mxu0  ;;  %v21928_v16 = vld [vmem:[#allocation15_spill] sm:$0xff]  ;;  %v21929_v52 = vld [vmem:[#allocation12_spill] sm:$0xff] }
 0x965   : > { %v13544_v18 = vpop.f32.mrf.mxu1  ;;  %v13493_v11 = vpop.f32.mrf.mxu0  ;;  %v21930_v63 = vld [vmem:[#allocation9_spill] sm:$0xff] }
 0x966   : > { %v13564_v59 = vadd.f32 %v13493_v11, %v21362_v4 }
 0x967   : > { %v13546_v22 = vpop.f32.mrf.mxu1  ;;  %v13497_v14 = vpop.f32.mrf.mxu0  ;;  %v21933_v4 = vld [vmem:[#allocation13_spill] sm:$0xff] }
 0x969   : > { %v13550_v51 = vpop.f32.mrf.mxu1  ;;  %v13499_v9 = vpop.f32.mrf.mxu0 }
 0x96a   : > { %v13569_v39 = vadd.f32 %v13550_v51, %v21928_v16  ;;  %v13568_v56 = vadd.f32 %v13499_v9, %v21929_v52 }
 0x96b   : > { %v13552_v30 = vpop.f32.mrf.mxu1  ;;  %v13501_v21 = vpop.f32.mrf.mxu0 }
 0x96d   : > { %v13554_v19 = vpop.f32.mrf.mxu1  ;;  %v13503_v17 = vpop.f32.mrf.mxu0 }
 0x96e   : > { %v13572_v11 = vadd.f32 %v13503_v17, %v21933_v4 }
 0x96f   : > { %v13556_v29 = vpop.f32.mrf.mxu1  ;;  %v13660_v41 = vpop.f32.mrf.mxu0 }
 0x971   : > { %v13713_v42 = vpop.f32.mrf.mxu1  ;;  %v13662_v2 = vpop.f32.mrf.mxu0 }
 0x972   : > { %v13734_v16 = vadd.f32 %v13713_v42, %v13561_v12  ;;  %v13733_v51 = vadd.f32 %v13662_v2, %v13560_v33 }
 0x973   : > { %v13715_v40 = vpop.f32.mrf.mxu1  ;;  %v13664_v60 = vpop.f32.mrf.mxu0 }
 0x975   : > { %v13717_v8 = vpop.f32.mrf.mxu1  ;;  %v13666_v38 = vpop.f32.mrf.mxu0 }
 0x977   : > { %v13719_v27 = vpop.f32.mrf.mxu1  ;;  %v13670_v3 = vpop.f32.mrf.mxu0 }
 0x979   : > { %v13723_v46 = vpop.f32.mrf.mxu1  ;;  %v13672_v31 = vpop.f32.mrf.mxu0 }
 0x97a   : > { %v13742_v4 = vadd.f32 %v13723_v46, %v13569_v39  ;;  %v13741_v17 = vadd.f32 %v13672_v31, %v13568_v56 }
 0x97b   : > { %v13725_v20 = vpop.f32.mrf.mxu1  ;;  %v13674_v50 = vpop.f32.mrf.mxu0 }
 0x97d   : > { %v13727_v57 = vpop.f32.mrf.mxu1  ;;  %v13676_v45 = vpop.f32.mrf.mxu0 }
 0x97e   : > { %v13745_v12 = vadd.f32 %v13676_v45, %v13572_v11  ;;  %v14275_v11 = vpop.permute.xlu0 %14274 }
 0x97f   : > { %v13729_v26 = vpop.f32.mrf.mxu1  ;;  %v13833_v7 = vpop.f32.mrf.mxu0 }
 0x981   : > { %v13886_v13 = vpop.f32.mrf.mxu1  ;;  %v13835_v53 = vpop.f32.mrf.mxu0 }
 0x983   : > { %v13888_v25 = vpop.f32.mrf.mxu1  ;;  %v13837_v54 = vpop.f32.mrf.mxu0 }
 0x985   : > { %v13890_v44 = vpop.f32.mrf.mxu1  ;;  %v13839_v10 = vpop.f32.mrf.mxu0 }
 0x987   : > { %v13892_v1 = vpop.f32.mrf.mxu1  ;;  %v13843_v43 = vpop.f32.mrf.mxu0 }
 0x989   : > { %v13896_v48 = vpop.f32.mrf.mxu1  ;;  %v13845_v35 = vpop.f32.mrf.mxu0 }
 0x98a   : > { %v13914_v46 = vadd.f32 %v13845_v35, %v13741_v17 }
 0x98b   : > { %v13898_v28 = vpop.f32.mrf.mxu1  ;;  %v21382_v37 = vpop.f32.mrf.mxu0 }
 0x98c   : > { %21920 = vst [vmem:[#allocation20_spill] sm:$0xff] %v21382_v37  ;;  %v13562_v37 = vadd.f32 %v13542_v6, %v21356_v58  ;;  %v13570_v6 = vadd.f32 %v13552_v30, %v21930_v63 }
 0x98d   : > { %v21384_v61 = vpop.f32.mrf.mxu1  ;;  %v21386_v49 = vpop.f32.mrf.mxu0 }
 0x98e   : > { %21921 = vst [vmem:[#allocation17_spill] sm:$0xff] %v21384_v61  ;;  %21922 = vst [vmem:[#allocation14_spill] sm:$0xff] %v21386_v49  ;;  %v13563_v49 = vadd.f32 %v13491_v24, %v21358_v62  ;;  %v21931_v24 = vld [vmem:[#allocation19_spill] sm:$0xff]  ;;  %v13735_v9 = vadd.f32 %v13715_v40, %v13562_v37  ;;  %v13907_v37 = vadd.f32 %v13886_v13, %v13734_v16 }
 0x98f   : > { %v21388_v36 = vpop.f32.mrf.mxu1  ;;  %v14006_v0 = vpop.f32.mrf.mxu0  ;;  %v13571_v62 = vadd.f32 %v13501_v21, %v21931_v24  ;;  %v13737_v21 = vadd.f32 %v13666_v38, %v13564_v59  ;;  %v13906_v40 = vadd.f32 %v13835_v53, %v13733_v51 }
 0x990   : > { %21923 = vst [vmem:[#allocation11_spill] sm:$0xff] %v21388_v36  ;;  %v13565_v36 = vadd.f32 %v13544_v18, %v21360_v47  ;;  %v21932_v18 = vld [vmem:[#allocation16_spill] sm:$0xff]  ;;  %v13736_v30 = vadd.f32 %v13664_v60, %v13563_v49  ;;  %v13908_v49 = vadd.f32 %v13888_v25, %v13735_v9 }
 0x991   : > { %v21390_v55 = vpop.f32.mrf.mxu1  ;;  %v21392_v34 = vpop.f32.mrf.mxu0  ;;  %v13573_v47 = vadd.f32 %v13554_v19, %v21932_v18  ;;  %v13910_v59 = vadd.f32 %v13839_v10, %v13737_v21 }
 0x992   : > { %21924 = vst [vmem:[#allocation21_spill] sm:$0xff] %v21390_v55  ;;  %21925 = vst [vmem:[#allocation22_spill] sm:$0xff] %v21392_v34  ;;  %v13566_v55 = vadd.f32 %v13546_v22, %v21364_v23  ;;  %v21934_v22 = vld [vmem:[#allocation10_spill] sm:$0xff]  ;;  %v13738_v63 = vadd.f32 %v13717_v8, %v13565_v36  ;;  %v13909_v8 = vadd.f32 %v13837_v54, %v13736_v30 }
 0x993   : > { %v21394_v32 = vpop.f32.mrf.mxu1  ;;  %v14010_v61 = vpop.f32.mrf.mxu0  ;;  %v13574_v23 = vadd.f32 %v13556_v29, %v21934_v22  ;;  %v13743_v22 = vadd.f32 %v13725_v20, %v13570_v6 }
 0x994   : > { %21926 = vst [vmem:[#allocation23_spill] sm:$0xff] %v21394_v32  ;;  %v21927_v32 = vld [vmem:[#allocation18_spill] sm:$0xff]  ;;  %v13739_v24 = vadd.f32 %v13719_v27, %v13566_v55  ;;  %v13911_v36 = vadd.f32 %v13890_v44, %v13738_v63  ;;  %v14082_v35 = vadd.f32 %v14010_v61, %v13909_v8 }
 0x995   : > { %v14063_v34 = vpop.f32.mrf.mxu1  ;;  %v13567_v15 = vadd.f32 %v13497_v14, %v21927_v32  ;;  %v14012_v58 = vpop.f32.mrf.mxu0  ;;  %v13732_v32 = vadd.f32 %v13660_v41, %v13559_v5  ;;  %v13744_v5 = vadd.f32 %v13674_v50, %v13571_v62  ;;  %v13746_v41 = vadd.f32 %v13727_v57, %v13573_v47  ;;  %v21935_v50 = vld [vmem:[#allocation20_spill] sm:$0xff]  ;;  %v21936_v45 = vld [vmem:[#allocation17_spill] sm:$0xff] }
 0x996   : > { %v13747_v42 = vadd.f32 %v13729_v26, %v13574_v23  ;;  %v13912_v55 = vadd.f32 %v13892_v1, %v13739_v24  ;;  %v13916_v31 = vadd.f32 %v13898_v28, %v13743_v22  ;;  %v14084_v28 = vadd.f32 %v14063_v34, %v13911_v36 }
 0x997   : > { %v14065_v14 = vpop.f32.mrf.mxu1  ;;  %v14016_v52 = vpop.f32.mrf.mxu0  ;;  %v13740_v19 = vadd.f32 %v13670_v3, %v13567_v15  ;;  %v13905_v33 = vadd.f32 %v13833_v7, %v13732_v32  ;;  %v13915_v3 = vadd.f32 %v13896_v48, %v13742_v4  ;;  %v13917_v57 = vadd.f32 %v21935_v50, %v13744_v5  ;;  %v21937_v15 = vld [vmem:[#allocation14_spill] sm:$0xff]  ;;  %v21938_v25 = vld [vmem:[#allocation11_spill] sm:$0xff] }
 0x998   : > { %v13919_v26 = vadd.f32 %v21936_v45, %v13746_v41  ;;  %v13918_v7 = vadd.f32 %v21937_v15, %v13745_v12  ;;  %v13920_v39 = vadd.f32 %v21938_v25, %v13747_v42  ;;  %v14083_v6 = vadd.f32 %v14012_v58, %v13910_v59  ;;  %v308_v41 = vld [vmem:[%s21540_s7] sm:$0xff]  ;;  %v21945_v25 = vld [vmem:[#allocation7_spill] sm:$0xff] }
 0x999   : > { %v14069_v18 = vpop.f32.mrf.mxu1  ;;  %v14018_v29 = vpop.f32.mrf.mxu0  ;;  %v13913_v27 = vadd.f32 %v13843_v43, %v13740_v19  ;;  %v14078_v13 = vadd.f32 %v14006_v0, %v13905_v33  ;;  %v21939_v54 = vld [vmem:[#allocation21_spill] sm:$0xff]  ;;  %v21940_v10 = vld [vmem:[#allocation22_spill] sm:$0xff]  ;;  %v14085_v23 = vadd.f32 %v14065_v14, %v13912_v55  ;;  %v21943_v55 = vld [vmem:[#allocation4_spill] sm:$0xff] }
 0x99a   : > { %v14080_v44 = vadd.f32 %v21939_v54, %v13907_v37  ;;  %v14079_v1 = vadd.f32 %v21940_v10, %v13906_v40  ;;  %v21419_v0 = vadd.f32 %v14069_v18, %v13915_v3  ;;  %v21421_v9 = vadd.f32 %v14018_v29, %v13914_v46  ;;  %v14280_v29 = vpop.permute.xlu1 %14279  ;;  %v21942_v37 = vld [vmem:[#allocation5_spill] sm:$0xff]  ;;  %v312_v54 = vld [vmem:[%s21540_s7 + $0x20] sm:$0xff] }
 0x99b   : > { %v14071_v2 = vpop.f32.mrf.mxu1  ;;  %v14020_v60 = vpop.f32.mrf.mxu0  ;;  %v21941_v56 = vld [vmem:[#allocation23_spill] sm:$0xff]  ;;  %v14086_v32 = vadd.f32 %v14016_v52, %v13913_v27  ;;  %v309_v27 = vld [vmem:[%s21540_s7 + $0x8] sm:$0xff] }
 0x99c   : > { %v14081_v43 = vadd.f32 %v21941_v56, %v13908_v49  ;;  %v21423_v30 = vadd.f32 %v14071_v2, %v13916_v31  ;;  %v21425_v61 = vadd.f32 %v14020_v60, %v13917_v57  ;;  %v310_v49 = vld [vmem:[%s21540_s7 + $0x10] sm:$0xff] }
 0x99d   : > { %v14073_v38 = vpop.f32.mrf.mxu1  ;;  %v14022_v20 = vpop.f32.mrf.mxu0  ;;  %v21944_v57 = vld [vmem:[#allocation6_spill] sm:$0xff] }
 0x99e   : > { %v21427_v34 = vadd.f32 %v14073_v38, %v13919_v26  ;;  %v21429_v19 = vadd.f32 %v14022_v20, %v13918_v7  ;;  %v311_v26 = vld [vmem:[%s21540_s7 + $0x18] sm:$0xff] }
 0x99f   : > { %v14075_v53 = vpop.f32.mrf.mxu1  ;;  %v14179_v48 = vpop.f32.mrf.mxu0 }
 0x9a0   : > { %v14251_v62 = vadd.f32 %v14179_v48, %v14078_v13  ;;  %v21432_v5 = vadd.f32 %v14075_v53, %v13920_v39  ;;  %v314_v48 = vld [vmem:[%s21540_s7 + $0x30] sm:$0xff] }
 0x9a1   : > { %v14232_v47 = vpop.f32.mrf.mxu1  ;;  %v14181_v51 = vpop.f32.mrf.mxu0 }
 0x9a2   : > { %v14253_v16 = vadd.f32 %v14232_v47, %v14080_v44  ;;  %v14292_v63 = vadd.f32 %v14275_v11, %v14251_v62  ;;  %v14252_v21 = vadd.f32 %v14181_v51, %v14079_v1  ;;  %v14285_v62 = vpop.permute.xlu0 %14284 }
 0x9a3   : > { %v14234_v24 = vpop.f32.mrf.mxu1  ;;  %v14183_v52 = vpop.f32.mrf.mxu0 }
 0x9a4   : > { %v14294_v58 = vadd.f32 %v14275_v11, %v14253_v16  ;;  %v14254_v14 = vadd.f32 %v14234_v24, %v14081_v43  ;;  %v14308_v18 = vmax.f32 %v14292_v63, 0.0  ;;  %v14293_v4 = vadd.f32 %v14275_v11, %v14252_v21  ;;  %v315_v24 = vld [vmem:[%s21540_s7 + $0x38] sm:$0xff] }
 0x9a5   : > { %v14255_v17 = vadd.f32 %v14183_v52, %v14082_v35  ;;  %v14236_v22 = vpop.f32.mrf.mxu1  ;;  %v14185_v33 = vpop.f32.mrf.mxu0 }
 0x9a6   : > { %v14310_v12 = vmax.f32 %v14294_v58, 0.0  ;;  %v14295_v42 = vadd.f32 %v14275_v11, %v14254_v14  ;;  %v14257_v2 = vadd.f32 %v14236_v22, %v14084_v28  ;;  %v14324_v40 = vmul.f32 %v14308_v18, %v21942_v37 }
 0x9a7   : > { %v14309_v60 = vmax.f32 %v14293_v4, 0.0  ;;  %v14296_v8 = vadd.f32 %v14280_v29, %v14255_v17  ;;  %v14256_v36 = vadd.f32 %v14185_v33, %v14083_v6  ;;  %v14238_v59 = vpop.f32.mrf.mxu1  ;;  %v14189_v20 = vpop.f32.mrf.mxu0 }
 0x9a8   : > { %v14326_v38 = vmul.f32 %v14310_v12, %v21943_v55  ;;  %v14311_v3 = vmax.f32 %v14295_v42, 0.0  ;;  %v14298_v46 = vadd.f32 %v14280_v29, %v14257_v2  ;;  %v14258_v31 = vadd.f32 %v14238_v59, %v14085_v23  ;;  %v313_v23 = vld [vmem:[%s21540_s7 + $0x28] sm:$0xff] }
 0x9a9   : > { %v14340_v50 = vadd.f32 %v14324_v40, %v308_v41  ;;  %v14325_v45 = vmul.f32 %v14309_v60, %v21944_v57  ;;  %v14312_v15 = vmax.f32 %v14296_v8, 0.0  ;;  %v14297_v7 = vadd.f32 %v14280_v29, %v14256_v36  ;;  %v14242_v13 = vpop.f32.mrf.mxu1  ;;  %v14191_v1 = vpop.f32.mrf.mxu0  ;;  %v316_v40 = vld [vmem:[%s21540_s7 + $0x40] sm:$0xff]  ;;  %v318_v36 = vld [vmem:[%s21540_s7 + $0x50] sm:$0xff] }
 0x9aa   : > { %v14342_v53 = vadd.f32 %v14326_v38, %v310_v49  ;;  %v14327_v39 = vmul.f32 %v14311_v3, %v21945_v25  ;;  %v14314_v44 = vmax.f32 %v14298_v46, 0.0  ;;  %v14299_v10 = vadd.f32 %v14280_v29, %v14258_v31 }
 0x9ab   : > { %14356 = vst [vmem:[%s21444_s25] sm:$0xff] %v14340_v50  ;;  %v14341_v56 = vadd.f32 %v14325_v45, %v309_v27  ;;  %v14328_v43 = vmul.f32 %v14312_v15, %v21942_v37  ;;  %v14313_v35 = vmax.f32 %v14297_v7, 0.0  ;;  %v14259_v28 = vadd.f32 %v14189_v20, %v14086_v32  ;;  %v14244_v6 = vpop.f32.mrf.mxu1  ;;  %v14193_v63 = vpop.f32.mrf.mxu0 }
 0x9ac   : > { %14358 = vst [vmem:[%s21444_s25 + $0x10] sm:$0xff] %v14342_v53  ;;  %v14343_v47 = vadd.f32 %v14327_v39, %v311_v26  ;;  %v14330_v11 = vmul.f32 %v14314_v44, %v21943_v55  ;;  %v14315_v16 = vmax.f32 %v14299_v10, 0.0  ;;  %v14261_v51 = vadd.f32 %v14242_v13, %v21419_v0  ;;  %v320_v13 = vld [vmem:[%s21540_s7 + $0x60] sm:$0xff]  ;;  %v322_v44 = vld [vmem:[%s21540_s7 + $0x70] sm:$0xff] }
 0x9ad   : > { %14357 = vst [vmem:[%s21444_s25 + $0x8] sm:$0xff] %v14341_v56  ;;  %v14344_v21 = vadd.f32 %v14328_v43, %v312_v54  ;;  %v14329_v32 = vmul.f32 %v14313_v35, %v21944_v57  ;;  %v14300_v58 = vadd.f32 %v14285_v62, %v14259_v28  ;;  %v14260_v14 = vadd.f32 %v14191_v1, %v21421_v9  ;;  %v14246_v52 = vpop.f32.mrf.mxu1  ;;  %v14195_v22 = vpop.f32.mrf.mxu0  ;;  %v321_v43 = vld [vmem:[%s21540_s7 + $0x68] sm:$0xff]  ;;  %v323_v28 = vld [vmem:[%s21540_s7 + $0x78] sm:$0xff] }
 0x9ae   : > { %14360 = vst.msk [vmem:[%s21444_s25 + $0x18] sm:$0xff] %vm14359_vm8, %v14343_v47  ;;  %v14346_v18 = vadd.f32 %v14330_v11, %v314_v48  ;;  %v14331_v4 = vmul.f32 %v14315_v16, %v21945_v25  ;;  %v14302_v0 = vadd.f32 %v14285_v62, %v14261_v51  ;;  %v14262_v17 = vadd.f32 %v14244_v6, %v21423_v30  ;;  %v14290_v9 = vpop.permute.xlu1 %14289 }
 0x9af   : > { %14361 = vst [vmem:[%s21444_s25 + $0x20] sm:$0xff] %v14344_v21  ;;  %v14345_v29 = vadd.f32 %v14329_v32, %v313_v23  ;;  %v14316_v41 = vmax.f32 %v14300_v58, 0.0  ;;  %v14301_v12 = vadd.f32 %v14285_v62, %v14260_v14  ;;  %v14263_v42 = vadd.f32 %v14193_v63, %v21425_v61  ;;  %v14248_v2 = vpop.f32.mrf.mxu1 }
 0x9b0   : > { %14363 = vst [vmem:[%s21444_s25 + $0x30] sm:$0xff] %v14346_v18  ;;  %v14347_v33 = vadd.f32 %v14331_v4, %v315_v24  ;;  %v14318_v49 = vmax.f32 %v14302_v0, 0.0  ;;  %v14303_v60 = vadd.f32 %v14285_v62, %v14262_v17  ;;  %v14265_v30 = vadd.f32 %v14246_v52, %v21427_v34  ;;  %v317_v34 = vld [vmem:[%s21540_s7 + $0x48] sm:$0xff] }
 0x9b1   : > { %14362 = vst [vmem:[%s21444_s25 + $0x28] sm:$0xff] %v14345_v29  ;;  %v14332_v8 = vmul.f32 %v14316_v41, %v21942_v37  ;;  %v14317_v61 = vmax.f32 %v14301_v12, 0.0  ;;  %v14304_v59 = vadd.f32 %v14290_v9, %v14263_v42  ;;  %v14264_v38 = vadd.f32 %v14195_v22, %v21429_v19  ;;  %v319_v19 = vld [vmem:[%s21540_s7 + $0x58] sm:$0xff] }
 0x9b2   : > { %14364 = vst.msk [vmem:[%s21444_s25 + $0x38] sm:$0xff] %vm14359_vm8, %v14347_v33  ;;  %v14334_v27 = vmul.f32 %v14318_v49, %v21943_v55  ;;  %v14319_v3 = vmax.f32 %v14303_v60, 0.0  ;;  %v14306_v46 = vadd.f32 %v14290_v9, %v14265_v30  ;;  %v14266_v31 = vadd.f32 %v14248_v2, %v21432_v5 }
 0x9b3   : > { %v14348_v20 = vadd.f32 %v14332_v8, %v316_v40  ;;  %v14333_v50 = vmul.f32 %v14317_v61, %v21944_v57  ;;  %v14320_v45 = vmax.f32 %v14304_v59, 0.0  ;;  %v14305_v26 = vadd.f32 %v14290_v9, %v14264_v38 }
 0x9b4   : > { %v14350_v15 = vadd.f32 %v14334_v27, %v318_v36  ;;  %v14335_v7 = vmul.f32 %v14319_v3, %v21945_v25  ;;  %v14322_v53 = vmax.f32 %v14306_v46, 0.0  ;;  %v14307_v5 = vadd.f32 %v14290_v9, %v14266_v31 }
 0x9b5   : > { %14365 = vst [vmem:[%s21444_s25 + $0x40] sm:$0xff] %v14348_v20  ;;  %v14349_v39 = vadd.f32 %v14333_v50, %v317_v34  ;;  %v14336_v54 = vmul.f32 %v14320_v45, %v21942_v37  ;;  %v14321_v10 = vmax.f32 %v14305_v26, 0.0 }
 0x9b6   : > { %14367 = vst [vmem:[%s21444_s25 + $0x50] sm:$0xff] %v14350_v15  ;;  %v14351_v1 = vadd.f32 %v14335_v7, %v319_v19  ;;  %v14338_v56 = vmul.f32 %v14322_v53, %v21943_v55  ;;  %v14323_v48 = vmax.f32 %v14307_v5, 0.0 }
 0x9b7   : > { %14366 = vst [vmem:[%s21444_s25 + $0x48] sm:$0xff] %v14349_v39  ;;  %v14352_v35 = vadd.f32 %v14336_v54, %v320_v13  ;;  %v14337_v37 = vmul.f32 %v14321_v10, %v21944_v57 }
 0x9b8   : > { %14368 = vst.msk [vmem:[%s21444_s25 + $0x58] sm:$0xff] %vm14359_vm8, %v14351_v1  ;;  %v14354_v6 = vadd.f32 %v14338_v56, %v322_v44  ;;  %v14339_v62 = vmul.f32 %v14323_v48, %v21945_v25 }
 0x9b9   : > { %14369 = vst [vmem:[%s21444_s25 + $0x60] sm:$0xff] %v14352_v35  ;;  %v14353_v55 = vadd.f32 %v14337_v37, %v321_v43 }
 0x9ba   : > { %14371 = vst [vmem:[%s21444_s25 + $0x70] sm:$0xff] %v14354_v6  ;;  %v14355_v47 = vadd.f32 %v14339_v62, %v323_v28 }
 0x9bb   : > { %14370 = vst [vmem:[%s21444_s25 + $0x68] sm:$0xff] %v14353_v55 }
 0x9bc   : > { %14372 = vst.msk [vmem:[%s21444_s25 + $0x78] sm:$0xff] %vm14359_vm8, %v14355_v47 }
 0x9bd PF: > { %s18_s27 = sadd.s32 1, %s15596_s27  }
 0x9be   : > { %p15_p4 = scmp.ge.s32.totalorder %s18_s27, 4  }
 0x9c0   :  { %17 = sbr.rel (!%p15_p4) target bundleno = 1 (0x1), region = 157 }

</bundles_post_ra>
